<compile_context>
chip_gen: v7x
topology: tpu7x:2x2x1
jax: 0.10.0
libtpu: 0.0.40
codegen_flags: <defaults>
</compile_context>

<pallas_src>
import functools

import jax
import jax.numpy as jnp
import numpy as np
from jax.experimental import pallas as pl
from jax.experimental.pallas import tpu as pltpu

# ----------------------------- small config ---------------------------------
NUM_FRAMES = 2
IN_CHANNELS = 3
HIDDEN_SIZE = 4                 # token grid per frame -> 16 tokens
DIM = 32
DEPTH = 2
HEADS = 2
DIM_HEAD = 16
SCALE_DIM = 2                   # mlp dim = DIM * SCALE_DIM
IMAGE_SIZE = HIDDEN_SIZE * 16   # 4 stride-2 convs down (enc) / 4 x2 ups (dec)
BATCH = 1

_PARALLEL1 = pltpu.CompilerParams(dimension_semantics=("parallel",))


# ----------------------------- kernel helpers --------------------------------
def _bcast_spec(a):
    """Full-array block, same block for every grid step (weights / biases)."""
    nd = a.ndim
    return pl.BlockSpec(a.shape, lambda *_: (0,) * nd)


def _mxu(a, b):
    """bf16-operand MXU matmul with f32 accumulation."""
    return jnp.dot(a.astype(jnp.bfloat16), b.astype(jnp.bfloat16),
                   preferred_element_type=jnp.float32)


def _layernorm(v, g, b, eps=1e-5):
    mu = jnp.mean(v, axis=-1, keepdims=True)
    var = jnp.mean(jnp.square(v - mu), axis=-1, keepdims=True)
    return (v - mu) * jax.lax.rsqrt(var + eps) * g + b


# ----------------------------- conv stem --------------------------------------
def _linear_gelu_kernel(a_ref, w_ref, b_ref, o_ref):
    o_ref[...] = jax.nn.gelu(_mxu(a_ref[...], w_ref[...]) + b_ref[...])


def pallas_linear_gelu(a, w, b):
    """Single-block (no-grid) fused linear+GELU; whole operands in VMEM."""
    M, _ = a.shape
    N = w.shape[1]
    return pl.pallas_call(
        _linear_gelu_kernel,
        out_shape=jax.ShapeDtypeStruct((M, N), jnp.float32),
    )(a.astype(jnp.float32), w, b)


def extract_patches_s2(x):
    """3x3 patches, stride 2, pad 1 (pure data movement, stays in XLA)."""
    B, H, W, C = x.shape
    xp = jnp.pad(x, ((0, 0), (1, 1), (1, 1), (0, 0)))
    cols = []
    for di in range(3):
        for dj in range(3):
            cols.append(xp[:, di:di + H:2, dj:dj + W:2, :])
    return jnp.concatenate(cols, axis=-1)          # (B, H//2, W//2, 9*C)


def conv_stem_forward(stem_params, x):
    # x: (BT, H, W, C) channel-last; each stage writes a lane-dense
    # (BT*Ho, Wo*cout) slab via a kron/block-diagonal weight.
    for wk, bk in stem_params:
        p = extract_patches_s2(x)
        BT, Ho, Wo, K = p.shape
        y = pallas_linear_gelu(p.reshape(BT * Ho, Wo * K), wk, bk)
        x = y.reshape(BT, Ho, Wo, -1)
    return x


# -------------------- fused transformer stack (+ optional LeFF) --------------
_TX_KEYS = ("ln1_g", "ln1_b", "w_qkv", "w_out", "b_out",
            "ln2_g", "ln2_b", "w_ff1", "b_ff1", "w_ff2", "b_ff2")
_LEFF_KEYS = ("w1", "b1", "w_dw", "b_dw", "scat", "w2", "b2")


def _tx_block_kernel(*refs, n_add, depth, heads, dh, scale, use_leff):
    x_ref = refs[0]
    add_refs = refs[1:1 + n_add]
    idx = 1 + n_add
    (g1_ref, b1_ref, wqkv_ref, wo_ref, bo_ref,
     g2_ref, b2_ref, wf1_ref, bf1_ref, wf2_ref, bf2_ref) = refs[idx:idx + 11]
    idx += 11
    if use_leff:
        (lw1_ref, lb1_ref, lwdw_ref, lbdw_ref, lscat_ref,
         lw2_ref, lb2_ref) = refs[idx:idx + 7]
        idx += 7
    o_ref = refs[idx]

    x = x_ref[0]                                     # (n, D) tokens of one frame
    for a_ref in add_refs:                           # folded pos / src+fake adds
        x = x + a_ref[0]

    inner = heads * dh
    for l in range(depth):                           # both layers in one kernel
        # ---- multi-head self attention (pre-norm): one qkv matmul -----------
        h = _layernorm(x, g1_ref[l], b1_ref[l])
        qkv = _mxu(h, wqkv_ref[l])                   # (n, 3*inner)
        q = qkv[:, :inner]
        k = qkv[:, inner:2 * inner]
        v = qkv[:, 2 * inner:]
        outs = []
        for hh in range(heads):
            qh = q[:, hh * dh:(hh + 1) * dh]
            kh = k[:, hh * dh:(hh + 1) * dh]
            vh = v[:, hh * dh:(hh + 1) * dh]
            s = jax.lax.dot_general(qh, kh, (((1,), (1,)), ((), ())),
                                    preferred_element_type=jnp.float32) * scale
            s = s - jnp.max(s, axis=-1, keepdims=True)
            p = jnp.exp(s)
            p = p * pl.reciprocal(jnp.sum(p, axis=-1, keepdims=True), approx=True)
            outs.append(jnp.dot(p, vh, preferred_element_type=jnp.float32))
        o = jnp.concatenate(outs, axis=-1)           # (n, inner)
        x = x + _mxu(o, wo_ref[l]) + bo_ref[l]       # single out-projection

        # ---- feed-forward (pre-norm) -----------------------------------------
        h2 = _layernorm(x, g2_ref[l], b2_ref[l])
        f = jax.nn.gelu(_mxu(h2, wf1_ref[l]) + bf1_ref[l])
        x = x + _mxu(f, wf2_ref[l]) + bf2_ref[l]

    if use_leff:
        # Residual(LeFF): linear -> depthwise 3x3 (one matmul) -> linear
        lh = jax.nn.gelu(_mxu(x, lw1_ref[...]) + lb1_ref[...])        # (n, hd)
        hs = jnp.concatenate([lh * lwdw_ref[t:t + 1, :] for t in range(9)],
                             axis=0)                                   # (9n, hd)
        dw = jax.nn.gelu(_mxu(lscat_ref[...], hs) + lbdw_ref[...])     # (n, hd)
        x = x + _mxu(dw, lw2_ref[...]) + lb2_ref[...]

    o_ref[0] = x


def fused_transformer_block(tparams, x3d, adds, leff=None):
    B, n, D = x3d.shape
    tile3 = pl.BlockSpec((1, n, D), lambda b: (b, 0, 0))
    weights = [tparams[k] for k in _TX_KEYS]
    if leff is not None:
        weights += [leff[k] for k in _LEFF_KEYS]
    args = [x3d] + list(adds) + weights
    in_specs = [tile3] * (1 + len(adds)) + [_bcast_spec(w) for w in weights]
    return pl.pallas_call(
        functools.partial(_tx_block_kernel, n_add=len(adds), depth=DEPTH,
                          heads=HEADS, dh=DIM_HEAD, scale=DIM_HEAD ** -0.5,
                          use_leff=leff is not None),
        grid=(B,),
        in_specs=in_specs,
        out_specs=tile3,
        out_shape=jax.ShapeDtypeStruct((B, n, D), jnp.float32),
        compiler_params=_PARALLEL1,
    )(*args)


def build_leff_shift_mats(hw):
    """0/1 matrices realizing the 9 taps of a zero-padded 3x3 depthwise conv."""
    n = hw * hw
    m = np.zeros((9, n, n), np.float32)
    for di in range(3):
        for dj in range(3):
            t = di * 3 + dj
            for i in range(hw):
                for j in range(hw):
                    ii, jj = i + di - 1, j + dj - 1
                    if 0 <= ii < hw and 0 <= jj < hw:
                        m[t, i * hw + j, ii * hw + jj] = 1.0
    return jnp.asarray(m)


# ----------------------------- decoder tail -----------------------------------
def _dec_tail_kernel(x_ref, w0_ref, b0_ref, w1_ref, b1_ref, w2_ref, b2_ref,
                     w3_ref, b3_ref, o_ref):
    # Whole UpperSample chain as a per-token MLP (kron-expanded weights), then
    # last stage's two output channels are split, GELU'd, averaged, sigmoid'd.
    y = jax.nn.gelu(_mxu(x_ref[...], w0_ref[...]) + b0_ref[...])
    y = jax.nn.gelu(_mxu(y, w1_ref[...]) + b1_ref[...])
    y = jax.nn.gelu(_mxu(y, w2_ref[...]) + b2_ref[...])
    y = _mxu(y, w3_ref[...]) + b3_ref[...]
    half = y.shape[-1] // 2
    ya = jax.nn.gelu(y[:, :half])
    yb = jax.nn.gelu(y[:, half:])
    o_ref[...] = jax.nn.sigmoid(0.5 * (ya + yb))


def decoder_tail_forward(tail_params, tokens):
    BT, n, d = tokens.shape
    expand = (IMAGE_SIZE // HIDDEN_SIZE) ** 2            # 256 pixels per token
    x2 = tokens.reshape(BT * n, d)
    args = [x2]
    for wk, bk in tail_params:
        args += [wk, bk]
    out = pl.pallas_call(
        _dec_tail_kernel,
        out_shape=jax.ShapeDtypeStruct((BT * n, expand), jnp.float32),
    )(*args)
    # Morton-ordered pixel columns -> image (pure data movement, stays in XLA).
    hs = HIDDEN_SIZE
    out = out.reshape(BT, hs, hs, 2, 2, 2, 2, 2, 2, 2, 2)
    out = out.transpose(0, 1, 3, 5, 7, 9, 2, 4, 6, 8, 10)
    img = out.reshape(BT, IMAGE_SIZE, IMAGE_SIZE)
    return img.reshape(BATCH, NUM_FRAMES, IMAGE_SIZE, IMAGE_SIZE)


# ----------------------------- model pieces ----------------------------------
def encoder_forward(params, x):
    # x: (b, T, c, H, W) NCHW-style input; T may stack multiple clips' frames.
    b, T, c, H, W = x.shape
    xi = x.reshape(b * T, c, H, W).transpose(0, 2, 3, 1)          # channel-last
    xi = conv_stem_forward(params["stem"], xi)                    # (bT, hs, hs, DIM)
    n = HIDDEN_SIZE * HIDDEN_SIZE
    tokens = xi.reshape(b * T, n, DIM)
    pos = jnp.tile(params["pos"][0], (b * (T // NUM_FRAMES), 1, 1))
    # pos add folded into layer-0; both layers + Residual(LeFF) in one kernel
    return fused_transformer_block(params["transformer"], tokens,
                                   adds=[pos], leff=params["leff"])


def decoder_forward(params, src, fake):
    BT, n, d = src.shape
    pos = jnp.broadcast_to(params["pos"], (BT, n, d))
    # x = src + fake + pos folded into the layer-0 kernel
    x = fused_transformer_block(params["transformer"], src, adds=[fake, pos])
    return decoder_tail_forward(params["tail"], x)


def generator_forward(params, x0, x1):
    # Batch both encoder passes into one by stacking clips on the frame axis.
    x = jnp.concatenate([x0, x1], axis=1)                         # (b, 2T, c, H, W)
    tokens = encoder_forward(params["enc"], x)                    # (b*2T, n, d)
    n, d = tokens.shape[1], tokens.shape[2]
    tokens = tokens.reshape(BATCH, 2, NUM_FRAMES, n, d)
    src = tokens[:, 0].reshape(BATCH * NUM_FRAMES, n, d)
    fake = tokens[:, 1].reshape(BATCH * NUM_FRAMES, n, d)
    return decoder_forward(params["dec"], src, fake)


# ----------------------------- parameter init --------------------------------
def init_params(key):
    keys = iter(jax.random.split(key, 64))

    def nrm(shape, scale):
        return jax.random.normal(next(keys), shape, jnp.float32) * scale

    def init_transformer(dim, depth, heads, dim_head, mlp_dim):
        inner = heads * dim_head
        layers = []
        for _ in range(depth):
            layers.append(dict(
                ln1_g=jnp.ones((1, dim), jnp.float32),
                ln1_b=jnp.zeros((1, dim), jnp.float32),
                w_qkv=nrm((dim, 3 * inner), dim ** -0.5),
                w_out=nrm((inner, dim), inner ** -0.5),
                b_out=jnp.zeros((1, dim), jnp.float32),
                ln2_g=jnp.ones((1, dim), jnp.float32),
                ln2_b=jnp.zeros((1, dim), jnp.float32),
                w_ff1=nrm((dim, mlp_dim), dim ** -0.5),
                b_ff1=jnp.zeros((1, mlp_dim), jnp.float32),
                w_ff2=nrm((mlp_dim, dim), mlp_dim ** -0.5),
                b_ff2=jnp.zeros((1, dim), jnp.float32),
            ))
        # stack per-layer weights so one kernel can loop over layers
        return {k: jnp.stack([lyr[k] for lyr in layers]) for k in layers[0]}

    # conv stem: standard 4-stage stride-2 3x3 + GELU; weights kron-expanded at
    # init so each stage's Pallas output is a lane-dense (rows, 128) slab.
    chans = [IN_CHANNELS, DIM // 8, DIM // 4, DIM // 2, DIM]
    stem = []
    hw = IMAGE_SIZE
    for cin, cout in zip(chans[:-1], chans[1:]):
        hw //= 2
        w = nrm((9 * cin, cout), (9 * cin) ** -0.5)
        wk = jnp.kron(jnp.eye(hw, dtype=jnp.float32), w)    # (hw*9cin, hw*cout)
        bk = jnp.zeros((1, hw * cout), jnp.float32)
        stem.append((wk, bk))

    hd = 4 * DIM
    smat = build_leff_shift_mats(HIDDEN_SIZE)
    leff = dict(
        w1=nrm((DIM, hd), DIM ** -0.5), b1=jnp.zeros((1, hd), jnp.float32),
        w_dw=nrm((9, hd), 1.0 / 3.0), b_dw=jnp.zeros((1, hd), jnp.float32),
        scat=jnp.concatenate([smat[t] for t in range(9)], axis=1),   # (n, 9n)
        w2=nrm((hd, DIM), hd ** -0.5), b2=jnp.zeros((1, DIM), jnp.float32),
    )

    enc = dict(
        pos=nrm((1, NUM_FRAMES, HIDDEN_SIZE ** 2, DIM), 1.0),
        stem=stem,
        transformer=init_transformer(DIM, DEPTH, HEADS, DIM_HEAD, DIM * SCALE_DIM),
        leff=leff,
    )

    # decoder UpperSample chain (ConvT k=2,s=2 + GELU) kron-expanded at init so
    # the whole chain + channel-mean + sigmoid is one per-token MLP whose output
    # columns enumerate the token's 16x16 pixel block in Morton order.
    tail = []
    c = DIM
    for s in range(4):
        cout = c // 2
        w = nrm((c, 4 * cout), c ** -0.5)        # cols ordered (2x2 quadrant, channel)
        b = jnp.zeros((4 * cout,), jnp.float32)
        q = 4 ** s
        eye = jnp.eye(q, dtype=jnp.float32)
        if s < 3:
            wk = jnp.kron(eye, w)
            bk = jnp.tile(b, q).reshape(1, -1)
        else:
            w_a, w_b = w[:, 0::2], w[:, 1::2]     # split the 2 output channels
            b_a, b_b = b[0::2], b[1::2]
            wk = jnp.concatenate([jnp.kron(eye, w_a), jnp.kron(eye, w_b)], axis=1)
            bk = jnp.concatenate([jnp.tile(b_a, q), jnp.tile(b_b, q)]).reshape(1, -1)
        tail.append((wk, bk))
        c = cout

    dec = dict(
        pos=nrm((1, HIDDEN_SIZE ** 2, DIM), 1.0),
        transformer=init_transformer(DIM, DEPTH, HEADS, DIM_HEAD, DIM * SCALE_DIM),
        tail=tail,
    )
    return {"enc": enc, "dec": dec}


# ----------------------------- main -------------------------------------------
if __name__ == "__main__":
    key = jax.random.PRNGKey(0)
    kp, k0, k1 = jax.random.split(key, 3)
    params = init_params(kp)

    x0 = jax.random.normal(k0, (BATCH, NUM_FRAMES, IN_CHANNELS, IMAGE_SIZE, IMAGE_SIZE),
                           jnp.float32)
    x1 = jax.random.normal(k1, (BATCH, NUM_FRAMES, IN_CHANNELS, IMAGE_SIZE, IMAGE_SIZE),
                           jnp.float32)

    fwd = jax.jit(generator_forward)
    out = jax.block_until_ready(fwd(params, x0, x1))

    assert out.shape == (BATCH, NUM_FRAMES, IMAGE_SIZE, IMAGE_SIZE), out.shape
    assert bool(jnp.all(jnp.isfinite(out)))
    assert bool(jnp.all((out >= 0.0) & (out <= 1.0)))   # sigmoid output range
    print("KERNEL_OK")
</pallas_src>

<mosaic_0001>
module attributes {stable_mosaic.version = 11 : i64} {
  func.func @_linear_gelu_kernel(%arg0: memref<128x864xf32, #tpu.memory_space<vmem>>, %arg1: memref<864x128xf32, #tpu.memory_space<vmem>>, %arg2: memref<1x128xf32, #tpu.memory_space<vmem>>, %arg3: memref<128x128xf32, #tpu.memory_space<vmem>>) attributes {dimension_semantics = [], scalar_prefetch = 0 : i64, scratch_operands = 0 : i64, tpu.core_type = #tpu.core_type<tc>} {
    %c0 = arith.constant 0 : index
    %c0_0 = arith.constant 0 : index
    %0 = vector.load %arg0[%c0, %c0_0] : memref<128x864xf32, #tpu.memory_space<vmem>>, vector<128x864xf32>
    %c0_1 = arith.constant 0 : index
    %c0_2 = arith.constant 0 : index
    %1 = vector.load %arg1[%c0_1, %c0_2] : memref<864x128xf32, #tpu.memory_space<vmem>>, vector<864x128xf32>
    %2 = arith.truncf %0 : vector<128x864xf32> to vector<128x864xbf16>
    %3 = arith.truncf %1 : vector<864x128xf32> to vector<864x128xbf16>
    %cst = arith.constant dense<0.000000e+00> : vector<128x128xf32>
    %4 = tpu.matmul %2, %3, %cst {dimension_numbers = #tpu.dot_dimension_numbers<[1], [0], [0], [1], [0, 0, 1, 1], [], []>} : vector<128x864xbf16>, vector<864x128xbf16>, vector<128x128xf32> -> vector<128x128xf32>
    %c0_3 = arith.constant 0 : index
    %c0_4 = arith.constant 0 : index
    %5 = vector.load %arg2[%c0_3, %c0_4] : memref<1x128xf32, #tpu.memory_space<vmem>>, vector<1x128xf32>
    %6 = vector.broadcast %5 : vector<1x128xf32> to vector<128x128xf32>
    %7 = arith.addf %4, %6 : vector<128x128xf32>
    %8 = arith.mulf %7, %7 : vector<128x128xf32>
    %9 = arith.mulf %7, %8 : vector<128x128xf32>
    %cst_5 = arith.constant 4.471500e-02 : f32
    %10 = vector.broadcast %cst_5 : f32 to vector<128x128xf32>
    %11 = arith.mulf %10, %9 : vector<128x128xf32>
    %12 = arith.addf %7, %11 : vector<128x128xf32>
    %cst_6 = arith.constant 0.797884583 : f32
    %13 = vector.broadcast %cst_6 : f32 to vector<128x128xf32>
    %14 = arith.mulf %13, %12 : vector<128x128xf32>
    %15 = math.tanh %14 : vector<128x128xf32>
    %cst_7 = arith.constant 1.000000e+00 : f32
    %16 = vector.broadcast %cst_7 : f32 to vector<128x128xf32>
    %17 = arith.addf %16, %15 : vector<128x128xf32>
    %cst_8 = arith.constant 5.000000e-01 : f32
    %18 = vector.broadcast %cst_8 : f32 to vector<128x128xf32>
    %19 = arith.mulf %18, %17 : vector<128x128xf32>
    %20 = arith.mulf %7, %19 : vector<128x128xf32>
    %c0_9 = arith.constant 0 : index
    %c0_10 = arith.constant 0 : index
    %21 = vector.load %arg3[%c0_9, %c0_10] : memref<128x128xf32, #tpu.memory_space<vmem>>, vector<128x128xf32>
    tpu.vector_store %arg3[%c0_9, %c0_10], %20 {strides = array<i32>} : memref<128x128xf32, #tpu.memory_space<vmem>>, vector<128x128xf32>,
    return
  }
}

module attributes {stable_mosaic.version = 11 : i64} {
  func.func @_linear_gelu_kernel(%arg0: memref<64x576xf32, #tpu.memory_space<vmem>>, %arg1: memref<576x128xf32, #tpu.memory_space<vmem>>, %arg2: memref<1x128xf32, #tpu.memory_space<vmem>>, %arg3: memref<64x128xf32, #tpu.memory_space<vmem>>) attributes {dimension_semantics = [], scalar_prefetch = 0 : i64, scratch_operands = 0 : i64, tpu.core_type = #tpu.core_type<tc>} {
    %c0 = arith.constant 0 : index
    %c0_0 = arith.constant 0 : index
    %0 = vector.load %arg0[%c0, %c0_0] : memref<64x576xf32, #tpu.memory_space<vmem>>, vector<64x576xf32>
    %c0_1 = arith.constant 0 : index
    %c0_2 = arith.constant 0 : index
    %1 = vector.load %arg1[%c0_1, %c0_2] : memref<576x128xf32, #tpu.memory_space<vmem>>, vector<576x128xf32>
    %2 = arith.truncf %0 : vector<64x576xf32> to vector<64x576xbf16>
    %3 = arith.truncf %1 : vector<576x128xf32> to vector<576x128xbf16>
    %cst = arith.constant dense<0.000000e+00> : vector<64x128xf32>
    %4 = tpu.matmul %2, %3, %cst {dimension_numbers = #tpu.dot_dimension_numbers<[1], [0], [0], [1], [0, 0, 1, 1], [], []>} : vector<64x576xbf16>, vector<576x128xbf16>, vector<64x128xf32> -> vector<64x128xf32>
    %c0_3 = arith.constant 0 : index
    %c0_4 = arith.constant 0 : index
    %5 = vector.load %arg2[%c0_3, %c0_4] : memref<1x128xf32, #tpu.memory_space<vmem>>, vector<1x128xf32>
    %6 = vector.broadcast %5 : vector<1x128xf32> to vector<64x128xf32>
    %7 = arith.addf %4, %6 : vector<64x128xf32>
    %8 = arith.mulf %7, %7 : vector<64x128xf32>
    %9 = arith.mulf %7, %8 : vector<64x128xf32>
    %cst_5 = arith.constant 4.471500e-02 : f32
    %10 = vector.broadcast %cst_5 : f32 to vector<64x128xf32>
    %11 = arith.mulf %10, %9 : vector<64x128xf32>
    %12 = arith.addf %7, %11 : vector<64x128xf32>
    %cst_6 = arith.constant 0.797884583 : f32
    %13 = vector.broadcast %cst_6 : f32 to vector<64x128xf32>
    %14 = arith.mulf %13, %12 : vector<64x128xf32>
    %15 = math.tanh %14 : vector<64x128xf32>
    %cst_7 = arith.constant 1.000000e+00 : f32
    %16 = vector.broadcast %cst_7 : f32 to vector<64x128xf32>
    %17 = arith.addf %16, %15 : vector<64x128xf32>
    %cst_8 = arith.constant 5.000000e-01 : f32
    %18 = vector.broadcast %cst_8 : f32 to vector<64x128xf32>
    %19 = arith.mulf %18, %17 : vector<64x128xf32>
    %20 = arith.mulf %7, %19 : vector<64x128xf32>
    %c0_9 = arith.constant 0 : index
    %c0_10 = arith.constant 0 : index
    %21 = vector.load %arg3[%c0_9, %c0_10] : memref<64x128xf32, #tpu.memory_space<vmem>>, vector<64x128xf32>
    tpu.vector_store %arg3[%c0_9, %c0_10], %20 {strides = array<i32>} : memref<64x128xf32, #tpu.memory_space<vmem>>, vector<64x128xf32>,
    return
  }
}

module attributes {stable_mosaic.version = 11 : i64} {
  func.func @_linear_gelu_kernel(%arg0: memref<32x576xf32, #tpu.memory_space<vmem>>, %arg1: memref<576x128xf32, #tpu.memory_space<vmem>>, %arg2: memref<1x128xf32, #tpu.memory_space<vmem>>, %arg3: memref<32x128xf32, #tpu.memory_space<vmem>>) attributes {dimension_semantics = [], scalar_prefetch = 0 : i64, scratch_operands = 0 : i64, tpu.core_type = #tpu.core_type<tc>} {
    %c0 = arith.constant 0 : index
    %c0_0 = arith.constant 0 : index
    %0 = vector.load %arg0[%c0, %c0_0] : memref<32x576xf32, #tpu.memory_space<vmem>>, vector<32x576xf32>
    %c0_1 = arith.constant 0 : index
    %c0_2 = arith.constant 0 : index
    %1 = vector.load %arg1[%c0_1, %c0_2] : memref<576x128xf32, #tpu.memory_space<vmem>>, vector<576x128xf32>
    %2 = arith.truncf %0 : vector<32x576xf32> to vector<32x576xbf16>
    %3 = arith.truncf %1 : vector<576x128xf32> to vector<576x128xbf16>
    %cst = arith.constant dense<0.000000e+00> : vector<32x128xf32>
    %4 = tpu.matmul %2, %3, %cst {dimension_numbers = #tpu.dot_dimension_numbers<[1], [0], [0], [1], [0, 0, 1, 1], [], []>} : vector<32x576xbf16>, vector<576x128xbf16>, vector<32x128xf32> -> vector<32x128xf32>
    %c0_3 = arith.constant 0 : index
    %c0_4 = arith.constant 0 : index
    %5 = vector.load %arg2[%c0_3, %c0_4] : memref<1x128xf32, #tpu.memory_space<vmem>>, vector<1x128xf32>
    %6 = vector.broadcast %5 : vector<1x128xf32> to vector<32x128xf32>
    %7 = arith.addf %4, %6 : vector<32x128xf32>
    %8 = arith.mulf %7, %7 : vector<32x128xf32>
    %9 = arith.mulf %7, %8 : vector<32x128xf32>
    %cst_5 = arith.constant 4.471500e-02 : f32
    %10 = vector.broadcast %cst_5 : f32 to vector<32x128xf32>
    %11 = arith.mulf %10, %9 : vector<32x128xf32>
    %12 = arith.addf %7, %11 : vector<32x128xf32>
    %cst_6 = arith.constant 0.797884583 : f32
    %13 = vector.broadcast %cst_6 : f32 to vector<32x128xf32>
    %14 = arith.mulf %13, %12 : vector<32x128xf32>
    %15 = math.tanh %14 : vector<32x128xf32>
    %cst_7 = arith.constant 1.000000e+00 : f32
    %16 = vector.broadcast %cst_7 : f32 to vector<32x128xf32>
    %17 = arith.addf %16, %15 : vector<32x128xf32>
    %cst_8 = arith.constant 5.000000e-01 : f32
    %18 = vector.broadcast %cst_8 : f32 to vector<32x128xf32>
    %19 = arith.mulf %18, %17 : vector<32x128xf32>
    %20 = arith.mulf %7, %19 : vector<32x128xf32>
    %c0_9 = arith.constant 0 : index
    %c0_10 = arith.constant 0 : index
    %21 = vector.load %arg3[%c0_9, %c0_10] : memref<32x128xf32, #tpu.memory_space<vmem>>, vector<32x128xf32>
    tpu.vector_store %arg3[%c0_9, %c0_10], %20 {strides = array<i32>} : memref<32x128xf32, #tpu.memory_space<vmem>>, vector<32x128xf32>,
    return
  }
}

module attributes {stable_mosaic.version = 11 : i64} {
  func.func @_linear_gelu_kernel(%arg0: memref<16x576xf32, #tpu.memory_space<vmem>>, %arg1: memref<576x128xf32, #tpu.memory_space<vmem>>, %arg2: memref<1x128xf32, #tpu.memory_space<vmem>>, %arg3: memref<16x128xf32, #tpu.memory_space<vmem>>) attributes {dimension_semantics = [], scalar_prefetch = 0 : i64, scratch_operands = 0 : i64, tpu.core_type = #tpu.core_type<tc>} {
    %c0 = arith.constant 0 : index
    %c0_0 = arith.constant 0 : index
    %0 = vector.load %arg0[%c0, %c0_0] : memref<16x576xf32, #tpu.memory_space<vmem>>, vector<16x576xf32>
    %c0_1 = arith.constant 0 : index
    %c0_2 = arith.constant 0 : index
    %1 = vector.load %arg1[%c0_1, %c0_2] : memref<576x128xf32, #tpu.memory_space<vmem>>, vector<576x128xf32>
    %2 = arith.truncf %0 : vector<16x576xf32> to vector<16x576xbf16>
    %3 = arith.truncf %1 : vector<576x128xf32> to vector<576x128xbf16>
    %cst = arith.constant dense<0.000000e+00> : vector<16x128xf32>
    %4 = tpu.matmul %2, %3, %cst {dimension_numbers = #tpu.dot_dimension_numbers<[1], [0], [0], [1], [0, 0, 1, 1], [], []>} : vector<16x576xbf16>, vector<576x128xbf16>, vector<16x128xf32> -> vector<16x128xf32>
    %c0_3 = arith.constant 0 : index
    %c0_4 = arith.constant 0 : index
    %5 = vector.load %arg2[%c0_3, %c0_4] : memref<1x128xf32, #tpu.memory_space<vmem>>, vector<1x128xf32>
    %6 = vector.broadcast %5 : vector<1x128xf32> to vector<16x128xf32>
    %7 = arith.addf %4, %6 : vector<16x128xf32>
    %8 = arith.mulf %7, %7 : vector<16x128xf32>
    %9 = arith.mulf %7, %8 : vector<16x128xf32>
    %cst_5 = arith.constant 4.471500e-02 : f32
    %10 = vector.broadcast %cst_5 : f32 to vector<16x128xf32>
    %11 = arith.mulf %10, %9 : vector<16x128xf32>
    %12 = arith.addf %7, %11 : vector<16x128xf32>
    %cst_6 = arith.constant 0.797884583 : f32
    %13 = vector.broadcast %cst_6 : f32 to vector<16x128xf32>
    %14 = arith.mulf %13, %12 : vector<16x128xf32>
    %15 = math.tanh %14 : vector<16x128xf32>
    %cst_7 = arith.constant 1.000000e+00 : f32
    %16 = vector.broadcast %cst_7 : f32 to vector<16x128xf32>
    %17 = arith.addf %16, %15 : vector<16x128xf32>
    %cst_8 = arith.constant 5.000000e-01 : f32
    %18 = vector.broadcast %cst_8 : f32 to vector<16x128xf32>
    %19 = arith.mulf %18, %17 : vector<16x128xf32>
    %20 = arith.mulf %7, %19 : vector<16x128xf32>
    %c0_9 = arith.constant 0 : index
    %c0_10 = arith.constant 0 : index
    %21 = vector.load %arg3[%c0_9, %c0_10] : memref<16x128xf32, #tpu.memory_space<vmem>>, vector<16x128xf32>
    tpu.vector_store %arg3[%c0_9, %c0_10], %20 {strides = array<i32>} : memref<16x128xf32, #tpu.memory_space<vmem>>, vector<16x128xf32>,
    return
  }
}

module attributes {stable_mosaic.version = 11 : i64} {
  func.func @_tx_block_kernel(%arg0: i32, %arg1: memref<1x16x32xf32, #tpu.memory_space<vmem>>, %arg2: memref<1x16x32xf32, #tpu.memory_space<vmem>>, %arg3: memref<2x1x32xf32, #tpu.memory_space<vmem>>, %arg4: memref<2x1x32xf32, #tpu.memory_space<vmem>>, %arg5: memref<2x32x96xf32, #tpu.memory_space<vmem>>, %arg6: memref<2x32x32xf32, #tpu.memory_space<vmem>>, %arg7: memref<2x1x32xf32, #tpu.memory_space<vmem>>, %arg8: memref<2x1x32xf32, #tpu.memory_space<vmem>>, %arg9: memref<2x1x32xf32, #tpu.memory_space<vmem>>, %arg10: memref<2x32x64xf32, #tpu.memory_space<vmem>>, %arg11: memref<2x1x64xf32, #tpu.memory_space<vmem>>, %arg12: memref<2x64x32xf32, #tpu.memory_space<vmem>>, %arg13: memref<2x1x32xf32, #tpu.memory_space<vmem>>, %arg14: memref<32x128xf32, #tpu.memory_space<vmem>>, %arg15: memref<1x128xf32, #tpu.memory_space<vmem>>, %arg16: memref<9x128xf32, #tpu.memory_space<vmem>>, %arg17: memref<1x128xf32, #tpu.memory_space<vmem>>, %arg18: memref<16x144xf32, #tpu.memory_space<vmem>>, %arg19: memref<128x32xf32, #tpu.memory_space<vmem>>, %arg20: memref<1x32xf32, #tpu.memory_space<vmem>>, %arg21: memref<1x16x32xf32, #tpu.memory_space<vmem>>) attributes {dimension_semantics = [#tpu.dimension_semantics<parallel>], iteration_bounds = array<i64: 4>, scalar_prefetch = 0 : i64, scratch_operands = 0 : i64, tpu.core_type = #tpu.core_type<tc>, window_params = [{transform_indices = @transform_0, window_bounds = array<i64: 1, 16, 32>}, {transform_indices = @transform_1, window_bounds = array<i64: 1, 16, 32>}, {pipeline_mode = #tpu.pipeline_mode<synchronous>, transform_indices = @transform_2, window_bounds = array<i64: 2, 1, 32>}, {pipeline_mode = #tpu.pipeline_mode<synchronous>, transform_indices = @transform_3, window_bounds = array<i64: 2, 1, 32>}, {pipeline_mode = #tpu.pipeline_mode<synchronous>, transform_indices = @transform_4, window_bounds = array<i64: 2, 32, 96>}, {pipeline_mode = #tpu.pipeline_mode<synchronous>, transform_indices = @transform_5, window_bounds = array<i64: 2, 32, 32>}, {pipeline_mode = #tpu.pipeline_mode<synchronous>, transform_indices = @transform_6, window_bounds = array<i64: 2, 1, 32>}, {pipeline_mode = #tpu.pipeline_mode<synchronous>, transform_indices = @transform_7, window_bounds = array<i64: 2, 1, 32>}, {pipeline_mode = #tpu.pipeline_mode<synchronous>, transform_indices = @transform_8, window_bounds = array<i64: 2, 1, 32>}, {pipeline_mode = #tpu.pipeline_mode<synchronous>, transform_indices = @transform_9, window_bounds = array<i64: 2, 32, 64>}, {pipeline_mode = #tpu.pipeline_mode<synchronous>, transform_indices = @transform_10, window_bounds = array<i64: 2, 1, 64>}, {pipeline_mode = #tpu.pipeline_mode<synchronous>, transform_indices = @transform_11, window_bounds = array<i64: 2, 64, 32>}, {pipeline_mode = #tpu.pipeline_mode<synchronous>, transform_indices = @transform_12, window_bounds = array<i64: 2, 1, 32>}, {pipeline_mode = #tpu.pipeline_mode<synchronous>, transform_indices = @transform_13, window_bounds = array<i64: 32, 128>}, {pipeline_mode = #tpu.pipeline_mode<synchronous>, transform_indices = @transform_14, window_bounds = array<i64: 1, 128>}, {pipeline_mode = #tpu.pipeline_mode<synchronous>, transform_indices = @transform_15, window_bounds = array<i64: 9, 128>}, {pipeline_mode = #tpu.pipeline_mode<synchronous>, transform_indices = @transform_16, window_bounds = array<i64: 1, 128>}, {pipeline_mode = #tpu.pipeline_mode<synchronous>, transform_indices = @transform_17, window_bounds = array<i64: 16, 144>}, {pipeline_mode = #tpu.pipeline_mode<synchronous>, transform_indices = @transform_18, window_bounds = array<i64: 128, 32>}, {pipeline_mode = #tpu.pipeline_mode<synchronous>, transform_indices = @transform_19, window_bounds = array<i64: 1, 32>}, {transform_indices = @transform_20, window_bounds = array<i64: 1, 16, 32>}]} {
    %c0 = arith.constant 0 : index
    %c0_0 = arith.constant 0 : index
    %c0_1 = arith.constant 0 : index
    %0 = vector.load %arg1[%c0, %c0_0, %c0_1] : memref<1x16x32xf32, #tpu.memory_space<vmem>>, vector<1x16x32xf32>
    %1 = vector.shape_cast %0 : vector<1x16x32xf32> to vector<16x32xf32>
    %c0_2 = arith.constant 0 : index
    %c0_3 = arith.constant 0 : index
    %c0_4 = arith.constant 0 : index
    %2 = vector.load %arg2[%c0_2, %c0_3, %c0_4] : memref<1x16x32xf32, #tpu.memory_space<vmem>>, vector<1x16x32xf32>
    %3 = vector.shape_cast %2 : vector<1x16x32xf32> to vector<16x32xf32>
    %4 = arith.addf %1, %3 : vector<16x32xf32>
    %c0_5 = arith.constant 0 : index
    %c0_6 = arith.constant 0 : index
    %c0_7 = arith.constant 0 : index
    %5 = vector.load %arg3[%c0_5, %c0_6, %c0_7] : memref<2x1x32xf32, #tpu.memory_space<vmem>>, vector<1x1x32xf32>
    %6 = vector.shape_cast %5 : vector<1x1x32xf32> to vector<1x32xf32>
    %c0_8 = arith.constant 0 : index
    %c0_9 = arith.constant 0 : index
    %c0_10 = arith.constant 0 : index
    %7 = vector.load %arg4[%c0_8, %c0_9, %c0_10] : memref<2x1x32xf32, #tpu.memory_space<vmem>>, vector<1x1x32xf32>
    %8 = vector.shape_cast %7 : vector<1x1x32xf32> to vector<1x32xf32>
    %cst = arith.constant dense<0.000000e+00> : vector<16xf32>
    %9 = vector.multi_reduction <add>, %4, %cst [1] : vector<16x32xf32> to vector<16xf32>
    %10 = vector.shape_cast %9 : vector<16xf32> to vector<16x1xf32>
    %cst_11 = arith.constant 3.200000e+01 : f32
    %11 = vector.broadcast %cst_11 : f32 to vector<16x1xf32>
    %12 = arith.divf %10, %11 : vector<16x1xf32>
    %13 = vector.broadcast %12 : vector<16x1xf32> to vector<16x32xf32>
    %14 = arith.subf %4, %13 : vector<16x32xf32>
    %15 = arith.mulf %14, %14 : vector<16x32xf32>
    %cst_12 = arith.constant dense<0.000000e+00> : vector<16xf32>
    %16 = vector.multi_reduction <add>, %15, %cst_12 [1] : vector<16x32xf32> to vector<16xf32>
    %17 = vector.shape_cast %16 : vector<16xf32> to vector<16x1xf32>
    %cst_13 = arith.constant 3.200000e+01 : f32
    %18 = vector.broadcast %cst_13 : f32 to vector<16x1xf32>
    %19 = arith.divf %17, %18 : vector<16x1xf32>
    %20 = vector.broadcast %12 : vector<16x1xf32> to vector<16x32xf32>
    %21 = arith.subf %4, %20 : vector<16x32xf32>
    %cst_14 = arith.constant 9.99999974E-6 : f32
    %22 = vector.broadcast %cst_14 : f32 to vector<16x1xf32>
    %23 = arith.addf %19, %22 : vector<16x1xf32>
    %24 = math.rsqrt %23 : vector<16x1xf32>
    %25 = vector.broadcast %24 : vector<16x1xf32> to vector<16x32xf32>
    %26 = arith.mulf %21, %25 : vector<16x32xf32>
    %27 = vector.broadcast %6 : vector<1x32xf32> to vector<16x32xf32>
    %28 = arith.mulf %26, %27 : vector<16x32xf32>
    %29 = vector.broadcast %8 : vector<1x32xf32> to vector<16x32xf32>
    %30 = arith.addf %28, %29 : vector<16x32xf32>
    %c0_15 = arith.constant 0 : index
    %c0_16 = arith.constant 0 : index
    %c0_17 = arith.constant 0 : index
    %31 = vector.load %arg5[%c0_15, %c0_16, %c0_17] : memref<2x32x96xf32, #tpu.memory_space<vmem>>, vector<1x32x96xf32>
    %32 = vector.shape_cast %31 : vector<1x32x96xf32> to vector<32x96xf32>
    %33 = arith.truncf %30 : vector<16x32xf32> to vector<16x32xbf16>
    %34 = arith.truncf %32 : vector<32x96xf32> to vector<32x96xbf16>
    %cst_18 = arith.constant dense<0.000000e+00> : vector<16x96xf32>
    %35 = tpu.matmul %33, %34, %cst_18 {dimension_numbers = #tpu.dot_dimension_numbers<[1], [0], [0], [1], [0, 0, 1, 1], [], []>} : vector<16x32xbf16>, vector<32x96xbf16>, vector<16x96xf32> -> vector<16x96xf32>
    %36 = vector.extract_strided_slice %35 {offsets = [0, 0], sizes = [16, 32], strides = [1, 1]} : vector<16x96xf32> to vector<16x32xf32>
    %37 = vector.extract_strided_slice %35 {offsets = [0, 32], sizes = [16, 32], strides = [1, 1]} : vector<16x96xf32> to vector<16x32xf32>
    %38 = vector.extract_strided_slice %35 {offsets = [0, 64], sizes = [16, 32], strides = [1, 1]} : vector<16x96xf32> to vector<16x32xf32>
    %39 = vector.extract_strided_slice %36 {offsets = [0, 0], sizes = [16, 16], strides = [1, 1]} : vector<16x32xf32> to vector<16x16xf32>
    %40 = vector.extract_strided_slice %37 {offsets = [0, 0], sizes = [16, 16], strides = [1, 1]} : vector<16x32xf32> to vector<16x16xf32>
    %41 = vector.extract_strided_slice %38 {offsets = [0, 0], sizes = [16, 16], strides = [1, 1]} : vector<16x32xf32> to vector<16x16xf32>
    %cst_19 = arith.constant dense<0.000000e+00> : vector<16x16xf32>
    %42 = tpu.matmul %39, %40, %cst_19 {dimension_numbers = #tpu.dot_dimension_numbers<[1], [1], [0], [0], [0, 0, 1, 0], [], []>} : vector<16x16xf32>, vector<16x16xf32>, vector<16x16xf32> -> vector<16x16xf32>
    %cst_20 = arith.constant 2.500000e-01 : f32
    %43 = vector.broadcast %cst_20 : f32 to vector<16x16xf32>
    %44 = arith.mulf %42, %43 : vector<16x16xf32>
    %cst_21 = arith.constant dense<0xFF800000> : vector<16xf32>
    %45 = vector.multi_reduction <maximumf>, %44, %cst_21 [1] : vector<16x16xf32> to vector<16xf32>
    %46 = vector.shape_cast %45 : vector<16xf32> to vector<16x1xf32>
    %47 = vector.broadcast %46 : vector<16x1xf32> to vector<16x16xf32>
    %48 = arith.subf %44, %47 : vector<16x16xf32>
    %49 = math.exp %48 : vector<16x16xf32>
    %cst_22 = arith.constant dense<0.000000e+00> : vector<16xf32>
    %50 = vector.multi_reduction <add>, %49, %cst_22 [1] : vector<16x16xf32> to vector<16xf32>
    %51 = vector.shape_cast %50 : vector<16xf32> to vector<16x1xf32>
    %52 = tpu.reciprocal %51 {approx = true} : vector<16x1xf32> -> vector<16x1xf32>
    %53 = vector.broadcast %52 : vector<16x1xf32> to vector<16x16xf32>
    %54 = arith.mulf %49, %53 : vector<16x16xf32>
    %cst_23 = arith.constant dense<0.000000e+00> : vector<16x16xf32>
    %55 = tpu.matmul %54, %41, %cst_23 {dimension_numbers = #tpu.dot_dimension_numbers<[1], [0], [0], [1], [0, 0, 1, 1], [], []>} : vector<16x16xf32>, vector<16x16xf32>, vector<16x16xf32> -> vector<16x16xf32>
    %56 = vector.extract_strided_slice %36 {offsets = [0, 16], sizes = [16, 16], strides = [1, 1]} : vector<16x32xf32> to vector<16x16xf32>
    %57 = vector.extract_strided_slice %37 {offsets = [0, 16], sizes = [16, 16], strides = [1, 1]} : vector<16x32xf32> to vector<16x16xf32>
    %58 = vector.extract_strided_slice %38 {offsets = [0, 16], sizes = [16, 16], strides = [1, 1]} : vector<16x32xf32> to vector<16x16xf32>
    %cst_24 = arith.constant dense<0.000000e+00> : vector<16x16xf32>
    %59 = tpu.matmul %56, %57, %cst_24 {dimension_numbers = #tpu.dot_dimension_numbers<[1], [1], [0], [0], [0, 0, 1, 0], [], []>} : vector<16x16xf32>, vector<16x16xf32>, vector<16x16xf32> -> vector<16x16xf32>
    %cst_25 = arith.constant 2.500000e-01 : f32
    %60 = vector.broadcast %cst_25 : f32 to vector<16x16xf32>
    %61 = arith.mulf %59, %60 : vector<16x16xf32>
    %cst_26 = arith.constant dense<0xFF800000> : vector<16xf32>
    %62 = vector.multi_reduction <maximumf>, %61, %cst_26 [1] : vector<16x16xf32> to vector<16xf32>
    %63 = vector.shape_cast %62 : vector<16xf32> to vector<16x1xf32>
    %64 = vector.broadcast %63 : vector<16x1xf32> to vector<16x16xf32>
    %65 = arith.subf %61, %64 : vector<16x16xf32>
    %66 = math.exp %65 : vector<16x16xf32>
    %cst_27 = arith.constant dense<0.000000e+00> : vector<16xf32>
    %67 = vector.multi_reduction <add>, %66, %cst_27 [1] : vector<16x16xf32> to vector<16xf32>
    %68 = vector.shape_cast %67 : vector<16xf32> to vector<16x1xf32>
    %69 = tpu.reciprocal %68 {approx = true} : vector<16x1xf32> -> vector<16x1xf32>
    %70 = vector.broadcast %69 : vector<16x1xf32> to vector<16x16xf32>
    %71 = arith.mulf %66, %70 : vector<16x16xf32>
    %cst_28 = arith.constant dense<0.000000e+00> : vector<16x16xf32>
    %72 = tpu.matmul %71, %58, %cst_28 {dimension_numbers = #tpu.dot_dimension_numbers<[1], [0], [0], [1], [0, 0, 1, 1], [], []>} : vector<16x16xf32>, vector<16x16xf32>, vector<16x16xf32> -> vector<16x16xf32>
    %73 = tpu.concatenate %55, %72 in 1 : vector<16x16xf32>, vector<16x16xf32> -> vector<16x32xf32>
    %c0_29 = arith.constant 0 : index
    %c0_30 = arith.constant 0 : index
    %c0_31 = arith.constant 0 : index
    %74 = vector.load %arg6[%c0_29, %c0_30, %c0_31] : memref<2x32x32xf32, #tpu.memory_space<vmem>>, vector<1x32x32xf32>
    %75 = vector.shape_cast %74 : vector<1x32x32xf32> to vector<32x32xf32>
    %76 = arith.truncf %73 : vector<16x32xf32> to vector<16x32xbf16>
    %77 = arith.truncf %75 : vector<32x32xf32> to vector<32x32xbf16>
    %cst_32 = arith.constant dense<0.000000e+00> : vector<16x32xf32>
    %78 = tpu.matmul %76, %77, %cst_32 {dimension_numbers = #tpu.dot_dimension_numbers<[1], [0], [0], [1], [0, 0, 1, 1], [], []>} : vector<16x32xbf16>, vector<32x32xbf16>, vector<16x32xf32> -> vector<16x32xf32>
    %79 = arith.addf %4, %78 : vector<16x32xf32>
    %c0_33 = arith.constant 0 : index
    %c0_34 = arith.constant 0 : index
    %c0_35 = arith.constant 0 : index
    %80 = vector.load %arg7[%c0_33, %c0_34, %c0_35] : memref<2x1x32xf32, #tpu.memory_space<vmem>>, vector<1x1x32xf32>
    %81 = vector.shape_cast %80 : vector<1x1x32xf32> to vector<1x32xf32>
    %82 = vector.broadcast %81 : vector<1x32xf32> to vector<16x32xf32>
    %83 = arith.addf %79, %82 : vector<16x32xf32>
    %c0_36 = arith.constant 0 : index
    %c0_37 = arith.constant 0 : index
    %c0_38 = arith.constant 0 : index
    %84 = vector.load %arg8[%c0_36, %c0_37, %c0_38] : memref<2x1x32xf32, #tpu.memory_space<vmem>>, vector<1x1x32xf32>
    %85 = vector.shape_cast %84 : vector<1x1x32xf32> to vector<1x32xf32>
    %c0_39 = arith.constant 0 : index
    %c0_40 = arith.constant 0 : index
    %c0_41 = arith.constant 0 : index
    %86 = vector.load %arg9[%c0_39, %c0_40, %c0_41] : memref<2x1x32xf32, #tpu.memory_space<vmem>>, vector<1x1x32xf32>
    %87 = vector.shape_cast %86 : vector<1x1x32xf32> to vector<1x32xf32>
    %cst_42 = arith.constant dense<0.000000e+00> : vector<16xf32>
    %88 = vector.multi_reduction <add>, %83, %cst_42 [1] : vector<16x32xf32> to vector<16xf32>
    %89 = vector.shape_cast %88 : vector<16xf32> to vector<16x1xf32>
    %cst_43 = arith.constant 3.200000e+01 : f32
    %90 = vector.broadcast %cst_43 : f32 to vector<16x1xf32>
    %91 = arith.divf %89, %90 : vector<16x1xf32>
    %92 = vector.broadcast %91 : vector<16x1xf32> to vector<16x32xf32>
    %93 = arith.subf %83, %92 : vector<16x32xf32>
    %94 = arith.mulf %93, %93 : vector<16x32xf32>
    %cst_44 = arith.constant dense<0.000000e+00> : vector<16xf32>
    %95 = vector.multi_reduction <add>, %94, %cst_44 [1] : vector<16x32xf32> to vector<16xf32>
    %96 = vector.shape_cast %95 : vector<16xf32> to vector<16x1xf32>
    %cst_45 = arith.constant 3.200000e+01 : f32
    %97 = vector.broadcast %cst_45 : f32 to vector<16x1xf32>
    %98 = arith.divf %96, %97 : vector<16x1xf32>
    %99 = vector.broadcast %91 : vector<16x1xf32> to vector<16x32xf32>
    %100 = arith.subf %83, %99 : vector<16x32xf32>
    %cst_46 = arith.constant 9.99999974E-6 : f32
    %101 = vector.broadcast %cst_46 : f32 to vector<16x1xf32>
    %102 = arith.addf %98, %101 : vector<16x1xf32>
    %103 = math.rsqrt %102 : vector<16x1xf32>
    %104 = vector.broadcast %103 : vector<16x1xf32> to vector<16x32xf32>
    %105 = arith.mulf %100, %104 : vector<16x32xf32>
    %106 = vector.broadcast %85 : vector<1x32xf32> to vector<16x32xf32>
    %107 = arith.mulf %105, %106 : vector<16x32xf32>
    %108 = vector.broadcast %87 : vector<1x32xf32> to vector<16x32xf32>
    %109 = arith.addf %107, %108 : vector<16x32xf32>
    %c0_47 = arith.constant 0 : index
    %c0_48 = arith.constant 0 : index
    %c0_49 = arith.constant 0 : index
    %110 = vector.load %arg10[%c0_47, %c0_48, %c0_49] : memref<2x32x64xf32, #tpu.memory_space<vmem>>, vector<1x32x64xf32>
    %111 = vector.shape_cast %110 : vector<1x32x64xf32> to vector<32x64xf32>
    %112 = arith.truncf %109 : vector<16x32xf32> to vector<16x32xbf16>
    %113 = arith.truncf %111 : vector<32x64xf32> to vector<32x64xbf16>
    %cst_50 = arith.constant dense<0.000000e+00> : vector<16x64xf32>
    %114 = tpu.matmul %112, %113, %cst_50 {dimension_numbers = #tpu.dot_dimension_numbers<[1], [0], [0], [1], [0, 0, 1, 1], [], []>} : vector<16x32xbf16>, vector<32x64xbf16>, vector<16x64xf32> -> vector<16x64xf32>
    %c0_51 = arith.constant 0 : index
    %c0_52 = arith.constant 0 : index
    %c0_53 = arith.constant 0 : index
    %115 = vector.load %arg11[%c0_51, %c0_52, %c0_53] : memref<2x1x64xf32, #tpu.memory_space<vmem>>, vector<1x1x64xf32>
    %116 = vector.shape_cast %115 : vector<1x1x64xf32> to vector<1x64xf32>
    %117 = vector.broadcast %116 : vector<1x64xf32> to vector<16x64xf32>
    %118 = arith.addf %114, %117 : vector<16x64xf32>
    %119 = arith.mulf %118, %118 : vector<16x64xf32>
    %120 = arith.mulf %118, %119 : vector<16x64xf32>
    %cst_54 = arith.constant 4.471500e-02 : f32
    %121 = vector.broadcast %cst_54 : f32 to vector<16x64xf32>
    %122 = arith.mulf %121, %120 : vector<16x64xf32>
    %123 = arith.addf %118, %122 : vector<16x64xf32>
    %cst_55 = arith.constant 0.797884583 : f32
    %124 = vector.broadcast %cst_55 : f32 to vector<16x64xf32>
    %125 = arith.mulf %124, %123 : vector<16x64xf32>
    %126 = math.tanh %125 : vector<16x64xf32>
    %cst_56 = arith.constant 1.000000e+00 : f32
    %127 = vector.broadcast %cst_56 : f32 to vector<16x64xf32>
    %128 = arith.addf %127, %126 : vector<16x64xf32>
    %cst_57 = arith.constant 5.000000e-01 : f32
    %129 = vector.broadcast %cst_57 : f32 to vector<16x64xf32>
    %130 = arith.mulf %129, %128 : vector<16x64xf32>
    %131 = arith.mulf %118, %130 : vector<16x64xf32>
    %c0_58 = arith.constant 0 : index
    %c0_59 = arith.constant 0 : index
    %c0_60 = arith.constant 0 : index
    %132 = vector.load %arg12[%c0_58, %c0_59, %c0_60] : memref<2x64x32xf32, #tpu.memory_space<vmem>>, vector<1x64x32xf32>
    %133 = vector.shape_cast %132 : vector<1x64x32xf32> to vector<64x32xf32>
    %134 = arith.truncf %131 : vector<16x64xf32> to vector<16x64xbf16>
    %135 = arith.truncf %133 : vector<64x32xf32> to vector<64x32xbf16>
    %cst_61 = arith.constant dense<0.000000e+00> : vector<16x32xf32>
    %136 = tpu.matmul %134, %135, %cst_61 {dimension_numbers = #tpu.dot_dimension_numbers<[1], [0], [0], [1], [0, 0, 1, 1], [], []>} : vector<16x64xbf16>, vector<64x32xbf16>, vector<16x32xf32> -> vector<16x32xf32>
    %137 = arith.addf %83, %136 : vector<16x32xf32>
    %c0_62 = arith.constant 0 : index
    %c0_63 = arith.constant 0 : index
    %c0_64 = arith.constant 0 : index
    %138 = vector.load %arg13[%c0_62, %c0_63, %c0_64] : memref<2x1x32xf32, #tpu.memory_space<vmem>>, vector<1x1x32xf32>
    %139 = vector.shape_cast %138 : vector<1x1x32xf32> to vector<1x32xf32>
    %140 = vector.broadcast %139 : vector<1x32xf32> to vector<16x32xf32>
    %141 = arith.addf %137, %140 : vector<16x32xf32>
    %c1 = arith.constant 1 : index
    %c0_65 = arith.constant 0 : index
    %c0_66 = arith.constant 0 : index
    %142 = vector.load %arg3[%c1, %c0_65, %c0_66] : memref<2x1x32xf32, #tpu.memory_space<vmem>>, vector<1x1x32xf32>
    %143 = vector.shape_cast %142 : vector<1x1x32xf32> to vector<1x32xf32>
    %c1_67 = arith.constant 1 : index
    %c0_68 = arith.constant 0 : index
    %c0_69 = arith.constant 0 : index
    %144 = vector.load %arg4[%c1_67, %c0_68, %c0_69] : memref<2x1x32xf32, #tpu.memory_space<vmem>>, vector<1x1x32xf32>
    %145 = vector.shape_cast %144 : vector<1x1x32xf32> to vector<1x32xf32>
    %cst_70 = arith.constant dense<0.000000e+00> : vector<16xf32>
    %146 = vector.multi_reduction <add>, %141, %cst_70 [1] : vector<16x32xf32> to vector<16xf32>
    %147 = vector.shape_cast %146 : vector<16xf32> to vector<16x1xf32>
    %cst_71 = arith.constant 3.200000e+01 : f32
    %148 = vector.broadcast %cst_71 : f32 to vector<16x1xf32>
    %149 = arith.divf %147, %148 : vector<16x1xf32>
    %150 = vector.broadcast %149 : vector<16x1xf32> to vector<16x32xf32>
    %151 = arith.subf %141, %150 : vector<16x32xf32>
    %152 = arith.mulf %151, %151 : vector<16x32xf32>
    %cst_72 = arith.constant dense<0.000000e+00> : vector<16xf32>
    %153 = vector.multi_reduction <add>, %152, %cst_72 [1] : vector<16x32xf32> to vector<16xf32>
    %154 = vector.shape_cast %153 : vector<16xf32> to vector<16x1xf32>
    %cst_73 = arith.constant 3.200000e+01 : f32
    %155 = vector.broadcast %cst_73 : f32 to vector<16x1xf32>
    %156 = arith.divf %154, %155 : vector<16x1xf32>
    %157 = vector.broadcast %149 : vector<16x1xf32> to vector<16x32xf32>
    %158 = arith.subf %141, %157 : vector<16x32xf32>
    %cst_74 = arith.constant 9.99999974E-6 : f32
    %159 = vector.broadcast %cst_74 : f32 to vector<16x1xf32>
    %160 = arith.addf %156, %159 : vector<16x1xf32>
    %161 = math.rsqrt %160 : vector<16x1xf32>
    %162 = vector.broadcast %161 : vector<16x1xf32> to vector<16x32xf32>
    %163 = arith.mulf %158, %162 : vector<16x32xf32>
    %164 = vector.broadcast %143 : vector<1x32xf32> to vector<16x32xf32>
    %165 = arith.mulf %163, %164 : vector<16x32xf32>
    %166 = vector.broadcast %145 : vector<1x32xf32> to vector<16x32xf32>
    %167 = arith.addf %165, %166 : vector<16x32xf32>
    %c1_75 = arith.constant 1 : index
    %c0_76 = arith.constant 0 : index
    %c0_77 = arith.constant 0 : index
    %168 = vector.load %arg5[%c1_75, %c0_76, %c0_77] : memref<2x32x96xf32, #tpu.memory_space<vmem>>, vector<1x32x96xf32>
    %169 = vector.shape_cast %168 : vector<1x32x96xf32> to vector<32x96xf32>
    %170 = arith.truncf %167 : vector<16x32xf32> to vector<16x32xbf16>
    %171 = arith.truncf %169 : vector<32x96xf32> to vector<32x96xbf16>
    %cst_78 = arith.constant dense<0.000000e+00> : vector<16x96xf32>
    %172 = tpu.matmul %170, %171, %cst_78 {dimension_numbers = #tpu.dot_dimension_numbers<[1], [0], [0], [1], [0, 0, 1, 1], [], []>} : vector<16x32xbf16>, vector<32x96xbf16>, vector<16x96xf32> -> vector<16x96xf32>
    %173 = vector.extract_strided_slice %172 {offsets = [0, 0], sizes = [16, 32], strides = [1, 1]} : vector<16x96xf32> to vector<16x32xf32>
    %174 = vector.extract_strided_slice %172 {offsets = [0, 32], sizes = [16, 32], strides = [1, 1]} : vector<16x96xf32> to vector<16x32xf32>
    %175 = vector.extract_strided_slice %172 {offsets = [0, 64], sizes = [16, 32], strides = [1, 1]} : vector<16x96xf32> to vector<16x32xf32>
    %176 = vector.extract_strided_slice %173 {offsets = [0, 0], sizes = [16, 16], strides = [1, 1]} : vector<16x32xf32> to vector<16x16xf32>
    %177 = vector.extract_strided_slice %174 {offsets = [0, 0], sizes = [16, 16], strides = [1, 1]} : vector<16x32xf32> to vector<16x16xf32>
    %178 = vector.extract_strided_slice %175 {offsets = [0, 0], sizes = [16, 16], strides = [1, 1]} : vector<16x32xf32> to vector<16x16xf32>
    %cst_79 = arith.constant dense<0.000000e+00> : vector<16x16xf32>
    %179 = tpu.matmul %176, %177, %cst_79 {dimension_numbers = #tpu.dot_dimension_numbers<[1], [1], [0], [0], [0, 0, 1, 0], [], []>} : vector<16x16xf32>, vector<16x16xf32>, vector<16x16xf32> -> vector<16x16xf32>
    %cst_80 = arith.constant 2.500000e-01 : f32
    %180 = vector.broadcast %cst_80 : f32 to vector<16x16xf32>
    %181 = arith.mulf %179, %180 : vector<16x16xf32>
    %cst_81 = arith.constant dense<0xFF800000> : vector<16xf32>
    %182 = vector.multi_reduction <maximumf>, %181, %cst_81 [1] : vector<16x16xf32> to vector<16xf32>
    %183 = vector.shape_cast %182 : vector<16xf32> to vector<16x1xf32>
    %184 = vector.broadcast %183 : vector<16x1xf32> to vector<16x16xf32>
    %185 = arith.subf %181, %184 : vector<16x16xf32>
    %186 = math.exp %185 : vector<16x16xf32>
    %cst_82 = arith.constant dense<0.000000e+00> : vector<16xf32>
    %187 = vector.multi_reduction <add>, %186, %cst_82 [1] : vector<16x16xf32> to vector<16xf32>
    %188 = vector.shape_cast %187 : vector<16xf32> to vector<16x1xf32>
    %189 = tpu.reciprocal %188 {approx = true} : vector<16x1xf32> -> vector<16x1xf32>
    %190 = vector.broadcast %189 : vector<16x1xf32> to vector<16x16xf32>
    %191 = arith.mulf %186, %190 : vector<16x16xf32>
    %cst_83 = arith.constant dense<0.000000e+00> : vector<16x16xf32>
    %192 = tpu.matmul %191, %178, %cst_83 {dimension_numbers = #tpu.dot_dimension_numbers<[1], [0], [0], [1], [0, 0, 1, 1], [], []>} : vector<16x16xf32>, vector<16x16xf32>, vector<16x16xf32> -> vector<16x16xf32>
    %193 = vector.extract_strided_slice %173 {offsets = [0, 16], sizes = [16, 16], strides = [1, 1]} : vector<16x32xf32> to vector<16x16xf32>
    %194 = vector.extract_strided_slice %174 {offsets = [0, 16], sizes = [16, 16], strides = [1, 1]} : vector<16x32xf32> to vector<16x16xf32>
    %195 = vector.extract_strided_slice %175 {offsets = [0, 16], sizes = [16, 16], strides = [1, 1]} : vector<16x32xf32> to vector<16x16xf32>
    %cst_84 = arith.constant dense<0.000000e+00> : vector<16x16xf32>
    %196 = tpu.matmul %193, %194, %cst_84 {dimension_numbers = #tpu.dot_dimension_numbers<[1], [1], [0], [0], [0, 0, 1, 0], [], []>} : vector<16x16xf32>, vector<16x16xf32>, vector<16x16xf32> -> vector<16x16xf32>
    %cst_85 = arith.constant 2.500000e-01 : f32
    %197 = vector.broadcast %cst_85 : f32 to vector<16x16xf32>
    %198 = arith.mulf %196, %197 : vector<16x16xf32>
    %cst_86 = arith.constant dense<0xFF800000> : vector<16xf32>
    %199 = vector.multi_reduction <maximumf>, %198, %cst_86 [1] : vector<16x16xf32> to vector<16xf32>
    %200 = vector.shape_cast %199 : vector<16xf32> to vector<16x1xf32>
    %201 = vector.broadcast %200 : vector<16x1xf32> to vector<16x16xf32>
    %202 = arith.subf %198, %201 : vector<16x16xf32>
    %203 = math.exp %202 : vector<16x16xf32>
    %cst_87 = arith.constant dense<0.000000e+00> : vector<16xf32>
    %204 = vector.multi_reduction <add>, %203, %cst_87 [1] : vector<16x16xf32> to vector<16xf32>
    %205 = vector.shape_cast %204 : vector<16xf32> to vector<16x1xf32>
    %206 = tpu.reciprocal %205 {approx = true} : vector<16x1xf32> -> vector<16x1xf32>
    %207 = vector.broadcast %206 : vector<16x1xf32> to vector<16x16xf32>
    %208 = arith.mulf %203, %207 : vector<16x16xf32>
    %cst_88 = arith.constant dense<0.000000e+00> : vector<16x16xf32>
    %209 = tpu.matmul %208, %195, %cst_88 {dimension_numbers = #tpu.dot_dimension_numbers<[1], [0], [0], [1], [0, 0, 1, 1], [], []>} : vector<16x16xf32>, vector<16x16xf32>, vector<16x16xf32> -> vector<16x16xf32>
    %210 = tpu.concatenate %192, %209 in 1 : vector<16x16xf32>, vector<16x16xf32> -> vector<16x32xf32>
    %c1_89 = arith.constant 1 : index
    %c0_90 = arith.constant 0 : index
    %c0_91 = arith.constant 0 : index
    %211 = vector.load %arg6[%c1_89, %c0_90, %c0_91] : memref<2x32x32xf32, #tpu.memory_space<vmem>>, vector<1x32x32xf32>
    %212 = vector.shape_cast %211 : vector<1x32x32xf32> to vector<32x32xf32>
    %213 = arith.truncf %210 : vector<16x32xf32> to vector<16x32xbf16>
    %214 = arith.truncf %212 : vector<32x32xf32> to vector<32x32xbf16>
    %cst_92 = arith.constant dense<0.000000e+00> : vector<16x32xf32>
    %215 = tpu.matmul %213, %214, %cst_92 {dimension_numbers = #tpu.dot_dimension_numbers<[1], [0], [0], [1], [0, 0, 1, 1], [], []>} : vector<16x32xbf16>, vector<32x32xbf16>, vector<16x32xf32> -> vector<16x32xf32>
    %216 = arith.addf %141, %215 : vector<16x32xf32>
    %c1_93 = arith.constant 1 : index
    %c0_94 = arith.constant 0 : index
    %c0_95 = arith.constant 0 : index
    %217 = vector.load %arg7[%c1_93, %c0_94, %c0_95] : memref<2x1x32xf32, #tpu.memory_space<vmem>>, vector<1x1x32xf32>
    %218 = vector.shape_cast %217 : vector<1x1x32xf32> to vector<1x32xf32>
    %219 = vector.broadcast %218 : vector<1x32xf32> to vector<16x32xf32>
    %220 = arith.addf %216, %219 : vector<16x32xf32>
    %c1_96 = arith.constant 1 : index
    %c0_97 = arith.constant 0 : index
    %c0_98 = arith.constant 0 : index
    %221 = vector.load %arg8[%c1_96, %c0_97, %c0_98] : memref<2x1x32xf32, #tpu.memory_space<vmem>>, vector<1x1x32xf32>
    %222 = vector.shape_cast %221 : vector<1x1x32xf32> to vector<1x32xf32>
    %c1_99 = arith.constant 1 : index
    %c0_100 = arith.constant 0 : index
    %c0_101 = arith.constant 0 : index
    %223 = vector.load %arg9[%c1_99, %c0_100, %c0_101] : memref<2x1x32xf32, #tpu.memory_space<vmem>>, vector<1x1x32xf32>
    %224 = vector.shape_cast %223 : vector<1x1x32xf32> to vector<1x32xf32>
    %cst_102 = arith.constant dense<0.000000e+00> : vector<16xf32>
    %225 = vector.multi_reduction <add>, %220, %cst_102 [1] : vector<16x32xf32> to vector<16xf32>
    %226 = vector.shape_cast %225 : vector<16xf32> to vector<16x1xf32>
    %cst_103 = arith.constant 3.200000e+01 : f32
    %227 = vector.broadcast %cst_103 : f32 to vector<16x1xf32>
    %228 = arith.divf %226, %227 : vector<16x1xf32>
    %229 = vector.broadcast %228 : vector<16x1xf32> to vector<16x32xf32>
    %230 = arith.subf %220, %229 : vector<16x32xf32>
    %231 = arith.mulf %230, %230 : vector<16x32xf32>
    %cst_104 = arith.constant dense<0.000000e+00> : vector<16xf32>
    %232 = vector.multi_reduction <add>, %231, %cst_104 [1] : vector<16x32xf32> to vector<16xf32>
    %233 = vector.shape_cast %232 : vector<16xf32> to vector<16x1xf32>
    %cst_105 = arith.constant 3.200000e+01 : f32
    %234 = vector.broadcast %cst_105 : f32 to vector<16x1xf32>
    %235 = arith.divf %233, %234 : vector<16x1xf32>
    %236 = vector.broadcast %228 : vector<16x1xf32> to vector<16x32xf32>
    %237 = arith.subf %220, %236 : vector<16x32xf32>
    %cst_106 = arith.constant 9.99999974E-6 : f32
    %238 = vector.broadcast %cst_106 : f32 to vector<16x1xf32>
    %239 = arith.addf %235, %238 : vector<16x1xf32>
    %240 = math.rsqrt %239 : vector<16x1xf32>
    %241 = vector.broadcast %240 : vector<16x1xf32> to vector<16x32xf32>
    %242 = arith.mulf %237, %241 : vector<16x32xf32>
    %243 = vector.broadcast %222 : vector<1x32xf32> to vector<16x32xf32>
    %244 = arith.mulf %242, %243 : vector<16x32xf32>
    %245 = vector.broadcast %224 : vector<1x32xf32> to vector<16x32xf32>
    %246 = arith.addf %244, %245 : vector<16x32xf32>
    %c1_107 = arith.constant 1 : index
    %c0_108 = arith.constant 0 : index
    %c0_109 = arith.constant 0 : index
    %247 = vector.load %arg10[%c1_107, %c0_108, %c0_109] : memref<2x32x64xf32, #tpu.memory_space<vmem>>, vector<1x32x64xf32>
    %248 = vector.shape_cast %247 : vector<1x32x64xf32> to vector<32x64xf32>
    %249 = arith.truncf %246 : vector<16x32xf32> to vector<16x32xbf16>
    %250 = arith.truncf %248 : vector<32x64xf32> to vector<32x64xbf16>
    %cst_110 = arith.constant dense<0.000000e+00> : vector<16x64xf32>
    %251 = tpu.matmul %249, %250, %cst_110 {dimension_numbers = #tpu.dot_dimension_numbers<[1], [0], [0], [1], [0, 0, 1, 1], [], []>} : vector<16x32xbf16>, vector<32x64xbf16>, vector<16x64xf32> -> vector<16x64xf32>
    %c1_111 = arith.constant 1 : index
    %c0_112 = arith.constant 0 : index
    %c0_113 = arith.constant 0 : index
    %252 = vector.load %arg11[%c1_111, %c0_112, %c0_113] : memref<2x1x64xf32, #tpu.memory_space<vmem>>, vector<1x1x64xf32>
    %253 = vector.shape_cast %252 : vector<1x1x64xf32> to vector<1x64xf32>
    %254 = vector.broadcast %253 : vector<1x64xf32> to vector<16x64xf32>
    %255 = arith.addf %251, %254 : vector<16x64xf32>
    %256 = arith.mulf %255, %255 : vector<16x64xf32>
    %257 = arith.mulf %255, %256 : vector<16x64xf32>
    %cst_114 = arith.constant 4.471500e-02 : f32
    %258 = vector.broadcast %cst_114 : f32 to vector<16x64xf32>
    %259 = arith.mulf %258, %257 : vector<16x64xf32>
    %260 = arith.addf %255, %259 : vector<16x64xf32>
    %cst_115 = arith.constant 0.797884583 : f32
    %261 = vector.broadcast %cst_115 : f32 to vector<16x64xf32>
    %262 = arith.mulf %261, %260 : vector<16x64xf32>
    %263 = math.tanh %262 : vector<16x64xf32>
    %cst_116 = arith.constant 1.000000e+00 : f32
    %264 = vector.broadcast %cst_116 : f32 to vector<16x64xf32>
    %265 = arith.addf %264, %263 : vector<16x64xf32>
    %cst_117 = arith.constant 5.000000e-01 : f32
    %266 = vector.broadcast %cst_117 : f32 to vector<16x64xf32>
    %267 = arith.mulf %266, %265 : vector<16x64xf32>
    %268 = arith.mulf %255, %267 : vector<16x64xf32>
    %c1_118 = arith.constant 1 : index
    %c0_119 = arith.constant 0 : index
    %c0_120 = arith.constant 0 : index
    %269 = vector.load %arg12[%c1_118, %c0_119, %c0_120] : memref<2x64x32xf32, #tpu.memory_space<vmem>>, vector<1x64x32xf32>
    %270 = vector.shape_cast %269 : vector<1x64x32xf32> to vector<64x32xf32>
    %271 = arith.truncf %268 : vector<16x64xf32> to vector<16x64xbf16>
    %272 = arith.truncf %270 : vector<64x32xf32> to vector<64x32xbf16>
    %cst_121 = arith.constant dense<0.000000e+00> : vector<16x32xf32>
    %273 = tpu.matmul %271, %272, %cst_121 {dimension_numbers = #tpu.dot_dimension_numbers<[1], [0], [0], [1], [0, 0, 1, 1], [], []>} : vector<16x64xbf16>, vector<64x32xbf16>, vector<16x32xf32> -> vector<16x32xf32>
    %274 = arith.addf %220, %273 : vector<16x32xf32>
    %c1_122 = arith.constant 1 : index
    %c0_123 = arith.constant 0 : index
    %c0_124 = arith.constant 0 : index
    %275 = vector.load %arg13[%c1_122, %c0_123, %c0_124] : memref<2x1x32xf32, #tpu.memory_space<vmem>>, vector<1x1x32xf32>
    %276 = vector.shape_cast %275 : vector<1x1x32xf32> to vector<1x32xf32>
    %277 = vector.broadcast %276 : vector<1x32xf32> to vector<16x32xf32>
    %278 = arith.addf %274, %277 : vector<16x32xf32>
    %c0_125 = arith.constant 0 : index
    %c0_126 = arith.constant 0 : index
    %279 = vector.load %arg14[%c0_125, %c0_126] : memref<32x128xf32, #tpu.memory_space<vmem>>, vector<32x128xf32>
    %280 = arith.truncf %278 : vector<16x32xf32> to vector<16x32xbf16>
    %281 = arith.truncf %279 : vector<32x128xf32> to vector<32x128xbf16>
    %cst_127 = arith.constant dense<0.000000e+00> : vector<16x128xf32>
    %282 = tpu.matmul %280, %281, %cst_127 {dimension_numbers = #tpu.dot_dimension_numbers<[1], [0], [0], [1], [0, 0, 1, 1], [], []>} : vector<16x32xbf16>, vector<32x128xbf16>, vector<16x128xf32> -> vector<16x128xf32>
    %c0_128 = arith.constant 0 : index
    %c0_129 = arith.constant 0 : index
    %283 = vector.load %arg15[%c0_128, %c0_129] : memref<1x128xf32, #tpu.memory_space<vmem>>, vector<1x128xf32>
    %284 = vector.broadcast %283 : vector<1x128xf32> to vector<16x128xf32>
    %285 = arith.addf %282, %284 : vector<16x128xf32>
    %286 = arith.mulf %285, %285 : vector<16x128xf32>
    %287 = arith.mulf %285, %286 : vector<16x128xf32>
    %cst_130 = arith.constant 4.471500e-02 : f32
    %288 = vector.broadcast %cst_130 : f32 to vector<16x128xf32>
    %289 = arith.mulf %288, %287 : vector<16x128xf32>
    %290 = arith.addf %285, %289 : vector<16x128xf32>
    %cst_131 = arith.constant 0.797884583 : f32
    %291 = vector.broadcast %cst_131 : f32 to vector<16x128xf32>
    %292 = arith.mulf %291, %290 : vector<16x128xf32>
    %293 = math.tanh %292 : vector<16x128xf32>
    %cst_132 = arith.constant 1.000000e+00 : f32
    %294 = vector.broadcast %cst_132 : f32 to vector<16x128xf32>
    %295 = arith.addf %294, %293 : vector<16x128xf32>
    %cst_133 = arith.constant 5.000000e-01 : f32
    %296 = vector.broadcast %cst_133 : f32 to vector<16x128xf32>
    %297 = arith.mulf %296, %295 : vector<16x128xf32>
    %298 = arith.mulf %285, %297 : vector<16x128xf32>
    %c0_134 = arith.constant 0 : index
    %c0_135 = arith.constant 0 : index
    %299 = vector.load %arg16[%c0_134, %c0_135] : memref<9x128xf32, #tpu.memory_space<vmem>>, vector<1x128xf32>
    %300 = vector.broadcast %299 : vector<1x128xf32> to vector<16x128xf32>
    %301 = arith.mulf %298, %300 : vector<16x128xf32>
    %c1_136 = arith.constant 1 : index
    %c0_137 = arith.constant 0 : index
    %302 = vector.load %arg16[%c1_136, %c0_137] : memref<9x128xf32, #tpu.memory_space<vmem>>, vector<1x128xf32>
    %303 = vector.broadcast %302 : vector<1x128xf32> to vector<16x128xf32>
    %304 = arith.mulf %298, %303 : vector<16x128xf32>
    %c2 = arith.constant 2 : index
    %c0_138 = arith.constant 0 : index
    %305 = vector.load %arg16[%c2, %c0_138] : memref<9x128xf32, #tpu.memory_space<vmem>>, vector<1x128xf32>
    %306 = vector.broadcast %305 : vector<1x128xf32> to vector<16x128xf32>
    %307 = arith.mulf %298, %306 : vector<16x128xf32>
    %c3 = arith.constant 3 : index
    %c0_139 = arith.constant 0 : index
    %308 = vector.load %arg16[%c3, %c0_139] : memref<9x128xf32, #tpu.memory_space<vmem>>, vector<1x128xf32>
    %309 = vector.broadcast %308 : vector<1x128xf32> to vector<16x128xf32>
    %310 = arith.mulf %298, %309 : vector<16x128xf32>
    %c4 = arith.constant 4 : index
    %c0_140 = arith.constant 0 : index
    %311 = vector.load %arg16[%c4, %c0_140] : memref<9x128xf32, #tpu.memory_space<vmem>>, vector<1x128xf32>
    %312 = vector.broadcast %311 : vector<1x128xf32> to vector<16x128xf32>
    %313 = arith.mulf %298, %312 : vector<16x128xf32>
    %c5 = arith.constant 5 : index
    %c0_141 = arith.constant 0 : index
    %314 = vector.load %arg16[%c5, %c0_141] : memref<9x128xf32, #tpu.memory_space<vmem>>, vector<1x128xf32>
    %315 = vector.broadcast %314 : vector<1x128xf32> to vector<16x128xf32>
    %316 = arith.mulf %298, %315 : vector<16x128xf32>
    %c6 = arith.constant 6 : index
    %c0_142 = arith.constant 0 : index
    %317 = vector.load %arg16[%c6, %c0_142] : memref<9x128xf32, #tpu.memory_space<vmem>>, vector<1x128xf32>
    %318 = vector.broadcast %317 : vector<1x128xf32> to vector<16x128xf32>
    %319 = arith.mulf %298, %318 : vector<16x128xf32>
    %c7 = arith.constant 7 : index
    %c0_143 = arith.constant 0 : index
    %320 = vector.load %arg16[%c7, %c0_143] : memref<9x128xf32, #tpu.memory_space<vmem>>, vector<1x128xf32>
    %321 = vector.broadcast %320 : vector<1x128xf32> to vector<16x128xf32>
    %322 = arith.mulf %298, %321 : vector<16x128xf32>
    %c8 = arith.constant 8 : index
    %c0_144 = arith.constant 0 : index
    %323 = vector.load %arg16[%c8, %c0_144] : memref<9x128xf32, #tpu.memory_space<vmem>>, vector<1x128xf32>
    %324 = vector.broadcast %323 : vector<1x128xf32> to vector<16x128xf32>
    %325 = arith.mulf %298, %324 : vector<16x128xf32>
    %326 = tpu.concatenate %301, %304, %307, %310, %313, %316, %319, %322, %325 in 0 : vector<16x128xf32>, vector<16x128xf32>, vector<16x128xf32>, vector<16x128xf32>, vector<16x128xf32>, vector<16x128xf32>, vector<16x128xf32>, vector<16x128xf32>, vector<16x128xf32> -> vector<144x128xf32>
    %c0_145 = arith.constant 0 : index
    %c0_146 = arith.constant 0 : index
    %327 = vector.load %arg18[%c0_145, %c0_146] : memref<16x144xf32, #tpu.memory_space<vmem>>, vector<16x144xf32>
    %328 = arith.truncf %327 : vector<16x144xf32> to vector<16x144xbf16>
    %329 = arith.truncf %326 : vector<144x128xf32> to vector<144x128xbf16>
    %cst_147 = arith.constant dense<0.000000e+00> : vector<16x128xf32>
    %330 = tpu.matmul %328, %329, %cst_147 {dimension_numbers = #tpu.dot_dimension_numbers<[1], [0], [0], [1], [0, 0, 1, 1], [], []>} : vector<16x144xbf16>, vector<144x128xbf16>, vector<16x128xf32> -> vector<16x128xf32>
    %c0_148 = arith.constant 0 : index
    %c0_149 = arith.constant 0 : index
    %331 = vector.load %arg17[%c0_148, %c0_149] : memref<1x128xf32, #tpu.memory_space<vmem>>, vector<1x128xf32>
    %332 = vector.broadcast %331 : vector<1x128xf32> to vector<16x128xf32>
    %333 = arith.addf %330, %332 : vector<16x128xf32>
    %334 = arith.mulf %333, %333 : vector<16x128xf32>
    %335 = arith.mulf %333, %334 : vector<16x128xf32>
    %cst_150 = arith.constant 4.471500e-02 : f32
    %336 = vector.broadcast %cst_150 : f32 to vector<16x128xf32>
    %337 = arith.mulf %336, %335 : vector<16x128xf32>
    %338 = arith.addf %333, %337 : vector<16x128xf32>
    %cst_151 = arith.constant 0.797884583 : f32
    %339 = vector.broadcast %cst_151 : f32 to vector<16x128xf32>
    %340 = arith.mulf %339, %338 : vector<16x128xf32>
    %341 = math.tanh %340 : vector<16x128xf32>
    %cst_152 = arith.constant 1.000000e+00 : f32
    %342 = vector.broadcast %cst_152 : f32 to vector<16x128xf32>
    %343 = arith.addf %342, %341 : vector<16x128xf32>
    %cst_153 = arith.constant 5.000000e-01 : f32
    %344 = vector.broadcast %cst_153 : f32 to vector<16x128xf32>
    %345 = arith.mulf %344, %343 : vector<16x128xf32>
    %346 = arith.mulf %333, %345 : vector<16x128xf32>
    %c0_154 = arith.constant 0 : index
    %c0_155 = arith.constant 0 : index
    %347 = vector.load %arg19[%c0_154, %c0_155] : memref<128x32xf32, #tpu.memory_space<vmem>>, vector<128x32xf32>
    %348 = arith.truncf %346 : vector<16x128xf32> to vector<16x128xbf16>
    %349 = arith.truncf %347 : vector<128x32xf32> to vector<128x32xbf16>
    %cst_156 = arith.constant dense<0.000000e+00> : vector<16x32xf32>
    %350 = tpu.matmul %348, %349, %cst_156 {dimension_numbers = #tpu.dot_dimension_numbers<[1], [0], [0], [1], [0, 0, 1, 1], [], []>} : vector<16x128xbf16>, vector<128x32xbf16>, vector<16x32xf32> -> vector<16x32xf32>
    %351 = arith.addf %278, %350 : vector<16x32xf32>
    %c0_157 = arith.constant 0 : index
    %c0_158 = arith.constant 0 : index
    %352 = vector.load %arg20[%c0_157, %c0_158] : memref<1x32xf32, #tpu.memory_space<vmem>>, vector<1x32xf32>
    %353 = vector.broadcast %352 : vector<1x32xf32> to vector<16x32xf32>
    %354 = arith.addf %351, %353 : vector<16x32xf32>
    %c0_159 = arith.constant 0 : index
    %c0_160 = arith.constant 0 : index
    %c0_161 = arith.constant 0 : index
    %355 = vector.load %arg21[%c0_159, %c0_160, %c0_161] : memref<1x16x32xf32, #tpu.memory_space<vmem>>, vector<1x16x32xf32>
    %356 = vector.shape_cast %355 : vector<1x16x32xf32> to vector<16x32xf32>
    %357 = vector.shape_cast %354 : vector<16x32xf32> to vector<1x16x32xf32>
    tpu.vector_store %arg21[%c0_159, %c0_160, %c0_161], %357 {strides = array<i32>} : memref<1x16x32xf32, #tpu.memory_space<vmem>>, vector<1x16x32xf32>,
    return
  }
  func.func @transform_0(%arg0: i32) -> (i32, i32, i32) {
    %c0_i32 = arith.constant 0 : i32
    %c0_i32_0 = arith.constant 0 : i32
    %c0_i32_1 = arith.constant 0 : i32
    return %arg0, %c0_i32, %c0_i32_0 : i32, i32, i32
  }
  func.func @transform_1(%arg0: i32) -> (i32, i32, i32) {
    %c0_i32 = arith.constant 0 : i32
    %c0_i32_0 = arith.constant 0 : i32
    %c0_i32_1 = arith.constant 0 : i32
    return %arg0, %c0_i32, %c0_i32_0 : i32, i32, i32
  }
  func.func @transform_2(%arg0: i32) -> (i32, i32, i32) {
    %c0_i32 = arith.constant 0 : i32
    %c0_i32_0 = arith.constant 0 : i32
    %c0_i32_1 = arith.constant 0 : i32
    %c0_i32_2 = arith.constant 0 : i32
    return %c0_i32, %c0_i32_0, %c0_i32_1 : i32, i32, i32
  }
  func.func @transform_3(%arg0: i32) -> (i32, i32, i32) {
    %c0_i32 = arith.constant 0 : i32
    %c0_i32_0 = arith.constant 0 : i32
    %c0_i32_1 = arith.constant 0 : i32
    %c0_i32_2 = arith.constant 0 : i32
    return %c0_i32, %c0_i32_0, %c0_i32_1 : i32, i32, i32
  }
  func.func @transform_4(%arg0: i32) -> (i32, i32, i32) {
    %c0_i32 = arith.constant 0 : i32
    %c0_i32_0 = arith.constant 0 : i32
    %c0_i32_1 = arith.constant 0 : i32
    %c0_i32_2 = arith.constant 0 : i32
    return %c0_i32, %c0_i32_0, %c0_i32_1 : i32, i32, i32
  }
  func.func @transform_5(%arg0: i32) -> (i32, i32, i32) {
    %c0_i32 = arith.constant 0 : i32
    %c0_i32_0 = arith.constant 0 : i32
    %c0_i32_1 = arith.constant 0 : i32
    %c0_i32_2 = arith.constant 0 : i32
    return %c0_i32, %c0_i32_0, %c0_i32_1 : i32, i32, i32
  }
  func.func @transform_6(%arg0: i32) -> (i32, i32, i32) {
    %c0_i32 = arith.constant 0 : i32
    %c0_i32_0 = arith.constant 0 : i32
    %c0_i32_1 = arith.constant 0 : i32
    %c0_i32_2 = arith.constant 0 : i32
    return %c0_i32, %c0_i32_0, %c0_i32_1 : i32, i32, i32
  }
  func.func @transform_7(%arg0: i32) -> (i32, i32, i32) {
    %c0_i32 = arith.constant 0 : i32
    %c0_i32_0 = arith.constant 0 : i32
    %c0_i32_1 = arith.constant 0 : i32
    %c0_i32_2 = arith.constant 0 : i32
    return %c0_i32, %c0_i32_0, %c0_i32_1 : i32, i32, i32
  }
  func.func @transform_8(%arg0: i32) -> (i32, i32, i32) {
    %c0_i32 = arith.constant 0 : i32
    %c0_i32_0 = arith.constant 0 : i32
    %c0_i32_1 = arith.constant 0 : i32
    %c0_i32_2 = arith.constant 0 : i32
    return %c0_i32, %c0_i32_0, %c0_i32_1 : i32, i32, i32
  }
  func.func @transform_9(%arg0: i32) -> (i32, i32, i32) {
    %c0_i32 = arith.constant 0 : i32
    %c0_i32_0 = arith.constant 0 : i32
    %c0_i32_1 = arith.constant 0 : i32
    %c0_i32_2 = arith.constant 0 : i32
    return %c0_i32, %c0_i32_0, %c0_i32_1 : i32, i32, i32
  }
  func.func @transform_10(%arg0: i32) -> (i32, i32, i32) {
    %c0_i32 = arith.constant 0 : i32
    %c0_i32_0 = arith.constant 0 : i32
    %c0_i32_1 = arith.constant 0 : i32
    %c0_i32_2 = arith.constant 0 : i32
    return %c0_i32, %c0_i32_0, %c0_i32_1 : i32, i32, i32
  }
  func.func @transform_11(%arg0: i32) -> (i32, i32, i32) {
    %c0_i32 = arith.constant 0 : i32
    %c0_i32_0 = arith.constant 0 : i32
    %c0_i32_1 = arith.constant 0 : i32
    %c0_i32_2 = arith.constant 0 : i32
    return %c0_i32, %c0_i32_0, %c0_i32_1 : i32, i32, i32
  }
  func.func @transform_12(%arg0: i32) -> (i32, i32, i32) {
    %c0_i32 = arith.constant 0 : i32
    %c0_i32_0 = arith.constant 0 : i32
    %c0_i32_1 = arith.constant 0 : i32
    %c0_i32_2 = arith.constant 0 : i32
    return %c0_i32, %c0_i32_0, %c0_i32_1 : i32, i32, i32
  }
  func.func @transform_13(%arg0: i32) -> (i32, i32) {
    %c0_i32 = arith.constant 0 : i32
    %c0_i32_0 = arith.constant 0 : i32
    %c0_i32_1 = arith.constant 0 : i32
    return %c0_i32, %c0_i32_0 : i32, i32
  }
  func.func @transform_14(%arg0: i32) -> (i32, i32) {
    %c0_i32 = arith.constant 0 : i32
    %c0_i32_0 = arith.constant 0 : i32
    %c0_i32_1 = arith.constant 0 : i32
    return %c0_i32, %c0_i32_0 : i32, i32
  }
  func.func @transform_15(%arg0: i32) -> (i32, i32) {
    %c0_i32 = arith.constant 0 : i32
    %c0_i32_0 = arith.constant 0 : i32
    %c0_i32_1 = arith.constant 0 : i32
    return %c0_i32, %c0_i32_0 : i32, i32
  }
  func.func @transform_16(%arg0: i32) -> (i32, i32) {
    %c0_i32 = arith.constant 0 : i32
    %c0_i32_0 = arith.constant 0 : i32
    %c0_i32_1 = arith.constant 0 : i32
    return %c0_i32, %c0_i32_0 : i32, i32
  }
  func.func @transform_17(%arg0: i32) -> (i32, i32) {
    %c0_i32 = arith.constant 0 : i32
    %c0_i32_0 = arith.constant 0 : i32
    %c0_i32_1 = arith.constant 0 : i32
    return %c0_i32, %c0_i32_0 : i32, i32
  }
  func.func @transform_18(%arg0: i32) -> (i32, i32) {
    %c0_i32 = arith.constant 0 : i32
    %c0_i32_0 = arith.constant 0 : i32
    %c0_i32_1 = arith.constant 0 : i32
    return %c0_i32, %c0_i32_0 : i32, i32
  }
  func.func @transform_19(%arg0: i32) -> (i32, i32) {
    %c0_i32 = arith.constant 0 : i32
    %c0_i32_0 = arith.constant 0 : i32
    %c0_i32_1 = arith.constant 0 : i32
    return %c0_i32, %c0_i32_0 : i32, i32
  }
  func.func @transform_20(%arg0: i32) -> (i32, i32, i32) {
    %c0_i32 = arith.constant 0 : i32
    %c0_i32_0 = arith.constant 0 : i32
    %c0_i32_1 = arith.constant 0 : i32
    return %arg0, %c0_i32, %c0_i32_0 : i32, i32, i32
  }
}

module attributes {stable_mosaic.version = 11 : i64} {
  func.func @_tx_block_kernel(%arg0: i32, %arg1: memref<1x16x32xf32, #tpu.memory_space<vmem>>, %arg2: memref<1x16x32xf32, #tpu.memory_space<vmem>>, %arg3: memref<1x16x32xf32, #tpu.memory_space<vmem>>, %arg4: memref<2x1x32xf32, #tpu.memory_space<vmem>>, %arg5: memref<2x1x32xf32, #tpu.memory_space<vmem>>, %arg6: memref<2x32x96xf32, #tpu.memory_space<vmem>>, %arg7: memref<2x32x32xf32, #tpu.memory_space<vmem>>, %arg8: memref<2x1x32xf32, #tpu.memory_space<vmem>>, %arg9: memref<2x1x32xf32, #tpu.memory_space<vmem>>, %arg10: memref<2x1x32xf32, #tpu.memory_space<vmem>>, %arg11: memref<2x32x64xf32, #tpu.memory_space<vmem>>, %arg12: memref<2x1x64xf32, #tpu.memory_space<vmem>>, %arg13: memref<2x64x32xf32, #tpu.memory_space<vmem>>, %arg14: memref<2x1x32xf32, #tpu.memory_space<vmem>>, %arg15: memref<1x16x32xf32, #tpu.memory_space<vmem>>) attributes {dimension_semantics = [#tpu.dimension_semantics<parallel>], iteration_bounds = array<i64: 2>, scalar_prefetch = 0 : i64, scratch_operands = 0 : i64, tpu.core_type = #tpu.core_type<tc>, window_params = [{transform_indices = @transform_0, window_bounds = array<i64: 1, 16, 32>}, {transform_indices = @transform_1, window_bounds = array<i64: 1, 16, 32>}, {transform_indices = @transform_2, window_bounds = array<i64: 1, 16, 32>}, {pipeline_mode = #tpu.pipeline_mode<synchronous>, transform_indices = @transform_3, window_bounds = array<i64: 2, 1, 32>}, {pipeline_mode = #tpu.pipeline_mode<synchronous>, transform_indices = @transform_4, window_bounds = array<i64: 2, 1, 32>}, {pipeline_mode = #tpu.pipeline_mode<synchronous>, transform_indices = @transform_5, window_bounds = array<i64: 2, 32, 96>}, {pipeline_mode = #tpu.pipeline_mode<synchronous>, transform_indices = @transform_6, window_bounds = array<i64: 2, 32, 32>}, {pipeline_mode = #tpu.pipeline_mode<synchronous>, transform_indices = @transform_7, window_bounds = array<i64: 2, 1, 32>}, {pipeline_mode = #tpu.pipeline_mode<synchronous>, transform_indices = @transform_8, window_bounds = array<i64: 2, 1, 32>}, {pipeline_mode = #tpu.pipeline_mode<synchronous>, transform_indices = @transform_9, window_bounds = array<i64: 2, 1, 32>}, {pipeline_mode = #tpu.pipeline_mode<synchronous>, transform_indices = @transform_10, window_bounds = array<i64: 2, 32, 64>}, {pipeline_mode = #tpu.pipeline_mode<synchronous>, transform_indices = @transform_11, window_bounds = array<i64: 2, 1, 64>}, {pipeline_mode = #tpu.pipeline_mode<synchronous>, transform_indices = @transform_12, window_bounds = array<i64: 2, 64, 32>}, {pipeline_mode = #tpu.pipeline_mode<synchronous>, transform_indices = @transform_13, window_bounds = array<i64: 2, 1, 32>}, {transform_indices = @transform_14, window_bounds = array<i64: 1, 16, 32>}]} {
    %c0 = arith.constant 0 : index
    %c0_0 = arith.constant 0 : index
    %c0_1 = arith.constant 0 : index
    %0 = vector.load %arg1[%c0, %c0_0, %c0_1] : memref<1x16x32xf32, #tpu.memory_space<vmem>>, vector<1x16x32xf32>
    %1 = vector.shape_cast %0 : vector<1x16x32xf32> to vector<16x32xf32>
    %c0_2 = arith.constant 0 : index
    %c0_3 = arith.constant 0 : index
    %c0_4 = arith.constant 0 : index
    %2 = vector.load %arg2[%c0_2, %c0_3, %c0_4] : memref<1x16x32xf32, #tpu.memory_space<vmem>>, vector<1x16x32xf32>
    %3 = vector.shape_cast %2 : vector<1x16x32xf32> to vector<16x32xf32>
    %4 = arith.addf %1, %3 : vector<16x32xf32>
    %c0_5 = arith.constant 0 : index
    %c0_6 = arith.constant 0 : index
    %c0_7 = arith.constant 0 : index
    %5 = vector.load %arg3[%c0_5, %c0_6, %c0_7] : memref<1x16x32xf32, #tpu.memory_space<vmem>>, vector<1x16x32xf32>
    %6 = vector.shape_cast %5 : vector<1x16x32xf32> to vector<16x32xf32>
    %7 = arith.addf %4, %6 : vector<16x32xf32>
    %c0_8 = arith.constant 0 : index
    %c0_9 = arith.constant 0 : index
    %c0_10 = arith.constant 0 : index
    %8 = vector.load %arg4[%c0_8, %c0_9, %c0_10] : memref<2x1x32xf32, #tpu.memory_space<vmem>>, vector<1x1x32xf32>
    %9 = vector.shape_cast %8 : vector<1x1x32xf32> to vector<1x32xf32>
    %c0_11 = arith.constant 0 : index
    %c0_12 = arith.constant 0 : index
    %c0_13 = arith.constant 0 : index
    %10 = vector.load %arg5[%c0_11, %c0_12, %c0_13] : memref<2x1x32xf32, #tpu.memory_space<vmem>>, vector<1x1x32xf32>
    %11 = vector.shape_cast %10 : vector<1x1x32xf32> to vector<1x32xf32>
    %cst = arith.constant dense<0.000000e+00> : vector<16xf32>
    %12 = vector.multi_reduction <add>, %7, %cst [1] : vector<16x32xf32> to vector<16xf32>
    %13 = vector.shape_cast %12 : vector<16xf32> to vector<16x1xf32>
    %cst_14 = arith.constant 3.200000e+01 : f32
    %14 = vector.broadcast %cst_14 : f32 to vector<16x1xf32>
    %15 = arith.divf %13, %14 : vector<16x1xf32>
    %16 = vector.broadcast %15 : vector<16x1xf32> to vector<16x32xf32>
    %17 = arith.subf %7, %16 : vector<16x32xf32>
    %18 = arith.mulf %17, %17 : vector<16x32xf32>
    %cst_15 = arith.constant dense<0.000000e+00> : vector<16xf32>
    %19 = vector.multi_reduction <add>, %18, %cst_15 [1] : vector<16x32xf32> to vector<16xf32>
    %20 = vector.shape_cast %19 : vector<16xf32> to vector<16x1xf32>
    %cst_16 = arith.constant 3.200000e+01 : f32
    %21 = vector.broadcast %cst_16 : f32 to vector<16x1xf32>
    %22 = arith.divf %20, %21 : vector<16x1xf32>
    %23 = vector.broadcast %15 : vector<16x1xf32> to vector<16x32xf32>
    %24 = arith.subf %7, %23 : vector<16x32xf32>
    %cst_17 = arith.constant 9.99999974E-6 : f32
    %25 = vector.broadcast %cst_17 : f32 to vector<16x1xf32>
    %26 = arith.addf %22, %25 : vector<16x1xf32>
    %27 = math.rsqrt %26 : vector<16x1xf32>
    %28 = vector.broadcast %27 : vector<16x1xf32> to vector<16x32xf32>
    %29 = arith.mulf %24, %28 : vector<16x32xf32>
    %30 = vector.broadcast %9 : vector<1x32xf32> to vector<16x32xf32>
    %31 = arith.mulf %29, %30 : vector<16x32xf32>
    %32 = vector.broadcast %11 : vector<1x32xf32> to vector<16x32xf32>
    %33 = arith.addf %31, %32 : vector<16x32xf32>
    %c0_18 = arith.constant 0 : index
    %c0_19 = arith.constant 0 : index
    %c0_20 = arith.constant 0 : index
    %34 = vector.load %arg6[%c0_18, %c0_19, %c0_20] : memref<2x32x96xf32, #tpu.memory_space<vmem>>, vector<1x32x96xf32>
    %35 = vector.shape_cast %34 : vector<1x32x96xf32> to vector<32x96xf32>
    %36 = arith.truncf %33 : vector<16x32xf32> to vector<16x32xbf16>
    %37 = arith.truncf %35 : vector<32x96xf32> to vector<32x96xbf16>
    %cst_21 = arith.constant dense<0.000000e+00> : vector<16x96xf32>
    %38 = tpu.matmul %36, %37, %cst_21 {dimension_numbers = #tpu.dot_dimension_numbers<[1], [0], [0], [1], [0, 0, 1, 1], [], []>} : vector<16x32xbf16>, vector<32x96xbf16>, vector<16x96xf32> -> vector<16x96xf32>
    %39 = vector.extract_strided_slice %38 {offsets = [0, 0], sizes = [16, 32], strides = [1, 1]} : vector<16x96xf32> to vector<16x32xf32>
    %40 = vector.extract_strided_slice %38 {offsets = [0, 32], sizes = [16, 32], strides = [1, 1]} : vector<16x96xf32> to vector<16x32xf32>
    %41 = vector.extract_strided_slice %38 {offsets = [0, 64], sizes = [16, 32], strides = [1, 1]} : vector<16x96xf32> to vector<16x32xf32>
    %42 = vector.extract_strided_slice %39 {offsets = [0, 0], sizes = [16, 16], strides = [1, 1]} : vector<16x32xf32> to vector<16x16xf32>
    %43 = vector.extract_strided_slice %40 {offsets = [0, 0], sizes = [16, 16], strides = [1, 1]} : vector<16x32xf32> to vector<16x16xf32>
    %44 = vector.extract_strided_slice %41 {offsets = [0, 0], sizes = [16, 16], strides = [1, 1]} : vector<16x32xf32> to vector<16x16xf32>
    %cst_22 = arith.constant dense<0.000000e+00> : vector<16x16xf32>
    %45 = tpu.matmul %42, %43, %cst_22 {dimension_numbers = #tpu.dot_dimension_numbers<[1], [1], [0], [0], [0, 0, 1, 0], [], []>} : vector<16x16xf32>, vector<16x16xf32>, vector<16x16xf32> -> vector<16x16xf32>
    %cst_23 = arith.constant 2.500000e-01 : f32
    %46 = vector.broadcast %cst_23 : f32 to vector<16x16xf32>
    %47 = arith.mulf %45, %46 : vector<16x16xf32>
    %cst_24 = arith.constant dense<0xFF800000> : vector<16xf32>
    %48 = vector.multi_reduction <maximumf>, %47, %cst_24 [1] : vector<16x16xf32> to vector<16xf32>
    %49 = vector.shape_cast %48 : vector<16xf32> to vector<16x1xf32>
    %50 = vector.broadcast %49 : vector<16x1xf32> to vector<16x16xf32>
    %51 = arith.subf %47, %50 : vector<16x16xf32>
    %52 = math.exp %51 : vector<16x16xf32>
    %cst_25 = arith.constant dense<0.000000e+00> : vector<16xf32>
    %53 = vector.multi_reduction <add>, %52, %cst_25 [1] : vector<16x16xf32> to vector<16xf32>
    %54 = vector.shape_cast %53 : vector<16xf32> to vector<16x1xf32>
    %55 = tpu.reciprocal %54 {approx = true} : vector<16x1xf32> -> vector<16x1xf32>
    %56 = vector.broadcast %55 : vector<16x1xf32> to vector<16x16xf32>
    %57 = arith.mulf %52, %56 : vector<16x16xf32>
    %cst_26 = arith.constant dense<0.000000e+00> : vector<16x16xf32>
    %58 = tpu.matmul %57, %44, %cst_26 {dimension_numbers = #tpu.dot_dimension_numbers<[1], [0], [0], [1], [0, 0, 1, 1], [], []>} : vector<16x16xf32>, vector<16x16xf32>, vector<16x16xf32> -> vector<16x16xf32>
    %59 = vector.extract_strided_slice %39 {offsets = [0, 16], sizes = [16, 16], strides = [1, 1]} : vector<16x32xf32> to vector<16x16xf32>
    %60 = vector.extract_strided_slice %40 {offsets = [0, 16], sizes = [16, 16], strides = [1, 1]} : vector<16x32xf32> to vector<16x16xf32>
    %61 = vector.extract_strided_slice %41 {offsets = [0, 16], sizes = [16, 16], strides = [1, 1]} : vector<16x32xf32> to vector<16x16xf32>
    %cst_27 = arith.constant dense<0.000000e+00> : vector<16x16xf32>
    %62 = tpu.matmul %59, %60, %cst_27 {dimension_numbers = #tpu.dot_dimension_numbers<[1], [1], [0], [0], [0, 0, 1, 0], [], []>} : vector<16x16xf32>, vector<16x16xf32>, vector<16x16xf32> -> vector<16x16xf32>
    %cst_28 = arith.constant 2.500000e-01 : f32
    %63 = vector.broadcast %cst_28 : f32 to vector<16x16xf32>
    %64 = arith.mulf %62, %63 : vector<16x16xf32>
    %cst_29 = arith.constant dense<0xFF800000> : vector<16xf32>
    %65 = vector.multi_reduction <maximumf>, %64, %cst_29 [1] : vector<16x16xf32> to vector<16xf32>
    %66 = vector.shape_cast %65 : vector<16xf32> to vector<16x1xf32>
    %67 = vector.broadcast %66 : vector<16x1xf32> to vector<16x16xf32>
    %68 = arith.subf %64, %67 : vector<16x16xf32>
    %69 = math.exp %68 : vector<16x16xf32>
    %cst_30 = arith.constant dense<0.000000e+00> : vector<16xf32>
    %70 = vector.multi_reduction <add>, %69, %cst_30 [1] : vector<16x16xf32> to vector<16xf32>
    %71 = vector.shape_cast %70 : vector<16xf32> to vector<16x1xf32>
    %72 = tpu.reciprocal %71 {approx = true} : vector<16x1xf32> -> vector<16x1xf32>
    %73 = vector.broadcast %72 : vector<16x1xf32> to vector<16x16xf32>
    %74 = arith.mulf %69, %73 : vector<16x16xf32>
    %cst_31 = arith.constant dense<0.000000e+00> : vector<16x16xf32>
    %75 = tpu.matmul %74, %61, %cst_31 {dimension_numbers = #tpu.dot_dimension_numbers<[1], [0], [0], [1], [0, 0, 1, 1], [], []>} : vector<16x16xf32>, vector<16x16xf32>, vector<16x16xf32> -> vector<16x16xf32>
    %76 = tpu.concatenate %58, %75 in 1 : vector<16x16xf32>, vector<16x16xf32> -> vector<16x32xf32>
    %c0_32 = arith.constant 0 : index
    %c0_33 = arith.constant 0 : index
    %c0_34 = arith.constant 0 : index
    %77 = vector.load %arg7[%c0_32, %c0_33, %c0_34] : memref<2x32x32xf32, #tpu.memory_space<vmem>>, vector<1x32x32xf32>
    %78 = vector.shape_cast %77 : vector<1x32x32xf32> to vector<32x32xf32>
    %79 = arith.truncf %76 : vector<16x32xf32> to vector<16x32xbf16>
    %80 = arith.truncf %78 : vector<32x32xf32> to vector<32x32xbf16>
    %cst_35 = arith.constant dense<0.000000e+00> : vector<16x32xf32>
    %81 = tpu.matmul %79, %80, %cst_35 {dimension_numbers = #tpu.dot_dimension_numbers<[1], [0], [0], [1], [0, 0, 1, 1], [], []>} : vector<16x32xbf16>, vector<32x32xbf16>, vector<16x32xf32> -> vector<16x32xf32>
    %82 = arith.addf %7, %81 : vector<16x32xf32>
    %c0_36 = arith.constant 0 : index
    %c0_37 = arith.constant 0 : index
    %c0_38 = arith.constant 0 : index
    %83 = vector.load %arg8[%c0_36, %c0_37, %c0_38] : memref<2x1x32xf32, #tpu.memory_space<vmem>>, vector<1x1x32xf32>
    %84 = vector.shape_cast %83 : vector<1x1x32xf32> to vector<1x32xf32>
    %85 = vector.broadcast %84 : vector<1x32xf32> to vector<16x32xf32>
    %86 = arith.addf %82, %85 : vector<16x32xf32>
    %c0_39 = arith.constant 0 : index
    %c0_40 = arith.constant 0 : index
    %c0_41 = arith.constant 0 : index
    %87 = vector.load %arg9[%c0_39, %c0_40, %c0_41] : memref<2x1x32xf32, #tpu.memory_space<vmem>>, vector<1x1x32xf32>
    %88 = vector.shape_cast %87 : vector<1x1x32xf32> to vector<1x32xf32>
    %c0_42 = arith.constant 0 : index
    %c0_43 = arith.constant 0 : index
    %c0_44 = arith.constant 0 : index
    %89 = vector.load %arg10[%c0_42, %c0_43, %c0_44] : memref<2x1x32xf32, #tpu.memory_space<vmem>>, vector<1x1x32xf32>
    %90 = vector.shape_cast %89 : vector<1x1x32xf32> to vector<1x32xf32>
    %cst_45 = arith.constant dense<0.000000e+00> : vector<16xf32>
    %91 = vector.multi_reduction <add>, %86, %cst_45 [1] : vector<16x32xf32> to vector<16xf32>
    %92 = vector.shape_cast %91 : vector<16xf32> to vector<16x1xf32>
    %cst_46 = arith.constant 3.200000e+01 : f32
    %93 = vector.broadcast %cst_46 : f32 to vector<16x1xf32>
    %94 = arith.divf %92, %93 : vector<16x1xf32>
    %95 = vector.broadcast %94 : vector<16x1xf32> to vector<16x32xf32>
    %96 = arith.subf %86, %95 : vector<16x32xf32>
    %97 = arith.mulf %96, %96 : vector<16x32xf32>
    %cst_47 = arith.constant dense<0.000000e+00> : vector<16xf32>
    %98 = vector.multi_reduction <add>, %97, %cst_47 [1] : vector<16x32xf32> to vector<16xf32>
    %99 = vector.shape_cast %98 : vector<16xf32> to vector<16x1xf32>
    %cst_48 = arith.constant 3.200000e+01 : f32
    %100 = vector.broadcast %cst_48 : f32 to vector<16x1xf32>
    %101 = arith.divf %99, %100 : vector<16x1xf32>
    %102 = vector.broadcast %94 : vector<16x1xf32> to vector<16x32xf32>
    %103 = arith.subf %86, %102 : vector<16x32xf32>
    %cst_49 = arith.constant 9.99999974E-6 : f32
    %104 = vector.broadcast %cst_49 : f32 to vector<16x1xf32>
    %105 = arith.addf %101, %104 : vector<16x1xf32>
    %106 = math.rsqrt %105 : vector<16x1xf32>
    %107 = vector.broadcast %106 : vector<16x1xf32> to vector<16x32xf32>
    %108 = arith.mulf %103, %107 : vector<16x32xf32>
    %109 = vector.broadcast %88 : vector<1x32xf32> to vector<16x32xf32>
    %110 = arith.mulf %108, %109 : vector<16x32xf32>
    %111 = vector.broadcast %90 : vector<1x32xf32> to vector<16x32xf32>
    %112 = arith.addf %110, %111 : vector<16x32xf32>
    %c0_50 = arith.constant 0 : index
    %c0_51 = arith.constant 0 : index
    %c0_52 = arith.constant 0 : index
    %113 = vector.load %arg11[%c0_50, %c0_51, %c0_52] : memref<2x32x64xf32, #tpu.memory_space<vmem>>, vector<1x32x64xf32>
    %114 = vector.shape_cast %113 : vector<1x32x64xf32> to vector<32x64xf32>
    %115 = arith.truncf %112 : vector<16x32xf32> to vector<16x32xbf16>
    %116 = arith.truncf %114 : vector<32x64xf32> to vector<32x64xbf16>
    %cst_53 = arith.constant dense<0.000000e+00> : vector<16x64xf32>
    %117 = tpu.matmul %115, %116, %cst_53 {dimension_numbers = #tpu.dot_dimension_numbers<[1], [0], [0], [1], [0, 0, 1, 1], [], []>} : vector<16x32xbf16>, vector<32x64xbf16>, vector<16x64xf32> -> vector<16x64xf32>
    %c0_54 = arith.constant 0 : index
    %c0_55 = arith.constant 0 : index
    %c0_56 = arith.constant 0 : index
    %118 = vector.load %arg12[%c0_54, %c0_55, %c0_56] : memref<2x1x64xf32, #tpu.memory_space<vmem>>, vector<1x1x64xf32>
    %119 = vector.shape_cast %118 : vector<1x1x64xf32> to vector<1x64xf32>
    %120 = vector.broadcast %119 : vector<1x64xf32> to vector<16x64xf32>
    %121 = arith.addf %117, %120 : vector<16x64xf32>
    %122 = arith.mulf %121, %121 : vector<16x64xf32>
    %123 = arith.mulf %121, %122 : vector<16x64xf32>
    %cst_57 = arith.constant 4.471500e-02 : f32
    %124 = vector.broadcast %cst_57 : f32 to vector<16x64xf32>
    %125 = arith.mulf %124, %123 : vector<16x64xf32>
    %126 = arith.addf %121, %125 : vector<16x64xf32>
    %cst_58 = arith.constant 0.797884583 : f32
    %127 = vector.broadcast %cst_58 : f32 to vector<16x64xf32>
    %128 = arith.mulf %127, %126 : vector<16x64xf32>
    %129 = math.tanh %128 : vector<16x64xf32>
    %cst_59 = arith.constant 1.000000e+00 : f32
    %130 = vector.broadcast %cst_59 : f32 to vector<16x64xf32>
    %131 = arith.addf %130, %129 : vector<16x64xf32>
    %cst_60 = arith.constant 5.000000e-01 : f32
    %132 = vector.broadcast %cst_60 : f32 to vector<16x64xf32>
    %133 = arith.mulf %132, %131 : vector<16x64xf32>
    %134 = arith.mulf %121, %133 : vector<16x64xf32>
    %c0_61 = arith.constant 0 : index
    %c0_62 = arith.constant 0 : index
    %c0_63 = arith.constant 0 : index
    %135 = vector.load %arg13[%c0_61, %c0_62, %c0_63] : memref<2x64x32xf32, #tpu.memory_space<vmem>>, vector<1x64x32xf32>
    %136 = vector.shape_cast %135 : vector<1x64x32xf32> to vector<64x32xf32>
    %137 = arith.truncf %134 : vector<16x64xf32> to vector<16x64xbf16>
    %138 = arith.truncf %136 : vector<64x32xf32> to vector<64x32xbf16>
    %cst_64 = arith.constant dense<0.000000e+00> : vector<16x32xf32>
    %139 = tpu.matmul %137, %138, %cst_64 {dimension_numbers = #tpu.dot_dimension_numbers<[1], [0], [0], [1], [0, 0, 1, 1], [], []>} : vector<16x64xbf16>, vector<64x32xbf16>, vector<16x32xf32> -> vector<16x32xf32>
    %140 = arith.addf %86, %139 : vector<16x32xf32>
    %c0_65 = arith.constant 0 : index
    %c0_66 = arith.constant 0 : index
    %c0_67 = arith.constant 0 : index
    %141 = vector.load %arg14[%c0_65, %c0_66, %c0_67] : memref<2x1x32xf32, #tpu.memory_space<vmem>>, vector<1x1x32xf32>
    %142 = vector.shape_cast %141 : vector<1x1x32xf32> to vector<1x32xf32>
    %143 = vector.broadcast %142 : vector<1x32xf32> to vector<16x32xf32>
    %144 = arith.addf %140, %143 : vector<16x32xf32>
    %c1 = arith.constant 1 : index
    %c0_68 = arith.constant 0 : index
    %c0_69 = arith.constant 0 : index
    %145 = vector.load %arg4[%c1, %c0_68, %c0_69] : memref<2x1x32xf32, #tpu.memory_space<vmem>>, vector<1x1x32xf32>
    %146 = vector.shape_cast %145 : vector<1x1x32xf32> to vector<1x32xf32>
    %c1_70 = arith.constant 1 : index
    %c0_71 = arith.constant 0 : index
    %c0_72 = arith.constant 0 : index
    %147 = vector.load %arg5[%c1_70, %c0_71, %c0_72] : memref<2x1x32xf32, #tpu.memory_space<vmem>>, vector<1x1x32xf32>
    %148 = vector.shape_cast %147 : vector<1x1x32xf32> to vector<1x32xf32>
    %cst_73 = arith.constant dense<0.000000e+00> : vector<16xf32>
    %149 = vector.multi_reduction <add>, %144, %cst_73 [1] : vector<16x32xf32> to vector<16xf32>
    %150 = vector.shape_cast %149 : vector<16xf32> to vector<16x1xf32>
    %cst_74 = arith.constant 3.200000e+01 : f32
    %151 = vector.broadcast %cst_74 : f32 to vector<16x1xf32>
    %152 = arith.divf %150, %151 : vector<16x1xf32>
    %153 = vector.broadcast %152 : vector<16x1xf32> to vector<16x32xf32>
    %154 = arith.subf %144, %153 : vector<16x32xf32>
    %155 = arith.mulf %154, %154 : vector<16x32xf32>
    %cst_75 = arith.constant dense<0.000000e+00> : vector<16xf32>
    %156 = vector.multi_reduction <add>, %155, %cst_75 [1] : vector<16x32xf32> to vector<16xf32>
    %157 = vector.shape_cast %156 : vector<16xf32> to vector<16x1xf32>
    %cst_76 = arith.constant 3.200000e+01 : f32
    %158 = vector.broadcast %cst_76 : f32 to vector<16x1xf32>
    %159 = arith.divf %157, %158 : vector<16x1xf32>
    %160 = vector.broadcast %152 : vector<16x1xf32> to vector<16x32xf32>
    %161 = arith.subf %144, %160 : vector<16x32xf32>
    %cst_77 = arith.constant 9.99999974E-6 : f32
    %162 = vector.broadcast %cst_77 : f32 to vector<16x1xf32>
    %163 = arith.addf %159, %162 : vector<16x1xf32>
    %164 = math.rsqrt %163 : vector<16x1xf32>
    %165 = vector.broadcast %164 : vector<16x1xf32> to vector<16x32xf32>
    %166 = arith.mulf %161, %165 : vector<16x32xf32>
    %167 = vector.broadcast %146 : vector<1x32xf32> to vector<16x32xf32>
    %168 = arith.mulf %166, %167 : vector<16x32xf32>
    %169 = vector.broadcast %148 : vector<1x32xf32> to vector<16x32xf32>
    %170 = arith.addf %168, %169 : vector<16x32xf32>
    %c1_78 = arith.constant 1 : index
    %c0_79 = arith.constant 0 : index
    %c0_80 = arith.constant 0 : index
    %171 = vector.load %arg6[%c1_78, %c0_79, %c0_80] : memref<2x32x96xf32, #tpu.memory_space<vmem>>, vector<1x32x96xf32>
    %172 = vector.shape_cast %171 : vector<1x32x96xf32> to vector<32x96xf32>
    %173 = arith.truncf %170 : vector<16x32xf32> to vector<16x32xbf16>
    %174 = arith.truncf %172 : vector<32x96xf32> to vector<32x96xbf16>
    %cst_81 = arith.constant dense<0.000000e+00> : vector<16x96xf32>
    %175 = tpu.matmul %173, %174, %cst_81 {dimension_numbers = #tpu.dot_dimension_numbers<[1], [0], [0], [1], [0, 0, 1, 1], [], []>} : vector<16x32xbf16>, vector<32x96xbf16>, vector<16x96xf32> -> vector<16x96xf32>
    %176 = vector.extract_strided_slice %175 {offsets = [0, 0], sizes = [16, 32], strides = [1, 1]} : vector<16x96xf32> to vector<16x32xf32>
    %177 = vector.extract_strided_slice %175 {offsets = [0, 32], sizes = [16, 32], strides = [1, 1]} : vector<16x96xf32> to vector<16x32xf32>
    %178 = vector.extract_strided_slice %175 {offsets = [0, 64], sizes = [16, 32], strides = [1, 1]} : vector<16x96xf32> to vector<16x32xf32>
    %179 = vector.extract_strided_slice %176 {offsets = [0, 0], sizes = [16, 16], strides = [1, 1]} : vector<16x32xf32> to vector<16x16xf32>
    %180 = vector.extract_strided_slice %177 {offsets = [0, 0], sizes = [16, 16], strides = [1, 1]} : vector<16x32xf32> to vector<16x16xf32>
    %181 = vector.extract_strided_slice %178 {offsets = [0, 0], sizes = [16, 16], strides = [1, 1]} : vector<16x32xf32> to vector<16x16xf32>
    %cst_82 = arith.constant dense<0.000000e+00> : vector<16x16xf32>
    %182 = tpu.matmul %179, %180, %cst_82 {dimension_numbers = #tpu.dot_dimension_numbers<[1], [1], [0], [0], [0, 0, 1, 0], [], []>} : vector<16x16xf32>, vector<16x16xf32>, vector<16x16xf32> -> vector<16x16xf32>
    %cst_83 = arith.constant 2.500000e-01 : f32
    %183 = vector.broadcast %cst_83 : f32 to vector<16x16xf32>
    %184 = arith.mulf %182, %183 : vector<16x16xf32>
    %cst_84 = arith.constant dense<0xFF800000> : vector<16xf32>
    %185 = vector.multi_reduction <maximumf>, %184, %cst_84 [1] : vector<16x16xf32> to vector<16xf32>
    %186 = vector.shape_cast %185 : vector<16xf32> to vector<16x1xf32>
    %187 = vector.broadcast %186 : vector<16x1xf32> to vector<16x16xf32>
    %188 = arith.subf %184, %187 : vector<16x16xf32>
    %189 = math.exp %188 : vector<16x16xf32>
    %cst_85 = arith.constant dense<0.000000e+00> : vector<16xf32>
    %190 = vector.multi_reduction <add>, %189, %cst_85 [1] : vector<16x16xf32> to vector<16xf32>
    %191 = vector.shape_cast %190 : vector<16xf32> to vector<16x1xf32>
    %192 = tpu.reciprocal %191 {approx = true} : vector<16x1xf32> -> vector<16x1xf32>
    %193 = vector.broadcast %192 : vector<16x1xf32> to vector<16x16xf32>
    %194 = arith.mulf %189, %193 : vector<16x16xf32>
    %cst_86 = arith.constant dense<0.000000e+00> : vector<16x16xf32>
    %195 = tpu.matmul %194, %181, %cst_86 {dimension_numbers = #tpu.dot_dimension_numbers<[1], [0], [0], [1], [0, 0, 1, 1], [], []>} : vector<16x16xf32>, vector<16x16xf32>, vector<16x16xf32> -> vector<16x16xf32>
    %196 = vector.extract_strided_slice %176 {offsets = [0, 16], sizes = [16, 16], strides = [1, 1]} : vector<16x32xf32> to vector<16x16xf32>
    %197 = vector.extract_strided_slice %177 {offsets = [0, 16], sizes = [16, 16], strides = [1, 1]} : vector<16x32xf32> to vector<16x16xf32>
    %198 = vector.extract_strided_slice %178 {offsets = [0, 16], sizes = [16, 16], strides = [1, 1]} : vector<16x32xf32> to vector<16x16xf32>
    %cst_87 = arith.constant dense<0.000000e+00> : vector<16x16xf32>
    %199 = tpu.matmul %196, %197, %cst_87 {dimension_numbers = #tpu.dot_dimension_numbers<[1], [1], [0], [0], [0, 0, 1, 0], [], []>} : vector<16x16xf32>, vector<16x16xf32>, vector<16x16xf32> -> vector<16x16xf32>
    %cst_88 = arith.constant 2.500000e-01 : f32
    %200 = vector.broadcast %cst_88 : f32 to vector<16x16xf32>
    %201 = arith.mulf %199, %200 : vector<16x16xf32>
    %cst_89 = arith.constant dense<0xFF800000> : vector<16xf32>
    %202 = vector.multi_reduction <maximumf>, %201, %cst_89 [1] : vector<16x16xf32> to vector<16xf32>
    %203 = vector.shape_cast %202 : vector<16xf32> to vector<16x1xf32>
    %204 = vector.broadcast %203 : vector<16x1xf32> to vector<16x16xf32>
    %205 = arith.subf %201, %204 : vector<16x16xf32>
    %206 = math.exp %205 : vector<16x16xf32>
    %cst_90 = arith.constant dense<0.000000e+00> : vector<16xf32>
    %207 = vector.multi_reduction <add>, %206, %cst_90 [1] : vector<16x16xf32> to vector<16xf32>
    %208 = vector.shape_cast %207 : vector<16xf32> to vector<16x1xf32>
    %209 = tpu.reciprocal %208 {approx = true} : vector<16x1xf32> -> vector<16x1xf32>
    %210 = vector.broadcast %209 : vector<16x1xf32> to vector<16x16xf32>
    %211 = arith.mulf %206, %210 : vector<16x16xf32>
    %cst_91 = arith.constant dense<0.000000e+00> : vector<16x16xf32>
    %212 = tpu.matmul %211, %198, %cst_91 {dimension_numbers = #tpu.dot_dimension_numbers<[1], [0], [0], [1], [0, 0, 1, 1], [], []>} : vector<16x16xf32>, vector<16x16xf32>, vector<16x16xf32> -> vector<16x16xf32>
    %213 = tpu.concatenate %195, %212 in 1 : vector<16x16xf32>, vector<16x16xf32> -> vector<16x32xf32>
    %c1_92 = arith.constant 1 : index
    %c0_93 = arith.constant 0 : index
    %c0_94 = arith.constant 0 : index
    %214 = vector.load %arg7[%c1_92, %c0_93, %c0_94] : memref<2x32x32xf32, #tpu.memory_space<vmem>>, vector<1x32x32xf32>
    %215 = vector.shape_cast %214 : vector<1x32x32xf32> to vector<32x32xf32>
    %216 = arith.truncf %213 : vector<16x32xf32> to vector<16x32xbf16>
    %217 = arith.truncf %215 : vector<32x32xf32> to vector<32x32xbf16>
    %cst_95 = arith.constant dense<0.000000e+00> : vector<16x32xf32>
    %218 = tpu.matmul %216, %217, %cst_95 {dimension_numbers = #tpu.dot_dimension_numbers<[1], [0], [0], [1], [0, 0, 1, 1], [], []>} : vector<16x32xbf16>, vector<32x32xbf16>, vector<16x32xf32> -> vector<16x32xf32>
    %219 = arith.addf %144, %218 : vector<16x32xf32>
    %c1_96 = arith.constant 1 : index
    %c0_97 = arith.constant 0 : index
    %c0_98 = arith.constant 0 : index
    %220 = vector.load %arg8[%c1_96, %c0_97, %c0_98] : memref<2x1x32xf32, #tpu.memory_space<vmem>>, vector<1x1x32xf32>
    %221 = vector.shape_cast %220 : vector<1x1x32xf32> to vector<1x32xf32>
    %222 = vector.broadcast %221 : vector<1x32xf32> to vector<16x32xf32>
    %223 = arith.addf %219, %222 : vector<16x32xf32>
    %c1_99 = arith.constant 1 : index
    %c0_100 = arith.constant 0 : index
    %c0_101 = arith.constant 0 : index
    %224 = vector.load %arg9[%c1_99, %c0_100, %c0_101] : memref<2x1x32xf32, #tpu.memory_space<vmem>>, vector<1x1x32xf32>
    %225 = vector.shape_cast %224 : vector<1x1x32xf32> to vector<1x32xf32>
    %c1_102 = arith.constant 1 : index
    %c0_103 = arith.constant 0 : index
    %c0_104 = arith.constant 0 : index
    %226 = vector.load %arg10[%c1_102, %c0_103, %c0_104] : memref<2x1x32xf32, #tpu.memory_space<vmem>>, vector<1x1x32xf32>
    %227 = vector.shape_cast %226 : vector<1x1x32xf32> to vector<1x32xf32>
    %cst_105 = arith.constant dense<0.000000e+00> : vector<16xf32>
    %228 = vector.multi_reduction <add>, %223, %cst_105 [1] : vector<16x32xf32> to vector<16xf32>
    %229 = vector.shape_cast %228 : vector<16xf32> to vector<16x1xf32>
    %cst_106 = arith.constant 3.200000e+01 : f32
    %230 = vector.broadcast %cst_106 : f32 to vector<16x1xf32>
    %231 = arith.divf %229, %230 : vector<16x1xf32>
    %232 = vector.broadcast %231 : vector<16x1xf32> to vector<16x32xf32>
    %233 = arith.subf %223, %232 : vector<16x32xf32>
    %234 = arith.mulf %233, %233 : vector<16x32xf32>
    %cst_107 = arith.constant dense<0.000000e+00> : vector<16xf32>
    %235 = vector.multi_reduction <add>, %234, %cst_107 [1] : vector<16x32xf32> to vector<16xf32>
    %236 = vector.shape_cast %235 : vector<16xf32> to vector<16x1xf32>
    %cst_108 = arith.constant 3.200000e+01 : f32
    %237 = vector.broadcast %cst_108 : f32 to vector<16x1xf32>
    %238 = arith.divf %236, %237 : vector<16x1xf32>
    %239 = vector.broadcast %231 : vector<16x1xf32> to vector<16x32xf32>
    %240 = arith.subf %223, %239 : vector<16x32xf32>
    %cst_109 = arith.constant 9.99999974E-6 : f32
    %241 = vector.broadcast %cst_109 : f32 to vector<16x1xf32>
    %242 = arith.addf %238, %241 : vector<16x1xf32>
    %243 = math.rsqrt %242 : vector<16x1xf32>
    %244 = vector.broadcast %243 : vector<16x1xf32> to vector<16x32xf32>
    %245 = arith.mulf %240, %244 : vector<16x32xf32>
    %246 = vector.broadcast %225 : vector<1x32xf32> to vector<16x32xf32>
    %247 = arith.mulf %245, %246 : vector<16x32xf32>
    %248 = vector.broadcast %227 : vector<1x32xf32> to vector<16x32xf32>
    %249 = arith.addf %247, %248 : vector<16x32xf32>
    %c1_110 = arith.constant 1 : index
    %c0_111 = arith.constant 0 : index
    %c0_112 = arith.constant 0 : index
    %250 = vector.load %arg11[%c1_110, %c0_111, %c0_112] : memref<2x32x64xf32, #tpu.memory_space<vmem>>, vector<1x32x64xf32>
    %251 = vector.shape_cast %250 : vector<1x32x64xf32> to vector<32x64xf32>
    %252 = arith.truncf %249 : vector<16x32xf32> to vector<16x32xbf16>
    %253 = arith.truncf %251 : vector<32x64xf32> to vector<32x64xbf16>
    %cst_113 = arith.constant dense<0.000000e+00> : vector<16x64xf32>
    %254 = tpu.matmul %252, %253, %cst_113 {dimension_numbers = #tpu.dot_dimension_numbers<[1], [0], [0], [1], [0, 0, 1, 1], [], []>} : vector<16x32xbf16>, vector<32x64xbf16>, vector<16x64xf32> -> vector<16x64xf32>
    %c1_114 = arith.constant 1 : index
    %c0_115 = arith.constant 0 : index
    %c0_116 = arith.constant 0 : index
    %255 = vector.load %arg12[%c1_114, %c0_115, %c0_116] : memref<2x1x64xf32, #tpu.memory_space<vmem>>, vector<1x1x64xf32>
    %256 = vector.shape_cast %255 : vector<1x1x64xf32> to vector<1x64xf32>
    %257 = vector.broadcast %256 : vector<1x64xf32> to vector<16x64xf32>
    %258 = arith.addf %254, %257 : vector<16x64xf32>
    %259 = arith.mulf %258, %258 : vector<16x64xf32>
    %260 = arith.mulf %258, %259 : vector<16x64xf32>
    %cst_117 = arith.constant 4.471500e-02 : f32
    %261 = vector.broadcast %cst_117 : f32 to vector<16x64xf32>
    %262 = arith.mulf %261, %260 : vector<16x64xf32>
    %263 = arith.addf %258, %262 : vector<16x64xf32>
    %cst_118 = arith.constant 0.797884583 : f32
    %264 = vector.broadcast %cst_118 : f32 to vector<16x64xf32>
    %265 = arith.mulf %264, %263 : vector<16x64xf32>
    %266 = math.tanh %265 : vector<16x64xf32>
    %cst_119 = arith.constant 1.000000e+00 : f32
    %267 = vector.broadcast %cst_119 : f32 to vector<16x64xf32>
    %268 = arith.addf %267, %266 : vector<16x64xf32>
    %cst_120 = arith.constant 5.000000e-01 : f32
    %269 = vector.broadcast %cst_120 : f32 to vector<16x64xf32>
    %270 = arith.mulf %269, %268 : vector<16x64xf32>
    %271 = arith.mulf %258, %270 : vector<16x64xf32>
    %c1_121 = arith.constant 1 : index
    %c0_122 = arith.constant 0 : index
    %c0_123 = arith.constant 0 : index
    %272 = vector.load %arg13[%c1_121, %c0_122, %c0_123] : memref<2x64x32xf32, #tpu.memory_space<vmem>>, vector<1x64x32xf32>
    %273 = vector.shape_cast %272 : vector<1x64x32xf32> to vector<64x32xf32>
    %274 = arith.truncf %271 : vector<16x64xf32> to vector<16x64xbf16>
    %275 = arith.truncf %273 : vector<64x32xf32> to vector<64x32xbf16>
    %cst_124 = arith.constant dense<0.000000e+00> : vector<16x32xf32>
    %276 = tpu.matmul %274, %275, %cst_124 {dimension_numbers = #tpu.dot_dimension_numbers<[1], [0], [0], [1], [0, 0, 1, 1], [], []>} : vector<16x64xbf16>, vector<64x32xbf16>, vector<16x32xf32> -> vector<16x32xf32>
    %277 = arith.addf %223, %276 : vector<16x32xf32>
    %c1_125 = arith.constant 1 : index
    %c0_126 = arith.constant 0 : index
    %c0_127 = arith.constant 0 : index
    %278 = vector.load %arg14[%c1_125, %c0_126, %c0_127] : memref<2x1x32xf32, #tpu.memory_space<vmem>>, vector<1x1x32xf32>
    %279 = vector.shape_cast %278 : vector<1x1x32xf32> to vector<1x32xf32>
    %280 = vector.broadcast %279 : vector<1x32xf32> to vector<16x32xf32>
    %281 = arith.addf %277, %280 : vector<16x32xf32>
    %c0_128 = arith.constant 0 : index
    %c0_129 = arith.constant 0 : index
    %c0_130 = arith.constant 0 : index
    %282 = vector.load %arg15[%c0_128, %c0_129, %c0_130] : memref<1x16x32xf32, #tpu.memory_space<vmem>>, vector<1x16x32xf32>
    %283 = vector.shape_cast %282 : vector<1x16x32xf32> to vector<16x32xf32>
    %284 = vector.shape_cast %281 : vector<16x32xf32> to vector<1x16x32xf32>
    tpu.vector_store %arg15[%c0_128, %c0_129, %c0_130], %284 {strides = array<i32>} : memref<1x16x32xf32, #tpu.memory_space<vmem>>, vector<1x16x32xf32>,
    return
  }
  func.func @transform_0(%arg0: i32) -> (i32, i32, i32) {
    %c0_i32 = arith.constant 0 : i32
    %c0_i32_0 = arith.constant 0 : i32
    %c0_i32_1 = arith.constant 0 : i32
    return %arg0, %c0_i32, %c0_i32_0 : i32, i32, i32
  }
  func.func @transform_1(%arg0: i32) -> (i32, i32, i32) {
    %c0_i32 = arith.constant 0 : i32
    %c0_i32_0 = arith.constant 0 : i32
    %c0_i32_1 = arith.constant 0 : i32
    return %arg0, %c0_i32, %c0_i32_0 : i32, i32, i32
  }
  func.func @transform_2(%arg0: i32) -> (i32, i32, i32) {
    %c0_i32 = arith.constant 0 : i32
    %c0_i32_0 = arith.constant 0 : i32
    %c0_i32_1 = arith.constant 0 : i32
    return %arg0, %c0_i32, %c0_i32_0 : i32, i32, i32
  }
  func.func @transform_3(%arg0: i32) -> (i32, i32, i32) {
    %c0_i32 = arith.constant 0 : i32
    %c0_i32_0 = arith.constant 0 : i32
    %c0_i32_1 = arith.constant 0 : i32
    %c0_i32_2 = arith.constant 0 : i32
    return %c0_i32, %c0_i32_0, %c0_i32_1 : i32, i32, i32
  }
  func.func @transform_4(%arg0: i32) -> (i32, i32, i32) {
    %c0_i32 = arith.constant 0 : i32
    %c0_i32_0 = arith.constant 0 : i32
    %c0_i32_1 = arith.constant 0 : i32
    %c0_i32_2 = arith.constant 0 : i32
    return %c0_i32, %c0_i32_0, %c0_i32_1 : i32, i32, i32
  }
  func.func @transform_5(%arg0: i32) -> (i32, i32, i32) {
    %c0_i32 = arith.constant 0 : i32
    %c0_i32_0 = arith.constant 0 : i32
    %c0_i32_1 = arith.constant 0 : i32
    %c0_i32_2 = arith.constant 0 : i32
    return %c0_i32, %c0_i32_0, %c0_i32_1 : i32, i32, i32
  }
  func.func @transform_6(%arg0: i32) -> (i32, i32, i32) {
    %c0_i32 = arith.constant 0 : i32
    %c0_i32_0 = arith.constant 0 : i32
    %c0_i32_1 = arith.constant 0 : i32
    %c0_i32_2 = arith.constant 0 : i32
    return %c0_i32, %c0_i32_0, %c0_i32_1 : i32, i32, i32
  }
  func.func @transform_7(%arg0: i32) -> (i32, i32, i32) {
    %c0_i32 = arith.constant 0 : i32
    %c0_i32_0 = arith.constant 0 : i32
    %c0_i32_1 = arith.constant 0 : i32
    %c0_i32_2 = arith.constant 0 : i32
    return %c0_i32, %c0_i32_0, %c0_i32_1 : i32, i32, i32
  }
  func.func @transform_8(%arg0: i32) -> (i32, i32, i32) {
    %c0_i32 = arith.constant 0 : i32
    %c0_i32_0 = arith.constant 0 : i32
    %c0_i32_1 = arith.constant 0 : i32
    %c0_i32_2 = arith.constant 0 : i32
    return %c0_i32, %c0_i32_0, %c0_i32_1 : i32, i32, i32
  }
  func.func @transform_9(%arg0: i32) -> (i32, i32, i32) {
    %c0_i32 = arith.constant 0 : i32
    %c0_i32_0 = arith.constant 0 : i32
    %c0_i32_1 = arith.constant 0 : i32
    %c0_i32_2 = arith.constant 0 : i32
    return %c0_i32, %c0_i32_0, %c0_i32_1 : i32, i32, i32
  }
  func.func @transform_10(%arg0: i32) -> (i32, i32, i32) {
    %c0_i32 = arith.constant 0 : i32
    %c0_i32_0 = arith.constant 0 : i32
    %c0_i32_1 = arith.constant 0 : i32
    %c0_i32_2 = arith.constant 0 : i32
    return %c0_i32, %c0_i32_0, %c0_i32_1 : i32, i32, i32
  }
  func.func @transform_11(%arg0: i32) -> (i32, i32, i32) {
    %c0_i32 = arith.constant 0 : i32
    %c0_i32_0 = arith.constant 0 : i32
    %c0_i32_1 = arith.constant 0 : i32
    %c0_i32_2 = arith.constant 0 : i32
    return %c0_i32, %c0_i32_0, %c0_i32_1 : i32, i32, i32
  }
  func.func @transform_12(%arg0: i32) -> (i32, i32, i32) {
    %c0_i32 = arith.constant 0 : i32
    %c0_i32_0 = arith.constant 0 : i32
    %c0_i32_1 = arith.constant 0 : i32
    %c0_i32_2 = arith.constant 0 : i32
    return %c0_i32, %c0_i32_0, %c0_i32_1 : i32, i32, i32
  }
  func.func @transform_13(%arg0: i32) -> (i32, i32, i32) {
    %c0_i32 = arith.constant 0 : i32
    %c0_i32_0 = arith.constant 0 : i32
    %c0_i32_1 = arith.constant 0 : i32
    %c0_i32_2 = arith.constant 0 : i32
    return %c0_i32, %c0_i32_0, %c0_i32_1 : i32, i32, i32
  }
  func.func @transform_14(%arg0: i32) -> (i32, i32, i32) {
    %c0_i32 = arith.constant 0 : i32
    %c0_i32_0 = arith.constant 0 : i32
    %c0_i32_1 = arith.constant 0 : i32
    return %arg0, %c0_i32, %c0_i32_0 : i32, i32, i32
  }
}

module attributes {stable_mosaic.version = 11 : i64} {
  func.func @_dec_tail_kernel(%arg0: memref<32x32xf32, #tpu.memory_space<vmem>>, %arg1: memref<32x64xf32, #tpu.memory_space<vmem>>, %arg2: memref<1x64xf32, #tpu.memory_space<vmem>>, %arg3: memref<64x128xf32, #tpu.memory_space<vmem>>, %arg4: memref<1x128xf32, #tpu.memory_space<vmem>>, %arg5: memref<128x256xf32, #tpu.memory_space<vmem>>, %arg6: memref<1x256xf32, #tpu.memory_space<vmem>>, %arg7: memref<256x512xf32, #tpu.memory_space<vmem>>, %arg8: memref<1x512xf32, #tpu.memory_space<vmem>>, %arg9: memref<32x256xf32, #tpu.memory_space<vmem>>) attributes {dimension_semantics = [], scalar_prefetch = 0 : i64, scratch_operands = 0 : i64, tpu.core_type = #tpu.core_type<tc>} {
    %c0 = arith.constant 0 : index
    %c0_0 = arith.constant 0 : index
    %0 = vector.load %arg0[%c0, %c0_0] : memref<32x32xf32, #tpu.memory_space<vmem>>, vector<32x32xf32>
    %c0_1 = arith.constant 0 : index
    %c0_2 = arith.constant 0 : index
    %1 = vector.load %arg1[%c0_1, %c0_2] : memref<32x64xf32, #tpu.memory_space<vmem>>, vector<32x64xf32>
    %2 = arith.truncf %0 : vector<32x32xf32> to vector<32x32xbf16>
    %3 = arith.truncf %1 : vector<32x64xf32> to vector<32x64xbf16>
    %cst = arith.constant dense<0.000000e+00> : vector<32x64xf32>
    %4 = tpu.matmul %2, %3, %cst {dimension_numbers = #tpu.dot_dimension_numbers<[1], [0], [0], [1], [0, 0, 1, 1], [], []>} : vector<32x32xbf16>, vector<32x64xbf16>, vector<32x64xf32> -> vector<32x64xf32>
    %c0_3 = arith.constant 0 : index
    %c0_4 = arith.constant 0 : index
    %5 = vector.load %arg2[%c0_3, %c0_4] : memref<1x64xf32, #tpu.memory_space<vmem>>, vector<1x64xf32>
    %6 = vector.broadcast %5 : vector<1x64xf32> to vector<32x64xf32>
    %7 = arith.addf %4, %6 : vector<32x64xf32>
    %8 = arith.mulf %7, %7 : vector<32x64xf32>
    %9 = arith.mulf %7, %8 : vector<32x64xf32>
    %cst_5 = arith.constant 4.471500e-02 : f32
    %10 = vector.broadcast %cst_5 : f32 to vector<32x64xf32>
    %11 = arith.mulf %10, %9 : vector<32x64xf32>
    %12 = arith.addf %7, %11 : vector<32x64xf32>
    %cst_6 = arith.constant 0.797884583 : f32
    %13 = vector.broadcast %cst_6 : f32 to vector<32x64xf32>
    %14 = arith.mulf %13, %12 : vector<32x64xf32>
    %15 = math.tanh %14 : vector<32x64xf32>
    %cst_7 = arith.constant 1.000000e+00 : f32
    %16 = vector.broadcast %cst_7 : f32 to vector<32x64xf32>
    %17 = arith.addf %16, %15 : vector<32x64xf32>
    %cst_8 = arith.constant 5.000000e-01 : f32
    %18 = vector.broadcast %cst_8 : f32 to vector<32x64xf32>
    %19 = arith.mulf %18, %17 : vector<32x64xf32>
    %20 = arith.mulf %7, %19 : vector<32x64xf32>
    %c0_9 = arith.constant 0 : index
    %c0_10 = arith.constant 0 : index
    %21 = vector.load %arg3[%c0_9, %c0_10] : memref<64x128xf32, #tpu.memory_space<vmem>>, vector<64x128xf32>
    %22 = arith.truncf %20 : vector<32x64xf32> to vector<32x64xbf16>
    %23 = arith.truncf %21 : vector<64x128xf32> to vector<64x128xbf16>
    %cst_11 = arith.constant dense<0.000000e+00> : vector<32x128xf32>
    %24 = tpu.matmul %22, %23, %cst_11 {dimension_numbers = #tpu.dot_dimension_numbers<[1], [0], [0], [1], [0, 0, 1, 1], [], []>} : vector<32x64xbf16>, vector<64x128xbf16>, vector<32x128xf32> -> vector<32x128xf32>
    %c0_12 = arith.constant 0 : index
    %c0_13 = arith.constant 0 : index
    %25 = vector.load %arg4[%c0_12, %c0_13] : memref<1x128xf32, #tpu.memory_space<vmem>>, vector<1x128xf32>
    %26 = vector.broadcast %25 : vector<1x128xf32> to vector<32x128xf32>
    %27 = arith.addf %24, %26 : vector<32x128xf32>
    %28 = arith.mulf %27, %27 : vector<32x128xf32>
    %29 = arith.mulf %27, %28 : vector<32x128xf32>
    %cst_14 = arith.constant 4.471500e-02 : f32
    %30 = vector.broadcast %cst_14 : f32 to vector<32x128xf32>
    %31 = arith.mulf %30, %29 : vector<32x128xf32>
    %32 = arith.addf %27, %31 : vector<32x128xf32>
    %cst_15 = arith.constant 0.797884583 : f32
    %33 = vector.broadcast %cst_15 : f32 to vector<32x128xf32>
    %34 = arith.mulf %33, %32 : vector<32x128xf32>
    %35 = math.tanh %34 : vector<32x128xf32>
    %cst_16 = arith.constant 1.000000e+00 : f32
    %36 = vector.broadcast %cst_16 : f32 to vector<32x128xf32>
    %37 = arith.addf %36, %35 : vector<32x128xf32>
    %cst_17 = arith.constant 5.000000e-01 : f32
    %38 = vector.broadcast %cst_17 : f32 to vector<32x128xf32>
    %39 = arith.mulf %38, %37 : vector<32x128xf32>
    %40 = arith.mulf %27, %39 : vector<32x128xf32>
    %c0_18 = arith.constant 0 : index
    %c0_19 = arith.constant 0 : index
    %41 = vector.load %arg5[%c0_18, %c0_19] : memref<128x256xf32, #tpu.memory_space<vmem>>, vector<128x256xf32>
    %42 = arith.truncf %40 : vector<32x128xf32> to vector<32x128xbf16>
    %43 = arith.truncf %41 : vector<128x256xf32> to vector<128x256xbf16>
    %cst_20 = arith.constant dense<0.000000e+00> : vector<32x256xf32>
    %44 = tpu.matmul %42, %43, %cst_20 {dimension_numbers = #tpu.dot_dimension_numbers<[1], [0], [0], [1], [0, 0, 1, 1], [], []>} : vector<32x128xbf16>, vector<128x256xbf16>, vector<32x256xf32> -> vector<32x256xf32>
    %c0_21 = arith.constant 0 : index
    %c0_22 = arith.constant 0 : index
    %45 = vector.load %arg6[%c0_21, %c0_22] : memref<1x256xf32, #tpu.memory_space<vmem>>, vector<1x256xf32>
    %46 = vector.broadcast %45 : vector<1x256xf32> to vector<32x256xf32>
    %47 = arith.addf %44, %46 : vector<32x256xf32>
    %48 = arith.mulf %47, %47 : vector<32x256xf32>
    %49 = arith.mulf %47, %48 : vector<32x256xf32>
    %cst_23 = arith.constant 4.471500e-02 : f32
    %50 = vector.broadcast %cst_23 : f32 to vector<32x256xf32>
    %51 = arith.mulf %50, %49 : vector<32x256xf32>
    %52 = arith.addf %47, %51 : vector<32x256xf32>
    %cst_24 = arith.constant 0.797884583 : f32
    %53 = vector.broadcast %cst_24 : f32 to vector<32x256xf32>
    %54 = arith.mulf %53, %52 : vector<32x256xf32>
    %55 = math.tanh %54 : vector<32x256xf32>
    %cst_25 = arith.constant 1.000000e+00 : f32
    %56 = vector.broadcast %cst_25 : f32 to vector<32x256xf32>
    %57 = arith.addf %56, %55 : vector<32x256xf32>
    %cst_26 = arith.constant 5.000000e-01 : f32
    %58 = vector.broadcast %cst_26 : f32 to vector<32x256xf32>
    %59 = arith.mulf %58, %57 : vector<32x256xf32>
    %60 = arith.mulf %47, %59 : vector<32x256xf32>
    %c0_27 = arith.constant 0 : index
    %c0_28 = arith.constant 0 : index
    %61 = vector.load %arg7[%c0_27, %c0_28] : memref<256x512xf32, #tpu.memory_space<vmem>>, vector<256x512xf32>
    %62 = arith.truncf %60 : vector<32x256xf32> to vector<32x256xbf16>
    %63 = arith.truncf %61 : vector<256x512xf32> to vector<256x512xbf16>
    %cst_29 = arith.constant dense<0.000000e+00> : vector<32x512xf32>
    %64 = tpu.matmul %62, %63, %cst_29 {dimension_numbers = #tpu.dot_dimension_numbers<[1], [0], [0], [1], [0, 0, 1, 1], [], []>} : vector<32x256xbf16>, vector<256x512xbf16>, vector<32x512xf32> -> vector<32x512xf32>
    %c0_30 = arith.constant 0 : index
    %c0_31 = arith.constant 0 : index
    %65 = vector.load %arg8[%c0_30, %c0_31] : memref<1x512xf32, #tpu.memory_space<vmem>>, vector<1x512xf32>
    %66 = vector.broadcast %65 : vector<1x512xf32> to vector<32x512xf32>
    %67 = arith.addf %64, %66 : vector<32x512xf32>
    %68 = vector.extract_strided_slice %67 {offsets = [0, 0], sizes = [32, 256], strides = [1, 1]} : vector<32x512xf32> to vector<32x256xf32>
    %69 = arith.mulf %68, %68 : vector<32x256xf32>
    %70 = arith.mulf %68, %69 : vector<32x256xf32>
    %cst_32 = arith.constant 4.471500e-02 : f32
    %71 = vector.broadcast %cst_32 : f32 to vector<32x256xf32>
    %72 = arith.mulf %71, %70 : vector<32x256xf32>
    %73 = arith.addf %68, %72 : vector<32x256xf32>
    %cst_33 = arith.constant 0.797884583 : f32
    %74 = vector.broadcast %cst_33 : f32 to vector<32x256xf32>
    %75 = arith.mulf %74, %73 : vector<32x256xf32>
    %76 = math.tanh %75 : vector<32x256xf32>
    %cst_34 = arith.constant 1.000000e+00 : f32
    %77 = vector.broadcast %cst_34 : f32 to vector<32x256xf32>
    %78 = arith.addf %77, %76 : vector<32x256xf32>
    %cst_35 = arith.constant 5.000000e-01 : f32
    %79 = vector.broadcast %cst_35 : f32 to vector<32x256xf32>
    %80 = arith.mulf %79, %78 : vector<32x256xf32>
    %81 = arith.mulf %68, %80 : vector<32x256xf32>
    %82 = vector.extract_strided_slice %67 {offsets = [0, 256], sizes = [32, 256], strides = [1, 1]} : vector<32x512xf32> to vector<32x256xf32>
    %83 = arith.mulf %82, %82 : vector<32x256xf32>
    %84 = arith.mulf %82, %83 : vector<32x256xf32>
    %cst_36 = arith.constant 4.471500e-02 : f32
    %85 = vector.broadcast %cst_36 : f32 to vector<32x256xf32>
    %86 = arith.mulf %85, %84 : vector<32x256xf32>
    %87 = arith.addf %82, %86 : vector<32x256xf32>
    %cst_37 = arith.constant 0.797884583 : f32
    %88 = vector.broadcast %cst_37 : f32 to vector<32x256xf32>
    %89 = arith.mulf %88, %87 : vector<32x256xf32>
    %90 = math.tanh %89 : vector<32x256xf32>
    %cst_38 = arith.constant 1.000000e+00 : f32
    %91 = vector.broadcast %cst_38 : f32 to vector<32x256xf32>
    %92 = arith.addf %91, %90 : vector<32x256xf32>
    %cst_39 = arith.constant 5.000000e-01 : f32
    %93 = vector.broadcast %cst_39 : f32 to vector<32x256xf32>
    %94 = arith.mulf %93, %92 : vector<32x256xf32>
    %95 = arith.mulf %82, %94 : vector<32x256xf32>
    %96 = arith.addf %81, %95 : vector<32x256xf32>
    %cst_40 = arith.constant 5.000000e-01 : f32
    %97 = vector.broadcast %cst_40 : f32 to vector<32x256xf32>
    %98 = arith.mulf %97, %96 : vector<32x256xf32>
    %99 = arith.negf %98 : vector<32x256xf32>
    %100 = math.exp %99 : vector<32x256xf32>
    %cst_41 = arith.constant 1.000000e+00 : f32
    %101 = vector.broadcast %cst_41 : f32 to vector<32x256xf32>
    %102 = arith.addf %101, %100 : vector<32x256xf32>
    %103 = arith.divf %101, %102 : vector<32x256xf32>
    %c0_42 = arith.constant 0 : index
    %c0_43 = arith.constant 0 : index
    %104 = vector.load %arg9[%c0_42, %c0_43] : memref<32x256xf32, #tpu.memory_space<vmem>>, vector<32x256xf32>
    tpu.vector_store %arg9[%c0_42, %c0_43], %103 {strides = array<i32>} : memref<32x256xf32, #tpu.memory_space<vmem>>, vector<32x256xf32>,
    return
  }
}

</mosaic_0001>

<bundles_post_ra>
// kernel: generator_forward.7
= control target key start
LH: loop header
LB: loop body
LE: loop exit
PB: predicated region body
PF: predicated region fallthrough
CT: control target
= control target key end

     0   :  { %vm352_vm0 = vcmask 785408   ;;  %s2137_s1 = inlined_call_operand.vmem [shape: f32[864,128], index: 1, kind: input, shape index: {}]   ;;  %s2138_s0 = inlined_call_operand.vmem [shape: f32[128,864], index: 0, kind: input, shape index: {}]   ;;  %s2139_s2 = inlined_call_operand.vmem [shape: f32[1,128], index: 2, kind: input, shape index: {}]   ;;  %s2140_s3 = inlined_call_operand.vmem [shape: f32[128,128], index: 3, kind: output, shape index: {}]  }
   0x1   :  { %v143_v0 = vld [vmem:[%s2137_s1 + $0x80] sm:$0xff]  ;;  %v144_v1 = vld [vmem:[%s2137_s1 + $0x88] sm:$0xff]  ;;  %v145_v11 = vld [vmem:[%s2137_s1 + $0x90] sm:$0xff] }
   0x2   :  { %v127_v2 = vld [vmem:[%s2137_s1] sm:$0xff]  ;;  %v299_v3 = vpack.c.bf16 %v144_v1, %v143_v0  ;;  %v128_v4 = vld [vmem:[%s2137_s1 + $0x8] sm:$0xff]  ;;  %v146_v13 = vld [vmem:[%s2137_s1 + $0x98] sm:$0xff] }
   0x3   :  { %v175_v5 = vld [vmem:[%s2137_s1 + $0x180] sm:$0xff]  ;;  %v176_v6 = vld [vmem:[%s2137_s1 + $0x188] sm:$0xff]  ;;  %v291_v7 = vpack.c.bf16 %v128_v4, %v127_v2  ;;  %v129_v14 = vld [vmem:[%s2137_s1 + $0x10] sm:$0xff]  ;;  %v300_v16 = vpack.c.bf16 %v146_v13, %v145_v11 }
   0x4   :  { %v315_v8 = vpack.c.bf16 %v176_v6, %v175_v5  ;;  %v159_v9 = vld [vmem:[%s2137_s1 + $0x100] sm:$0xff]  ;;  %v160_v10 = vld [vmem:[%s2137_s1 + $0x108] sm:$0xff]  ;;  %938 = vmatprep.subr.bf16.mxu0 %v299_v3  ;;  %v130_v15 = vld [vmem:[%s2137_s1 + $0x18] sm:$0xff] }
   0x5   :  { %v307_v12 = vpack.c.bf16 %v160_v10, %v159_v9  ;;  %939 = vmatpush3.bf16.msra.mxu0 %v291_v7  ;;  %v292_v17 = vpack.c.bf16 %v130_v15, %v129_v14  ;;  %v177_v18 = vld [vmem:[%s2137_s1 + $0x190] sm:$0xff]  ;;  %v178_v19 = vld [vmem:[%s2137_s1 + $0x198] sm:$0xff]  ;;  %v147_v23 = vld [vmem:[%s2137_s1 + $0xa0] sm:$0xff] }
   0x6   :  { %1002 = vmatprep.subr.bf16.mxu1 %v315_v8  ;;  %v161_v20 = vld [vmem:[%s2137_s1 + $0x110] sm:$0xff]  ;;  %v316_v21 = vpack.c.bf16 %v178_v19, %v177_v18  ;;  %v162_v22 = vld [vmem:[%s2137_s1 + $0x118] sm:$0xff]  ;;  %v148_v24 = vld [vmem:[%s2137_s1 + $0xa8] sm:$0xff]  ;;  %940 = vmatprep.subr.bf16.mxu0 %v300_v16 }
   0x7   :  { %1003 = vmatpush3.bf16.msra.mxu1 %v307_v12  ;;  %v308_v25 = vpack.c.bf16 %v162_v22, %v161_v20  ;;  %v301_v26 = vpack.c.bf16 %v148_v24, %v147_v23  ;;  %v131_v27 = vld [vmem:[%s2137_s1 + $0x20] sm:$0xff]  ;;  %v132_v28 = vld [vmem:[%s2137_s1 + $0x28] sm:$0xff]  ;;  %v149_v35 = vld [vmem:[%s2137_s1 + $0xb0] sm:$0xff] }
   0x8   :  { %v179_v29 = vld [vmem:[%s2137_s1 + $0x1a0] sm:$0xff]  ;;  %1004 = vmatprep.subr.bf16.mxu1 %v316_v21  ;;  %v180_v30 = vld [vmem:[%s2137_s1 + $0x1a8] sm:$0xff]  ;;  %v293_v33 = vpack.c.bf16 %v132_v28, %v131_v27  ;;  %v150_v36 = vld [vmem:[%s2137_s1 + $0xb8] sm:$0xff] }
   0x9   :  { %v163_v31 = vld [vmem:[%s2137_s1 + $0x120] sm:$0xff]  ;;  %v164_v32 = vld [vmem:[%s2137_s1 + $0x128] sm:$0xff]  ;;  %941 = vmatpush3.bf16.msra.mxu0 %v292_v17  ;;  %v317_v34 = vpack.c.bf16 %v180_v30, %v179_v29  ;;  %v133_v37 = vld [vmem:[%s2137_s1 + $0x30] sm:$0xff]  ;;  %v302_v39 = vpack.c.bf16 %v150_v36, %v149_v35 }
   0xa   :  { %942 = vmatprep.subr.bf16.mxu0 %v301_v26  ;;  %v309_v38 = vpack.c.bf16 %v164_v32, %v163_v31  ;;  %v134_v40 = vld [vmem:[%s2137_s1 + $0x38] sm:$0xff]  ;;  %v181_v41 = vld [vmem:[%s2137_s1 + $0x1b0] sm:$0xff]  ;;  %v151_v46 = vld [vmem:[%s2137_s1 + $0xc0] sm:$0xff] }
   0xb   :  { %1005 = vmatpush3.bf16.msra.mxu1 %v308_v25  ;;  %v182_v42 = vld [vmem:[%s2137_s1 + $0x1b8] sm:$0xff]  ;;  %v165_v44 = vld [vmem:[%s2137_s1 + $0x130] sm:$0xff]  ;;  %v152_v47 = vld [vmem:[%s2137_s1 + $0xc8] sm:$0xff]  ;;  %v294_v48 = vpack.c.bf16 %v134_v40, %v133_v37 }
   0xc   :  { %1006 = vmatprep.subr.bf16.mxu1 %v317_v34  ;;  %v318_v43 = vpack.c.bf16 %v182_v42, %v181_v41  ;;  %v166_v45 = vld [vmem:[%s2137_s1 + $0x138] sm:$0xff]  ;;  %v183_v49 = vld [vmem:[%s2137_s1 + $0x1c0] sm:$0xff]  ;;  %v184_v50 = vld [vmem:[%s2137_s1 + $0x1c8] sm:$0xff]  ;;  %v303_v52 = vpack.c.bf16 %v152_v47, %v151_v46 }
   0xd   :  { %943 = vmatpush3.bf16.msra.mxu0 %v293_v33  ;;  %v310_v51 = vpack.c.bf16 %v166_v45, %v165_v44  ;;  %v135_v53 = vld [vmem:[%s2137_s1 + $0x40] sm:$0xff]  ;;  %v136_v54 = vld [vmem:[%s2137_s1 + $0x48] sm:$0xff]  ;;  %v319_v56 = vpack.c.bf16 %v184_v50, %v183_v49  ;;  %v153_v58 = vld [vmem:[%s2137_s1 + $0xd0] sm:$0xff] }
   0xe   :  { %944 = vmatprep.subr.bf16.mxu0 %v302_v39  ;;  %v167_v55 = vld [vmem:[%s2137_s1 + $0x140] sm:$0xff]  ;;  %v168_v57 = vld [vmem:[%s2137_s1 + $0x148] sm:$0xff]  ;;  %v154_v59 = vld [vmem:[%s2137_s1 + $0xd8] sm:$0xff]  ;;  %v295_v62 = vpack.c.bf16 %v136_v54, %v135_v53 }
   0xf   :  { %1007 = vmatpush3.bf16.msra.mxu1 %v309_v38  ;;  %v185_v60 = vld [vmem:[%s2137_s1 + $0x1d0] sm:$0xff]  ;;  %v186_v61 = vld [vmem:[%s2137_s1 + $0x1d8] sm:$0xff]  ;;  %v311_v63 = vpack.c.bf16 %v168_v57, %v167_v55  ;;  %v304_v0 = vpack.c.bf16 %v154_v59, %v153_v58  ;;  %v155_v6 = vld [vmem:[%s2137_s1 + $0xe0] sm:$0xff] }
  0x10   :  { %1008 = vmatprep.subr.bf16.mxu1 %v318_v43  ;;  %v137_v1 = vld [vmem:[%s2137_s1 + $0x50] sm:$0xff]  ;;  %v138_v2 = vld [vmem:[%s2137_s1 + $0x58] sm:$0xff]  ;;  %v320_v4 = vpack.c.bf16 %v186_v61, %v185_v60  ;;  %v156_v7 = vld [vmem:[%s2137_s1 + $0xe8] sm:$0xff] }
  0x11   :  { %945 = vmatpush3.bf16.msra.mxu0 %v294_v48  ;;  %v169_v3 = vld [vmem:[%s2137_s1 + $0x150] sm:$0xff]  ;;  %v170_v5 = vld [vmem:[%s2137_s1 + $0x158] sm:$0xff]  ;;  %v187_v8 = vld [vmem:[%s2137_s1 + $0x1e0] sm:$0xff]  ;;  %v296_v10 = vpack.c.bf16 %v138_v2, %v137_v1  ;;  %v305_v15 = vpack.c.bf16 %v156_v7, %v155_v6 }
  0x12   :  { %946 = vmatprep.subr.bf16.mxu0 %v303_v52  ;;  %v188_v9 = vld [vmem:[%s2137_s1 + $0x1e8] sm:$0xff]  ;;  %v139_v11 = vld [vmem:[%s2137_s1 + $0x60] sm:$0xff]  ;;  %v312_v14 = vpack.c.bf16 %v170_v5, %v169_v3  ;;  %v157_v20 = vld [vmem:[%s2137_s1 + $0xf0] sm:$0xff] }
  0x13   :  { %1009 = vmatpush3.bf16.msra.mxu1 %v310_v51  ;;  %v140_v12 = vld [vmem:[%s2137_s1 + $0x68] sm:$0xff]  ;;  %v171_v16 = vld [vmem:[%s2137_s1 + $0x160] sm:$0xff]  ;;  %v321_v19 = vpack.c.bf16 %v188_v9, %v187_v8  ;;  %v158_v21 = vld [vmem:[%s2137_s1 + $0xf8] sm:$0xff] }
  0x14   :  { %1010 = vmatprep.subr.bf16.mxu1 %v319_v56  ;;  %v16_v13 = vld [vmem:[%s2138_s0 + $0x8] sm:$0xff]  ;;  %v23_v18 = vld [vmem:[%s2138_s0 + $0x40] sm:$0xff]  ;;  %v189_v22 = vld [vmem:[%s2137_s1 + $0x1f0] sm:$0xff]  ;;  %v297_v27 = vpack.c.bf16 %v140_v12, %v139_v11  ;;  %v306_v30 = vpack.c.bf16 %v158_v21, %v157_v20 }
  0x15   :  { %947 = vmatpush3.bf16.msra.mxu0 %v295_v62  ;;  %v172_v17 = vld [vmem:[%s2137_s1 + $0x168] sm:$0xff]  ;;  %v236_v23 = vpack.c.bf16 %v23_v18, %v16_v13  ;;  %v190_v24 = vld [vmem:[%s2137_s1 + $0x1f8] sm:$0xff]  ;;  %v25_v26 = vld [vmem:[%s2138_s0 + $0x50] sm:$0xff] }
  0x16   :  { %948 = vmatprep.subr.bf16.mxu0 %v304_v0  ;;  %v18_v25 = vld [vmem:[%s2138_s0 + $0x18] sm:$0xff]  ;;  %v313_v29 = vpack.c.bf16 %v172_v17, %v171_v16  ;;  %v141_v31 = vld [vmem:[%s2137_s1 + $0x70] sm:$0xff]  ;;  %v322_v34 = vpack.c.bf16 %v190_v24, %v189_v22  ;;  %v207_v36 = vld [vmem:[%s2137_s1 + $0x280] sm:$0xff] }
  0x17   :  { %1011 = vmatpush3.bf16.msra.mxu1 %v311_v63  ;;  %409 = vmatprep.mubr.bf16.mxu0 %v236_v23  ;;  %v238_v28 = vpack.c.bf16 %v25_v26, %v18_v25  ;;  %v142_v32 = vld [vmem:[%s2137_s1 + $0x78] sm:$0xff]  ;;  %v173_v33 = vld [vmem:[%s2137_s1 + $0x170] sm:$0xff]  ;;  %v208_v37 = vld [vmem:[%s2137_s1 + $0x288] sm:$0xff] }
  0x18   :  { %1012 = vmatprep.subr.bf16.mxu1 %v320_v4  ;;  %v174_v35 = vld [vmem:[%s2137_s1 + $0x178] sm:$0xff]  ;;  %v15_v38 = vld [vmem:[%s2138_s0] sm:$0xff]  ;;  %v298_v39 = vpack.c.bf16 %v142_v32, %v141_v31  ;;  %v192_v42 = vld [vmem:[%s2137_s1 + $0x208] sm:$0xff]  ;;  %v331_v44 = vpack.c.bf16 %v208_v37, %v207_v36 }
  0x19   :  { %949 = vmatpush3.bf16.msra.mxu0 %v296_v10  ;;  %506 = vmatprep.mubr.bf16.mxu1 %v238_v28  ;;  %v22_v40 = vld [vmem:[%s2138_s0 + $0x38] sm:$0xff]  ;;  %v191_v41 = vld [vmem:[%s2137_s1 + $0x200] sm:$0xff]  ;;  %v314_v43 = vpack.c.bf16 %v174_v35, %v173_v33  ;;  %v17_v45 = vld [vmem:[%s2138_s0 + $0x10] sm:$0xff] }
  0x1a   :  { %950 = vmatprep.subr.bf16.mxu0 %v305_v15  ;;  %v24_v46 = vld [vmem:[%s2138_s0 + $0x48] sm:$0xff]  ;;  %v30_v47 = vld [vmem:[%s2138_s0 + $0x78] sm:$0xff]  ;;  %v37_v48 = vld [vmem:[%s2138_s0 + $0xb0] sm:$0xff]  ;;  %v235_v51 = vpack.c.bf16 %v22_v40, %v15_v38  ;;  %v323_v54 = vpack.c.bf16 %v192_v42, %v191_v41 }
  0x1b   :  { %1013 = vmatpush3.bf16.msra.mxu1 %v312_v14  ;;  %v209_v49 = vld [vmem:[%s2137_s1 + $0x290] sm:$0xff]  ;;  %v210_v50 = vld [vmem:[%s2137_s1 + $0x298] sm:$0xff]  ;;  %v32_v52 = vld [vmem:[%s2138_s0 + $0x88] sm:$0xff]  ;;  %v237_v55 = vpack.c.bf16 %v24_v46, %v17_v45  ;;  %v243_v56 = vpack.c.bf16 %v37_v48, %v30_v47 }
  0x1c   :  { %1014 = vmatprep.subr.bf16.mxu1 %v321_v19  ;;  %v39_v53 = vld [vmem:[%s2138_s0 + $0xc0] sm:$0xff]  ;;  %v332_v57 = vpack.c.bf16 %v210_v50, %v209_v49  ;;  %v193_v58 = vld [vmem:[%s2137_s1 + $0x210] sm:$0xff]  ;;  %v194_v59 = vld [vmem:[%s2137_s1 + $0x218] sm:$0xff] }
  0x1d   :  { %951 = vmatpush3.bf16.msra.mxu0 %v297_v27  ;;  %v245_v60 = vpack.c.bf16 %v39_v53, %v32_v52  ;;  %v211_v61 = vld [vmem:[%s2137_s1 + $0x2a0] sm:$0xff]  ;;  %v212_v62 = vld [vmem:[%s2137_s1 + $0x2a8] sm:$0xff]  ;;  %v29_v63 = vld [vmem:[%s2138_s0 + $0x70] sm:$0xff]  ;;  %v324_v1 = vpack.c.bf16 %v194_v59, %v193_v58 }
  0x1e   :  { %952 = vmatprep.subr.bf16.mxu0 %v306_v30  ;;  %v36_v0 = vld [vmem:[%s2138_s0 + $0xa8] sm:$0xff]  ;;  %v31_v2 = vld [vmem:[%s2138_s0 + $0x80] sm:$0xff]  ;;  %v38_v3 = vld [vmem:[%s2138_s0 + $0xb8] sm:$0xff]  ;;  %v333_v6 = vpack.c.bf16 %v212_v62, %v211_v61 }
  0x1f   :  { %1015 = vmatpush3.bf16.msra.mxu1 %v313_v29  ;;  %v44_v4 = vld [vmem:[%s2138_s0 + $0xe8] sm:$0xff]  ;;  %v51_v5 = vld [vmem:[%s2138_s0 + $0x120] sm:$0xff]  ;;  %v46_v7 = vld [vmem:[%s2138_s0 + $0xf8] sm:$0xff]  ;;  %v242_v11 = vpack.c.bf16 %v36_v0, %v29_v63  ;;  %v244_v14 = vpack.c.bf16 %v38_v3, %v31_v2 }
  0x20   :  { %1016 = vmatprep.subr.bf16.mxu1 %v322_v34  ;;  %v53_v8 = vld [vmem:[%s2138_s0 + $0x130] sm:$0xff]  ;;  %v195_v9 = vld [vmem:[%s2137_s1 + $0x220] sm:$0xff]  ;;  %v196_v10 = vld [vmem:[%s2137_s1 + $0x228] sm:$0xff]  ;;  %v250_v15 = vpack.c.bf16 %v51_v5, %v44_v4 }
  0x21   :  { %953 = vmatpush3.bf16.msra.mxu0 %v298_v39  ;;  %v213_v12 = vld [vmem:[%s2137_s1 + $0x2b0] sm:$0xff]  ;;  %v214_v13 = vld [vmem:[%s2137_s1 + $0x2b8] sm:$0xff]  ;;  %v252_v16 = vpack.c.bf16 %v53_v8, %v46_v7  ;;  %v325_v17 = vpack.c.bf16 %v196_v10, %v195_v9  ;;  %v223_v18 = vld [vmem:[%s2137_s1 + $0x300] sm:$0xff] }
  0x22   :  { %1066 = vmatprep.subr.bf16.mxu0 %v331_v44  ;;  %v224_v19 = vld [vmem:[%s2137_s1 + $0x308] sm:$0xff]  ;;  %v43_v20 = vld [vmem:[%s2138_s0 + $0xe0] sm:$0xff]  ;;  %v334_v21 = vpack.c.bf16 %v214_v13, %v213_v12  ;;  %v197_v22 = vld [vmem:[%s2137_s1 + $0x230] sm:$0xff] }
  0x23   :  { %1017 = vmatpush3.bf16.msra.mxu1 %v314_v43  ;;  %v198_v23 = vld [vmem:[%s2137_s1 + $0x238] sm:$0xff]  ;;  %v339_v24 = vpack.c.bf16 %v224_v19, %v223_v18  ;;  %v215_v26 = vld [vmem:[%s2137_s1 + $0x2c0] sm:$0xff]  ;;  %v216_v27 = vld [vmem:[%s2137_s1 + $0x2c8] sm:$0xff] }
  0x24   :  { %410 = vmatmul.mubr.bf16.vlgmr.msra.gmra.mrb[0].mxu0 %v235_v51  ;;  %v50_v25 = vld [vmem:[%s2138_s0 + $0x118] sm:$0xff]  ;;  %v45_v28 = vld [vmem:[%s2138_s0 + $0xf0] sm:$0xff]  ;;  %v52_v29 = vld [vmem:[%s2138_s0 + $0x128] sm:$0xff]  ;;  %v326_v34 = vpack.c.bf16 %v198_v23, %v197_v22  ;;  %v335_v35 = vpack.c.bf16 %v216_v27, %v215_v26 }
  0x25   :  { %1067 = vmatpush3.bf16.msra.mxu0 %v323_v54  ;;  %417 = vmatprep.mubr.bf16.mxu0 %v243_v56  ;;  %v58_v30 = vld [vmem:[%s2138_s0 + $0x158] sm:$0xff]  ;;  %v65_v31 = vld [vmem:[%s2138_s0 + $0x190] sm:$0xff]  ;;  %v60_v32 = vld [vmem:[%s2138_s0 + $0x168] sm:$0xff]  ;;  %v249_v39 = vpack.c.bf16 %v50_v25, %v43_v20  ;;  %v251_v43 = vpack.c.bf16 %v52_v29, %v45_v28 }
  0x26   :  { %507 = vmatmul.mubr.bf16.vlgmr.msra.gmra.mrb[0].mxu1 %v237_v55  ;;  %1068 = vmatprep.subr.bf16.mxu0 %v332_v57  ;;  %v67_v33 = vld [vmem:[%s2138_s0 + $0x1a0] sm:$0xff]  ;;  %v200_v37 = vld [vmem:[%s2137_s1 + $0x248] sm:$0xff]  ;;  %v225_v38 = vld [vmem:[%s2137_s1 + $0x310] sm:$0xff]  ;;  %v257_v44 = vpack.c.bf16 %v65_v31, %v58_v30 }
  0x27   :  { %514 = vmatprep.mubr.bf16.mxu1 %v245_v60  ;;  %v199_v36 = vld [vmem:[%s2137_s1 + $0x240] sm:$0xff]  ;;  %1144 = vmatprep.subr.bf16.mxu1 %v339_v24  ;;  %v217_v40 = vld [vmem:[%s2137_s1 + $0x2d0] sm:$0xff]  ;;  %v218_v41 = vld [vmem:[%s2137_s1 + $0x2d8] sm:$0xff]  ;;  %v259_v46 = vpack.c.bf16 %v67_v33, %v60_v32 }
  0x28   :  { %1145 = vmatpush3.bf16.msra.mxu1 %v339_v24  ;;  %v226_v42 = vld [vmem:[%s2137_s1 + $0x318] sm:$0xff]  ;;  %v327_v47 = vpack.c.bf16 %v200_v37, %v199_v36  ;;  %v57_v48 = vld [vmem:[%s2138_s0 + $0x150] sm:$0xff]  ;;  %v64_v49 = vld [vmem:[%s2138_s0 + $0x188] sm:$0xff]  ;;  %v336_v50 = vpack.c.bf16 %v218_v41, %v217_v40 }
  0x29   :  { %1069 = vmatpush3.bf16.msra.mxu0 %v324_v1  ;;  %v340_v45 = vpack.c.bf16 %v226_v42, %v225_v38  ;;  %v201_v51 = vld [vmem:[%s2137_s1 + $0x250] sm:$0xff]  ;;  %v202_v52 = vld [vmem:[%s2137_s1 + $0x258] sm:$0xff]  ;;  %v227_v53 = vld [vmem:[%s2137_s1 + $0x320] sm:$0xff]  ;;  %v256_v7 = vpack.c.bf16 %v64_v49, %v57_v48 }
  0x2a   :  { %1070 = vmatprep.subr.bf16.mxu0 %v333_v6  ;;  %v59_v54 = vld [vmem:[%s2138_s0 + $0x160] sm:$0xff]  ;;  %v220_v56 = vld [vmem:[%s2137_s1 + $0x2e8] sm:$0xff]  ;;  %v66_v58 = vld [vmem:[%s2138_s0 + $0x198] sm:$0xff]  ;;  %v328_v63 = vpack.c.bf16 %v202_v52, %v201_v51 }
  0x2b   :  { %1146 = vmatprep.subr.bf16.mxu1 %v340_v45  ;;  %v219_v55 = vld [vmem:[%s2137_s1 + $0x2e0] sm:$0xff]  ;;  %v228_v57 = vld [vmem:[%s2137_s1 + $0x328] sm:$0xff]  ;;  %v74_v62 = vld [vmem:[%s2138_s0 + $0x1d8] sm:$0xff]  ;;  %v258_v10 = vpack.c.bf16 %v66_v58, %v59_v54 }
  0x2c   :  { %418 = vmatmul.mubr.bf16.gmra.mrb[4].mxu0 %v242_v11  ;;  %1147 = vmatpush3.bf16.msra.mxu1 %v340_v45  ;;  %v72_v59 = vld [vmem:[%s2138_s0 + $0x1c8] sm:$0xff]  ;;  %v79_v60 = vld [vmem:[%s2138_s0 + $0x200] sm:$0xff]  ;;  %v341_v61 = vpack.c.bf16 %v228_v57, %v227_v53  ;;  %v229_v0 = vld [vmem:[%s2137_s1 + $0x330] sm:$0xff]  ;;  %v337_v3 = vpack.c.bf16 %v220_v56, %v219_v55 }
  0x2d   :  { %425 = vmatprep.mubr.bf16.mxu0 %v250_v15  ;;  %1071 = vmatpush3.bf16.msra.mxu0 %v325_v17  ;;  %v230_v1 = vld [vmem:[%s2137_s1 + $0x338] sm:$0xff]  ;;  %v81_v2 = vld [vmem:[%s2138_s0 + $0x210] sm:$0xff]  ;;  %v203_v4 = vld [vmem:[%s2137_s1 + $0x260] sm:$0xff]  ;;  %v264_v11 = vpack.c.bf16 %v79_v60, %v72_v59 }
  0x2e   :  { %515 = vmatmul.mubr.bf16.gmra.mrb[4].mxu1 %v244_v14  ;;  %1072 = vmatprep.subr.bf16.mxu0 %v334_v21  ;;  %v204_v5 = vld [vmem:[%s2137_s1 + $0x268] sm:$0xff]  ;;  %v342_v6 = vpack.c.bf16 %v230_v1, %v229_v0  ;;  %v221_v8 = vld [vmem:[%s2137_s1 + $0x2f0] sm:$0xff]  ;;  %v222_v9 = vld [vmem:[%s2137_s1 + $0x2f8] sm:$0xff]  ;;  %v266_v14 = vpack.c.bf16 %v81_v2, %v74_v62 }
  0x2f   :  { %522 = vmatprep.mubr.bf16.mxu1 %v252_v16  ;;  %1148 = vmatprep.subr.bf16.mxu1 %v341_v61  ;;  %v231_v12 = vld [vmem:[%s2137_s1 + $0x340] sm:$0xff]  ;;  %v232_v13 = vld [vmem:[%s2137_s1 + $0x348] sm:$0xff]  ;;  %v329_v15 = vpack.c.bf16 %v204_v5, %v203_v4  ;;  %v205_v16 = vld [vmem:[%s2137_s1 + $0x270] sm:$0xff]  ;;  %v338_v17 = vpack.c.bf16 %v222_v9, %v221_v8 }
  0x30   :  { %1149 = vmatpush3.bf16.msra.mxu1 %v341_v61  ;;  %v206_v18 = vld [vmem:[%s2137_s1 + $0x278] sm:$0xff]  ;;  %v343_v19 = vpack.c.bf16 %v232_v13, %v231_v12  ;;  %v233_v20 = vld [vmem:[%s2137_s1 + $0x350] sm:$0xff]  ;;  %v71_v22 = vld [vmem:[%s2138_s0 + $0x1c0] sm:$0xff] }
  0x31   :  { %1073 = vmatpush3.bf16.msra.mxu0 %v326_v34  ;;  %1150 = vmatprep.subr.bf16.mxu1 %v342_v6  ;;  %v234_v21 = vld [vmem:[%s2137_s1 + $0x358] sm:$0xff]  ;;  %v73_v24 = vld [vmem:[%s2138_s0 + $0x1d0] sm:$0xff]  ;;  %v80_v26 = vld [vmem:[%s2138_s0 + $0x208] sm:$0xff]  ;;  %v330_v29 = vpack.c.bf16 %v206_v18, %v205_v16 }
  0x32   :  { %1074 = vmatprep.subr.bf16.mxu0 %v335_v35  ;;  %v78_v23 = vld [vmem:[%s2138_s0 + $0x1f8] sm:$0xff]  ;;  %v344_v25 = vpack.c.bf16 %v234_v21, %v233_v20  ;;  %v93_v28 = vld [vmem:[%s2138_s0 + $0x270] sm:$0xff]  ;;  %v88_v30 = vld [vmem:[%s2138_s0 + $0x248] sm:$0xff]  ;;  %v265_v33 = vpack.c.bf16 %v80_v26, %v73_v24 }
  0x33   :  { %v86_v27 = vld [vmem:[%s2138_s0 + $0x238] sm:$0xff]  ;;  %v95_v31 = vld [vmem:[%s2138_s0 + $0x280] sm:$0xff]  ;;  %v263_v32 = vpack.c.bf16 %v78_v23, %v71_v22  ;;  %v85_v36 = vld [vmem:[%s2138_s0 + $0x230] sm:$0xff] }
  0x34   :  { %426 = vmatmul.mubr.bf16.gmra.mrb[8].mxu0 %v249_v39  ;;  %1151 = vmatpush3.bf16.msra.mxu1 %v342_v6  ;;  %v271_v34 = vpack.c.bf16 %v93_v28, %v86_v27  ;;  %v273_v35 = vpack.c.bf16 %v95_v31, %v88_v30  ;;  %v92_v37 = vld [vmem:[%s2138_s0 + $0x268] sm:$0xff]  ;;  %v87_v38 = vld [vmem:[%s2138_s0 + $0x240] sm:$0xff]  ;;  %v94_v39 = vld [vmem:[%s2138_s0 + $0x278] sm:$0xff] }
  0x35   :  { %433 = vmatprep.mubr.bf16.mxu0 %v257_v44  ;;  %1075 = vmatpush3.bf16.msra.mxu0 %v327_v47  ;;  %v100_v40 = vld [vmem:[%s2138_s0 + $0x2a8] sm:$0xff]  ;;  %v107_v41 = vld [vmem:[%s2138_s0 + $0x2e0] sm:$0xff]  ;;  %v102_v42 = vld [vmem:[%s2138_s0 + $0x2b8] sm:$0xff]  ;;  %v270_v44 = vpack.c.bf16 %v92_v37, %v85_v36  ;;  %v272_v45 = vpack.c.bf16 %v94_v39, %v87_v38 }
  0x36   :  { %523 = vmatmul.mubr.bf16.gmra.mrb[8].mxu1 %v251_v43  ;;  %1076 = vmatprep.subr.bf16.mxu0 %v336_v50  ;;  %v109_v43 = vld [vmem:[%s2138_s0 + $0x2f0] sm:$0xff]  ;;  %v99_v48 = vld [vmem:[%s2138_s0 + $0x2a0] sm:$0xff]  ;;  %v106_v49 = vld [vmem:[%s2138_s0 + $0x2d8] sm:$0xff] }
  0x37   :  { %530 = vmatprep.mubr.bf16.mxu1 %v259_v46  ;;  %1152 = vmatprep.subr.bf16.mxu1 %v343_v19  ;;  %v278_v46 = vpack.c.bf16 %v107_v41, %v100_v40  ;;  %v280_v47 = vpack.c.bf16 %v109_v43, %v102_v42  ;;  %v101_v50 = vld [vmem:[%s2138_s0 + $0x2b0] sm:$0xff]  ;;  %v108_v51 = vld [vmem:[%s2138_s0 + $0x2e8] sm:$0xff]  ;;  %v114_v52 = vld [vmem:[%s2138_s0 + $0x318] sm:$0xff]  ;;  %v277_v56 = vpack.c.bf16 %v106_v49, %v99_v48 }
  0x38   :  { %1153 = vmatpush3.bf16.msra.mxu1 %v343_v19  ;;  %v121_v53 = vld [vmem:[%s2138_s0 + $0x350] sm:$0xff]  ;;  %v116_v54 = vld [vmem:[%s2138_s0 + $0x328] sm:$0xff]  ;;  %v123_v55 = vld [vmem:[%s2138_s0 + $0x360] sm:$0xff]  ;;  %v279_v57 = vpack.c.bf16 %v108_v51, %v101_v50 }
  0x39   :  { %1077 = vmatpush3.bf16.msra.mxu0 %v328_v63  ;;  %1154 = vmatprep.subr.bf16.mxu1 %v344_v25  ;;  %v285_v58 = vpack.c.bf16 %v121_v53, %v114_v52  ;;  %v287_v59 = vpack.c.bf16 %v123_v55, %v116_v54  ;;  %v113_v60 = vld [vmem:[%s2138_s0 + $0x310] sm:$0xff]  ;;  %v120_v61 = vld [vmem:[%s2138_s0 + $0x348] sm:$0xff]  ;;  %v115_v62 = vld [vmem:[%s2138_s0 + $0x320] sm:$0xff] }
  0x3a   :  { %1078 = vmatprep.subr.bf16.mxu0 %v337_v3  ;;  %v122_v63 = vld [vmem:[%s2138_s0 + $0x358] sm:$0xff]  ;;  %v20_v0 = vld [vmem:[%s2138_s0 + $0x28] sm:$0xff]  ;;  %v27_v1 = vld [vmem:[%s2138_s0 + $0x60] sm:$0xff]  ;;  %v284_v4 = vpack.c.bf16 %v120_v61, %v113_v60 }
  0x3b   :  { %v21_v2 = vld [vmem:[%s2138_s0 + $0x30] sm:$0xff]  ;;  %v28_v3 = vld [vmem:[%s2138_s0 + $0x68] sm:$0xff]  ;;  %v286_v5 = vpack.c.bf16 %v122_v63, %v115_v62  ;;  %v240_v6 = vpack.c.bf16 %v27_v1, %v20_v0  ;;  %v19_v8 = vld [vmem:[%s2138_s0 + $0x20] sm:$0xff] }
  0x3c   :  { %434 = vmatmul.mubr.bf16.gmra.mrb[12].mxu0 %v256_v7  ;;  %1155 = vmatpush3.bf16.msra.mxu1 %v344_v25  ;;  %v241_v7 = vpack.c.bf16 %v28_v3, %v21_v2  ;;  %v26_v9 = vld [vmem:[%s2138_s0 + $0x58] sm:$0xff]  ;;  %v41_v13 = vld [vmem:[%s2138_s0 + $0xd0] sm:$0xff]  ;;  %v40_v21 = vld [vmem:[%s2138_s0 + $0xc8] sm:$0xff] }
  0x3d   :  { %441 = vmatprep.mubr.bf16.mxu0 %v264_v11  ;;  %1079 = vmatpush3.bf16.msra.mxu0 %v329_v15  ;;  %v42_v11 = vld [vmem:[%s2138_s0 + $0xd8] sm:$0xff]  ;;  %v56_v15 = vld [vmem:[%s2138_s0 + $0x148] sm:$0xff]  ;;  %v239_v16 = vpack.c.bf16 %v26_v9, %v19_v8  ;;  %v33_v20 = vld [vmem:[%s2138_s0 + $0x90] sm:$0xff] }
  0x3e   :  { %531 = vmatmul.mubr.bf16.gmra.mrb[12].mxu1 %v258_v10  ;;  %1080 = vmatprep.subr.bf16.mxu0 %v338_v17  ;;  %v35_v10 = vld [vmem:[%s2138_s0 + $0xa0] sm:$0xff]  ;;  %v34_v12 = vld [vmem:[%s2138_s0 + $0x98] sm:$0xff]  ;;  %v48_v22 = vld [vmem:[%s2138_s0 + $0x108] sm:$0xff]  ;;  %v246_v28 = vpack.c.bf16 %v40_v21, %v33_v20 }
  0x3f   :  { %538 = vmatprep.mubr.bf16.mxu1 %v266_v14  ;;  %v49_v14 = vld [vmem:[%s2138_s0 + $0x110] sm:$0xff]  ;;  %v248_v17 = vpack.c.bf16 %v42_v11, %v35_v10  ;;  %v247_v18 = vpack.c.bf16 %v41_v13, %v34_v12  ;;  %v55_v23 = vld [vmem:[%s2138_s0 + $0x140] sm:$0xff]  ;;  %v70_v25 = vld [vmem:[%s2138_s0 + $0x1b8] sm:$0xff] }
  0x40   :  { %v255_v19 = vpack.c.bf16 %v56_v15, %v49_v14  ;;  %v63_v24 = vld [vmem:[%s2138_s0 + $0x180] sm:$0xff]  ;;  %v77_v26 = vld [vmem:[%s2138_s0 + $0x1f0] sm:$0xff]  ;;  %v84_v27 = vld [vmem:[%s2138_s0 + $0x228] sm:$0xff] }
  0x41   :  { %1081 = vmatpush3.bf16.msra.mxu0 %v330_v29  ;;  %v254_v29 = vpack.c.bf16 %v55_v23, %v48_v22  ;;  %v262_v30 = vpack.c.bf16 %v70_v25, %v63_v24  ;;  %v269_v31 = vpack.c.bf16 %v84_v27, %v77_v26  ;;  %v91_v36 = vld [vmem:[%s2138_s0 + $0x260] sm:$0xff]  ;;  %v98_v37 = vld [vmem:[%s2138_s0 + $0x298] sm:$0xff]  ;;  %v105_v38 = vld [vmem:[%s2138_s0 + $0x2d0] sm:$0xff] }
  0x42   :  { %v112_v39 = vld [vmem:[%s2138_s0 + $0x308] sm:$0xff]  ;;  %v276_v42 = vpack.c.bf16 %v98_v37, %v91_v36  ;;  %v119_v48 = vld [vmem:[%s2138_s0 + $0x340] sm:$0xff]  ;;  %v126_v49 = vld [vmem:[%s2138_s0 + $0x378] sm:$0xff] }
  0x43   :  { %v283_v43 = vpack.c.bf16 %v112_v39, %v105_v38  ;;  %v290_v52 = vpack.c.bf16 %v126_v49, %v119_v48  ;;  %v75_v53 = vld [vmem:[%s2138_s0 + $0x1e0] sm:$0xff]  ;;  %v82_v54 = vld [vmem:[%s2138_s0 + $0x218] sm:$0xff]  ;;  %v96_v60 = vld [vmem:[%s2138_s0 + $0x288] sm:$0xff] }
  0x44   :  { %442 = vmatmul.mubr.bf16.gmra.mrb[16].mxu0 %v263_v32  ;;  %v47_v32 = vld [vmem:[%s2138_s0 + $0x100] sm:$0xff]  ;;  %v90_v55 = vld [vmem:[%s2138_s0 + $0x258] sm:$0xff]  ;;  %v104_v61 = vld [vmem:[%s2138_s0 + $0x2c8] sm:$0xff] }
  0x45   :  { %449 = vmatprep.mubr.bf16.mxu0 %v271_v34  ;;  %v62_v34 = vld [vmem:[%s2138_s0 + $0x178] sm:$0xff]  ;;  %v111_v62 = vld [vmem:[%s2138_s0 + $0x300] sm:$0xff]  ;;  %v124_v8 = vld [vmem:[%s2138_s0 + $0x368] sm:$0xff] }
  0x46   :  { %539 = vmatmul.mubr.bf16.gmra.mrb[16].mxu1 %v265_v33  ;;  %v54_v33 = vld [vmem:[%s2138_s0 + $0x138] sm:$0xff]  ;;  %v282_v0 = vpack.c.bf16 %v111_v62, %v104_v61  ;;  %v103_v1 = vld [vmem:[%s2138_s0 + $0x2c0] sm:$0xff] }
  0x47   :  { %546 = vmatprep.mubr.bf16.mxu1 %v273_v35  ;;  %v69_v35 = vld [vmem:[%s2138_s0 + $0x1b0] sm:$0xff]  ;;  %v253_v40 = vpack.c.bf16 %v54_v33, %v47_v32  ;;  %v110_v2 = vld [vmem:[%s2138_s0 + $0x2f8] sm:$0xff]  ;;  %v1895_v11 = vld [vmem:[%s2139_s2] ss:$0 sm:$0xff] }
  0x48   :  { %v261_v41 = vpack.c.bf16 %v69_v35, %v62_v34  ;;  %v118_v3 = vld [vmem:[%s2138_s0 + $0x338] sm:$0xff] }
  0x4c   :  { %450 = vmatmul.mubr.bf16.gmra.mrb[20].mxu0 %v270_v44  ;;  %v61_v44 = vld [vmem:[%s2138_s0 + $0x170] sm:$0xff] }
  0x4d   :  { %457 = vmatprep.mubr.bf16.mxu0 %v278_v46  ;;  %v76_v46 = vld [vmem:[%s2138_s0 + $0x1e8] sm:$0xff] }
  0x4e   :  { %547 = vmatmul.mubr.bf16.gmra.mrb[20].mxu1 %v272_v45  ;;  %v68_v45 = vld [vmem:[%s2138_s0 + $0x1a8] sm:$0xff] }
  0x4f   :  { %554 = vmatprep.mubr.bf16.mxu1 %v280_v47  ;;  %v83_v47 = vld [vmem:[%s2138_s0 + $0x220] sm:$0xff]  ;;  %v260_v50 = vpack.c.bf16 %v68_v45, %v61_v44 }
  0x50   :  { %v268_v51 = vpack.c.bf16 %v83_v47, %v76_v46 }
  0x54   :  { %458 = vmatmul.mubr.bf16.gmra.mrb[24].mxu0 %v277_v56  ;;  %v97_v56 = vld [vmem:[%s2138_s0 + $0x290] sm:$0xff] }
  0x55   :  { %465 = vmatprep.mubr.bf16.mxu0 %v285_v58  ;;  %v275_v58 = vpack.c.bf16 %v97_v56, %v90_v55 }
  0x56   :  { %555 = vmatmul.mubr.bf16.gmra.mrb[24].mxu1 %v279_v57  ;;  %v267_v57 = vpack.c.bf16 %v82_v54, %v75_v53 }
  0x57   :  { %562 = vmatprep.mubr.bf16.mxu1 %v287_v59  ;;  %v89_v59 = vld [vmem:[%s2138_s0 + $0x250] sm:$0xff] }
  0x58   :  { %v274_v63 = vpack.c.bf16 %v96_v60, %v89_v59 }
  0x5c   :  { %466 = vmatmul.mubr.bf16.gmra.mrb[28].mxu0 %v284_v4  ;;  %v125_v4 = vld [vmem:[%s2138_s0 + $0x370] sm:$0xff] }
  0x5d   :  { %603 = vmatprep.mubr.bf16.mxu0 %v240_v6  ;;  %v289_v6 = vpack.c.bf16 %v125_v4, %v118_v3 }
  0x5e   :  { %563 = vmatmul.mubr.bf16.gmra.mrb[28].mxu1 %v286_v5  ;;  %v281_v5 = vpack.c.bf16 %v110_v2, %v103_v1 }
  0x5f   :  { %1156 = vmatprep.mubr.msk.bf16.mxu1 %vm352_vm0, %v241_v7  ;;  %v117_v7 = vld [vmem:[%s2138_s0 + $0x330] sm:$0xff] }
  0x60   :  { %v288_v9 = vpack.c.bf16 %v124_v8, %v117_v7 }
  0x64   :  { %604 = vmatmul.mubr.bf16.vlgmr.msra.gmra.mrb[32].mxu0 %v239_v16 }
  0x65   :  { %611 = vmatprep.mubr.bf16.mxu0 %v247_v18 }
  0x66   :  { %1157 = vmatmul.mubr.msk.bf16.vlgmr.msra.gmra.mrb[32].mxu1 %vm352_vm0, %v248_v17 }
  0x67   :  { %1160 = vmatprep.mubr.msk.bf16.mxu1 %vm352_vm0, %v255_v19 }
  0x6c   :  { %612 = vmatmul.mubr.bf16.gmra.mrb[36].mxu0 %v246_v28 }
  0x6d   :  { %619 = vmatprep.mubr.bf16.mxu0 %v254_v29 }
  0x6e   :  { %1161 = vmatmul.mubr.msk.bf16.gmra.mrb[36].mxu1 %vm352_vm0, %v262_v30 }
  0x6f   :  { %1164 = vmatprep.mubr.msk.bf16.mxu1 %vm352_vm0, %v269_v31 }
  0x74   :  { %620 = vmatmul.mubr.bf16.gmra.mrb[40].mxu0 %v253_v40 }
  0x75   :  { %627 = vmatprep.mubr.bf16.mxu0 %v261_v41 }
  0x76   :  { %1165 = vmatmul.mubr.msk.bf16.gmra.mrb[40].mxu1 %vm352_vm0, %v276_v42 }
  0x77   :  { %1168 = vmatprep.mubr.msk.bf16.mxu1 %vm352_vm0, %v283_v43 }
  0x7c   :  { %628 = vmatmul.mubr.bf16.gmra.mrb[44].mxu0 %v260_v50 }
  0x7d   :  { %635 = vmatprep.mubr.bf16.mxu0 %v268_v51 }
  0x7e   :  { %1169 = vmatmul.mubr.msk.bf16.gmra.mrb[44].mxu1 %vm352_vm0, %v290_v52 }
  0x84   :  { %636 = vmatmul.mubr.bf16.gmra.mrb[48].mxu0 %v267_v57 }
  0x85   :  { %643 = vmatprep.mubr.bf16.mxu0 %v275_v58 }
  0x8c   :  { %644 = vmatmul.mubr.bf16.gmra.mrb[52].mxu0 %v274_v63 }
  0x8d   :  { %651 = vmatprep.mubr.bf16.mxu0 %v282_v0 }
  0x94   :  { %652 = vmatmul.mubr.bf16.gmra.mrb[56].mxu0 %v281_v5 }
  0x95   :  { %659 = vmatprep.mubr.bf16.mxu0 %v289_v6 }
  0x9c   :  { %660 = vmatmul.mubr.bf16.gmra.mrb[60].mxu0 %v288_v9 }
  0xf7   :  { %v954_v10 = vpop.f32.mrb[0].mxu0 }
  0xf8   :  { %v955_v12 = vpop.f32.mrb[1].mxu0 }
  0xf9   :  { %v1018_v13 = vpop.f32.mrb[0].mxu1  ;;  %v956_v14 = vadd.f32 %v955_v12, %v954_v10  ;;  %v957_v15 = vpop.f32.mrb[2].mxu0 }
  0xfa   :  { %v1019_v16 = vpop.f32.mrb[1].mxu1  ;;  %v958_v17 = vpop.f32.mrb[3].mxu0 }
  0xfb   :  { %v1020_v18 = vadd.f32 %v1019_v16, %v1018_v13  ;;  %v1021_v19 = vpop.f32.mrb[2].mxu1  ;;  %v412_v20 = vadd.f32 %v956_v14, %v1895_v11  ;;  %v959_v21 = vadd.f32 %v958_v17, %v957_v15 }
  0xfc   :  { %v1022_v22 = vpop.f32.mrb[3].mxu1 }
  0xfd   :  { %v1023_v23 = vadd.f32 %v1022_v22, %v1021_v19  ;;  %v415_v24 = vadd.f32 %v959_v21, %v1895_v11  ;;  %v1899_v25 = vadd.f32 %v1020_v18, %v412_v20 }
  0xff   :  { %v1901_v26 = vadd.f32 %v1023_v23, %v415_v24  ;;  %v960_v27 = vpop.f32.mrb[4].mxu0 }
 0x100   :  { %v961_v28 = vpop.f32.mrb[5].mxu0 }
 0x101   :  { %v1024_v29 = vpop.f32.mrb[4].mxu1  ;;  %v962_v30 = vadd.f32 %v961_v28, %v960_v27  ;;  %v963_v31 = vpop.f32.mrb[6].mxu0 }
 0x102   :  { %v1025_v32 = vpop.f32.mrb[5].mxu1  ;;  %v964_v33 = vpop.f32.mrb[7].mxu0 }
 0x103   :  { %v1026_v34 = vadd.f32 %v1025_v32, %v1024_v29  ;;  %v1027_v35 = vpop.f32.mrb[6].mxu1  ;;  %v420_v36 = vadd.f32 %v962_v30, %v1895_v11  ;;  %v965_v37 = vadd.f32 %v964_v33, %v963_v31 }
 0x104   :  { %v1028_v38 = vpop.f32.mrb[7].mxu1 }
 0x105   :  { %v1029_v39 = vadd.f32 %v1028_v38, %v1027_v35  ;;  %v423_v40 = vadd.f32 %v965_v37, %v1895_v11  ;;  %v1905_v41 = vadd.f32 %v1026_v34, %v420_v36 }
 0x107   :  { %v1907_v42 = vadd.f32 %v1029_v39, %v423_v40  ;;  %v966_v43 = vpop.f32.mrb[8].mxu0 }
 0x108   :  { %v967_v44 = vpop.f32.mrb[9].mxu0 }
 0x109   :  { %v1030_v45 = vpop.f32.mrb[8].mxu1  ;;  %v968_v46 = vadd.f32 %v967_v44, %v966_v43  ;;  %v969_v47 = vpop.f32.mrb[10].mxu0 }
 0x10a   :  { %v1031_v48 = vpop.f32.mrb[9].mxu1  ;;  %v970_v49 = vpop.f32.mrb[11].mxu0 }
 0x10b   :  { %v1032_v50 = vadd.f32 %v1031_v48, %v1030_v45  ;;  %v1033_v51 = vpop.f32.mrb[10].mxu1  ;;  %v428_v52 = vadd.f32 %v968_v46, %v1895_v11  ;;  %v971_v53 = vadd.f32 %v970_v49, %v969_v47 }
 0x10c   :  { %v1034_v54 = vpop.f32.mrb[11].mxu1 }
 0x10d   :  { %v1035_v55 = vadd.f32 %v1034_v54, %v1033_v51  ;;  %v431_v56 = vadd.f32 %v971_v53, %v1895_v11  ;;  %v1911_v57 = vadd.f32 %v1032_v50, %v428_v52 }
 0x10f   :  { %v1913_v58 = vadd.f32 %v1035_v55, %v431_v56  ;;  %v972_v59 = vpop.f32.mrb[12].mxu0 }
 0x110   :  { %v973_v60 = vpop.f32.mrb[13].mxu0 }
 0x111   :  { %v1036_v61 = vpop.f32.mrb[12].mxu1  ;;  %v974_v62 = vadd.f32 %v973_v60, %v972_v59  ;;  %v975_v63 = vpop.f32.mrb[14].mxu0 }
 0x112   :  { %v1037_v0 = vpop.f32.mrb[13].mxu1  ;;  %v976_v1 = vpop.f32.mrb[15].mxu0 }
 0x113   :  { %v1038_v2 = vadd.f32 %v1037_v0, %v1036_v61  ;;  %v1039_v3 = vpop.f32.mrb[14].mxu1  ;;  %v436_v4 = vadd.f32 %v974_v62, %v1895_v11  ;;  %v977_v5 = vadd.f32 %v976_v1, %v975_v63 }
 0x114   :  { %v1040_v6 = vpop.f32.mrb[15].mxu1 }
 0x115   :  { %v1041_v7 = vadd.f32 %v1040_v6, %v1039_v3  ;;  %v439_v8 = vadd.f32 %v977_v5, %v1895_v11  ;;  %v1917_v9 = vadd.f32 %v1038_v2, %v436_v4 }
 0x117   :  { %v1919_v10 = vadd.f32 %v1041_v7, %v439_v8  ;;  %v978_v12 = vpop.f32.mrb[16].mxu0 }
 0x118   :  { %v979_v13 = vpop.f32.mrb[17].mxu0 }
 0x119   :  { %v1042_v14 = vpop.f32.mrb[16].mxu1  ;;  %v980_v15 = vadd.f32 %v979_v13, %v978_v12  ;;  %v981_v16 = vpop.f32.mrb[18].mxu0 }
 0x11a   :  { %v1043_v17 = vpop.f32.mrb[17].mxu1  ;;  %v982_v18 = vpop.f32.mrb[19].mxu0 }
 0x11b   :  { %v1044_v19 = vadd.f32 %v1043_v17, %v1042_v14  ;;  %v1045_v20 = vpop.f32.mrb[18].mxu1  ;;  %v444_v21 = vadd.f32 %v980_v15, %v1895_v11  ;;  %v983_v22 = vadd.f32 %v982_v18, %v981_v16 }
 0x11c   :  { %v1046_v23 = vpop.f32.mrb[19].mxu1 }
 0x11d   :  { %v1047_v24 = vadd.f32 %v1046_v23, %v1045_v20  ;;  %v447_v27 = vadd.f32 %v983_v22, %v1895_v11  ;;  %v1923_v28 = vadd.f32 %v1044_v19, %v444_v21 }
 0x11f   :  { %v1925_v29 = vadd.f32 %v1047_v24, %v447_v27  ;;  %v984_v30 = vpop.f32.mrb[20].mxu0 }
 0x120   :  { %v985_v31 = vpop.f32.mrb[21].mxu0 }
 0x121   :  { %v1048_v32 = vpop.f32.mrb[20].mxu1  ;;  %v986_v33 = vadd.f32 %v985_v31, %v984_v30  ;;  %v987_v34 = vpop.f32.mrb[22].mxu0 }
 0x122   :  { %v1049_v35 = vpop.f32.mrb[21].mxu1  ;;  %v988_v36 = vpop.f32.mrb[23].mxu0 }
 0x123   :  { %v1050_v37 = vadd.f32 %v1049_v35, %v1048_v32  ;;  %v1051_v38 = vpop.f32.mrb[22].mxu1  ;;  %v452_v39 = vadd.f32 %v986_v33, %v1895_v11  ;;  %v989_v40 = vadd.f32 %v988_v36, %v987_v34 }
 0x124   :  { %v1052_v43 = vpop.f32.mrb[23].mxu1 }
 0x125   :  { %v1053_v44 = vadd.f32 %v1052_v43, %v1051_v38  ;;  %v455_v45 = vadd.f32 %v989_v40, %v1895_v11  ;;  %v1929_v46 = vadd.f32 %v1050_v37, %v452_v39 }
 0x127   :  { %v1931_v47 = vadd.f32 %v1053_v44, %v455_v45  ;;  %v990_v48 = vpop.f32.mrb[24].mxu0 }
 0x128   :  { %v991_v49 = vpop.f32.mrb[25].mxu0 }
 0x129   :  { %v1054_v50 = vpop.f32.mrb[24].mxu1  ;;  %v992_v51 = vadd.f32 %v991_v49, %v990_v48  ;;  %v993_v52 = vpop.f32.mrb[26].mxu0 }
 0x12a   :  { %v1055_v53 = vpop.f32.mrb[25].mxu1  ;;  %v994_v54 = vpop.f32.mrb[27].mxu0 }
 0x12b   :  { %v1056_v55 = vadd.f32 %v1055_v53, %v1054_v50  ;;  %v1057_v56 = vpop.f32.mrb[26].mxu1  ;;  %v460_v59 = vadd.f32 %v992_v51, %v1895_v11  ;;  %v995_v60 = vadd.f32 %v994_v54, %v993_v52 }
 0x12c   :  { %v1058_v61 = vpop.f32.mrb[27].mxu1 }
 0x12d   :  { %v1059_v62 = vadd.f32 %v1058_v61, %v1057_v56  ;;  %v463_v63 = vadd.f32 %v995_v60, %v1895_v11  ;;  %v1935_v0 = vadd.f32 %v1056_v55, %v460_v59 }
 0x12f   :  { %v1937_v1 = vadd.f32 %v1059_v62, %v463_v63  ;;  %v996_v2 = vpop.f32.mrb[28].mxu0 }
 0x130   :  { %v997_v3 = vpop.f32.mrb[29].mxu0 }
 0x131   :  { %v1060_v4 = vpop.f32.mrb[28].mxu1  ;;  %v998_v5 = vadd.f32 %v997_v3, %v996_v2  ;;  %v999_v6 = vpop.f32.mrb[30].mxu0 }
 0x132   :  { %v1061_v7 = vpop.f32.mrb[29].mxu1  ;;  %v1000_v8 = vpop.f32.mrb[31].mxu0 }
 0x133   :  { %v1062_v12 = vadd.f32 %v1061_v7, %v1060_v4  ;;  %v1063_v13 = vpop.f32.mrb[30].mxu1  ;;  %v468_v14 = vadd.f32 %v998_v5, %v1895_v11  ;;  %v1001_v15 = vadd.f32 %v1000_v8, %v999_v6 }
 0x134   :  { %v1064_v16 = vpop.f32.mrb[31].mxu1 }
 0x135   :  { %v1065_v17 = vadd.f32 %v1064_v16, %v1063_v13  ;;  %v471_v18 = vadd.f32 %v1001_v15, %v1895_v11  ;;  %v1941_v19 = vadd.f32 %v1062_v12, %v468_v14 }
 0x137   :  { %v1943_v20 = vadd.f32 %v1065_v17, %v471_v18  ;;  %v1082_v21 = vpop.f32.mrb[32].mxu0 }
 0x138   :  { %v1083_v22 = vpop.f32.mrb[33].mxu0 }
 0x139   :  { %v1158_v23 = vpop.f32.mrb[32].mxu1  ;;  %v1084_v24 = vadd.f32 %v1083_v22, %v1082_v21  ;;  %v1085_v27 = vpop.f32.mrb[34].mxu0 }
 0x13a   :  { %v702_v30 = vpop.f32.mrb[33].mxu1  ;;  %v1086_v31 = vpop.f32.mrb[35].mxu0 }
 0x13b   :  { %v1159_v32 = vpop.f32.mrb[34].mxu1  ;;  %v1087_v33 = vadd.f32 %v1086_v31, %v1085_v27  ;;  %v606_v34 = vadd.f32 %v1084_v24, %v1899_v25 }
 0x13c   :  { %v705_v35 = vpop.f32.mrb[35].mxu1 }
 0x13d   :  { %v1946_v36 = vadd.f32 %v702_v30, %v606_v34  ;;  %v609_v11 = vadd.f32 %v1087_v33, %v1901_v26 }
 0x13f   :  { %v765_v37 = vmul.f32 %v1946_v36, %v1946_v36  ;;  %v1951_v38 = vadd.f32 %v705_v35, %v609_v11  ;;  %v1088_v39 = vpop.f32.mrb[36].mxu0 }
 0x140   :  { %v1089_v40 = vpop.f32.mrb[37].mxu0 }
 0x141   :  { %v1953_v43 = vpop.f32.mrb[36].mxu1  ;;  %v781_v44 = vmul.f32 %v765_v37, %v1946_v36  ;;  %v766_v45 = vmul.f32 %v1951_v38, %v1951_v38  ;;  %v1090_v25 = vadd.f32 %v1089_v40, %v1088_v39  ;;  %v1091_v48 = vpop.f32.mrb[38].mxu0 }
 0x142   :  { %v718_v49 = vpop.f32.mrb[37].mxu1  ;;  %v1092_v50 = vpop.f32.mrb[39].mxu0 }
 0x143   :  { %v1958_v51 = vpop.f32.mrb[38].mxu1  ;;  %v797_v26 = vmul.f32 0.044715, %v781_v44  ;;  %v782_v52 = vmul.f32 %v766_v45, %v1951_v38  ;;  %v614_v53 = vadd.f32 %v1090_v25, %v1905_v41  ;;  %v1093_v54 = vadd.f32 %v1092_v50, %v1091_v48 }
 0x144   :  { %v721_v55 = vpop.f32.mrb[39].mxu1 }
 0x145   :  { %v813_v56 = vadd.f32 %v797_v26, %v1946_v36  ;;  %v798_v59 = vmul.f32 0.044715, %v782_v52  ;;  %v1963_v60 = vadd.f32 %v1158_v23, %v614_v53  ;;  %v617_v61 = vadd.f32 %v1093_v54, %v1907_v42 }
 0x147   :  { %v829_v62 = vmul.f32 0.7978846, %v813_v56  ;;  %v814_v63 = vadd.f32 %v798_v59, %v1951_v38  ;;  %v767_v2 = vmul.f32 %v1963_v60, %v1963_v60  ;;  %v1969_v3 = vadd.f32 %v1159_v32, %v617_v61  ;;  %v1094_v4 = vpop.f32.mrb[40].mxu0 }
 0x148   :  { %v1095_v5 = vpop.f32.mrb[41].mxu0 }
 0x149   :  { %v1971_v41 = vpop.f32.mrb[40].mxu1  ;;  %1172 = vtanh.f32 %v829_v62  ;;  %v830_v6 = vmul.f32 0.7978846, %v814_v63  ;;  %v783_v7 = vmul.f32 %v767_v2, %v1963_v60  ;;  %v768_v8 = vmul.f32 %v1969_v3, %v1969_v3  ;;  %v1097_v42 = vpop.f32.mrb[42].mxu0 }
 0x14a   :  { %v1976_v12 = vpop.f32.mrb[41].mxu1  ;;  %v1096_v13 = vadd.f32 %v1095_v5, %v1094_v4  ;;  %v1098_v14 = vpop.f32.mrb[43].mxu0 }
 0x14b   :  { %v1978_v15 = vpop.f32.mrb[42].mxu1  ;;  %1174 = vtanh.f32 %v830_v6  ;;  %v799_v16 = vmul.f32 0.044715, %v783_v7  ;;  %v784_v17 = vmul.f32 %v768_v8, %v1969_v3  ;;  %v1099_v18 = vadd.f32 %v1098_v14, %v1097_v42 }
 0x14c   :  { %v1981_v21 = vpop.f32.mrb[43].mxu1  ;;  %v622_v22 = vadd.f32 %v1096_v13, %v1911_v57 }
 0x14d   :  { %v815_v23 = vadd.f32 %v799_v16, %v1963_v60  ;;  %v800_v24 = vmul.f32 0.044715, %v784_v17  ;;  %v625_v27 = vadd.f32 %v1099_v18, %v1913_v58 }
 0x14e   :  { %v1986_v30 = vadd.f32 %v718_v49, %v622_v22 }
 0x14f   :  { %v831_v31 = vmul.f32 0.7978846, %v815_v23  ;;  %v816_v32 = vadd.f32 %v800_v24, %v1969_v3  ;;  %v1989_v33 = vadd.f32 %v721_v55, %v625_v27  ;;  %v1100_v34 = vpop.f32.mrb[44].mxu0 }
 0x150   :  { %v769_v35 = vmul.f32 %v1986_v30, %v1986_v30  ;;  %v1101_v11 = vpop.f32.mrb[45].mxu0 }
 0x151   :  { %v1993_v37 = vpop.f32.mrb[44].mxu1  ;;  %1176 = vtanh.f32 %v831_v31  ;;  %v832_v57 = vmul.f32 0.7978846, %v816_v32  ;;  %v770_v39 = vmul.f32 %v1989_v33, %v1989_v33  ;;  %v1102_v58 = vadd.f32 %v1101_v11, %v1100_v34  ;;  %v1103_v40 = vpop.f32.mrb[46].mxu0 }
 0x152   :  { %v1997_v44 = vpop.f32.mrb[45].mxu1  ;;  %v785_v45 = vmul.f32 %v769_v35, %v1986_v30  ;;  %v1104_v25 = vpop.f32.mrb[47].mxu0 }
 0x153   :  { %v2000_v48 = vpop.f32.mrb[46].mxu1  ;;  %v1173_v49 = vpop.eup %1172  ;;  %1178 = vtanh.f32 %v832_v57  ;;  %v786_v50 = vmul.f32 %v770_v39, %v1989_v33  ;;  %v630_v26 = vadd.f32 %v1102_v58, %v1917_v9  ;;  %v1105_v52 = vadd.f32 %v1104_v25, %v1103_v40 }
 0x154   :  { %v2004_v53 = vpop.f32.mrb[47].mxu1  ;;  %v861_v54 = vadd.f32 1.0, %v1173_v49  ;;  %v801_v55 = vmul.f32 0.044715, %v785_v45 }
 0x155   :  { %v1175_v56 = vpop.eup %1174  ;;  %v802_v59 = vmul.f32 0.044715, %v786_v50  ;;  %v2007_v61 = vadd.f32 %v1953_v43, %v630_v26  ;;  %v633_v62 = vadd.f32 %v1105_v52, %v1919_v10 }
 0x156   :  { %v877_v63 = vmul.f32 0.5, %v861_v54  ;;  %v862_v2 = vadd.f32 1.0, %v1175_v56  ;;  %v817_v4 = vadd.f32 %v801_v55, %v1986_v30 }
 0x157   :  { %v818_v5 = vadd.f32 %v802_v59, %v1989_v33  ;;  %v771_v9 = vmul.f32 %v2007_v61, %v2007_v61  ;;  %v2015_v6 = vadd.f32 %v1958_v51, %v633_v62  ;;  %v1106_v7 = vpop.f32.mrb[48].mxu0 }
 0x158   :  { %v893_v8 = vmul.f32 %v877_v63, %v1946_v36  ;;  %v878_v42 = vmul.f32 0.5, %v862_v2  ;;  %v833_v43 = vmul.f32 0.7978846, %v817_v4  ;;  %v1107_v13 = vpop.f32.mrb[49].mxu0 }
 0x159   :  { %v834_v14 = vmul.f32 0.7978846, %v818_v5  ;;  %v787_v10 = vmul.f32 %v771_v9, %v2007_v61  ;;  %v772_v16 = vmul.f32 %v2015_v6, %v2015_v6  ;;  %v1108_v17 = vadd.f32 %v1107_v13, %v1106_v7  ;;  %v1109_v18 = vpop.f32.mrb[50].mxu0 }
 0x15a   :  { %909 = vst [vmem:[%s2140_s3] sm:$0xff] %v893_v8  ;;  %v894_v51 = vmul.f32 %v878_v42, %v1951_v38  ;;  %1180 = vtanh.f32 %v833_v43  ;;  %v1110_v22 = vpop.f32.mrb[51].mxu0 }
 0x15b   :  { %v1177_v36 = vpop.eup %1176  ;;  %1182 = vtanh.f32 %v834_v14  ;;  %v803_v23 = vmul.f32 0.044715, %v787_v10  ;;  %v788_v24 = vmul.f32 %v772_v16, %v2015_v6  ;;  %v1111_v27 = vadd.f32 %v1110_v22, %v1109_v18 }
 0x15c   :  { %910 = vst [vmem:[%s2140_s3 + $0x8] sm:$0xff] %v894_v51  ;;  %v863_v31 = vadd.f32 1.0, %v1177_v36  ;;  %v638_v32 = vadd.f32 %v1108_v17, %v1923_v28 }
 0x15d   :  { %v1179_v34 = vpop.eup %1178  ;;  %v819_v35 = vadd.f32 %v803_v23, %v2007_v61  ;;  %v804_v11 = vmul.f32 0.044715, %v788_v24  ;;  %v641_v38 = vadd.f32 %v1111_v27, %v1925_v29 }
 0x15e   :  { %v879_v57 = vmul.f32 0.5, %v863_v31  ;;  %v864_v39 = vadd.f32 1.0, %v1179_v34  ;;  %v2033_v58 = vadd.f32 %v1976_v12, %v638_v32 }
 0x15f   :  { %v835_v40 = vmul.f32 0.7978846, %v819_v35  ;;  %v820_v45 = vadd.f32 %v804_v11, %v2015_v6  ;;  %v2037_v25 = vadd.f32 %v1981_v21, %v641_v38  ;;  %v1112_v49 = vpop.f32.mrb[52].mxu0 }
 0x160   :  { %v895_v28 = vmul.f32 %v879_v57, %v1963_v60  ;;  %v880_v50 = vmul.f32 0.5, %v864_v39  ;;  %v773_v26 = vmul.f32 %v2033_v58, %v2033_v58  ;;  %v1113_v52 = vpop.f32.mrb[53].mxu0 }
 0x161   :  { %1184 = vtanh.f32 %v835_v40  ;;  %v836_v29 = vmul.f32 0.7978846, %v820_v45  ;;  %v774_v12 = vmul.f32 %v2037_v25, %v2037_v25  ;;  %v1114_v54 = vadd.f32 %v1113_v52, %v1112_v49  ;;  %v1115_v55 = vpop.f32.mrb[54].mxu0 }
 0x162   :  { %911 = vst [vmem:[%s2140_s3 + $0x10] sm:$0xff] %v895_v28  ;;  %v896_v21 = vmul.f32 %v880_v50, %v1969_v3  ;;  %v789_v60 = vmul.f32 %v773_v26, %v2033_v58  ;;  %v1116_v56 = vpop.f32.mrb[55].mxu0 }
 0x163   :  { %1186 = vtanh.f32 %v836_v29  ;;  %v790_v59 = vmul.f32 %v774_v12, %v2037_v25  ;;  %v646_v62 = vadd.f32 %v1114_v54, %v1929_v46  ;;  %v1117_v63 = vadd.f32 %v1116_v56, %v1115_v55 }
 0x164   :  { %v1181_v2 = vpop.eup %1180  ;;  %912 = vst [vmem:[%s2140_s3 + $0x18] sm:$0xff] %v896_v21  ;;  %v805_v4 = vmul.f32 0.044715, %v789_v60 }
 0x165   :  { %v1183_v5 = vpop.eup %1182  ;;  %v865_v9 = vadd.f32 1.0, %v1181_v2  ;;  %v806_v7 = vmul.f32 0.044715, %v790_v59  ;;  %v2055_v3 = vadd.f32 %v1971_v41, %v646_v62  ;;  %v649_v8 = vadd.f32 %v1117_v63, %v1931_v47 }
 0x166   :  { %v866_v42 = vadd.f32 1.0, %v1183_v5  ;;  %v821_v43 = vadd.f32 %v805_v4, %v2033_v58 }
 0x167   :  { %v881_v13 = vmul.f32 0.5, %v865_v9  ;;  %v822_v46 = vadd.f32 %v806_v7, %v2037_v25  ;;  %v775_v14 = vmul.f32 %v2055_v3, %v2055_v3  ;;  %v2063_v10 = vadd.f32 %v1978_v15, %v649_v8  ;;  %v1118_v16 = vpop.f32.mrb[56].mxu0 }
 0x168   :  { %v882_v17 = vmul.f32 0.5, %v866_v42  ;;  %v837_v18 = vmul.f32 0.7978846, %v821_v43  ;;  %v1119_v51 = vpop.f32.mrb[57].mxu0 }
 0x169   :  { %v897_v41 = vmul.f32 %v881_v13, %v1986_v30  ;;  %v838_v22 = vmul.f32 0.7978846, %v822_v46  ;;  %v791_v47 = vmul.f32 %v775_v14, %v2055_v3  ;;  %v776_v36 = vmul.f32 %v2063_v10, %v2063_v10  ;;  %v1121_v23 = vpop.f32.mrb[58].mxu0 }
 0x16a   :  { %v898_v24 = vmul.f32 %v882_v17, %v1989_v33  ;;  %1188 = vtanh.f32 %v837_v18  ;;  %v1120_v27 = vadd.f32 %v1119_v51, %v1118_v16  ;;  %v1122_v31 = vpop.f32.mrb[59].mxu0 }
 0x16b   :  { %v1185_v15 = vpop.eup %1184  ;;  %913 = vst [vmem:[%s2140_s3 + $0x20] sm:$0xff] %v897_v41  ;;  %1190 = vtanh.f32 %v838_v22  ;;  %v807_v32 = vmul.f32 0.044715, %v791_v47  ;;  %v792_v30 = vmul.f32 %v776_v36, %v2063_v10  ;;  %v1123_v34 = vadd.f32 %v1122_v31, %v1121_v23 }
 0x16c   :  { %914 = vst [vmem:[%s2140_s3 + $0x28] sm:$0xff] %v898_v24  ;;  %v867_v35 = vadd.f32 1.0, %v1185_v15  ;;  %v654_v33 = vadd.f32 %v1120_v27, %v1935_v0 }
 0x16d   :  { %v1187_v11 = vpop.eup %1186  ;;  %v823_v38 = vadd.f32 %v807_v32, %v2055_v3  ;;  %v808_v57 = vmul.f32 0.044715, %v792_v30  ;;  %v657_v39 = vadd.f32 %v1123_v34, %v1937_v1 }
 0x16e   :  { %v883_v40 = vmul.f32 0.5, %v867_v35  ;;  %v868_v45 = vadd.f32 1.0, %v1187_v11  ;;  %v2081_v49 = vadd.f32 %v1997_v44, %v654_v33 }
 0x16f   :  { %v839_v28 = vmul.f32 0.7978846, %v823_v38  ;;  %v824_v50 = vadd.f32 %v808_v57, %v2063_v10  ;;  %v2085_v26 = vadd.f32 %v2004_v53, %v657_v39  ;;  %v1124_v52 = vpop.f32.mrb[60].mxu0 }
 0x170   :  { %v899_v0 = vmul.f32 %v883_v40, %v2007_v61  ;;  %v884_v29 = vmul.f32 0.5, %v868_v45  ;;  %v777_v12 = vmul.f32 %v2081_v49, %v2081_v49  ;;  %v1125_v54 = vpop.f32.mrb[61].mxu0 }
 0x171   :  { %1192 = vtanh.f32 %v839_v28  ;;  %v840_v1 = vmul.f32 0.7978846, %v824_v50  ;;  %v778_v44 = vmul.f32 %v2085_v26, %v2085_v26  ;;  %v1126_v55 = vadd.f32 %v1125_v54, %v1124_v52  ;;  %v1127_v21 = vpop.f32.mrb[62].mxu0 }
 0x172   :  { %915 = vst [vmem:[%s2140_s3 + $0x30] sm:$0xff] %v899_v0  ;;  %v900_v53 = vmul.f32 %v884_v29, %v2015_v6  ;;  %v793_v61 = vmul.f32 %v777_v12, %v2081_v49  ;;  %v1128_v60 = vpop.f32.mrb[63].mxu0 }
 0x173   :  { %1194 = vtanh.f32 %v840_v1  ;;  %v794_v56 = vmul.f32 %v778_v44, %v2085_v26  ;;  %v662_v59 = vadd.f32 %v1126_v55, %v1941_v19  ;;  %v1129_v62 = vadd.f32 %v1128_v60, %v1127_v21 }
 0x174   :  { %v1189_v63 = vpop.eup %1188  ;;  %916 = vst [vmem:[%s2140_s3 + $0x38] sm:$0xff] %v900_v53  ;;  %v809_v2 = vmul.f32 0.044715, %v793_v61 }
 0x175   :  { %v1191_v4 = vpop.eup %1190  ;;  %v869_v5 = vadd.f32 1.0, %v1189_v63  ;;  %v810_v9 = vmul.f32 0.044715, %v794_v56  ;;  %v759_v6 = vadd.f32 %v1993_v37, %v662_v59  ;;  %v665_v7 = vadd.f32 %v1129_v62, %v1943_v20 }
 0x176   :  { %v870_v8 = vadd.f32 1.0, %v1191_v4  ;;  %v825_v42 = vadd.f32 %v809_v2, %v2081_v49 }
 0x177   :  { %v885_v43 = vmul.f32 0.5, %v869_v5  ;;  %v826_v19 = vadd.f32 %v810_v9, %v2085_v26  ;;  %v779_v13 = vmul.f32 %v759_v6, %v759_v6  ;;  %v762_v46 = vadd.f32 %v2000_v48, %v665_v7 }
 0x178   :  { %v886_v14 = vmul.f32 0.5, %v870_v8  ;;  %v841_v16 = vmul.f32 0.7978846, %v825_v42 }
 0x179   :  { %v901_v17 = vmul.f32 %v885_v43, %v2033_v58  ;;  %v842_v18 = vmul.f32 0.7978846, %v826_v19  ;;  %v795_v51 = vmul.f32 %v779_v13, %v759_v6  ;;  %v780_v41 = vmul.f32 %v762_v46, %v762_v46 }
 0x17a   :  { %v902_v37 = vmul.f32 %v886_v14, %v2037_v25  ;;  %1196 = vtanh.f32 %v841_v16 }
 0x17b   :  { %v1193_v20 = vpop.eup %1192  ;;  %917 = vst [vmem:[%s2140_s3 + $0x40] sm:$0xff] %v901_v17  ;;  %1198 = vtanh.f32 %v842_v18  ;;  %v811_v22 = vmul.f32 0.044715, %v795_v51  ;;  %v796_v47 = vmul.f32 %v780_v41, %v762_v46 }
 0x17c   :  { %918 = vst [vmem:[%s2140_s3 + $0x48] sm:$0xff] %v902_v37  ;;  %v871_v48 = vadd.f32 1.0, %v1193_v20 }
 0x17d   :  { %v1195_v58 = vpop.eup %1194  ;;  %v827_v36 = vadd.f32 %v811_v22, %v759_v6  ;;  %v812_v23 = vmul.f32 0.044715, %v796_v47 }
 0x17e   :  { %v887_v24 = vmul.f32 0.5, %v871_v48  ;;  %v872_v27 = vadd.f32 1.0, %v1195_v58 }
 0x17f   :  { %v843_v25 = vmul.f32 0.7978846, %v827_v36  ;;  %v828_v31 = vadd.f32 %v812_v23, %v762_v46 }
 0x180   :  { %v903_v15 = vmul.f32 %v887_v24, %v2055_v3  ;;  %v888_v32 = vmul.f32 0.5, %v872_v27 }
 0x181   :  { %1200 = vtanh.f32 %v843_v25  ;;  %v844_v30 = vmul.f32 0.7978846, %v828_v31 }
 0x182   :  { %919 = vst [vmem:[%s2140_s3 + $0x50] sm:$0xff] %v903_v15  ;;  %v904_v34 = vmul.f32 %v888_v32, %v2063_v10 }
 0x183   :  { %1202 = vtanh.f32 %v844_v30 }
 0x184   :  { %v1197_v35 = vpop.eup %1196  ;;  %920 = vst [vmem:[%s2140_s3 + $0x58] sm:$0xff] %v904_v34 }
 0x185   :  { %v1199_v33 = vpop.eup %1198  ;;  %v873_v11 = vadd.f32 1.0, %v1197_v35 }
 0x186   :  { %v874_v38 = vadd.f32 1.0, %v1199_v33 }
 0x187   :  { %v889_v57 = vmul.f32 0.5, %v873_v11 }
 0x188   :  { %v890_v3 = vmul.f32 0.5, %v874_v38 }
 0x189   :  { %v905_v39 = vmul.f32 %v889_v57, %v2081_v49 }
 0x18a   :  { %v906_v40 = vmul.f32 %v890_v3, %v2085_v26 }
 0x18b   :  { %v1201_v45 = vpop.eup %1200  ;;  %921 = vst [vmem:[%s2140_s3 + $0x60] sm:$0xff] %v905_v39 }
 0x18c   :  { %922 = vst [vmem:[%s2140_s3 + $0x68] sm:$0xff] %v906_v40  ;;  %v875_v10 = vadd.f32 1.0, %v1201_v45 }
 0x18d   :  { %v1203_v28 = vpop.eup %1202 }
 0x18e   :  { %v891_v50 = vmul.f32 0.5, %v875_v10  ;;  %v876_v52 = vadd.f32 1.0, %v1203_v28 }
 0x190   :  { %v907_v0 = vmul.f32 %v891_v50, %v759_v6  ;;  %v892_v29 = vmul.f32 0.5, %v876_v52 }
 0x192   :  { %923 = vst [vmem:[%s2140_s3 + $0x70] sm:$0xff] %v907_v0  ;;  %v908_v49 = vmul.f32 %v892_v29, %v762_v46 }
 0x194   :  { %924 = vst [vmem:[%s2140_s3 + $0x78] sm:$0xff] %v908_v49 }

// kernel: generator_forward.8
= control target key start
LH: loop header
LB: loop body
LE: loop exit
PB: predicated region body
PF: predicated region fallthrough
CT: control target
= control target key end

     0   :  { %vm190_vm0 = vcmask 523264   ;;  %s1057_s1 = inlined_call_operand.vmem [shape: f32[576,128], index: 1, kind: input, shape index: {}]   ;;  %s1058_s0 = inlined_call_operand.vmem [shape: f32[64,576], index: 0, kind: input, shape index: {}]   ;;  %s1059_s2 = inlined_call_operand.vmem [shape: f32[1,128], index: 2, kind: input, shape index: {}]   ;;  %s1060_s3 = inlined_call_operand.vmem [shape: f32[64,128], index: 3, kind: output, shape index: {}]  }
   0x1   :  { %v71_v0 = vld [vmem:[%s1057_s1 + $0x80] sm:$0xff]  ;;  %v72_v1 = vld [vmem:[%s1057_s1 + $0x88] sm:$0xff]  ;;  %v73_v11 = vld [vmem:[%s1057_s1 + $0x90] sm:$0xff] }
   0x2   :  { %v103_v2 = vld [vmem:[%s1057_s1 + $0x180] sm:$0xff]  ;;  %v155_v3 = vpack.c.bf16 %v72_v1, %v71_v0  ;;  %v104_v4 = vld [vmem:[%s1057_s1 + $0x188] sm:$0xff]  ;;  %v74_v13 = vld [vmem:[%s1057_s1 + $0x98] sm:$0xff] }
   0x3   :  { %v55_v5 = vld [vmem:[%s1057_s1] sm:$0xff]  ;;  %v56_v6 = vld [vmem:[%s1057_s1 + $0x8] sm:$0xff]  ;;  %v171_v7 = vpack.c.bf16 %v104_v4, %v103_v2  ;;  %v105_v14 = vld [vmem:[%s1057_s1 + $0x190] sm:$0xff]  ;;  %v156_v16 = vpack.c.bf16 %v74_v13, %v73_v11 }
   0x4   :  { %v147_v8 = vpack.c.bf16 %v56_v6, %v55_v5  ;;  %v87_v9 = vld [vmem:[%s1057_s1 + $0x100] sm:$0xff]  ;;  %v88_v10 = vld [vmem:[%s1057_s1 + $0x108] sm:$0xff]  ;;  %487 = vmatprep.subr.bf16.mxu0 %v155_v3  ;;  %v106_v15 = vld [vmem:[%s1057_s1 + $0x198] sm:$0xff] }
   0x5   :  { %v163_v12 = vpack.c.bf16 %v88_v10, %v87_v9  ;;  %527 = vmatprep.subr.bf16.mxu1 %v171_v7  ;;  %v172_v17 = vpack.c.bf16 %v106_v15, %v105_v14  ;;  %v57_v18 = vld [vmem:[%s1057_s1 + $0x10] sm:$0xff]  ;;  %v58_v19 = vld [vmem:[%s1057_s1 + $0x18] sm:$0xff]  ;;  %v75_v23 = vld [vmem:[%s1057_s1 + $0xa0] sm:$0xff] }
   0x6   :  { %488 = vmatpush3.bf16.msra.mxu0 %v147_v8  ;;  %v89_v20 = vld [vmem:[%s1057_s1 + $0x110] sm:$0xff]  ;;  %v148_v21 = vpack.c.bf16 %v58_v19, %v57_v18  ;;  %v90_v22 = vld [vmem:[%s1057_s1 + $0x118] sm:$0xff]  ;;  %v76_v24 = vld [vmem:[%s1057_s1 + $0xa8] sm:$0xff] }
   0x7   :  { %528 = vmatpush3.bf16.msra.mxu1 %v163_v12  ;;  %489 = vmatprep.subr.bf16.mxu0 %v156_v16  ;;  %v164_v25 = vpack.c.bf16 %v90_v22, %v89_v20  ;;  %v157_v26 = vpack.c.bf16 %v76_v24, %v75_v23  ;;  %v107_v27 = vld [vmem:[%s1057_s1 + $0x1a0] sm:$0xff]  ;;  %v108_v28 = vld [vmem:[%s1057_s1 + $0x1a8] sm:$0xff]  ;;  %v77_v35 = vld [vmem:[%s1057_s1 + $0xb0] sm:$0xff] }
   0x8   :  { %529 = vmatprep.subr.bf16.mxu1 %v172_v17  ;;  %v59_v29 = vld [vmem:[%s1057_s1 + $0x20] sm:$0xff]  ;;  %v173_v30 = vpack.c.bf16 %v108_v28, %v107_v27  ;;  %v60_v31 = vld [vmem:[%s1057_s1 + $0x28] sm:$0xff]  ;;  %v78_v36 = vld [vmem:[%s1057_s1 + $0xb8] sm:$0xff] }
   0x9   :  { %v91_v32 = vld [vmem:[%s1057_s1 + $0x120] sm:$0xff]  ;;  %v92_v33 = vld [vmem:[%s1057_s1 + $0x128] sm:$0xff]  ;;  %v149_v34 = vpack.c.bf16 %v60_v31, %v59_v29  ;;  %v109_v37 = vld [vmem:[%s1057_s1 + $0x1b0] sm:$0xff]  ;;  %v158_v39 = vpack.c.bf16 %v78_v36, %v77_v35 }
   0xa   :  { %490 = vmatpush3.bf16.msra.mxu0 %v148_v21  ;;  %v165_v38 = vpack.c.bf16 %v92_v33, %v91_v32  ;;  %v110_v40 = vld [vmem:[%s1057_s1 + $0x1b8] sm:$0xff]  ;;  %v61_v41 = vld [vmem:[%s1057_s1 + $0x30] sm:$0xff]  ;;  %v79_v46 = vld [vmem:[%s1057_s1 + $0xc0] sm:$0xff] }
   0xb   :  { %530 = vmatpush3.bf16.msra.mxu1 %v164_v25  ;;  %491 = vmatprep.subr.bf16.mxu0 %v157_v26  ;;  %v62_v42 = vld [vmem:[%s1057_s1 + $0x38] sm:$0xff]  ;;  %v174_v43 = vpack.c.bf16 %v110_v40, %v109_v37  ;;  %v93_v44 = vld [vmem:[%s1057_s1 + $0x130] sm:$0xff]  ;;  %v80_v47 = vld [vmem:[%s1057_s1 + $0xc8] sm:$0xff] }
   0xc   :  { %531 = vmatprep.subr.bf16.mxu1 %v173_v30  ;;  %v94_v45 = vld [vmem:[%s1057_s1 + $0x138] sm:$0xff]  ;;  %v111_v48 = vld [vmem:[%s1057_s1 + $0x1c0] sm:$0xff]  ;;  %v112_v49 = vld [vmem:[%s1057_s1 + $0x1c8] sm:$0xff]  ;;  %v150_v50 = vpack.c.bf16 %v62_v42, %v61_v41  ;;  %v159_v52 = vpack.c.bf16 %v80_v47, %v79_v46 }
   0xd   :  { %v166_v51 = vpack.c.bf16 %v94_v45, %v93_v44  ;;  %v63_v53 = vld [vmem:[%s1057_s1 + $0x40] sm:$0xff]  ;;  %v64_v54 = vld [vmem:[%s1057_s1 + $0x48] sm:$0xff]  ;;  %v175_v56 = vpack.c.bf16 %v112_v49, %v111_v48  ;;  %v81_v58 = vld [vmem:[%s1057_s1 + $0xd0] sm:$0xff] }
   0xe   :  { %492 = vmatpush3.bf16.msra.mxu0 %v149_v34  ;;  %v95_v55 = vld [vmem:[%s1057_s1 + $0x140] sm:$0xff]  ;;  %v96_v57 = vld [vmem:[%s1057_s1 + $0x148] sm:$0xff]  ;;  %v82_v59 = vld [vmem:[%s1057_s1 + $0xd8] sm:$0xff]  ;;  %v151_v62 = vpack.c.bf16 %v64_v54, %v63_v53 }
   0xf   :  { %532 = vmatpush3.bf16.msra.mxu1 %v165_v38  ;;  %493 = vmatprep.subr.bf16.mxu0 %v158_v39  ;;  %v113_v60 = vld [vmem:[%s1057_s1 + $0x1d0] sm:$0xff]  ;;  %v114_v61 = vld [vmem:[%s1057_s1 + $0x1d8] sm:$0xff]  ;;  %v167_v63 = vpack.c.bf16 %v96_v57, %v95_v55  ;;  %v160_v0 = vpack.c.bf16 %v82_v59, %v81_v58  ;;  %v83_v6 = vld [vmem:[%s1057_s1 + $0xe0] sm:$0xff] }
  0x10   :  { %533 = vmatprep.subr.bf16.mxu1 %v174_v43  ;;  %v65_v1 = vld [vmem:[%s1057_s1 + $0x50] sm:$0xff]  ;;  %v66_v2 = vld [vmem:[%s1057_s1 + $0x58] sm:$0xff]  ;;  %v176_v4 = vpack.c.bf16 %v114_v61, %v113_v60  ;;  %v84_v7 = vld [vmem:[%s1057_s1 + $0xe8] sm:$0xff] }
  0x11   :  { %v97_v3 = vld [vmem:[%s1057_s1 + $0x150] sm:$0xff]  ;;  %v98_v5 = vld [vmem:[%s1057_s1 + $0x158] sm:$0xff]  ;;  %v115_v8 = vld [vmem:[%s1057_s1 + $0x1e0] sm:$0xff]  ;;  %v152_v11 = vpack.c.bf16 %v66_v2, %v65_v1  ;;  %v161_v16 = vpack.c.bf16 %v84_v7, %v83_v6 }
  0x12   :  { %494 = vmatpush3.bf16.msra.mxu0 %v150_v50  ;;  %v116_v9 = vld [vmem:[%s1057_s1 + $0x1e8] sm:$0xff]  ;;  %v67_v10 = vld [vmem:[%s1057_s1 + $0x60] sm:$0xff]  ;;  %v168_v15 = vpack.c.bf16 %v98_v5, %v97_v3  ;;  %v85_v17 = vld [vmem:[%s1057_s1 + $0xf0] sm:$0xff] }
  0x13   :  { %534 = vmatpush3.bf16.msra.mxu1 %v166_v51  ;;  %495 = vmatprep.subr.bf16.mxu0 %v159_v52  ;;  %v68_v12 = vld [vmem:[%s1057_s1 + $0x68] sm:$0xff]  ;;  %v99_v13 = vld [vmem:[%s1057_s1 + $0x160] sm:$0xff]  ;;  %v21_v19 = vld [vmem:[%s1058_s0 + $0x30] sm:$0xff]  ;;  %v177_v20 = vpack.c.bf16 %v116_v9, %v115_v8 }
  0x14   :  { %535 = vmatprep.subr.bf16.mxu1 %v175_v56  ;;  %v100_v14 = vld [vmem:[%s1057_s1 + $0x168] sm:$0xff]  ;;  %v86_v21 = vld [vmem:[%s1057_s1 + $0xf8] sm:$0xff]  ;;  %v23_v24 = vld [vmem:[%s1058_s0 + $0x40] sm:$0xff]  ;;  %v153_v28 = vpack.c.bf16 %v68_v12, %v67_v10 }
  0x15   :  { %v16_v18 = vld [vmem:[%s1058_s0 + $0x8] sm:$0xff]  ;;  %v18_v23 = vld [vmem:[%s1058_s0 + $0x18] sm:$0xff]  ;;  %v117_v25 = vld [vmem:[%s1057_s1 + $0x1f0] sm:$0xff]  ;;  %v169_v29 = vpack.c.bf16 %v100_v14, %v99_v13  ;;  %v162_v30 = vpack.c.bf16 %v86_v21, %v85_v17 }
  0x16   :  { %496 = vmatpush3.bf16.msra.mxu0 %v151_v62  ;;  %v128_v22 = vpack.c.bf16 %v21_v19, %v16_v18  ;;  %v118_v26 = vld [vmem:[%s1057_s1 + $0x1f8] sm:$0xff]  ;;  %v130_v27 = vpack.c.bf16 %v23_v24, %v18_v23  ;;  %v69_v31 = vld [vmem:[%s1057_s1 + $0x70] sm:$0xff]  ;;  %v119_v36 = vld [vmem:[%s1057_s1 + $0x200] sm:$0xff] }
  0x17   :  { %536 = vmatpush3.bf16.msra.mxu1 %v167_v63  ;;  %497 = vmatprep.subr.bf16.mxu0 %v160_v0  ;;  %v70_v32 = vld [vmem:[%s1057_s1 + $0x78] sm:$0xff]  ;;  %v101_v33 = vld [vmem:[%s1057_s1 + $0x170] sm:$0xff]  ;;  %v178_v34 = vpack.c.bf16 %v118_v26, %v117_v25  ;;  %v120_v37 = vld [vmem:[%s1057_s1 + $0x208] sm:$0xff] }
  0x18   :  { %537 = vmatprep.subr.bf16.mxu1 %v176_v4  ;;  %235 = vmatprep.mubr.bf16.mxu0 %v128_v22  ;;  %v102_v35 = vld [vmem:[%s1057_s1 + $0x178] sm:$0xff]  ;;  %v154_v38 = vpack.c.bf16 %v70_v32, %v69_v31  ;;  %v15_v39 = vld [vmem:[%s1058_s0] sm:$0xff]  ;;  %v20_v40 = vld [vmem:[%s1058_s0 + $0x28] sm:$0xff]  ;;  %v179_v44 = vpack.c.bf16 %v120_v37, %v119_v36 }
  0x19   :  { %300 = vmatprep.mubr.bf16.mxu1 %v130_v27  ;;  %v170_v41 = vpack.c.bf16 %v102_v35, %v101_v33  ;;  %v17_v42 = vld [vmem:[%s1058_s0 + $0x10] sm:$0xff]  ;;  %v22_v43 = vld [vmem:[%s1058_s0 + $0x38] sm:$0xff]  ;;  %v31_v46 = vld [vmem:[%s1058_s0 + $0x80] sm:$0xff]  ;;  %v127_v48 = vpack.c.bf16 %v20_v40, %v15_v39 }
  0x1a   :  { %498 = vmatpush3.bf16.msra.mxu0 %v152_v11  ;;  %v26_v45 = vld [vmem:[%s1058_s0 + $0x58] sm:$0xff]  ;;  %v28_v47 = vld [vmem:[%s1058_s0 + $0x68] sm:$0xff]  ;;  %v33_v49 = vld [vmem:[%s1058_s0 + $0x90] sm:$0xff]  ;;  %v129_v52 = vpack.c.bf16 %v22_v43, %v17_v42 }
  0x1b   :  { %538 = vmatpush3.bf16.msra.mxu1 %v168_v15  ;;  %499 = vmatprep.subr.bf16.mxu0 %v161_v16  ;;  %v121_v50 = vld [vmem:[%s1057_s1 + $0x210] sm:$0xff]  ;;  %v122_v51 = vld [vmem:[%s1057_s1 + $0x218] sm:$0xff]  ;;  %v133_v53 = vpack.c.bf16 %v31_v46, %v26_v45  ;;  %v135_v54 = vpack.c.bf16 %v33_v49, %v28_v47  ;;  %v123_v56 = vld [vmem:[%s1057_s1 + $0x220] sm:$0xff] }
  0x1c   :  { %539 = vmatprep.subr.bf16.mxu1 %v177_v20  ;;  %v180_v55 = vpack.c.bf16 %v122_v51, %v121_v50  ;;  %v124_v57 = vld [vmem:[%s1057_s1 + $0x228] sm:$0xff]  ;;  %v25_v58 = vld [vmem:[%s1058_s0 + $0x50] sm:$0xff]  ;;  %v30_v59 = vld [vmem:[%s1058_s0 + $0x78] sm:$0xff] }
  0x1d   :  { %v27_v60 = vld [vmem:[%s1058_s0 + $0x60] sm:$0xff]  ;;  %v32_v61 = vld [vmem:[%s1058_s0 + $0x88] sm:$0xff]  ;;  %v41_v63 = vld [vmem:[%s1058_s0 + $0xd0] sm:$0xff]  ;;  %v181_v0 = vpack.c.bf16 %v124_v57, %v123_v56  ;;  %v132_v3 = vpack.c.bf16 %v30_v59, %v25_v58 }
  0x1e   :  { %500 = vmatpush3.bf16.msra.mxu0 %v153_v28  ;;  %v36_v62 = vld [vmem:[%s1058_s0 + $0xa8] sm:$0xff]  ;;  %v38_v1 = vld [vmem:[%s1058_s0 + $0xb8] sm:$0xff]  ;;  %v43_v2 = vld [vmem:[%s1058_s0 + $0xe0] sm:$0xff]  ;;  %v134_v6 = vpack.c.bf16 %v32_v61, %v27_v60 }
  0x1f   :  { %540 = vmatpush3.bf16.msra.mxu1 %v169_v29  ;;  %501 = vmatprep.subr.bf16.mxu0 %v162_v30  ;;  %v125_v4 = vld [vmem:[%s1057_s1 + $0x230] sm:$0xff]  ;;  %v126_v5 = vld [vmem:[%s1057_s1 + $0x238] sm:$0xff]  ;;  %v138_v7 = vpack.c.bf16 %v41_v63, %v36_v62  ;;  %v140_v8 = vpack.c.bf16 %v43_v2, %v38_v1  ;;  %v35_v10 = vld [vmem:[%s1058_s0 + $0xa0] sm:$0xff] }
  0x20   :  { %541 = vmatprep.subr.bf16.mxu1 %v178_v34  ;;  %v182_v9 = vpack.c.bf16 %v126_v5, %v125_v4  ;;  %v40_v11 = vld [vmem:[%s1058_s0 + $0xc8] sm:$0xff]  ;;  %v37_v12 = vld [vmem:[%s1058_s0 + $0xb0] sm:$0xff]  ;;  %v42_v13 = vld [vmem:[%s1058_s0 + $0xd8] sm:$0xff] }
  0x21   :  { %v46_v14 = vld [vmem:[%s1058_s0 + $0xf8] sm:$0xff]  ;;  %v51_v15 = vld [vmem:[%s1058_s0 + $0x120] sm:$0xff]  ;;  %v48_v16 = vld [vmem:[%s1058_s0 + $0x108] sm:$0xff]  ;;  %v137_v18 = vpack.c.bf16 %v40_v11, %v35_v10  ;;  %v139_v19 = vpack.c.bf16 %v42_v13, %v37_v12 }
  0x22   :  { %502 = vmatpush3.bf16.msra.mxu0 %v154_v38  ;;  %v53_v17 = vld [vmem:[%s1058_s0 + $0x130] sm:$0xff]  ;;  %v143_v20 = vpack.c.bf16 %v51_v15, %v46_v14  ;;  %v50_v23 = vld [vmem:[%s1058_s0 + $0x118] sm:$0xff]  ;;  %v47_v24 = vld [vmem:[%s1058_s0 + $0x100] sm:$0xff] }
  0x23   :  { %542 = vmatpush3.bf16.msra.mxu1 %v170_v41  ;;  %575 = vmatprep.subr.bf16.mxu0 %v179_v44  ;;  %v145_v21 = vpack.c.bf16 %v53_v17, %v48_v16  ;;  %v45_v22 = vld [vmem:[%s1058_s0 + $0xf0] sm:$0xff]  ;;  %v52_v25 = vld [vmem:[%s1058_s0 + $0x128] sm:$0xff]  ;;  %v19_v26 = vld [vmem:[%s1058_s0 + $0x20] sm:$0xff] }
  0x24   :  { %591 = vmatprep.subr.bf16.mxu1 %v179_v44  ;;  %v24_v27 = vld [vmem:[%s1058_s0 + $0x48] sm:$0xff]  ;;  %v39_v28 = vld [vmem:[%s1058_s0 + $0xc0] sm:$0xff]  ;;  %v142_v30 = vpack.c.bf16 %v50_v23, %v45_v22  ;;  %v144_v31 = vpack.c.bf16 %v52_v25, %v47_v24  ;;  %v29_v34 = vld [vmem:[%s1058_s0 + $0x70] sm:$0xff] }
  0x25   :  { %236 = vmatmul.mubr.bf16.vlgmr.msra.gmra.mrb[0].mxu0 %v127_v48  ;;  %v44_v29 = vld [vmem:[%s1058_s0 + $0xe8] sm:$0xff]  ;;  %v131_v32 = vpack.c.bf16 %v24_v27, %v19_v26  ;;  %v34_v35 = vld [vmem:[%s1058_s0 + $0x98] sm:$0xff]  ;;  %v49_v36 = vld [vmem:[%s1058_s0 + $0x110] sm:$0xff] }
  0x26   :  { %301 = vmatmul.mubr.bf16.vlgmr.msra.gmra.mrb[0].mxu1 %v129_v52  ;;  %576 = vmatpush3.bf16.msra.mxu0 %v179_v44  ;;  %v141_v33 = vpack.c.bf16 %v44_v29, %v39_v28  ;;  %v54_v37 = vld [vmem:[%s1058_s0 + $0x138] sm:$0xff]  ;;  %v136_v38 = vpack.c.bf16 %v34_v35, %v29_v34  ;;  %v482_v42 = vld [vmem:[%s1059_s2] ss:$0 sm:$0xff] }
  0x27   :  { %595 = vmatpush3.bf16.msra.mxu1 %v179_v44  ;;  %243 = vmatprep.mubr.bf16.mxu0 %v133_v53  ;;  %v146_v39 = vpack.c.bf16 %v54_v37, %v49_v36 }
  0x28   :  { %308 = vmatprep.mubr.bf16.mxu1 %v135_v54  ;;  %577 = vmatprep.subr.bf16.mxu0 %v180_v55 }
  0x29   :  { %592 = vmatprep.subr.bf16.mxu1 %v180_v55 }
  0x2a   :  { %578 = vmatpush3.bf16.msra.mxu0 %v180_v55 }
  0x2b   :  { %596 = vmatpush3.bf16.msra.mxu1 %v180_v55  ;;  %579 = vmatprep.subr.bf16.mxu0 %v181_v0 }
  0x2c   :  { %593 = vmatprep.subr.bf16.mxu1 %v181_v0 }
  0x2d   :  { %244 = vmatmul.mubr.bf16.gmra.mrb[4].mxu0 %v132_v3 }
  0x2e   :  { %309 = vmatmul.mubr.bf16.gmra.mrb[4].mxu1 %v134_v6  ;;  %251 = vmatprep.mubr.bf16.mxu0 %v138_v7 }
  0x2f   :  { %316 = vmatprep.mubr.bf16.mxu1 %v140_v8  ;;  %580 = vmatpush3.bf16.msra.mxu0 %v181_v0 }
  0x30   :  { %597 = vmatpush3.bf16.msra.mxu1 %v181_v0  ;;  %581 = vmatprep.subr.bf16.mxu0 %v182_v9 }
  0x31   :  { %594 = vmatprep.subr.bf16.mxu1 %v182_v9 }
  0x33   :  { %582 = vmatpush3.bf16.msra.mxu0 %v182_v9 }
  0x34   :  { %598 = vmatpush3.bf16.msra.mxu1 %v182_v9 }
  0x35   :  { %252 = vmatmul.mubr.bf16.gmra.mrb[8].mxu0 %v137_v18 }
  0x36   :  { %317 = vmatmul.mubr.bf16.gmra.mrb[8].mxu1 %v139_v19  ;;  %259 = vmatprep.mubr.bf16.mxu0 %v143_v20 }
  0x37   :  { %324 = vmatprep.mubr.bf16.mxu1 %v145_v21 }
  0x3d   :  { %260 = vmatmul.mubr.bf16.gmra.mrb[12].mxu0 %v142_v30 }
  0x3e   :  { %325 = vmatmul.mubr.bf16.gmra.mrb[12].mxu1 %v144_v31  ;;  %583 = vmatprep.mubr.msk.bf16.mxu0 %vm190_vm0, %v131_v32 }
  0x3f   :  { %587 = vmatprep.mubr.msk.bf16.mxu1 %vm190_vm0, %v141_v33 }
  0x45   :  { %584 = vmatmul.mubr.msk.bf16.vlgmr.msra.gmra.mrb[16].mxu0 %vm190_vm0, %v136_v38 }
  0x46   :  { %588 = vmatmul.mubr.msk.bf16.vlgmr.msra.gmra.mrb[16].mxu1 %vm190_vm0, %v146_v39 }
  0xf8   :  { %v503_v40 = vpop.f32.mrb[0].mxu0 }
  0xf9   :  { %v543_v41 = vpop.f32.mrb[0].mxu1  ;;  %v504_v43 = vpop.f32.mrb[1].mxu0 }
  0xfa   :  { %v505_v44 = vadd.f32 %v504_v43, %v503_v40  ;;  %v544_v45 = vpop.f32.mrb[1].mxu1  ;;  %v506_v46 = vpop.f32.mrb[2].mxu0 }
  0xfb   :  { %v545_v47 = vadd.f32 %v544_v45, %v543_v41  ;;  %v546_v48 = vpop.f32.mrb[2].mxu1  ;;  %v507_v49 = vpop.f32.mrb[3].mxu0 }
  0xfc   :  { %v238_v50 = vadd.f32 %v505_v44, %v482_v42  ;;  %v508_v51 = vadd.f32 %v507_v49, %v506_v46  ;;  %v547_v52 = vpop.f32.mrb[3].mxu1 }
  0xfd   :  { %v548_v53 = vadd.f32 %v547_v52, %v546_v48 }
  0xfe   :  { %v241_v54 = vadd.f32 %v508_v51, %v482_v42  ;;  %v303_v55 = vadd.f32 %v545_v47, %v238_v50 }
 0x100   :  { %v509_v56 = vpop.f32.mrb[4].mxu0  ;;  %v974_v57 = vadd.f32 %v548_v53, %v241_v54 }
 0x101   :  { %v549_v58 = vpop.f32.mrb[4].mxu1  ;;  %v510_v59 = vpop.f32.mrb[5].mxu0 }
 0x102   :  { %v511_v60 = vadd.f32 %v510_v59, %v509_v56  ;;  %v550_v61 = vpop.f32.mrb[5].mxu1  ;;  %v512_v62 = vpop.f32.mrb[6].mxu0 }
 0x103   :  { %v551_v63 = vadd.f32 %v550_v61, %v549_v58  ;;  %v552_v0 = vpop.f32.mrb[6].mxu1  ;;  %v513_v1 = vpop.f32.mrb[7].mxu0 }
 0x104   :  { %v246_v2 = vadd.f32 %v511_v60, %v482_v42  ;;  %v514_v3 = vadd.f32 %v513_v1, %v512_v62  ;;  %v553_v4 = vpop.f32.mrb[7].mxu1 }
 0x105   :  { %v554_v5 = vadd.f32 %v553_v4, %v552_v0 }
 0x106   :  { %v249_v6 = vadd.f32 %v514_v3, %v482_v42  ;;  %v311_v7 = vadd.f32 %v551_v63, %v246_v2 }
 0x108   :  { %v515_v8 = vpop.f32.mrb[8].mxu0  ;;  %v314_v9 = vadd.f32 %v554_v5, %v249_v6 }
 0x109   :  { %v555_v10 = vpop.f32.mrb[8].mxu1  ;;  %v516_v11 = vpop.f32.mrb[9].mxu0 }
 0x10a   :  { %v517_v12 = vadd.f32 %v516_v11, %v515_v8  ;;  %v556_v13 = vpop.f32.mrb[9].mxu1  ;;  %v518_v14 = vpop.f32.mrb[10].mxu0 }
 0x10b   :  { %v557_v15 = vadd.f32 %v556_v13, %v555_v10  ;;  %v558_v16 = vpop.f32.mrb[10].mxu1  ;;  %v519_v17 = vpop.f32.mrb[11].mxu0 }
 0x10c   :  { %v254_v18 = vadd.f32 %v517_v12, %v482_v42  ;;  %v520_v19 = vadd.f32 %v519_v17, %v518_v14  ;;  %v559_v20 = vpop.f32.mrb[11].mxu1 }
 0x10d   :  { %v560_v21 = vadd.f32 %v559_v20, %v558_v16 }
 0x10e   :  { %v257_v22 = vadd.f32 %v520_v19, %v482_v42  ;;  %v319_v23 = vadd.f32 %v557_v15, %v254_v18 }
 0x110   :  { %v521_v24 = vpop.f32.mrb[12].mxu0  ;;  %v322_v25 = vadd.f32 %v560_v21, %v257_v22 }
 0x111   :  { %v561_v26 = vpop.f32.mrb[12].mxu1  ;;  %v522_v27 = vpop.f32.mrb[13].mxu0 }
 0x112   :  { %v523_v28 = vadd.f32 %v522_v27, %v521_v24  ;;  %v562_v29 = vpop.f32.mrb[13].mxu1  ;;  %v524_v30 = vpop.f32.mrb[14].mxu0 }
 0x113   :  { %v563_v31 = vadd.f32 %v562_v29, %v561_v26  ;;  %v564_v32 = vpop.f32.mrb[14].mxu1  ;;  %v525_v33 = vpop.f32.mrb[15].mxu0 }
 0x114   :  { %v262_v34 = vadd.f32 %v523_v28, %v482_v42  ;;  %v526_v35 = vadd.f32 %v525_v33, %v524_v30  ;;  %v565_v36 = vpop.f32.mrb[15].mxu1 }
 0x115   :  { %v566_v37 = vadd.f32 %v565_v36, %v564_v32 }
 0x116   :  { %v265_v38 = vadd.f32 %v526_v35, %v482_v42  ;;  %v327_v39 = vadd.f32 %v563_v31, %v262_v34 }
 0x118   :  { %v585_v40 = vpop.f32.mrb[16].mxu0  ;;  %v330_v41 = vadd.f32 %v566_v37, %v265_v38 }
 0x119   :  { %v976_v43 = vadd.f32 %v585_v40, %v311_v7  ;;  %v589_v44 = vpop.f32.mrb[16].mxu1  ;;  %v367_v45 = vpop.f32.mrb[17].mxu0 }
 0x11a   :  { %v978_v46 = vadd.f32 %v589_v44, %v327_v39  ;;  %v980_v47 = vadd.f32 %v367_v45, %v303_v55  ;;  %v383_v48 = vpop.f32.mrb[17].mxu1  ;;  %v586_v49 = vpop.f32.mrb[18].mxu0 }
 0x11b   :  { %v400_v50 = vmul.f32 %v976_v43, %v976_v43  ;;  %v984_v51 = vadd.f32 %v383_v48, %v319_v23  ;;  %v986_v52 = vadd.f32 %v586_v49, %v314_v9  ;;  %v590_v42 = vpop.f32.mrb[18].mxu1  ;;  %v370_v53 = vpop.f32.mrb[19].mxu0 }
 0x11c   :  { %v404_v54 = vmul.f32 %v978_v46, %v978_v46  ;;  %v398_v56 = vmul.f32 %v980_v47, %v980_v47  ;;  %v992_v58 = vadd.f32 %v590_v42, %v330_v41  ;;  %v995_v55 = vadd.f32 %v370_v53, %v974_v57  ;;  %v386_v59 = vpop.f32.mrb[19].mxu1 }
 0x11d   :  { %v408_v60 = vmul.f32 %v400_v50, %v976_v43  ;;  %v402_v61 = vmul.f32 %v984_v51, %v984_v51  ;;  %v401_v62 = vmul.f32 %v986_v52, %v986_v52  ;;  %v1002_v63 = vadd.f32 %v386_v59, %v322_v25 }
 0x11e   :  { %v412_v0 = vmul.f32 %v404_v54, %v978_v46  ;;  %v406_v1 = vmul.f32 %v398_v56, %v980_v47  ;;  %v405_v2 = vmul.f32 %v992_v58, %v992_v58  ;;  %v399_v57 = vmul.f32 %v995_v55, %v995_v55 }
 0x11f   :  { %v416_v3 = vmul.f32 0.044715, %v408_v60  ;;  %v410_v4 = vmul.f32 %v402_v61, %v984_v51  ;;  %v409_v5 = vmul.f32 %v401_v62, %v986_v52  ;;  %v403_v6 = vmul.f32 %v1002_v63, %v1002_v63 }
 0x120   :  { %v420_v7 = vmul.f32 0.044715, %v412_v0  ;;  %v414_v8 = vmul.f32 0.044715, %v406_v1  ;;  %v413_v9 = vmul.f32 %v405_v2, %v992_v58  ;;  %v407_v10 = vmul.f32 %v399_v57, %v995_v55 }
 0x121   :  { %v424_v11 = vadd.f32 %v416_v3, %v976_v43  ;;  %v418_v12 = vmul.f32 0.044715, %v410_v4  ;;  %v417_v13 = vmul.f32 0.044715, %v409_v5  ;;  %v411_v14 = vmul.f32 %v403_v6, %v1002_v63 }
 0x122   :  { %v428_v15 = vadd.f32 %v420_v7, %v978_v46  ;;  %v422_v16 = vadd.f32 %v414_v8, %v980_v47  ;;  %v421_v17 = vmul.f32 0.044715, %v413_v9  ;;  %v415_v18 = vmul.f32 0.044715, %v407_v10 }
 0x123   :  { %v432_v19 = vmul.f32 0.7978846, %v424_v11  ;;  %v426_v20 = vadd.f32 %v418_v12, %v984_v51  ;;  %v425_v21 = vadd.f32 %v417_v13, %v986_v52  ;;  %v419_v22 = vmul.f32 0.044715, %v411_v14 }
 0x124   :  { %v436_v23 = vmul.f32 0.7978846, %v428_v15  ;;  %v430_v24 = vmul.f32 0.7978846, %v422_v16  ;;  %v429_v25 = vadd.f32 %v421_v17, %v992_v58  ;;  %v423_v26 = vadd.f32 %v415_v18, %v995_v55 }
 0x125   :  { %599 = vtanh.f32 %v432_v19  ;;  %v434_v27 = vmul.f32 0.7978846, %v426_v20  ;;  %v433_v28 = vmul.f32 0.7978846, %v425_v21  ;;  %v427_v29 = vadd.f32 %v419_v22, %v1002_v63 }
 0x126   :  { %601 = vtanh.f32 %v436_v23  ;;  %v437_v30 = vmul.f32 0.7978846, %v429_v25  ;;  %v431_v31 = vmul.f32 0.7978846, %v423_v26 }
 0x127   :  { %603 = vtanh.f32 %v430_v24  ;;  %v435_v32 = vmul.f32 0.7978846, %v427_v29 }
 0x128   :  { %605 = vtanh.f32 %v434_v27 }
 0x129   :  { %607 = vtanh.f32 %v433_v28 }
 0x12a   :  { %609 = vtanh.f32 %v437_v30 }
 0x12b   :  { %611 = vtanh.f32 %v431_v31 }
 0x12c   :  { %613 = vtanh.f32 %v435_v32 }
 0x12f   :  { %v600_v33 = vpop.eup %599 }
 0x130   :  { %v602_v34 = vpop.eup %601  ;;  %v448_v35 = vadd.f32 1.0, %v600_v33 }
 0x131   :  { %v604_v36 = vpop.eup %603  ;;  %v452_v37 = vadd.f32 1.0, %v602_v34 }
 0x132   :  { %v606_v38 = vpop.eup %605  ;;  %v456_v39 = vmul.f32 0.5, %v448_v35  ;;  %v446_v40 = vadd.f32 1.0, %v604_v36 }
 0x133   :  { %v608_v41 = vpop.eup %607  ;;  %v460_v44 = vmul.f32 0.5, %v452_v37  ;;  %v450_v45 = vadd.f32 1.0, %v606_v38 }
 0x134   :  { %v610_v48 = vpop.eup %609  ;;  %v464_v49 = vmul.f32 %v456_v39, %v976_v43  ;;  %v454_v50 = vmul.f32 0.5, %v446_v40  ;;  %v449_v42 = vadd.f32 1.0, %v608_v41 }
 0x135   :  { %v612_v53 = vpop.eup %611  ;;  %v468_v54 = vmul.f32 %v460_v44, %v978_v46  ;;  %v458_v56 = vmul.f32 0.5, %v450_v45  ;;  %v453_v59 = vadd.f32 1.0, %v610_v48 }
 0x136   :  { %v614_v60 = vpop.eup %613  ;;  %472 = vst [vmem:[%s1060_s3 + $0x10] sm:$0xff] %v464_v49  ;;  %v462_v61 = vmul.f32 %v454_v50, %v980_v47  ;;  %v457_v62 = vmul.f32 0.5, %v449_v42  ;;  %v447_v0 = vadd.f32 1.0, %v612_v53 }
 0x137   :  { %476 = vst [vmem:[%s1060_s3 + $0x30] sm:$0xff] %v468_v54  ;;  %v466_v43 = vmul.f32 %v458_v56, %v984_v51  ;;  %v461_v1 = vmul.f32 0.5, %v453_v59  ;;  %v451_v2 = vadd.f32 1.0, %v614_v60 }
 0x138   :  { %470 = vst [vmem:[%s1060_s3] sm:$0xff] %v462_v61  ;;  %v465_v46 = vmul.f32 %v457_v62, %v986_v52  ;;  %v455_v57 = vmul.f32 0.5, %v447_v0 }
 0x139   :  { %474 = vst [vmem:[%s1060_s3 + $0x20] sm:$0xff] %v466_v43  ;;  %v469_v47 = vmul.f32 %v461_v1, %v992_v58  ;;  %v459_v3 = vmul.f32 0.5, %v451_v2 }
 0x13a   :  { %473 = vst [vmem:[%s1060_s3 + $0x18] sm:$0xff] %v465_v46  ;;  %v463_v51 = vmul.f32 %v455_v57, %v995_v55 }
 0x13b   :  { %477 = vst [vmem:[%s1060_s3 + $0x38] sm:$0xff] %v469_v47  ;;  %v467_v52 = vmul.f32 %v459_v3, %v1002_v63 }
 0x13c   :  { %471 = vst [vmem:[%s1060_s3 + $0x8] sm:$0xff] %v463_v51 }
 0x13d   :  { %475 = vst [vmem:[%s1060_s3 + $0x28] sm:$0xff] %v467_v52 }

// kernel: generator_forward.9
= control target key start
LH: loop header
LB: loop body
LE: loop exit
PB: predicated region body
PF: predicated region fallthrough
CT: control target
= control target key end

     0   :  { %vm160_vm0 = vcmask 523264   ;;  %s754_s1 = inlined_call_operand.vmem [shape: f32[576,128], index: 1, kind: input, shape index: {}]   ;;  %s755_s0 = inlined_call_operand.vmem [shape: f32[32,576], index: 0, kind: input, shape index: {}]   ;;  %s756_s2 = inlined_call_operand.vmem [shape: f32[1,128], index: 2, kind: input, shape index: {}]   ;;  %s757_s3 = inlined_call_operand.vmem [shape: f32[32,128], index: 3, kind: output, shape index: {}]  }
   0x1   :  { %v51_v0 = vld [vmem:[%s754_s1 + $0x80] sm:$0xff]  ;;  %v52_v1 = vld [vmem:[%s754_s1 + $0x88] sm:$0xff]  ;;  %v53_v11 = vld [vmem:[%s754_s1 + $0x90] sm:$0xff] }
   0x2   :  { %v35_v2 = vld [vmem:[%s754_s1] sm:$0xff]  ;;  %v125_v3 = vpack.c.bf16 %v52_v1, %v51_v0  ;;  %v36_v4 = vld [vmem:[%s754_s1 + $0x8] sm:$0xff]  ;;  %v54_v13 = vld [vmem:[%s754_s1 + $0x98] sm:$0xff] }
   0x3   :  { %v83_v5 = vld [vmem:[%s754_s1 + $0x180] sm:$0xff]  ;;  %v84_v6 = vld [vmem:[%s754_s1 + $0x188] sm:$0xff]  ;;  %v117_v7 = vpack.c.bf16 %v36_v4, %v35_v2  ;;  %v37_v14 = vld [vmem:[%s754_s1 + $0x10] sm:$0xff]  ;;  %v126_v16 = vpack.c.bf16 %v54_v13, %v53_v11 }
   0x4   :  { %v141_v8 = vpack.c.bf16 %v84_v6, %v83_v5  ;;  %v67_v9 = vld [vmem:[%s754_s1 + $0x100] sm:$0xff]  ;;  %v68_v10 = vld [vmem:[%s754_s1 + $0x108] sm:$0xff]  ;;  %361 = vmatprep.subr.bf16.mxu0 %v125_v3  ;;  %v38_v15 = vld [vmem:[%s754_s1 + $0x18] sm:$0xff] }
   0x5   :  { %v133_v12 = vpack.c.bf16 %v68_v10, %v67_v9  ;;  %362 = vmatpush3.bf16.msra.mxu0 %v117_v7  ;;  %v118_v17 = vpack.c.bf16 %v38_v15, %v37_v14  ;;  %v85_v18 = vld [vmem:[%s754_s1 + $0x190] sm:$0xff]  ;;  %v86_v19 = vld [vmem:[%s754_s1 + $0x198] sm:$0xff]  ;;  %v55_v23 = vld [vmem:[%s754_s1 + $0xa0] sm:$0xff] }
   0x6   :  { %389 = vmatprep.subr.bf16.mxu1 %v141_v8  ;;  %v69_v20 = vld [vmem:[%s754_s1 + $0x110] sm:$0xff]  ;;  %v142_v21 = vpack.c.bf16 %v86_v19, %v85_v18  ;;  %v70_v22 = vld [vmem:[%s754_s1 + $0x118] sm:$0xff]  ;;  %v56_v24 = vld [vmem:[%s754_s1 + $0xa8] sm:$0xff]  ;;  %363 = vmatprep.subr.bf16.mxu0 %v126_v16 }
   0x7   :  { %390 = vmatpush3.bf16.msra.mxu1 %v133_v12  ;;  %v134_v25 = vpack.c.bf16 %v70_v22, %v69_v20  ;;  %v127_v26 = vpack.c.bf16 %v56_v24, %v55_v23  ;;  %v39_v27 = vld [vmem:[%s754_s1 + $0x20] sm:$0xff]  ;;  %v40_v28 = vld [vmem:[%s754_s1 + $0x28] sm:$0xff]  ;;  %v57_v35 = vld [vmem:[%s754_s1 + $0xb0] sm:$0xff] }
   0x8   :  { %v87_v29 = vld [vmem:[%s754_s1 + $0x1a0] sm:$0xff]  ;;  %391 = vmatprep.subr.bf16.mxu1 %v142_v21  ;;  %v88_v30 = vld [vmem:[%s754_s1 + $0x1a8] sm:$0xff]  ;;  %v119_v33 = vpack.c.bf16 %v40_v28, %v39_v27  ;;  %v58_v36 = vld [vmem:[%s754_s1 + $0xb8] sm:$0xff] }
   0x9   :  { %v71_v31 = vld [vmem:[%s754_s1 + $0x120] sm:$0xff]  ;;  %v72_v32 = vld [vmem:[%s754_s1 + $0x128] sm:$0xff]  ;;  %364 = vmatpush3.bf16.msra.mxu0 %v118_v17  ;;  %v143_v34 = vpack.c.bf16 %v88_v30, %v87_v29  ;;  %v41_v37 = vld [vmem:[%s754_s1 + $0x30] sm:$0xff]  ;;  %v128_v39 = vpack.c.bf16 %v58_v36, %v57_v35 }
   0xa   :  { %365 = vmatprep.subr.bf16.mxu0 %v127_v26  ;;  %v135_v38 = vpack.c.bf16 %v72_v32, %v71_v31  ;;  %v42_v40 = vld [vmem:[%s754_s1 + $0x38] sm:$0xff]  ;;  %v89_v41 = vld [vmem:[%s754_s1 + $0x1b0] sm:$0xff]  ;;  %v59_v46 = vld [vmem:[%s754_s1 + $0xc0] sm:$0xff] }
   0xb   :  { %392 = vmatpush3.bf16.msra.mxu1 %v134_v25  ;;  %v90_v42 = vld [vmem:[%s754_s1 + $0x1b8] sm:$0xff]  ;;  %v73_v44 = vld [vmem:[%s754_s1 + $0x130] sm:$0xff]  ;;  %v60_v47 = vld [vmem:[%s754_s1 + $0xc8] sm:$0xff]  ;;  %v120_v48 = vpack.c.bf16 %v42_v40, %v41_v37 }
   0xc   :  { %393 = vmatprep.subr.bf16.mxu1 %v143_v34  ;;  %v144_v43 = vpack.c.bf16 %v90_v42, %v89_v41  ;;  %v74_v45 = vld [vmem:[%s754_s1 + $0x138] sm:$0xff]  ;;  %v91_v49 = vld [vmem:[%s754_s1 + $0x1c0] sm:$0xff]  ;;  %v92_v50 = vld [vmem:[%s754_s1 + $0x1c8] sm:$0xff]  ;;  %v129_v52 = vpack.c.bf16 %v60_v47, %v59_v46 }
   0xd   :  { %366 = vmatpush3.bf16.msra.mxu0 %v119_v33  ;;  %v136_v51 = vpack.c.bf16 %v74_v45, %v73_v44  ;;  %v43_v53 = vld [vmem:[%s754_s1 + $0x40] sm:$0xff]  ;;  %v44_v54 = vld [vmem:[%s754_s1 + $0x48] sm:$0xff]  ;;  %v145_v56 = vpack.c.bf16 %v92_v50, %v91_v49  ;;  %v61_v58 = vld [vmem:[%s754_s1 + $0xd0] sm:$0xff] }
   0xe   :  { %367 = vmatprep.subr.bf16.mxu0 %v128_v39  ;;  %v75_v55 = vld [vmem:[%s754_s1 + $0x140] sm:$0xff]  ;;  %v76_v57 = vld [vmem:[%s754_s1 + $0x148] sm:$0xff]  ;;  %v62_v59 = vld [vmem:[%s754_s1 + $0xd8] sm:$0xff]  ;;  %v121_v62 = vpack.c.bf16 %v44_v54, %v43_v53 }
   0xf   :  { %394 = vmatpush3.bf16.msra.mxu1 %v135_v38  ;;  %v93_v60 = vld [vmem:[%s754_s1 + $0x1d0] sm:$0xff]  ;;  %v94_v61 = vld [vmem:[%s754_s1 + $0x1d8] sm:$0xff]  ;;  %v137_v63 = vpack.c.bf16 %v76_v57, %v75_v55  ;;  %v130_v0 = vpack.c.bf16 %v62_v59, %v61_v58  ;;  %v63_v6 = vld [vmem:[%s754_s1 + $0xe0] sm:$0xff] }
  0x10   :  { %395 = vmatprep.subr.bf16.mxu1 %v144_v43  ;;  %v45_v1 = vld [vmem:[%s754_s1 + $0x50] sm:$0xff]  ;;  %v46_v2 = vld [vmem:[%s754_s1 + $0x58] sm:$0xff]  ;;  %v146_v4 = vpack.c.bf16 %v94_v61, %v93_v60  ;;  %v64_v7 = vld [vmem:[%s754_s1 + $0xe8] sm:$0xff] }
  0x11   :  { %368 = vmatpush3.bf16.msra.mxu0 %v120_v48  ;;  %v77_v3 = vld [vmem:[%s754_s1 + $0x150] sm:$0xff]  ;;  %v78_v5 = vld [vmem:[%s754_s1 + $0x158] sm:$0xff]  ;;  %v95_v8 = vld [vmem:[%s754_s1 + $0x1e0] sm:$0xff]  ;;  %v122_v10 = vpack.c.bf16 %v46_v2, %v45_v1  ;;  %v131_v15 = vpack.c.bf16 %v64_v7, %v63_v6 }
  0x12   :  { %369 = vmatprep.subr.bf16.mxu0 %v129_v52  ;;  %v96_v9 = vld [vmem:[%s754_s1 + $0x1e8] sm:$0xff]  ;;  %v47_v11 = vld [vmem:[%s754_s1 + $0x60] sm:$0xff]  ;;  %v138_v14 = vpack.c.bf16 %v78_v5, %v77_v3  ;;  %v21_v18 = vld [vmem:[%s755_s0 + $0x30] sm:$0xff] }
  0x13   :  { %396 = vmatpush3.bf16.msra.mxu1 %v136_v51  ;;  %v48_v12 = vld [vmem:[%s754_s1 + $0x68] sm:$0xff]  ;;  %v79_v16 = vld [vmem:[%s754_s1 + $0x160] sm:$0xff]  ;;  %v147_v19 = vpack.c.bf16 %v96_v9, %v95_v8  ;;  %v65_v20 = vld [vmem:[%s754_s1 + $0xf0] sm:$0xff] }
  0x14   :  { %397 = vmatprep.subr.bf16.mxu1 %v145_v56  ;;  %v16_v13 = vld [vmem:[%s755_s0 + $0x8] sm:$0xff]  ;;  %v66_v21 = vld [vmem:[%s754_s1 + $0xf8] sm:$0xff]  ;;  %v97_v22 = vld [vmem:[%s754_s1 + $0x1f0] sm:$0xff]  ;;  %v123_v27 = vpack.c.bf16 %v48_v12, %v47_v11 }
  0x15   :  { %370 = vmatpush3.bf16.msra.mxu0 %v121_v62  ;;  %v80_v17 = vld [vmem:[%s754_s1 + $0x168] sm:$0xff]  ;;  %v108_v23 = vpack.c.bf16 %v21_v18, %v16_v13  ;;  %v98_v24 = vld [vmem:[%s754_s1 + $0x1f8] sm:$0xff]  ;;  %v23_v26 = vld [vmem:[%s755_s0 + $0x40] sm:$0xff]  ;;  %v132_v30 = vpack.c.bf16 %v66_v21, %v65_v20 }
  0x16   :  { %371 = vmatprep.subr.bf16.mxu0 %v130_v0  ;;  %v18_v25 = vld [vmem:[%s755_s0 + $0x18] sm:$0xff]  ;;  %v139_v29 = vpack.c.bf16 %v80_v17, %v79_v16  ;;  %v49_v31 = vld [vmem:[%s754_s1 + $0x70] sm:$0xff]  ;;  %v148_v34 = vpack.c.bf16 %v98_v24, %v97_v22  ;;  %v99_v36 = vld [vmem:[%s754_s1 + $0x200] sm:$0xff] }
  0x17   :  { %398 = vmatpush3.bf16.msra.mxu1 %v137_v63  ;;  %199 = vmatprep.mubr.bf16.mxu0 %v108_v23  ;;  %v110_v28 = vpack.c.bf16 %v23_v26, %v18_v25  ;;  %v50_v32 = vld [vmem:[%s754_s1 + $0x78] sm:$0xff]  ;;  %v81_v33 = vld [vmem:[%s754_s1 + $0x170] sm:$0xff]  ;;  %v100_v37 = vld [vmem:[%s754_s1 + $0x208] sm:$0xff] }
  0x18   :  { %399 = vmatprep.subr.bf16.mxu1 %v146_v4  ;;  %v82_v35 = vld [vmem:[%s754_s1 + $0x178] sm:$0xff]  ;;  %v124_v38 = vpack.c.bf16 %v50_v32, %v49_v31  ;;  %v15_v39 = vld [vmem:[%s755_s0] sm:$0xff]  ;;  %v20_v40 = vld [vmem:[%s755_s0 + $0x28] sm:$0xff]  ;;  %v149_v42 = vpack.c.bf16 %v100_v37, %v99_v36 }
  0x19   :  { %372 = vmatpush3.bf16.msra.mxu0 %v122_v10  ;;  %248 = vmatprep.mubr.bf16.mxu1 %v110_v28  ;;  %v140_v41 = vpack.c.bf16 %v82_v35, %v81_v33  ;;  %v17_v43 = vld [vmem:[%s755_s0 + $0x10] sm:$0xff]  ;;  %v22_v44 = vld [vmem:[%s755_s0 + $0x38] sm:$0xff]  ;;  %v31_v48 = vld [vmem:[%s755_s0 + $0x80] sm:$0xff]  ;;  %v107_v49 = vpack.c.bf16 %v20_v40, %v15_v39 }
  0x1a   :  { %373 = vmatprep.subr.bf16.mxu0 %v131_v15  ;;  %v101_v45 = vld [vmem:[%s754_s1 + $0x210] sm:$0xff]  ;;  %v102_v46 = vld [vmem:[%s754_s1 + $0x218] sm:$0xff]  ;;  %v28_v50 = vld [vmem:[%s755_s0 + $0x68] sm:$0xff]  ;;  %v109_v52 = vpack.c.bf16 %v22_v44, %v17_v43 }
  0x1b   :  { %400 = vmatpush3.bf16.msra.mxu1 %v138_v14  ;;  %v26_v47 = vld [vmem:[%s755_s0 + $0x58] sm:$0xff]  ;;  %v33_v51 = vld [vmem:[%s755_s0 + $0x90] sm:$0xff]  ;;  %v150_v53 = vpack.c.bf16 %v102_v46, %v101_v45  ;;  %v103_v55 = vld [vmem:[%s754_s1 + $0x220] sm:$0xff] }
  0x1c   :  { %401 = vmatprep.subr.bf16.mxu1 %v147_v19  ;;  %v113_v54 = vpack.c.bf16 %v31_v48, %v26_v47  ;;  %v104_v56 = vld [vmem:[%s754_s1 + $0x228] sm:$0xff]  ;;  %v115_v57 = vpack.c.bf16 %v33_v51, %v28_v50  ;;  %v25_v58 = vld [vmem:[%s755_s0 + $0x50] sm:$0xff]  ;;  %v30_v59 = vld [vmem:[%s755_s0 + $0x78] sm:$0xff] }
  0x1d   :  { %374 = vmatpush3.bf16.msra.mxu0 %v123_v27  ;;  %v151_v60 = vpack.c.bf16 %v104_v56, %v103_v55  ;;  %v27_v61 = vld [vmem:[%s755_s0 + $0x60] sm:$0xff]  ;;  %v32_v62 = vld [vmem:[%s755_s0 + $0x88] sm:$0xff]  ;;  %v105_v63 = vld [vmem:[%s754_s1 + $0x230] sm:$0xff]  ;;  %v112_v3 = vpack.c.bf16 %v30_v59, %v25_v58 }
  0x1e   :  { %375 = vmatprep.subr.bf16.mxu0 %v132_v30  ;;  %v106_v0 = vld [vmem:[%s754_s1 + $0x238] sm:$0xff]  ;;  %v19_v1 = vld [vmem:[%s755_s0 + $0x20] sm:$0xff]  ;;  %v24_v2 = vld [vmem:[%s755_s0 + $0x48] sm:$0xff]  ;;  %v114_v4 = vpack.c.bf16 %v32_v62, %v27_v61 }
  0x1f   :  { %402 = vmatpush3.bf16.msra.mxu1 %v139_v29  ;;  %v152_v5 = vpack.c.bf16 %v106_v0, %v105_v63  ;;  %v111_v6 = vpack.c.bf16 %v24_v2, %v19_v1  ;;  %v29_v7 = vld [vmem:[%s755_s0 + $0x70] sm:$0xff]  ;;  %v34_v8 = vld [vmem:[%s755_s0 + $0x98] sm:$0xff]  ;;  %v358_v11 = vld [vmem:[%s756_s2] ss:$0 sm:$0xff] }
  0x20   :  { %403 = vmatprep.subr.bf16.mxu1 %v148_v34  ;;  %v116_v9 = vpack.c.bf16 %v34_v8, %v29_v7 }
  0x21   :  { %376 = vmatpush3.bf16.msra.mxu0 %v124_v38 }
  0x22   :  { %423 = vmatprep.subr.bf16.mxu0 %v149_v42 }
  0x23   :  { %404 = vmatpush3.bf16.msra.mxu1 %v140_v41 }
  0x24   :  { %200 = vmatmul.mubr.bf16.vlgmr.msra.gmra.mrb[0].mxu0 %v107_v49 }
  0x25   :  { %424 = vmatpush3.bf16.msra.mxu0 %v149_v42  ;;  %207 = vmatprep.mubr.bf16.mxu0 %v113_v54 }
  0x26   :  { %249 = vmatmul.mubr.bf16.vlgmr.msra.gmra.mrb[0].mxu1 %v109_v52  ;;  %425 = vmatprep.subr.bf16.mxu0 %v150_v53 }
  0x27   :  { %256 = vmatprep.mubr.bf16.mxu1 %v115_v57 }
  0x29   :  { %426 = vmatpush3.bf16.msra.mxu0 %v150_v53 }
  0x2a   :  { %427 = vmatprep.subr.bf16.mxu0 %v151_v60 }
  0x2c   :  { %208 = vmatmul.mubr.bf16.gmra.mrb[4].mxu0 %v112_v3 }
  0x2d   :  { %428 = vmatpush3.bf16.msra.mxu0 %v151_v60  ;;  %431 = vmatprep.mubr.msk.bf16.mxu0 %vm160_vm0, %v111_v6 }
  0x2e   :  { %257 = vmatmul.mubr.bf16.gmra.mrb[4].mxu1 %v114_v4  ;;  %429 = vmatprep.subr.bf16.mxu0 %v152_v5 }
  0x31   :  { %430 = vmatpush3.bf16.msra.mxu0 %v152_v5 }
  0x34   :  { %432 = vmatmul.mubr.msk.bf16.vlgmr.msra.gmra.mrb[8].mxu0 %vm160_vm0, %v116_v9 }
  0xf7   :  { %v377_v10 = vpop.f32.mrb[0].mxu0 }
  0xf8   :  { %v378_v12 = vpop.f32.mrb[1].mxu0 }
  0xf9   :  { %v405_v13 = vpop.f32.mrb[0].mxu1  ;;  %v379_v14 = vadd.f32 %v378_v12, %v377_v10  ;;  %v380_v15 = vpop.f32.mrb[2].mxu0 }
  0xfa   :  { %v406_v16 = vpop.f32.mrb[1].mxu1  ;;  %v381_v17 = vpop.f32.mrb[3].mxu0 }
  0xfb   :  { %v407_v18 = vadd.f32 %v406_v16, %v405_v13  ;;  %v408_v19 = vpop.f32.mrb[2].mxu1  ;;  %v202_v20 = vadd.f32 %v379_v14, %v358_v11  ;;  %v382_v21 = vadd.f32 %v381_v17, %v380_v15 }
  0xfc   :  { %v409_v22 = vpop.f32.mrb[3].mxu1 }
  0xfd   :  { %v410_v23 = vadd.f32 %v409_v22, %v408_v19  ;;  %v205_v24 = vadd.f32 %v382_v21, %v358_v11  ;;  %v251_v25 = vadd.f32 %v407_v18, %v202_v20 }
  0xff   :  { %v383_v26 = vpop.f32.mrb[4].mxu0  ;;  %v254_v27 = vadd.f32 %v410_v23, %v205_v24 }
 0x100   :  { %v384_v28 = vpop.f32.mrb[5].mxu0 }
 0x101   :  { %v411_v29 = vpop.f32.mrb[4].mxu1  ;;  %v385_v30 = vadd.f32 %v384_v28, %v383_v26  ;;  %v386_v31 = vpop.f32.mrb[6].mxu0 }
 0x102   :  { %v412_v32 = vpop.f32.mrb[5].mxu1  ;;  %v387_v33 = vpop.f32.mrb[7].mxu0 }
 0x103   :  { %v413_v34 = vadd.f32 %v412_v32, %v411_v29  ;;  %v414_v35 = vpop.f32.mrb[6].mxu1  ;;  %v210_v36 = vadd.f32 %v385_v30, %v358_v11  ;;  %v388_v37 = vadd.f32 %v387_v33, %v386_v31 }
 0x104   :  { %v415_v38 = vpop.f32.mrb[7].mxu1 }
 0x105   :  { %v416_v39 = vadd.f32 %v415_v38, %v414_v35  ;;  %v213_v40 = vadd.f32 %v388_v37, %v358_v11  ;;  %v259_v41 = vadd.f32 %v413_v34, %v210_v36 }
 0x107   :  { %v433_v42 = vpop.f32.mrb[8].mxu0  ;;  %v262_v43 = vadd.f32 %v416_v39, %v213_v40 }
 0x108   :  { %v308_v44 = vadd.f32 %v433_v42, %v259_v41  ;;  %v299_v45 = vpop.f32.mrb[9].mxu0 }
 0x109   :  { %v300_v46 = vadd.f32 %v299_v45, %v251_v25  ;;  %v434_v47 = vpop.f32.mrb[10].mxu0 }
 0x10a   :  { %v316_v48 = vmul.f32 %v308_v44, %v308_v44  ;;  %v311_v49 = vadd.f32 %v434_v47, %v262_v43  ;;  %v302_v50 = vpop.f32.mrb[11].mxu0 }
 0x10b   :  { %v314_v51 = vmul.f32 %v300_v46, %v300_v46  ;;  %v303_v52 = vadd.f32 %v302_v50, %v254_v27 }
 0x10c   :  { %v320_v53 = vmul.f32 %v316_v48, %v308_v44  ;;  %v317_v54 = vmul.f32 %v311_v49, %v311_v49 }
 0x10d   :  { %v318_v55 = vmul.f32 %v314_v51, %v300_v46  ;;  %v315_v56 = vmul.f32 %v303_v52, %v303_v52 }
 0x10e   :  { %v324_v57 = vmul.f32 0.044715, %v320_v53  ;;  %v321_v58 = vmul.f32 %v317_v54, %v311_v49 }
 0x10f   :  { %v322_v59 = vmul.f32 0.044715, %v318_v55  ;;  %v319_v60 = vmul.f32 %v315_v56, %v303_v52 }
 0x110   :  { %v328_v61 = vadd.f32 %v324_v57, %v308_v44  ;;  %v325_v62 = vmul.f32 0.044715, %v321_v58 }
 0x111   :  { %v326_v63 = vadd.f32 %v322_v59, %v300_v46  ;;  %v323_v0 = vmul.f32 0.044715, %v319_v60 }
 0x112   :  { %v332_v1 = vmul.f32 0.7978846, %v328_v61  ;;  %v329_v2 = vadd.f32 %v325_v62, %v311_v49 }
 0x113   :  { %v330_v3 = vmul.f32 0.7978846, %v326_v63  ;;  %v327_v4 = vadd.f32 %v323_v0, %v303_v52 }
 0x114   :  { %435 = vtanh.f32 %v332_v1  ;;  %v333_v5 = vmul.f32 0.7978846, %v329_v2 }
 0x115   :  { %437 = vtanh.f32 %v330_v3  ;;  %v331_v6 = vmul.f32 0.7978846, %v327_v4 }
 0x116   :  { %439 = vtanh.f32 %v333_v5 }
 0x117   :  { %441 = vtanh.f32 %v331_v6 }
 0x11e   :  { %v436_v7 = vpop.eup %435 }
 0x11f   :  { %v438_v8 = vpop.eup %437  ;;  %v340_v9 = vadd.f32 1.0, %v436_v7 }
 0x120   :  { %v440_v10 = vpop.eup %439  ;;  %v338_v11 = vadd.f32 1.0, %v438_v8 }
 0x121   :  { %v442_v12 = vpop.eup %441  ;;  %v344_v13 = vmul.f32 0.5, %v340_v9  ;;  %v341_v14 = vadd.f32 1.0, %v440_v10 }
 0x122   :  { %v342_v15 = vmul.f32 0.5, %v338_v11  ;;  %v339_v16 = vadd.f32 1.0, %v442_v12 }
 0x123   :  { %v348_v17 = vmul.f32 %v344_v13, %v308_v44  ;;  %v345_v18 = vmul.f32 0.5, %v341_v14 }
 0x124   :  { %v346_v19 = vmul.f32 %v342_v15, %v300_v46  ;;  %v343_v20 = vmul.f32 0.5, %v339_v16 }
 0x125   :  { %352 = vst [vmem:[%s757_s3 + $0x10] sm:$0xff] %v348_v17  ;;  %v349_v21 = vmul.f32 %v345_v18, %v311_v49 }
 0x126   :  { %350 = vst [vmem:[%s757_s3] sm:$0xff] %v346_v19  ;;  %v347_v22 = vmul.f32 %v343_v20, %v303_v52 }
 0x127   :  { %353 = vst [vmem:[%s757_s3 + $0x18] sm:$0xff] %v349_v21 }
 0x128   :  { %351 = vst [vmem:[%s757_s3 + $0x8] sm:$0xff] %v347_v22 }

// kernel: generator_forward.10
= control target key start
LH: loop header
LB: loop body
LE: loop exit
PB: predicated region body
PF: predicated region fallthrough
CT: control target
= control target key end

     0   :  { %vm366_vm0 = vmmov 0   ;;  %vm145_vm1 = vcmask 523264   ;;  %s642_s1 = inlined_call_operand.vmem [shape: f32[576,128], index: 1, kind: input, shape index: {}]   ;;  %s643_s0 = inlined_call_operand.vmem [shape: f32[16,576], index: 0, kind: input, shape index: {}]   ;;  %s644_s2 = inlined_call_operand.vmem [shape: f32[1,128], index: 2, kind: input, shape index: {}]   ;;  %s645_s3 = inlined_call_operand.vmem [shape: f32[16,128], index: 3, kind: output, shape index: {}]  }
   0x1   :  { %v41_v0 = vld [vmem:[%s642_s1 + $0x80] sm:$0xff]  ;;  %v42_v1 = vld [vmem:[%s642_s1 + $0x88] sm:$0xff]  ;;  %v43_v11 = vld [vmem:[%s642_s1 + $0x90] sm:$0xff] }
   0x2   :  { %v25_v2 = vld [vmem:[%s642_s1] sm:$0xff]  ;;  %v110_v3 = vpack.c.bf16 %v42_v1, %v41_v0  ;;  %v26_v4 = vld [vmem:[%s642_s1 + $0x8] sm:$0xff]  ;;  %v44_v13 = vld [vmem:[%s642_s1 + $0x98] sm:$0xff] }
   0x3   :  { %v73_v5 = vld [vmem:[%s642_s1 + $0x180] sm:$0xff]  ;;  %v74_v6 = vld [vmem:[%s642_s1 + $0x188] sm:$0xff]  ;;  %v102_v7 = vpack.c.bf16 %v26_v4, %v25_v2  ;;  %v27_v14 = vld [vmem:[%s642_s1 + $0x10] sm:$0xff]  ;;  %v111_v16 = vpack.c.bf16 %v44_v13, %v43_v11 }
   0x4   :  { %v126_v8 = vpack.c.bf16 %v74_v6, %v73_v5  ;;  %v57_v9 = vld [vmem:[%s642_s1 + $0x100] sm:$0xff]  ;;  %v58_v10 = vld [vmem:[%s642_s1 + $0x108] sm:$0xff]  ;;  %298 = vmatprep.subr.bf16.mxu0 %v110_v3  ;;  %v28_v15 = vld [vmem:[%s642_s1 + $0x18] sm:$0xff] }
   0x5   :  { %v118_v12 = vpack.c.bf16 %v58_v10, %v57_v9  ;;  %299 = vmatpush3.bf16.msra.mxu0 %v102_v7  ;;  %v103_v17 = vpack.c.bf16 %v28_v15, %v27_v14  ;;  %v75_v18 = vld [vmem:[%s642_s1 + $0x190] sm:$0xff]  ;;  %v76_v19 = vld [vmem:[%s642_s1 + $0x198] sm:$0xff]  ;;  %v45_v23 = vld [vmem:[%s642_s1 + $0xa0] sm:$0xff] }
   0x6   :  { %320 = vmatprep.subr.bf16.mxu1 %v126_v8  ;;  %v59_v20 = vld [vmem:[%s642_s1 + $0x110] sm:$0xff]  ;;  %v127_v21 = vpack.c.bf16 %v76_v19, %v75_v18  ;;  %v60_v22 = vld [vmem:[%s642_s1 + $0x118] sm:$0xff]  ;;  %v46_v24 = vld [vmem:[%s642_s1 + $0xa8] sm:$0xff]  ;;  %300 = vmatprep.subr.bf16.mxu0 %v111_v16 }
   0x7   :  { %321 = vmatpush3.bf16.msra.mxu1 %v118_v12  ;;  %v119_v25 = vpack.c.bf16 %v60_v22, %v59_v20  ;;  %v112_v26 = vpack.c.bf16 %v46_v24, %v45_v23  ;;  %v29_v27 = vld [vmem:[%s642_s1 + $0x20] sm:$0xff]  ;;  %v30_v28 = vld [vmem:[%s642_s1 + $0x28] sm:$0xff]  ;;  %v47_v35 = vld [vmem:[%s642_s1 + $0xb0] sm:$0xff] }
   0x8   :  { %v77_v29 = vld [vmem:[%s642_s1 + $0x1a0] sm:$0xff]  ;;  %322 = vmatprep.subr.bf16.mxu1 %v127_v21  ;;  %v78_v30 = vld [vmem:[%s642_s1 + $0x1a8] sm:$0xff]  ;;  %v104_v33 = vpack.c.bf16 %v30_v28, %v29_v27  ;;  %v48_v36 = vld [vmem:[%s642_s1 + $0xb8] sm:$0xff] }
   0x9   :  { %v61_v31 = vld [vmem:[%s642_s1 + $0x120] sm:$0xff]  ;;  %v62_v32 = vld [vmem:[%s642_s1 + $0x128] sm:$0xff]  ;;  %301 = vmatpush3.bf16.msra.mxu0 %v103_v17  ;;  %v128_v34 = vpack.c.bf16 %v78_v30, %v77_v29  ;;  %v31_v37 = vld [vmem:[%s642_s1 + $0x30] sm:$0xff]  ;;  %v113_v39 = vpack.c.bf16 %v48_v36, %v47_v35 }
   0xa   :  { %302 = vmatprep.subr.bf16.mxu0 %v112_v26  ;;  %v120_v38 = vpack.c.bf16 %v62_v32, %v61_v31  ;;  %v32_v40 = vld [vmem:[%s642_s1 + $0x38] sm:$0xff]  ;;  %v79_v41 = vld [vmem:[%s642_s1 + $0x1b0] sm:$0xff]  ;;  %v49_v46 = vld [vmem:[%s642_s1 + $0xc0] sm:$0xff] }
   0xb   :  { %323 = vmatpush3.bf16.msra.mxu1 %v119_v25  ;;  %v80_v42 = vld [vmem:[%s642_s1 + $0x1b8] sm:$0xff]  ;;  %v63_v44 = vld [vmem:[%s642_s1 + $0x130] sm:$0xff]  ;;  %v50_v47 = vld [vmem:[%s642_s1 + $0xc8] sm:$0xff]  ;;  %v105_v48 = vpack.c.bf16 %v32_v40, %v31_v37 }
   0xc   :  { %324 = vmatprep.subr.bf16.mxu1 %v128_v34  ;;  %v129_v43 = vpack.c.bf16 %v80_v42, %v79_v41  ;;  %v64_v45 = vld [vmem:[%s642_s1 + $0x138] sm:$0xff]  ;;  %v81_v49 = vld [vmem:[%s642_s1 + $0x1c0] sm:$0xff]  ;;  %v82_v50 = vld [vmem:[%s642_s1 + $0x1c8] sm:$0xff]  ;;  %v114_v52 = vpack.c.bf16 %v50_v47, %v49_v46  ;;  %v365_v47 = vmov 0.0  }
   0xd   :  { %303 = vmatpush3.bf16.msra.mxu0 %v104_v33  ;;  %v121_v51 = vpack.c.bf16 %v64_v45, %v63_v44  ;;  %v33_v53 = vld [vmem:[%s642_s1 + $0x40] sm:$0xff]  ;;  %v34_v54 = vld [vmem:[%s642_s1 + $0x48] sm:$0xff]  ;;  %v130_v56 = vpack.c.bf16 %v82_v50, %v81_v49  ;;  %v51_v58 = vld [vmem:[%s642_s1 + $0xd0] sm:$0xff] }
   0xe   :  { %304 = vmatprep.subr.bf16.mxu0 %v113_v39  ;;  %v65_v55 = vld [vmem:[%s642_s1 + $0x140] sm:$0xff]  ;;  %v66_v57 = vld [vmem:[%s642_s1 + $0x148] sm:$0xff]  ;;  %v52_v59 = vld [vmem:[%s642_s1 + $0xd8] sm:$0xff]  ;;  %v106_v62 = vpack.c.bf16 %v34_v54, %v33_v53 }
   0xf   :  { %325 = vmatpush3.bf16.msra.mxu1 %v120_v38  ;;  %v83_v60 = vld [vmem:[%s642_s1 + $0x1d0] sm:$0xff]  ;;  %v84_v61 = vld [vmem:[%s642_s1 + $0x1d8] sm:$0xff]  ;;  %v122_v63 = vpack.c.bf16 %v66_v57, %v65_v55  ;;  %v115_v0 = vpack.c.bf16 %v52_v59, %v51_v58  ;;  %v53_v6 = vld [vmem:[%s642_s1 + $0xe0] sm:$0xff] }
  0x10   :  { %326 = vmatprep.subr.bf16.mxu1 %v129_v43  ;;  %v35_v1 = vld [vmem:[%s642_s1 + $0x50] sm:$0xff]  ;;  %v36_v2 = vld [vmem:[%s642_s1 + $0x58] sm:$0xff]  ;;  %v131_v4 = vpack.c.bf16 %v84_v61, %v83_v60  ;;  %v54_v7 = vld [vmem:[%s642_s1 + $0xe8] sm:$0xff] }
  0x11   :  { %305 = vmatpush3.bf16.msra.mxu0 %v105_v48  ;;  %v67_v3 = vld [vmem:[%s642_s1 + $0x150] sm:$0xff]  ;;  %v68_v5 = vld [vmem:[%s642_s1 + $0x158] sm:$0xff]  ;;  %v85_v8 = vld [vmem:[%s642_s1 + $0x1e0] sm:$0xff]  ;;  %v107_v10 = vpack.c.bf16 %v36_v2, %v35_v1  ;;  %v116_v15 = vpack.c.bf16 %v54_v7, %v53_v6 }
  0x12   :  { %306 = vmatprep.subr.bf16.mxu0 %v114_v52  ;;  %v86_v9 = vld [vmem:[%s642_s1 + $0x1e8] sm:$0xff]  ;;  %v37_v11 = vld [vmem:[%s642_s1 + $0x60] sm:$0xff]  ;;  %v123_v14 = vpack.c.bf16 %v68_v5, %v67_v3  ;;  %v21_v18 = vld [vmem:[%s643_s0 + $0x30] sm:$0xff] }
  0x13   :  { %327 = vmatpush3.bf16.msra.mxu1 %v121_v51  ;;  %v38_v12 = vld [vmem:[%s642_s1 + $0x68] sm:$0xff]  ;;  %v69_v16 = vld [vmem:[%s642_s1 + $0x160] sm:$0xff]  ;;  %v132_v19 = vpack.c.bf16 %v86_v9, %v85_v8  ;;  %v55_v20 = vld [vmem:[%s642_s1 + $0xf0] sm:$0xff] }
  0x14   :  { %328 = vmatprep.subr.bf16.mxu1 %v130_v56  ;;  %v16_v13 = vld [vmem:[%s643_s0 + $0x8] sm:$0xff]  ;;  %v56_v21 = vld [vmem:[%s642_s1 + $0xf8] sm:$0xff]  ;;  %v87_v24 = vld [vmem:[%s642_s1 + $0x1f0] sm:$0xff]  ;;  %v108_v27 = vpack.c.bf16 %v38_v12, %v37_v11 }
  0x15   :  { %307 = vmatpush3.bf16.msra.mxu0 %v106_v62  ;;  %v70_v17 = vld [vmem:[%s642_s1 + $0x168] sm:$0xff]  ;;  %v98_v22 = vpack.c.bf16 %v21_v18, %v16_v13  ;;  %v18_v23 = vld [vmem:[%s643_s0 + $0x18] sm:$0xff]  ;;  %v23_v26 = vld [vmem:[%s643_s0 + $0x40] sm:$0xff]  ;;  %v117_v30 = vpack.c.bf16 %v56_v21, %v55_v20 }
  0x16   :  { %308 = vmatprep.subr.bf16.mxu0 %v115_v0  ;;  %v88_v25 = vld [vmem:[%s642_s1 + $0x1f8] sm:$0xff]  ;;  %v100_v28 = vpack.c.bf16 %v23_v26, %v18_v23  ;;  %v124_v29 = vpack.c.bf16 %v70_v17, %v69_v16  ;;  %v39_v31 = vld [vmem:[%s642_s1 + $0x70] sm:$0xff]  ;;  %v15_v37 = vld [vmem:[%s643_s0] sm:$0xff] }
  0x17   :  { %329 = vmatpush3.bf16.msra.mxu1 %v122_v63  ;;  %181 = vmatprep.mubr.bf16.mxu0 %v98_v22  ;;  %v40_v32 = vld [vmem:[%s642_s1 + $0x78] sm:$0xff]  ;;  %v133_v33 = vpack.c.bf16 %v88_v25, %v87_v24  ;;  %v71_v34 = vld [vmem:[%s642_s1 + $0x170] sm:$0xff]  ;;  %v20_v38 = vld [vmem:[%s643_s0 + $0x28] sm:$0xff] }
  0x18   :  { %330 = vmatprep.subr.bf16.mxu1 %v131_v4  ;;  %v72_v35 = vld [vmem:[%s642_s1 + $0x178] sm:$0xff]  ;;  %222 = vmatprep.mubr.bf16.mxu1 %v100_v28  ;;  %v109_v36 = vpack.c.bf16 %v40_v32, %v39_v31  ;;  %v89_v39 = vld [vmem:[%s642_s1 + $0x200] sm:$0xff]  ;;  %v90_v41 = vld [vmem:[%s642_s1 + $0x208] sm:$0xff]  ;;  %v97_v44 = vpack.c.bf16 %v20_v38, %v15_v37 }
  0x19   :  { %309 = vmatpush3.bf16.msra.mxu0 %v107_v10  ;;  %v125_v40 = vpack.c.bf16 %v72_v35, %v71_v34  ;;  %v17_v42 = vld [vmem:[%s643_s0 + $0x10] sm:$0xff]  ;;  %v22_v43 = vld [vmem:[%s643_s0 + $0x38] sm:$0xff]  ;;  %v134_v45 = vpack.c.bf16 %v90_v41, %v89_v39  ;;  %v93_v51 = vld [vmem:[%s642_s1 + $0x220] sm:$0xff] }
  0x1a   :  { %310 = vmatprep.subr.bf16.mxu0 %v116_v15  ;;  %v99_v46 = vpack.c.bf16 %v22_v43, %v17_v42  ;;  %v91_v48 = vld [vmem:[%s642_s1 + $0x210] sm:$0xff]  ;;  %v92_v49 = vld [vmem:[%s642_s1 + $0x218] sm:$0xff]  ;;  %v94_v52 = vld [vmem:[%s642_s1 + $0x228] sm:$0xff] }
  0x1b   :  { %331 = vmatpush3.bf16.msra.mxu1 %v123_v14  ;;  %v135_v50 = vpack.c.bf16 %v92_v49, %v91_v48  ;;  %v136_v53 = vpack.c.bf16 %v94_v52, %v93_v51  ;;  %v95_v54 = vld [vmem:[%s642_s1 + $0x230] sm:$0xff]  ;;  %v96_v55 = vld [vmem:[%s642_s1 + $0x238] sm:$0xff]  ;;  %v19_v57 = vld [vmem:[%s643_s0 + $0x20] sm:$0xff] }
  0x1c   :  { %332 = vmatprep.subr.bf16.mxu1 %v132_v19  ;;  %v137_v56 = vpack.c.bf16 %v96_v55, %v95_v54  ;;  %v24_v58 = vld [vmem:[%s643_s0 + $0x48] sm:$0xff]  ;;  %v296_v61 = vld [vmem:[%s644_s2] ss:$0 sm:$0xff] }
  0x1d   :  { %311 = vmatpush3.bf16.msra.mxu0 %v108_v27  ;;  %v101_v59 = vpack.c.bf16 %v24_v58, %v19_v57 }
  0x1e   :  { %312 = vmatprep.subr.bf16.mxu0 %v117_v30 }
  0x1f   :  { %333 = vmatpush3.bf16.msra.mxu1 %v124_v29 }
  0x20   :  { %334 = vmatprep.subr.bf16.mxu1 %v133_v33 }
  0x21   :  { %313 = vmatpush3.bf16.msra.mxu0 %v109_v36 }
  0x22   :  { %347 = vmatprep.subr.bf16.mxu0 %v365_v47 }
  0x23   :  { %335 = vmatpush3.bf16.msra.mxu1 %v125_v40 }
  0x24   :  { %182 = vmatmul.mubr.bf16.vlgmr.msra.gmra.mrb[0].mxu0 %v97_v44 }
  0x25   :  { %348 = vmatpush3.bf16.msra.mxu0 %v134_v45  ;;  %355 = vmatprep.mubr.msk.bf16.mxu0 %vm366_vm0, %v365_v47 }
  0x26   :  { %223 = vmatmul.mubr.bf16.vlgmr.msra.gmra.mrb[0].mxu1 %v99_v46  ;;  %349 = vmatprep.subr.bf16.mxu0 %v365_v47 }
  0x29   :  { %350 = vmatpush3.bf16.msra.mxu0 %v135_v50 }
  0x2a   :  { %351 = vmatprep.subr.bf16.mxu0 %v365_v47 }
  0x2d   :  { %352 = vmatpush3.bf16.msra.mxu0 %v136_v53 }
  0x2e   :  { %353 = vmatprep.subr.bf16.mxu0 %v365_v47 }
  0x31   :  { %354 = vmatpush3.bf16.msra.mxu0 %v137_v56 }
  0x34   :  { %356 = vmatmul.mubr.msk.bf16.vlgmr.msra.gmra.mrb[4].mxu0 %vm145_vm1, %v101_v59 }
  0xf7   :  { %v314_v60 = vpop.f32.mrb[0].mxu0 }
  0xf8   :  { %v315_v62 = vpop.f32.mrb[1].mxu0 }
  0xf9   :  { %v336_v63 = vpop.f32.mrb[0].mxu1  ;;  %v316_v0 = vadd.f32 %v315_v62, %v314_v60  ;;  %v317_v1 = vpop.f32.mrb[2].mxu0 }
  0xfa   :  { %v337_v2 = vpop.f32.mrb[1].mxu1  ;;  %v318_v3 = vpop.f32.mrb[3].mxu0 }
  0xfb   :  { %v338_v4 = vadd.f32 %v337_v2, %v336_v63  ;;  %v339_v5 = vpop.f32.mrb[2].mxu1  ;;  %v184_v6 = vadd.f32 %v316_v0, %v296_v61  ;;  %v319_v7 = vadd.f32 %v318_v3, %v317_v1 }
  0xfc   :  { %v340_v8 = vpop.f32.mrb[3].mxu1 }
  0xfd   :  { %v341_v9 = vadd.f32 %v340_v8, %v339_v5  ;;  %v187_v10 = vadd.f32 %v319_v7, %v296_v61  ;;  %v225_v11 = vadd.f32 %v338_v4, %v184_v6 }
  0xff   :  { %v228_v12 = vadd.f32 %v341_v9, %v187_v10 }
 0x107   :  { %v265_v13 = vpop.f32.mrb[4].mxu0 }
 0x108   :  { %v266_v14 = vadd.f32 %v265_v13, %v225_v11  ;;  %v357_v15 = vpop.f32.mrb[5].mxu0 }
 0x109   :  { %v268_v16 = vpop.f32.mrb[6].mxu0 }
 0x10a   :  { %v272_v17 = vmul.f32 %v266_v14, %v266_v14  ;;  %v269_v18 = vadd.f32 %v268_v16, %v228_v12  ;;  %v358_v19 = vpop.f32.mrb[7].mxu0 }
 0x10c   :  { %v274_v20 = vmul.f32 %v272_v17, %v266_v14  ;;  %v273_v21 = vmul.f32 %v269_v18, %v269_v18 }
 0x10e   :  { %v276_v22 = vmul.f32 0.044715, %v274_v20  ;;  %v275_v23 = vmul.f32 %v273_v21, %v269_v18 }
 0x110   :  { %v278_v24 = vadd.f32 %v276_v22, %v266_v14  ;;  %v277_v25 = vmul.f32 0.044715, %v275_v23 }
 0x112   :  { %v280_v26 = vmul.f32 0.7978846, %v278_v24  ;;  %v279_v27 = vadd.f32 %v277_v25, %v269_v18 }
 0x114   :  { %361 = vtanh.f32 %v280_v26  ;;  %v281_v28 = vmul.f32 0.7978846, %v279_v27 }
 0x116   :  { %363 = vtanh.f32 %v281_v28 }
 0x11e   :  { %v362_v29 = vpop.eup %361 }
 0x11f   :  { %v284_v30 = vadd.f32 1.0, %v362_v29 }
 0x120   :  { %v364_v31 = vpop.eup %363 }
 0x121   :  { %v286_v32 = vmul.f32 0.5, %v284_v30  ;;  %v285_v33 = vadd.f32 1.0, %v364_v31 }
 0x123   :  { %v288_v34 = vmul.f32 %v286_v32, %v266_v14  ;;  %v287_v35 = vmul.f32 0.5, %v285_v33 }
 0x125   :  { %290 = vst [vmem:[%s645_s3] sm:$0xff] %v288_v34  ;;  %v289_v36 = vmul.f32 %v287_v35, %v269_v18 }
 0x127   :  { %291 = vst [vmem:[%s645_s3 + $0x8] sm:$0xff] %v289_v36 }

// kernel: generator_forward.13
= control target key start
LH: loop header
LB: loop body
LE: loop exit
PB: predicated region body
PF: predicated region fallthrough
CT: control target
= control target key end

     0   :  { %14 = vsyncpa [#allocation3], 0  ;;  %s1167_s30 = smov [#allocation2]   ;;  %s2000_s0 = inlined_call_operand.vmem [shape: f32[32,32], index: 0, kind: input, shape index: {}]   ;;  %s2001_s1 = inlined_call_operand.vmem [shape: f32[32,64], index: 1, kind: input, shape index: {}]   ;;  %s2002_s2 = inlined_call_operand.vmem [shape: f32[1,64], index: 2, kind: input, shape index: {}]   ;;  %s2003_s3 = inlined_call_operand.vmem [shape: f32[64,128], index: 3, kind: input, shape index: {}]   ;;  %s2004_s4 = inlined_call_operand.hbm [shape: f32[1,128], index: 4, kind: input, shape index: {}]   ;;  %s2005_s5 = inlined_call_operand.vmem [shape: f32[128,256], index: 5, kind: input, shape index: {}]   ;;  %s2006_s6 = inlined_call_operand.vmem [shape: f32[1,256], index: 6, kind: input, shape index: {}]   ;;  %s2007_s7 = inlined_call_operand.vmem [shape: f32[256,512], index: 7, kind: input, shape index: {}]   ;;  %s2008_s8 = inlined_call_operand.vmem [shape: f32[1,512], index: 8, kind: input, shape index: {}]   ;;  %s2009_s9 = inlined_call_operand.vmem [shape: f32[32,256], index: 9, kind: output, shape index: {}]  }
   0x1   :  { %s29_s10 = sshll.u32 %s1167_s30, 4  ;;  %s1143_s13 = scalar_lea.hbm %s2004_s4, 16  ;;  %s30_s10 = int_to_ptr.vmem [resolvable:$true] %s29_s10 }
   0x2   :  { %p1144_p0 = scmp.ne.s32.totalorder %s2004_s4, %s1143_s13  ;;  %p1147_p1 = scmp.lt.u32.totalorder %s1143_s13, %s2004_s4 }
   0x4   :  { %p1149_p2 = pnand %p1147_p1, %p1144_p0 }
   0x6   :  { %1152 = shalt.err (!%p1149_p2)
}
   0x7   :  { %s1153_s18 = scalar_lea.vmem %s30_s10, 16  ;;  %s1157_s19 = scalar_lea.vmem %s30_s10, 32 }
   0x8   :  { %p1154_p3 = scmp.ne.s32.totalorder %s30_s10, %s1153_s18  ;;  %p1158_p4 = scmp.lt.s32.totalorder %s30_s10, %s30_s10 }
   0x9   :  { %p1159_p5 = scmp.lt.s32.totalorder %s1157_s19, %s1153_s18 }
   0xb   :  { %p1160_p6 = por %p1159_p5, %p1158_p4 }
   0xd   :  { %p1161_p7 = pnand %p1160_p6, %p1154_p3 }
   0xf   :  { %1164 = shalt.err (!%p1161_p7)
}
  0x10   :  { %32 = dma.hbm_to_vmem [thread:$0]  %s2004_s4, 16, %s30_s10, [#allocation3]  }
  0x11   :  { %1165 = dma.done.wait [#allocation3], 16  }
  0x12   :  { %1166 = vsyncadd [#allocation3], 4294967280  ;;  %v49_v0 = vld [vmem:[%s2001_s1] sm:$0xff]  ;;  %v50_v1 = vld [vmem:[%s2001_s1 + $0x8] sm:$0xff]  ;;  %vm64_vm0 = vcmask 261120   ;;  %vm177_vm1 = vcmask 523264  }
  0x13   :  { %v51_v2 = vld [vmem:[%s2001_s1 + $0x10] sm:$0xff]  ;;  %v55_v3 = vpack.c.bf16 %v50_v1, %v49_v0  ;;  %v52_v4 = vld [vmem:[%s2001_s1 + $0x18] sm:$0xff]  ;;  %v45_v5 = vld [vmem:[%s2000_s0] sm:$0xff] }
  0x14   :  { %v46_v6 = vld [vmem:[%s2000_s0 + $0x8] sm:$0xff]  ;;  %v56_v7 = vpack.c.bf16 %v52_v4, %v51_v2  ;;  %v47_v9 = vld [vmem:[%s2000_s0 + $0x10] sm:$0xff]  ;;  %v48_v10 = vld [vmem:[%s2000_s0 + $0x18] sm:$0xff] }
  0x15   :  { %v53_v8 = vpack.c.bf16 %v46_v6, %v45_v5  ;;  %1025 = vmatprep.subr.bf16.mxu1 %v55_v3  ;;  %v54_v11 = vpack.c.bf16 %v48_v10, %v47_v9  ;;  %v156_v12 = vld [vmem:[%s2003_s3] sm:$0xff]  ;;  %v157_v13 = vld [vmem:[%s2003_s3 + $0x8] sm:$0xff]  ;;  %v158_v15 = vld [vmem:[%s2003_s3 + $0x10] sm:$0xff] }
  0x16   :  { %1026 = vmatpush3.bf16.msra.mxu1 %v55_v3  ;;  %v166_v14 = vpack.c.bf16 %v157_v13, %v156_v12  ;;  %v159_v16 = vld [vmem:[%s2003_s3 + $0x18] sm:$0xff]  ;;  %v160_v18 = vld [vmem:[%s2003_s3 + $0x20] sm:$0xff]  ;;  %v161_v19 = vld [vmem:[%s2003_s3 + $0x28] sm:$0xff] }
  0x17   :  { %1029 = vmatprep.mubr.msk.bf16.mxu1 %vm64_vm0, %v53_v8  ;;  %1027 = vmatprep.subr.bf16.mxu1 %v56_v7  ;;  %v167_v17 = vpack.c.bf16 %v159_v16, %v158_v15  ;;  %v168_v20 = vpack.c.bf16 %v161_v19, %v160_v18  ;;  %v162_v21 = vld [vmem:[%s2003_s3 + $0x30] sm:$0xff]  ;;  %v163_v22 = vld [vmem:[%s2003_s3 + $0x38] sm:$0xff]  ;;  %v1001_v24 = vld [vmem:[%s2002_s2] ss:$0 sm:$0xff] }
  0x18   :  { %v169_v23 = vpack.c.bf16 %v163_v22, %v162_v21  ;;  %v272_v8 = vld [vmem:[%s2005_s5 + $0x18] sm:$0xff]  ;;  %v269_v10 = vld [vmem:[%s2005_s5] sm:$0xff]  ;;  %v274_v13 = vld [vmem:[%s2005_s5 + $0x28] sm:$0xff] }
  0x19   :  { %v273_v16 = vld [vmem:[%s2005_s5 + $0x20] sm:$0xff]  ;;  %v278_v19 = vld [vmem:[%s2005_s5 + $0x48] sm:$0xff] }
  0x1a   :  { %1028 = vmatpush3.bf16.msra.mxu1 %v56_v7  ;;  %v270_v7 = vld [vmem:[%s2005_s5 + $0x8] sm:$0xff]  ;;  %v277_v22 = vld [vmem:[%s2005_s5 + $0x40] sm:$0xff] }
  0x1b   :  { %1033 = vmatprep.subr.bf16.mxu1 %v166_v14  ;;  %v304_v9 = vpack.c.bf16 %v272_v8, %v270_v7  ;;  %v473_v7 = vld [vmem:[%s2007_s7 + $0x88] sm:$0xff] }
  0x1c   :  { %v477_v8 = vld [vmem:[%s2007_s7 + $0xa8] sm:$0xff] }
  0x1d   :  { %1030 = vmatmul.mubr.msk.bf16.vlgmr.msra.gmra.mrb[0].mxu1 %vm64_vm0, %v54_v11  ;;  %v271_v11 = vld [vmem:[%s2005_s5 + $0x10] sm:$0xff]  ;;  %331 = vmatprep.subr.bf16.mxu0 %v304_v9  ;;  %v597_v9 = vpack.c.bf16 %v477_v8, %v473_v7 }
  0x1e   :  { %1034 = vmatpush3.bf16.msra.mxu1 %v166_v14  ;;  %v303_v12 = vpack.c.bf16 %v271_v11, %v269_v10  ;;  %v276_v14 = vld [vmem:[%s2005_s5 + $0x38] sm:$0xff]  ;;  %v472_v10 = vld [vmem:[%s2007_s7 + $0x80] sm:$0xff] }
  0x1f   :  { %1035 = vmatprep.subr.bf16.mxu1 %v167_v17  ;;  %v306_v15 = vpack.c.bf16 %v276_v14, %v274_v13  ;;  %v476_v11 = vld [vmem:[%s2007_s7 + $0xa0] sm:$0xff]  ;;  %v481_v13 = vld [vmem:[%s2007_s7 + $0xc8] sm:$0xff] }
  0x20   :  { %332 = vmatpush1.bf16.msra.mxu0 %v303_v12  ;;  %v596_v12 = vpack.c.bf16 %v476_v11, %v472_v10  ;;  %v485_v14 = vld [vmem:[%s2007_s7 + $0xe8] sm:$0xff] }
  0x21   :  { %333 = vmatprep.subr.bf16.mxu0 %v306_v15  ;;  %v601_v15 = vpack.c.bf16 %v485_v14, %v481_v13 }
  0x22   :  { %1036 = vmatpush3.bf16.msra.mxu1 %v167_v17  ;;  %v275_v17 = vld [vmem:[%s2005_s5 + $0x30] sm:$0xff] }
  0x23   :  { %1037 = vmatprep.subr.bf16.mxu1 %v168_v20  ;;  %v305_v18 = vpack.c.bf16 %v275_v17, %v273_v16  ;;  %v480_v16 = vld [vmem:[%s2007_s7 + $0xc0] sm:$0xff] }
  0x24   :  { %v484_v17 = vld [vmem:[%s2007_s7 + $0xe0] sm:$0xff] }
  0x25   :  { %334 = vmatpush1.bf16.msra.mxu0 %v305_v18  ;;  %v489_v18 = vld [vmem:[%s2007_s7 + $0x108] sm:$0xff] }
  0x26   :  { %1038 = vmatpush3.bf16.msra.mxu1 %v168_v20  ;;  %v280_v20 = vld [vmem:[%s2005_s5 + $0x58] sm:$0xff] }
  0x27   :  { %1039 = vmatprep.subr.bf16.mxu1 %v169_v23  ;;  %v308_v21 = vpack.c.bf16 %v280_v20, %v278_v19  ;;  %v493_v19 = vld [vmem:[%s2007_s7 + $0x128] sm:$0xff]  ;;  %v600_v20 = vpack.c.bf16 %v484_v17, %v480_v16  ;;  %v462_v16 = vld [vmem:[%s2007_s7 + $0x30] sm:$0xff] }
  0x29   :  { %335 = vmatprep.subr.bf16.mxu0 %v308_v21  ;;  %v605_v21 = vpack.c.bf16 %v493_v19, %v489_v18  ;;  %v467_v19 = vld [vmem:[%s2007_s7 + $0x58] sm:$0xff] }
  0x2a   :  { %1040 = vmatpush3.bf16.msra.mxu1 %v169_v23  ;;  %v279_v23 = vld [vmem:[%s2005_s5 + $0x50] sm:$0xff] }
  0xf0   :  { %v1031_v25 = vpop.f32.mrb[0].mxu1 }
  0xf1   :  { %v114_v26 = vadd.f32 %v1031_v25, %v1001_v24  ;;  %v105_v27 = vpop.f32.mrb[1].mxu1  ;;  %v282_v25 = vld [vmem:[%s2005_s5 + $0x68] sm:$0xff] }
  0xf2   :  { %v106_v28 = vadd.f32 %v1001_v24, %v105_v27  ;;  %v1032_v29 = vpop.f32.mrb[2].mxu1 }
  0xf3   :  { %v122_v30 = vmul.f32 %v114_v26, %v114_v26  ;;  %v117_v31 = vadd.f32 %v1032_v29, %v1001_v24  ;;  %v108_v32 = vpop.f32.mrb[3].mxu1  ;;  %v283_v29 = vld [vmem:[%s2005_s5 + $0x70] sm:$0xff] }
  0xf4   :  { %v120_v33 = vmul.f32 %v106_v28, %v106_v28  ;;  %v109_v34 = vadd.f32 %v1001_v24, %v108_v32  ;;  %v307_v24 = vpack.c.bf16 %v279_v23, %v277_v22  ;;  %v288_v32 = vld [vmem:[%s2005_s5 + $0x98] sm:$0xff]  ;;  %v488_v22 = vld [vmem:[%s2007_s7 + $0x100] sm:$0xff] }
  0xf5   :  { %v126_v35 = vmul.f32 %v122_v30, %v114_v26  ;;  %v123_v36 = vmul.f32 %v117_v31, %v117_v31  ;;  %v492_v23 = vld [vmem:[%s2007_s7 + $0x120] sm:$0xff] }
  0xf6   :  { %v124_v37 = vmul.f32 %v120_v33, %v106_v28  ;;  %v121_v38 = vmul.f32 %v109_v34, %v109_v34  ;;  %336 = vmatpush1.bf16.msra.mxu0 %v307_v24  ;;  %v285_v33 = vld [vmem:[%s2005_s5 + $0x80] sm:$0xff]  ;;  %v497_v24 = vld [vmem:[%s2007_s7 + $0x148] sm:$0xff] }
  0xf7   :  { %v130_v39 = vmul.f32 0.044715, %v126_v35  ;;  %v127_v40 = vmul.f32 %v123_v36, %v117_v31  ;;  %v287_v35 = vld [vmem:[%s2005_s5 + $0x90] sm:$0xff]  ;;  %v290_v36 = vld [vmem:[%s2005_s5 + $0xa8] sm:$0xff] }
  0xf8   :  { %v128_v41 = vmul.f32 0.044715, %v124_v37  ;;  %v125_v42 = vmul.f32 %v121_v38, %v109_v34  ;;  %v292_v37 = vld [vmem:[%s2005_s5 + $0xb8] sm:$0xff]  ;;  %v1168_v38 = vmov 0  }
  0xf9   :  { %v134_v43 = vadd.f32 %v130_v39, %v114_v26  ;;  %v131_v44 = vmul.f32 0.044715, %v127_v40  ;;  %363 = vmatprep.mubr.bf16.mxu0 %v1168_v38  ;;  %v311_v39 = vpack.c.bf16 %v287_v35, %v285_v33  ;;  %v314_v40 = vpack.c.bf16 %v292_v37, %v290_v36  ;;  %v508_v35 = vld [vmem:[%s2007_s7 + $0x1a0] sm:$0xff] }
  0xfa   :  { %v132_v45 = vadd.f32 %v128_v41, %v106_v28  ;;  %v129_v46 = vmul.f32 0.044715, %v125_v42  ;;  %v289_v41 = vld [vmem:[%s2005_s5 + $0xa0] sm:$0xff]  ;;  %v291_v42 = vld [vmem:[%s2005_s5 + $0xb0] sm:$0xff] }
  0xfb   :  { %v138_v47 = vmul.f32 0.7978846, %v134_v43  ;;  %v135_v48 = vadd.f32 %v131_v44, %v117_v31  ;;  %v294_v43 = vld [vmem:[%s2005_s5 + $0xc8] sm:$0xff]  ;;  %v296_v44 = vld [vmem:[%s2005_s5 + $0xd8] sm:$0xff]  ;;  %v1004_v37 = vld [vmem:[#allocation2] ss:$0 sm:$0xff] }
  0xfc   :  { %v136_v49 = vmul.f32 0.7978846, %v132_v45  ;;  %v133_v50 = vadd.f32 %v129_v46, %v109_v34  ;;  %v313_v45 = vpack.c.bf16 %v291_v42, %v289_v41  ;;  %v316_v46 = vpack.c.bf16 %v296_v44, %v294_v43 }
  0xfd   :  { %1047 = vtanh.f32 %v138_v47  ;;  %v139_v51 = vmul.f32 0.7978846, %v135_v48  ;;  %v293_v47 = vld [vmem:[%s2005_s5 + $0xc0] sm:$0xff]  ;;  %v295_v48 = vld [vmem:[%s2005_s5 + $0xd0] sm:$0xff] }
  0xfe   :  { %1049 = vtanh.f32 %v136_v49  ;;  %v137_v52 = vmul.f32 0.7978846, %v133_v50  ;;  %v298_v49 = vld [vmem:[%s2005_s5 + $0xe8] sm:$0xff]  ;;  %v300_v50 = vld [vmem:[%s2005_s5 + $0xf8] sm:$0xff] }
  0xff   :  { %1051 = vtanh.f32 %v139_v51  ;;  %v315_v51 = vpack.c.bf16 %v295_v48, %v293_v47 }
 0x100   :  { %1053 = vtanh.f32 %v137_v52  ;;  %v318_v52 = vpack.c.bf16 %v300_v50, %v298_v49 }
 0x107   :  { %v1048_v53 = vpop.eup %1047 }
 0x108   :  { %v1050_v54 = vpop.eup %1049  ;;  %v146_v55 = vadd.f32 1.0, %v1048_v53  ;;  %v297_v53 = vld [vmem:[%s2005_s5 + $0xe0] sm:$0xff] }
 0x109   :  { %v1052_v56 = vpop.eup %1051  ;;  %v144_v57 = vadd.f32 1.0, %v1050_v54  ;;  %v299_v54 = vld [vmem:[%s2005_s5 + $0xf0] sm:$0xff] }
 0x10a   :  { %v1054_v58 = vpop.eup %1053  ;;  %v150_v59 = vmul.f32 0.5, %v146_v55  ;;  %v147_v60 = vadd.f32 1.0, %v1052_v56  ;;  %v317_v55 = vpack.c.bf16 %v299_v54, %v297_v53  ;;  %v457_v56 = vld [vmem:[%s2007_s7 + $0x8] sm:$0xff] }
 0x10b   :  { %v148_v61 = vmul.f32 0.5, %v144_v57  ;;  %v145_v62 = vadd.f32 1.0, %v1054_v58  ;;  %v461_v57 = vld [vmem:[%s2007_s7 + $0x28] sm:$0xff]  ;;  %v459_v58 = vld [vmem:[%s2007_s7 + $0x18] sm:$0xff] }
 0x10c   :  { %v151_v63 = vmul.f32 0.5, %v147_v60  ;;  %v154_v1 = vmul.f32 %v150_v59, %v114_v26  ;;  %v284_v26 = vld [vmem:[%s2005_s5 + $0x78] sm:$0xff]  ;;  %v589_v59 = vpack.c.bf16 %v461_v57, %v457_v56 }
 0x10d   :  { %v149_v0 = vmul.f32 0.5, %v145_v62  ;;  %v152_v3 = vmul.f32 %v148_v61, %v106_v28  ;;  %v310_v27 = vpack.c.bf16 %v284_v26, %v282_v25  ;;  %v281_v28 = vld [vmem:[%s2005_s5 + $0x60] sm:$0xff]  ;;  %v463_v60 = vld [vmem:[%s2007_s7 + $0x38] sm:$0xff]  ;;  %v501_v25 = vld [vmem:[%s2007_s7 + $0x168] sm:$0xff]  ;;  %v604_v26 = vpack.c.bf16 %v492_v23, %v488_v22 }
 0x10e   :  { %v155_v2 = vmul.f32 %v151_v63, %v117_v31  ;;  %v309_v30 = vpack.c.bf16 %v283_v29, %v281_v28  ;;  %v286_v31 = vld [vmem:[%s2005_s5 + $0x88] sm:$0xff]  ;;  %v456_v61 = vld [vmem:[%s2007_s7] sm:$0xff]  ;;  %v591_v63 = vpack.c.bf16 %v463_v60, %v459_v58  ;;  %674 = vmatprep.subr.bf16.mxu1 %v589_v59 }
 0x10f   :  { %v153_v4 = vmul.f32 %v149_v0, %v109_v34  ;;  %337 = vmatprep.subr.bf16.mxu0 %v310_v27  ;;  %v312_v34 = vpack.c.bf16 %v288_v32, %v286_v31  ;;  %v460_v62 = vld [vmem:[%s2007_s7 + $0x20] sm:$0xff]  ;;  %v609_v27 = vpack.c.bf16 %v501_v25, %v497_v24  ;;  %v509_v31 = vld [vmem:[%s2007_s7 + $0x1a8] sm:$0xff] }
 0x110   :  { %v165_v5 = vpack.c.bf16 %v155_v2, %v154_v1  ;;  %338 = vmatpush1.bf16.msra.mxu0 %v309_v30  ;;  %v588_v0 = vpack.c.bf16 %v460_v62, %v456_v61  ;;  %v465_v1 = vld [vmem:[%s2007_s7 + $0x48] sm:$0xff]  ;;  %v496_v28 = vld [vmem:[%s2007_s7 + $0x140] sm:$0xff] }
 0x111   :  { %v164_v6 = vpack.c.bf16 %v153_v4, %v152_v3  ;;  %339 = vmatprep.subr.bf16.mxu0 %v312_v34  ;;  %v469_v2 = vld [vmem:[%s2007_s7 + $0x68] sm:$0xff]  ;;  %v464_v4 = vld [vmem:[%s2007_s7 + $0x40] sm:$0xff] }
 0x112   :  { %v593_v3 = vpack.c.bf16 %v469_v2, %v465_v1  ;;  %v500_v29 = vld [vmem:[%s2007_s7 + $0x160] sm:$0xff]  ;;  %v505_v30 = vld [vmem:[%s2007_s7 + $0x188] sm:$0xff] }
 0x113   :  { %1041 = vmatprep.mubr.msk.bf16.mxu1 %vm177_vm1, %v164_v6  ;;  %v608_v32 = vpack.c.bf16 %v500_v29, %v496_v28  ;;  %v613_v33 = vpack.c.bf16 %v509_v31, %v505_v30  ;;  %v504_v34 = vld [vmem:[%s2007_s7 + $0x180] sm:$0xff]  ;;  %v470_v28 = vld [vmem:[%s2007_s7 + $0x70] sm:$0xff]  ;;  %v475_v29 = vld [vmem:[%s2007_s7 + $0x98] sm:$0xff] }
 0x114   :  { %1042 = vmatmul.mubr.msk.bf16.vlgmr.msra.gmra.mrb[4].mxu1 %vm177_vm1, %v165_v5  ;;  %340 = vmatpush1.bf16.msra.mxu0 %v311_v39  ;;  %v468_v5 = vld [vmem:[%s2007_s7 + $0x60] sm:$0xff]  ;;  %v612_v36 = vpack.c.bf16 %v508_v35, %v504_v34  ;;  %v479_v30 = vld [vmem:[%s2007_s7 + $0xb8] sm:$0xff]  ;;  %v478_v34 = vld [vmem:[%s2007_s7 + $0xb0] sm:$0xff] }
 0x115   :  { %341 = vmatprep.subr.bf16.mxu0 %v314_v40  ;;  %675 = vmatpush1.bf16.msra.mxu1 %v588_v0  ;;  %v592_v6 = vpack.c.bf16 %v468_v5, %v464_v4  ;;  %v483_v35 = vld [vmem:[%s2007_s7 + $0xd8] sm:$0xff] }
 0x116   :  { %676 = vmatprep.subr.bf16.mxu1 %v593_v3 }
 0x118   :  { %342 = vmatpush1.bf16.msra.mxu0 %v313_v45 }
 0x119   :  { %343 = vmatprep.subr.bf16.mxu0 %v316_v46  ;;  %677 = vmatpush1.bf16.msra.mxu1 %v592_v6 }
 0x11a   :  { %678 = vmatprep.subr.bf16.mxu1 %v597_v9 }
 0x11c   :  { %344 = vmatpush1.bf16.msra.mxu0 %v315_v51 }
 0x11d   :  { %345 = vmatprep.subr.bf16.mxu0 %v318_v52  ;;  %679 = vmatpush1.bf16.msra.mxu1 %v596_v12 }
 0x11e   :  { %680 = vmatprep.subr.bf16.mxu1 %v601_v15  ;;  %v458_v15 = vld [vmem:[%s2007_s7 + $0x10] sm:$0xff] }
 0x11f   :  { %v590_v24 = vpack.c.bf16 %v462_v16, %v458_v15 }
 0x120   :  { %346 = vmatpush1.bf16.msra.mxu0 %v317_v55 }
 0x121   :  { %727 = vmatprep.subr.bf16.mxu0 %v591_v63  ;;  %681 = vmatpush1.bf16.msra.mxu1 %v600_v20  ;;  %v471_v20 = vld [vmem:[%s2007_s7 + $0x78] sm:$0xff] }
 0x122   :  { %682 = vmatprep.subr.bf16.mxu1 %v605_v21 }
 0x125   :  { %683 = vmatpush1.bf16.msra.mxu1 %v604_v26  ;;  %v595_v26 = vpack.c.bf16 %v471_v20, %v467_v19  ;;  %v529_v20 = vld [vmem:[%s2007_s7 + $0x248] sm:$0xff] }
 0x126   :  { %684 = vmatprep.subr.bf16.mxu1 %v609_v27  ;;  %v466_v27 = vld [vmem:[%s2007_s7 + $0x50] sm:$0xff] }
 0x127   :  { %v594_v31 = vpack.c.bf16 %v470_v28, %v466_v27 }
 0x129   :  { %685 = vmatpush1.bf16.msra.mxu1 %v608_v32  ;;  %v599_v32 = vpack.c.bf16 %v479_v30, %v475_v29  ;;  %v530_v29 = vld [vmem:[%s2007_s7 + $0x250] sm:$0xff] }
 0x12a   :  { %686 = vmatprep.subr.bf16.mxu1 %v613_v33  ;;  %v474_v33 = vld [vmem:[%s2007_s7 + $0x90] sm:$0xff] }
 0x12b   :  { %v534_v30 = vld [vmem:[%s2007_s7 + $0x270] sm:$0xff] }
 0x12d   :  { %687 = vmatpush1.bf16.msra.mxu1 %v612_v36  ;;  %v598_v36 = vpack.c.bf16 %v478_v34, %v474_v33  ;;  %v541_v33 = vld [vmem:[%s2007_s7 + $0x2a8] sm:$0xff]  ;;  %v539_v34 = vld [vmem:[%s2007_s7 + $0x298] sm:$0xff] }
 0x1e7   :  { %v1043_v39 = vpop.f32.mrb[4].mxu1 }
 0x1e8   :  { %v227_v40 = vadd.f32 %v1043_v39, %v1004_v37  ;;  %v218_v41 = vpop.f32.mrb[5].mxu1  ;;  %v482_v39 = vld [vmem:[%s2007_s7 + $0xd0] sm:$0xff] }
 0x1e9   :  { %v219_v42 = vadd.f32 %v1004_v37, %v218_v41  ;;  %v1044_v43 = vpop.f32.mrb[6].mxu1  ;;  %v491_v41 = vld [vmem:[%s2007_s7 + $0x118] sm:$0xff] }
 0x1ea   :  { %v235_v44 = vmul.f32 %v227_v40, %v227_v40  ;;  %v230_v45 = vadd.f32 %v1044_v43, %v1004_v37  ;;  %v221_v46 = vpop.f32.mrb[7].mxu1 }
 0x1eb   :  { %v233_v47 = vmul.f32 %v219_v42, %v219_v42  ;;  %v222_v48 = vadd.f32 %v1004_v37, %v221_v46  ;;  %v494_v46 = vld [vmem:[%s2007_s7 + $0x130] sm:$0xff] }
 0x1ec   :  { %v239_v49 = vmul.f32 %v235_v44, %v227_v40  ;;  %v236_v50 = vmul.f32 %v230_v45, %v230_v45 }
 0x1ed   :  { %v237_v51 = vmul.f32 %v233_v47, %v219_v42  ;;  %v234_v52 = vmul.f32 %v222_v48, %v222_v48  ;;  %v499_v47 = vld [vmem:[%s2007_s7 + $0x158] sm:$0xff] }
 0x1ee   :  { %v243_v53 = vmul.f32 0.044715, %v239_v49  ;;  %v240_v54 = vmul.f32 %v236_v50, %v230_v45 }
 0x1ef   :  { %v241_v55 = vmul.f32 0.044715, %v237_v51  ;;  %v238_v56 = vmul.f32 %v234_v52, %v222_v48  ;;  %v498_v51 = vld [vmem:[%s2007_s7 + $0x150] sm:$0xff] }
 0x1f0   :  { %v247_v57 = vadd.f32 %v243_v53, %v227_v40  ;;  %v244_v58 = vmul.f32 0.044715, %v240_v54  ;;  %v502_v52 = vld [vmem:[%s2007_s7 + $0x170] sm:$0xff]  ;;  %v507_v53 = vld [vmem:[%s2007_s7 + $0x198] sm:$0xff] }
 0x1f1   :  { %v245_v59 = vadd.f32 %v241_v55, %v219_v42  ;;  %v242_v60 = vmul.f32 0.044715, %v238_v56  ;;  %v511_v54 = vld [vmem:[%s2007_s7 + $0x1b8] sm:$0xff]  ;;  %v610_v55 = vpack.c.bf16 %v502_v52, %v498_v51 }
 0x1f2   :  { %v251_v61 = vmul.f32 0.7978846, %v247_v57  ;;  %v248_v62 = vadd.f32 %v244_v58, %v230_v45  ;;  %v615_v56 = vpack.c.bf16 %v511_v54, %v507_v53  ;;  %v506_v57 = vld [vmem:[%s2007_s7 + $0x190] sm:$0xff] }
 0x1f3   :  { %v249_v63 = vmul.f32 0.7978846, %v245_v59  ;;  %v246_v0 = vadd.f32 %v242_v60, %v222_v48  ;;  %v510_v58 = vld [vmem:[%s2007_s7 + $0x1b0] sm:$0xff]  ;;  %v513_v60 = vld [vmem:[%s2007_s7 + $0x1c8] sm:$0xff] }
 0x1f4   :  { %1055 = vtanh.f32 %v251_v61  ;;  %v252_v1 = vmul.f32 0.7978846, %v248_v62  ;;  %v614_v59 = vpack.c.bf16 %v510_v58, %v506_v57  ;;  %v517_v61 = vld [vmem:[%s2007_s7 + $0x1e8] sm:$0xff]  ;;  %v515_v62 = vld [vmem:[%s2007_s7 + $0x1d8] sm:$0xff]  ;;  %v546_v53 = vld [vmem:[%s2007_s7 + $0x2d0] sm:$0xff] }
 0x1f5   :  { %1057 = vtanh.f32 %v249_v63  ;;  %v250_v2 = vmul.f32 0.7978846, %v246_v0  ;;  %v617_v63 = vpack.c.bf16 %v517_v61, %v513_v60  ;;  %v519_v0 = vld [vmem:[%s2007_s7 + $0x1f8] sm:$0xff]  ;;  %v550_v54 = vld [vmem:[%s2007_s7 + $0x2f0] sm:$0xff]  ;;  %v557_v57 = vld [vmem:[%s2007_s7 + $0x328] sm:$0xff] }
 0x1f6   :  { %1059 = vtanh.f32 %v252_v1  ;;  %v512_v1 = vld [vmem:[%s2007_s7 + $0x1c0] sm:$0xff]  ;;  %v555_v58 = vld [vmem:[%s2007_s7 + $0x318] sm:$0xff] }
 0x1f7   :  { %1061 = vtanh.f32 %v250_v2  ;;  %v516_v2 = vld [vmem:[%s2007_s7 + $0x1e0] sm:$0xff]  ;;  %688 = vmatprep.subr.bf16.mxu1 %v617_v63  ;;  %v559_v60 = vld [vmem:[%s2007_s7 + $0x338] sm:$0xff] }
 0x1f8   :  { %v552_v61 = vld [vmem:[%s2007_s7 + $0x300] sm:$0xff]  ;;  %v639_v63 = vpack.c.bf16 %v559_v60, %v555_v58 }
 0x1fe   :  { %v1056_v3 = vpop.eup %1055 }
 0x1ff   :  { %v1058_v4 = vpop.eup %1057  ;;  %v259_v5 = vadd.f32 1.0, %v1056_v3  ;;  %v619_v3 = vpack.c.bf16 %v519_v0, %v515_v62  ;;  %v556_v62 = vld [vmem:[%s2007_s7 + $0x320] sm:$0xff] }
 0x200   :  { %v1060_v6 = vpop.eup %1059  ;;  %v257_v7 = vadd.f32 1.0, %v1058_v4  ;;  %v616_v4 = vpack.c.bf16 %v516_v2, %v512_v1  ;;  %v636_v0 = vpack.c.bf16 %v556_v62, %v552_v61  ;;  %v554_v1 = vld [vmem:[%s2007_s7 + $0x310] sm:$0xff] }
 0x201   :  { %v1062_v8 = vpop.eup %1061  ;;  %v260_v9 = vadd.f32 1.0, %v1060_v6  ;;  %v263_v10 = vmul.f32 0.5, %v259_v5  ;;  %v514_v5 = vld [vmem:[%s2007_s7 + $0x1d0] sm:$0xff] }
 0x202   :  { %v258_v11 = vadd.f32 1.0, %v1062_v8  ;;  %v261_v12 = vmul.f32 0.5, %v257_v7  ;;  %v518_v6 = vld [vmem:[%s2007_s7 + $0x1f0] sm:$0xff]  ;;  %689 = vmatpush1.bf16.msra.mxu1 %v616_v4  ;;  %v521_v8 = vld [vmem:[%s2007_s7 + $0x208] sm:$0xff] }
 0x203   :  { %v264_v13 = vmul.f32 0.5, %v260_v9  ;;  %v267_v17 = vmul.f32 %v263_v10, %v227_v40  ;;  %v486_v40 = vld [vmem:[%s2007_s7 + $0xf0] sm:$0xff]  ;;  %v618_v7 = vpack.c.bf16 %v518_v6, %v514_v5  ;;  %v525_v9 = vld [vmem:[%s2007_s7 + $0x228] sm:$0xff]  ;;  %v523_v10 = vld [vmem:[%s2007_s7 + $0x218] sm:$0xff] }
 0x204   :  { %v262_v14 = vmul.f32 0.5, %v258_v11  ;;  %v265_v21 = vmul.f32 %v261_v12, %v219_v42  ;;  %v495_v42 = vld [vmem:[%s2007_s7 + $0x138] sm:$0xff]  ;;  %v602_v43 = vpack.c.bf16 %v486_v40, %v482_v39  ;;  %v621_v11 = vpack.c.bf16 %v525_v9, %v521_v8  ;;  %v558_v2 = vld [vmem:[%s2007_s7 + $0x330] sm:$0xff]  ;;  %v561_v4 = vld [vmem:[%s2007_s7 + $0x348] sm:$0xff] }
 0x205   :  { %v268_v18 = vmul.f32 %v264_v13, %v230_v45  ;;  %v607_v44 = vpack.c.bf16 %v495_v42, %v491_v41  ;;  %v490_v45 = vld [vmem:[%s2007_s7 + $0x110] sm:$0xff]  ;;  %v527_v12 = vld [vmem:[%s2007_s7 + $0x238] sm:$0xff]  ;;  %v520_v13 = vld [vmem:[%s2007_s7 + $0x200] sm:$0xff] }
 0x206   :  { %v266_v22 = vmul.f32 %v262_v14, %v222_v48  ;;  %v503_v48 = vld [vmem:[%s2007_s7 + $0x178] sm:$0xff]  ;;  %v606_v49 = vpack.c.bf16 %v494_v46, %v490_v45  ;;  %v524_v14 = vld [vmem:[%s2007_s7 + $0x220] sm:$0xff]  ;;  %v623_v15 = vpack.c.bf16 %v527_v12, %v523_v10  ;;  %690 = vmatprep.subr.bf16.mxu1 %v621_v11  ;;  %v538_v41 = vld [vmem:[%s2007_s7 + $0x290] sm:$0xff] }
 0x207   :  { %v302_v23 = vpack.c.bf16 %v268_v18, %v267_v17  ;;  %v611_v50 = vpack.c.bf16 %v503_v48, %v499_v47  ;;  %v620_v16 = vpack.c.bf16 %v524_v14, %v520_v13  ;;  %v522_v17 = vld [vmem:[%s2007_s7 + $0x210] sm:$0xff]  ;;  %v549_v45 = vld [vmem:[%s2007_s7 + $0x2e8] sm:$0xff]  ;;  %v547_v46 = vld [vmem:[%s2007_s7 + $0x2d8] sm:$0xff] }
 0x208   :  { %v301_v25 = vpack.c.bf16 %v266_v22, %v265_v21  ;;  %v526_v18 = vld [vmem:[%s2007_s7 + $0x230] sm:$0xff]  ;;  %v533_v21 = vld [vmem:[%s2007_s7 + $0x268] sm:$0xff]  ;;  %v531_v22 = vld [vmem:[%s2007_s7 + $0x258] sm:$0xff] }
 0x209   :  { %v622_v19 = vpack.c.bf16 %v526_v18, %v522_v17  ;;  %691 = vmatpush1.bf16.msra.mxu1 %v620_v16  ;;  %v542_v42 = vld [vmem:[%s2007_s7 + $0x2b0] sm:$0xff]  ;;  %v551_v48 = vld [vmem:[%s2007_s7 + $0x2f8] sm:$0xff]  ;;  %v565_v5 = vld [vmem:[%s2007_s7 + $0x368] sm:$0xff] }
 0x20a   :  { %364 = vmatmul.mubr.bf16.vlgmr.msra.gmra.mrb[0].mxu0 %v301_v25  ;;  %v528_v25 = vld [vmem:[%s2007_s7 + $0x240] sm:$0xff]  ;;  %v635_v51 = vpack.c.bf16 %v551_v48, %v547_v46  ;;  %v563_v6 = vld [vmem:[%s2007_s7 + $0x358] sm:$0xff]  ;;  %v562_v13 = vld [vmem:[%s2007_s7 + $0x350] sm:$0xff] }
 0x20b   :  { %373 = vmatprep.mubr.bf16.mxu0 %v1168_v38  ;;  %728 = vmatpush1.bf16.msra.mxu0 %v590_v24  ;;  %v487_v38 = vld [vmem:[%s2007_s7 + $0xf8] sm:$0xff]  ;;  %v560_v9 = vld [vmem:[%s2007_s7 + $0x340] sm:$0xff]  ;;  %v566_v14 = vld [vmem:[%s2007_s7 + $0x370] sm:$0xff] }
 0x20c   :  { %729 = vmatprep.subr.bf16.mxu0 %v595_v26  ;;  %v603_v37 = vpack.c.bf16 %v487_v38, %v483_v35  ;;  %v535_v24 = vld [vmem:[%s2007_s7 + $0x278] sm:$0xff]  ;;  %v532_v26 = vld [vmem:[%s2007_s7 + $0x260] sm:$0xff]  ;;  %v569_v16 = vld [vmem:[%s2007_s7 + $0x388] sm:$0xff] }
 0x20d   :  { %v627_v27 = vpack.c.bf16 %v535_v24, %v531_v22  ;;  %v624_v28 = vpack.c.bf16 %v532_v26, %v528_v25  ;;  %v543_v38 = vld [vmem:[%s2007_s7 + $0x2b8] sm:$0xff]  ;;  %v564_v10 = vld [vmem:[%s2007_s7 + $0x360] sm:$0xff]  ;;  %v573_v17 = vld [vmem:[%s2007_s7 + $0x3a8] sm:$0xff] }
 0x20e   :  { %v631_v39 = vpack.c.bf16 %v543_v38, %v539_v34  ;;  %v567_v8 = vld [vmem:[%s2007_s7 + $0x378] sm:$0xff]  ;;  %v640_v12 = vpack.c.bf16 %v564_v10, %v560_v9  ;;  %v572_v22 = vld [vmem:[%s2007_s7 + $0x3a0] sm:$0xff]  ;;  %v570_v25 = vld [vmem:[%s2007_s7 + $0x390] sm:$0xff] }
 0x20f   :  { %730 = vmatpush1.bf16.msra.mxu0 %v594_v31  ;;  %v626_v31 = vpack.c.bf16 %v534_v30, %v530_v29  ;;  %v643_v11 = vpack.c.bf16 %v567_v8, %v563_v6  ;;  %v571_v18 = vld [vmem:[%s2007_s7 + $0x398] sm:$0xff]  ;;  %v574_v26 = vld [vmem:[%s2007_s7 + $0x3b0] sm:$0xff]  ;;  %v581_v29 = vld [vmem:[%s2007_s7 + $0x3e8] sm:$0xff] }
 0x210   :  { %731 = vmatprep.subr.bf16.mxu0 %v599_v32  ;;  %v537_v32 = vld [vmem:[%s2007_s7 + $0x288] sm:$0xff]  ;;  %v579_v30 = vld [vmem:[%s2007_s7 + $0x3d8] sm:$0xff]  ;;  %v580_v34 = vld [vmem:[%s2007_s7 + $0x3e0] sm:$0xff] }
 0x211   :  { %v629_v35 = vpack.c.bf16 %v541_v33, %v537_v32  ;;  %v583_v32 = vld [vmem:[%s2007_s7 + $0x3f8] sm:$0xff]  ;;  %v576_v33 = vld [vmem:[%s2007_s7 + $0x3c0] sm:$0xff] }
 0x212   :  { %374 = vmatmul.mubr.bf16.gmra.mrb[4].mxu0 %v302_v23  ;;  %v625_v23 = vpack.c.bf16 %v533_v21, %v529_v20  ;;  %v575_v20 = vld [vmem:[%s2007_s7 + $0x3b8] sm:$0xff]  ;;  %v568_v21 = vld [vmem:[%s2007_s7 + $0x380] sm:$0xff]  ;;  %v648_v38 = vpack.c.bf16 %v580_v34, %v576_v33 }
 0x213   :  { %732 = vmatpush1.bf16.msra.mxu0 %v598_v36  ;;  %v536_v36 = vld [vmem:[%s2007_s7 + $0x280] sm:$0xff]  ;;  %v644_v24 = vpack.c.bf16 %v572_v22, %v568_v21 }
 0x214   :  { %733 = vmatprep.subr.bf16.mxu0 %v603_v37  ;;  %692 = vmatprep.subr.bf16.mxu1 %v625_v23  ;;  %v540_v37 = vld [vmem:[%s2007_s7 + $0x2a0] sm:$0xff]  ;;  %v647_v23 = vpack.c.bf16 %v575_v20, %v571_v18 }
 0x215   :  { %693 = vmatpush1.bf16.msra.mxu1 %v624_v28  ;;  %v628_v40 = vpack.c.bf16 %v540_v37, %v536_v36  ;;  %v577_v28 = vld [vmem:[%s2007_s7 + $0x3c8] sm:$0xff]  ;;  %v578_v36 = vld [vmem:[%s2007_s7 + $0x3d0] sm:$0xff] }
 0x216   :  { %694 = vmatprep.subr.bf16.mxu1 %v629_v35  ;;  %v651_v35 = vpack.c.bf16 %v583_v32, %v579_v30  ;;  %v582_v37 = vld [vmem:[%s2007_s7 + $0x3f0] sm:$0xff] }
 0x217   :  { %734 = vmatpush1.bf16.msra.mxu0 %v602_v43  ;;  %v630_v43 = vpack.c.bf16 %v542_v42, %v538_v41 }
 0x218   :  { %735 = vmatprep.subr.bf16.mxu0 %v607_v44  ;;  %v545_v44 = vld [vmem:[%s2007_s7 + $0x2c8] sm:$0xff] }
 0x219   :  { %695 = vmatpush1.bf16.msra.mxu1 %v628_v40  ;;  %v633_v47 = vpack.c.bf16 %v549_v45, %v545_v44  ;;  %v321_v40 = vlaneseq }
 0x21b   :  { %736 = vmatpush1.bf16.msra.mxu0 %v606_v49  ;;  %v544_v49 = vld [vmem:[%s2007_s7 + $0x2c0] sm:$0xff]  ;;  %696 = vmatprep.subr.bf16.mxu1 %v633_v47  ;;  %v1764_v41 = vshrl.u32 %v321_v40, 7 }
 0x21c   :  { %737 = vmatprep.subr.bf16.mxu0 %v611_v50  ;;  %v548_v50 = vld [vmem:[%s2007_s7 + $0x2e0] sm:$0xff] }
 0x21d   :  { %v632_v52 = vpack.c.bf16 %v548_v50, %v544_v49  ;;  %v323_v42 = vsub.s32 0, %v1764_v41  ;;  %v327_v44 = vsub.s32 1, %v1764_v41 }
 0x21f   :  { %738 = vmatpush1.bf16.msra.mxu0 %v610_v55  ;;  %v634_v55 = vpack.c.bf16 %v550_v54, %v546_v53  ;;  %697 = vmatpush1.bf16.msra.mxu1 %v632_v52 }
 0x220   :  { %739 = vmatprep.subr.bf16.mxu0 %v615_v56  ;;  %v553_v56 = vld [vmem:[%s2007_s7 + $0x308] sm:$0xff] }
 0x223   :  { %740 = vmatpush1.bf16.msra.mxu0 %v614_v59  ;;  %v637_v59 = vpack.c.bf16 %v557_v57, %v553_v56 }
 0x224   :  { %741 = vmatprep.subr.bf16.mxu0 %v619_v3  ;;  %v638_v3 = vpack.c.bf16 %v558_v2, %v554_v1 }
 0x225   :  { %698 = vmatprep.subr.bf16.mxu1 %v637_v59 }
 0x226   :  { %699 = vmatpush1.bf16.msra.mxu1 %v636_v0 }
 0x227   :  { %742 = vmatpush1.bf16.msra.mxu0 %v618_v7  ;;  %v641_v7 = vpack.c.bf16 %v565_v5, %v561_v4 }
 0x228   :  { %743 = vmatprep.subr.bf16.mxu0 %v623_v15  ;;  %v642_v15 = vpack.c.bf16 %v566_v14, %v562_v13 }
 0x229   :  { %700 = vmatprep.subr.bf16.mxu1 %v641_v7 }
 0x22a   :  { %701 = vmatpush1.bf16.msra.mxu1 %v640_v12 }
 0x22b   :  { %744 = vmatpush1.bf16.msra.mxu0 %v622_v19  ;;  %v645_v19 = vpack.c.bf16 %v573_v17, %v569_v16 }
 0x22c   :  { %745 = vmatprep.subr.bf16.mxu0 %v627_v27  ;;  %v646_v27 = vpack.c.bf16 %v574_v26, %v570_v25 }
 0x22d   :  { %702 = vmatprep.subr.bf16.mxu1 %v645_v19 }
 0x22e   :  { %703 = vmatpush1.bf16.msra.mxu1 %v644_v24 }
 0x22f   :  { %746 = vmatpush1.bf16.msra.mxu0 %v626_v31  ;;  %v649_v31 = vpack.c.bf16 %v581_v29, %v577_v28 }
 0x230   :  { %747 = vmatprep.subr.bf16.mxu0 %v631_v39  ;;  %v650_v39 = vpack.c.bf16 %v582_v37, %v578_v36 }
 0x231   :  { %704 = vmatprep.subr.bf16.mxu1 %v649_v31 }
 0x232   :  { %705 = vmatpush1.bf16.msra.mxu1 %v648_v38 }
 0x233   :  { %748 = vmatpush1.bf16.msra.mxu0 %v630_v43  ;;  %v319_v43 = vld [vmem:[%s2006_s6] sm:$0x3] }
 0x234   :  { %749 = vmatprep.subr.bf16.mxu0 %v635_v51  ;;  %v324_v45 = vrot.slane %v319_v43, %v323_v42  ;;  %v328_v46 = vrot.slane %v319_v43, %v327_v44 }
 0x237   :  { %750 = vmatpush1.bf16.msra.mxu0 %v634_v55 }
 0x238   :  { %751 = vmatprep.subr.bf16.mxu0 %v639_v63 }
 0x23b   :  { %752 = vmatpush1.bf16.msra.mxu0 %v638_v3 }
 0x23c   :  { %753 = vmatprep.subr.bf16.mxu0 %v643_v11 }
 0x23f   :  { %754 = vmatpush1.bf16.msra.mxu0 %v642_v15 }
 0x240   :  { %755 = vmatprep.subr.bf16.mxu0 %v647_v23 }
 0x243   :  { %756 = vmatpush1.bf16.msra.mxu0 %v646_v27 }
 0x244   :  { %757 = vmatprep.subr.bf16.mxu0 %v651_v35 }
 0x247   :  { %758 = vmatpush1.bf16.msra.mxu0 %v650_v39 }
 0x2dd   :  { %v365_v47 = vpop.f32.mrb[0].mxu0 }
 0x2de   :  { %v1775_v48 = vadd.f32 %v365_v47, %v324_v45  ;;  %v367_v49 = vpop.f32.mrb[1].mxu0 }
 0x2df   :  { %v1777_v50 = vadd.f32 %v367_v49, %v328_v46  ;;  %v369_v51 = vpop.f32.mrb[2].mxu0 }
 0x2e0   :  { %v384_v52 = vmul.f32 %v1775_v48, %v1775_v48  ;;  %v1781_v53 = vadd.f32 %v369_v51, %v324_v45  ;;  %v371_v54 = vpop.f32.mrb[3].mxu0 }
 0x2e1   :  { %v385_v55 = vmul.f32 %v1777_v50, %v1777_v50  ;;  %v1785_v56 = vadd.f32 %v371_v54, %v328_v46 }
 0x2e2   :  { %v392_v57 = vmul.f32 %v384_v52, %v1775_v48  ;;  %v386_v58 = vmul.f32 %v1781_v53, %v1781_v53 }
 0x2e3   :  { %v393_v59 = vmul.f32 %v385_v55, %v1777_v50  ;;  %v387_v60 = vmul.f32 %v1785_v56, %v1785_v56 }
 0x2e4   :  { %v400_v61 = vmul.f32 0.044715, %v392_v57  ;;  %v394_v62 = vmul.f32 %v386_v58, %v1781_v53 }
 0x2e5   :  { %v401_v63 = vmul.f32 0.044715, %v393_v59  ;;  %v395_v0 = vmul.f32 %v387_v60, %v1785_v56  ;;  %v375_v1 = vpop.f32.mrb[4].mxu0 }
 0x2e6   :  { %v408_v2 = vadd.f32 %v400_v61, %v1775_v48  ;;  %v402_v3 = vmul.f32 0.044715, %v394_v62  ;;  %v1796_v4 = vadd.f32 %v375_v1, %v324_v45  ;;  %v377_v5 = vpop.f32.mrb[5].mxu0 }
 0x2e7   :  { %v409_v6 = vadd.f32 %v401_v63, %v1777_v50  ;;  %v403_v7 = vmul.f32 0.044715, %v395_v0  ;;  %v1799_v8 = vadd.f32 %v377_v5, %v328_v46  ;;  %v379_v9 = vpop.f32.mrb[6].mxu0 }
 0x2e8   :  { %v416_v10 = vmul.f32 0.7978846, %v408_v2  ;;  %v410_v11 = vadd.f32 %v402_v3, %v1781_v53  ;;  %v388_v12 = vmul.f32 %v1796_v4, %v1796_v4  ;;  %v1804_v13 = vadd.f32 %v379_v9, %v324_v45  ;;  %v381_v14 = vpop.f32.mrb[7].mxu0 }
 0x2e9   :  { %v417_v15 = vmul.f32 0.7978846, %v409_v6  ;;  %v411_v16 = vadd.f32 %v403_v7, %v1785_v56  ;;  %v389_v17 = vmul.f32 %v1799_v8, %v1799_v8  ;;  %v1809_v18 = vadd.f32 %v381_v14, %v328_v46 }
 0x2ea   :  { %1063 = vtanh.f32 %v416_v10  ;;  %v418_v19 = vmul.f32 0.7978846, %v410_v11  ;;  %v396_v20 = vmul.f32 %v388_v12, %v1796_v4  ;;  %v390_v21 = vmul.f32 %v1804_v13, %v1804_v13 }
 0x2eb   :  { %1065 = vtanh.f32 %v417_v15  ;;  %v419_v22 = vmul.f32 0.7978846, %v411_v16  ;;  %v397_v23 = vmul.f32 %v389_v17, %v1799_v8  ;;  %v391_v24 = vmul.f32 %v1809_v18, %v1809_v18 }
 0x2ec   :  { %1067 = vtanh.f32 %v418_v19  ;;  %v404_v25 = vmul.f32 0.044715, %v396_v20  ;;  %v398_v26 = vmul.f32 %v390_v21, %v1804_v13  ;;  %v664_v17 = vsub.s32 2, %v1764_v41  ;;  %v652_v19 = vld [vmem:[%s2008_s8] sm:$0xf] }
 0x2ed   :  { %1069 = vtanh.f32 %v419_v22  ;;  %v405_v27 = vmul.f32 0.044715, %v397_v23  ;;  %v399_v28 = vmul.f32 %v391_v24, %v1809_v18 }
 0x2ee   :  { %v412_v29 = vadd.f32 %v404_v25, %v1796_v4  ;;  %v406_v30 = vmul.f32 0.044715, %v398_v26 }
 0x2ef   :  { %v413_v31 = vadd.f32 %v405_v27, %v1799_v8  ;;  %v407_v32 = vmul.f32 0.044715, %v399_v28 }
 0x2f0   :  { %v420_v33 = vmul.f32 0.7978846, %v412_v29  ;;  %v414_v34 = vadd.f32 %v406_v30, %v1804_v13 }
 0x2f1   :  { %v421_v35 = vmul.f32 0.7978846, %v413_v31  ;;  %v415_v38 = vadd.f32 %v407_v32, %v1809_v18 }
 0x2f2   :  { %1071 = vtanh.f32 %v420_v33  ;;  %v422_v36 = vmul.f32 0.7978846, %v414_v34 }
 0x2f3   :  { %1073 = vtanh.f32 %v421_v35  ;;  %v423_v37 = vmul.f32 0.7978846, %v415_v38 }
 0x2f4   :  { %v1064_v39 = vpop.eup %1063  ;;  %1075 = vtanh.f32 %v422_v36 }
 0x2f5   :  { %v1066_v40 = vpop.eup %1065  ;;  %v432_v43 = vadd.f32 1.0, %v1064_v39  ;;  %1077 = vtanh.f32 %v423_v37 }
 0x2f6   :  { %v1068_v45 = vpop.eup %1067  ;;  %v433_v46 = vadd.f32 1.0, %v1066_v40 }
 0x2f7   :  { %v1070_v47 = vpop.eup %1069  ;;  %v440_v49 = vmul.f32 0.5, %v432_v43  ;;  %v434_v51 = vadd.f32 1.0, %v1068_v45 }
 0x2f8   :  { %v435_v52 = vadd.f32 1.0, %v1070_v47  ;;  %v441_v54 = vmul.f32 0.5, %v433_v46 }
 0x2f9   :  { %v442_v55 = vmul.f32 0.5, %v434_v51  ;;  %v448_v58 = vmul.f32 %v440_v49, %v1775_v48 }
 0x2fa   :  { %v443_v57 = vmul.f32 0.5, %v435_v52  ;;  %v449_v61 = vmul.f32 %v441_v54, %v1777_v50 }
 0x2fb   :  { %v450_v59 = vmul.f32 %v442_v55, %v1781_v53 }
 0x2fc   :  { %v1072_v60 = vpop.eup %1071  ;;  %v451_v62 = vmul.f32 %v443_v57, %v1785_v56 }
 0x2fd   :  { %v1074_v63 = vpop.eup %1073  ;;  %v584_v0 = vpack.c.bf16 %v450_v59, %v448_v58  ;;  %v436_v1 = vadd.f32 1.0, %v1072_v60 }
 0x2fe   :  { %v1076_v2 = vpop.eup %1075  ;;  %v585_v3 = vpack.c.bf16 %v451_v62, %v449_v61  ;;  %v437_v5 = vadd.f32 1.0, %v1074_v63 }
 0x2ff   :  { %v1078_v6 = vpop.eup %1077  ;;  %v438_v7 = vadd.f32 1.0, %v1076_v2  ;;  %v444_v9 = vmul.f32 0.5, %v436_v1 }
 0x300   :  { %706 = vmatprep.mubr.bf16.mxu1 %v585_v3  ;;  %759 = vmatprep.mubr.bf16.mxu0 %v585_v3  ;;  %v439_v10 = vadd.f32 1.0, %v1078_v6  ;;  %v445_v48 = vmul.f32 0.5, %v437_v5 }
 0x301   :  { %707 = vmatmul.mubr.bf16.vlgmr.msra.gmra.mrb[8].mxu1 %v584_v0  ;;  %760 = vmatmul.mubr.bf16.vlgmr.msra.gmra.mrb[8].mxu0 %v584_v0  ;;  %v446_v53 = vmul.f32 0.5, %v438_v7  ;;  %v452_v50 = vmul.f32 %v444_v9, %v1796_v4  ;;  %v668_v4 = vsub.s32 3, %v1764_v41 }
 0x302   :  { %v447_v11 = vmul.f32 0.5, %v439_v10  ;;  %v453_v12 = vmul.f32 %v445_v48, %v1799_v8  ;;  %v1840_v8 = vrot.slane %v652_v19, %v664_v17 }
 0x303   :  { %v454_v56 = vmul.f32 %v446_v53, %v1804_v13  ;;  %v1838_v13 = vrot.slane %v652_v19, %v323_v42  ;;  %v1846_v20 = vrot.slane %v652_v19, %v668_v4 }
 0x304   :  { %v455_v14 = vmul.f32 %v447_v11, %v1809_v18  ;;  %v1844_v18 = vrot.slane %v652_v19, %v327_v44 }
 0x305   :  { %v586_v15 = vpack.c.bf16 %v454_v56, %v452_v50 }
 0x306   :  { %v587_v16 = vpack.c.bf16 %v455_v14, %v453_v12 }
 0x308   :  { %716 = vmatprep.mubr.bf16.mxu1 %v587_v16  ;;  %769 = vmatprep.mubr.bf16.mxu0 %v587_v16 }
 0x309   :  { %717 = vmatmul.mubr.bf16.gmra.mrb[12].mxu1 %v586_v15  ;;  %770 = vmatmul.mubr.bf16.gmra.mrb[12].mxu0 %v586_v15 }
 0x3d4   :  { %v708_v21 = vpop.f32.mrb[8].mxu1  ;;  %v761_v22 = vpop.f32.mrb[8].mxu0 }
 0x3d5   :  { %v1849_v23 = vadd.f32 %v708_v21, %v1838_v13  ;;  %v1852_v24 = vadd.f32 %v761_v22, %v1840_v8  ;;  %v710_v25 = vpop.f32.mrb[9].mxu1  ;;  %v763_v26 = vpop.f32.mrb[9].mxu0 }
 0x3d6   :  { %v1855_v42 = vadd.f32 %v710_v25, %v1844_v18  ;;  %v1858_v27 = vadd.f32 %v763_v26, %v1846_v20  ;;  %v712_v41 = vpop.f32.mrb[10].mxu1  ;;  %v765_v44 = vpop.f32.mrb[10].mxu0 }
 0x3d7   :  { %v780_v28 = vmul.f32 %v1849_v23, %v1849_v23  ;;  %v852_v29 = vmul.f32 %v1852_v24, %v1852_v24  ;;  %v1865_v30 = vadd.f32 %v712_v41, %v1838_v13  ;;  %v1868_v31 = vadd.f32 %v765_v44, %v1840_v8  ;;  %v714_v32 = vpop.f32.mrb[11].mxu1  ;;  %v767_v33 = vpop.f32.mrb[11].mxu0 }
 0x3d8   :  { %v781_v34 = vmul.f32 %v1855_v42, %v1855_v42  ;;  %v853_v35 = vmul.f32 %v1858_v27, %v1858_v27  ;;  %v1875_v38 = vadd.f32 %v714_v32, %v1844_v18  ;;  %v1878_v36 = vadd.f32 %v767_v33, %v1846_v20 }
 0x3d9   :  { %v788_v37 = vmul.f32 %v780_v28, %v1849_v23  ;;  %v860_v39 = vmul.f32 %v852_v29, %v1852_v24  ;;  %v782_v40 = vmul.f32 %v1865_v30, %v1865_v30  ;;  %v854_v43 = vmul.f32 %v1868_v31, %v1868_v31 }
 0x3da   :  { %v789_v45 = vmul.f32 %v781_v34, %v1855_v42  ;;  %v861_v46 = vmul.f32 %v853_v35, %v1858_v27  ;;  %v783_v47 = vmul.f32 %v1875_v38, %v1875_v38  ;;  %v855_v49 = vmul.f32 %v1878_v36, %v1878_v36 }
 0x3db   :  { %v796_v51 = vmul.f32 0.044715, %v788_v37  ;;  %v868_v52 = vmul.f32 0.044715, %v860_v39  ;;  %v790_v54 = vmul.f32 %v782_v40, %v1865_v30  ;;  %v862_v55 = vmul.f32 %v854_v43, %v1868_v31 }
 0x3dc   :  { %v797_v57 = vmul.f32 0.044715, %v789_v45  ;;  %v869_v58 = vmul.f32 0.044715, %v861_v46  ;;  %v791_v59 = vmul.f32 %v783_v47, %v1875_v38  ;;  %v863_v60 = vmul.f32 %v855_v49, %v1878_v36  ;;  %v718_v61 = vpop.f32.mrb[12].mxu1  ;;  %v771_v62 = vpop.f32.mrb[12].mxu0 }
 0x3dd   :  { %v804_v63 = vadd.f32 %v796_v51, %v1849_v23  ;;  %v876_v0 = vadd.f32 %v868_v52, %v1852_v24  ;;  %v798_v1 = vmul.f32 0.044715, %v790_v54  ;;  %v870_v2 = vmul.f32 0.044715, %v862_v55  ;;  %v720_v3 = vpop.f32.mrb[13].mxu1  ;;  %v773_v5 = vpop.f32.mrb[13].mxu0 }
 0x3de   :  { %v805_v6 = vadd.f32 %v797_v57, %v1855_v42  ;;  %v877_v7 = vadd.f32 %v869_v58, %v1858_v27  ;;  %v799_v9 = vmul.f32 0.044715, %v791_v59  ;;  %v871_v10 = vmul.f32 0.044715, %v863_v60  ;;  %v722_v48 = vpop.f32.mrb[14].mxu1  ;;  %v775_v53 = vpop.f32.mrb[14].mxu0 }
 0x3df   :  { %v812_v11 = vmul.f32 0.7978846, %v804_v63  ;;  %v884_v50 = vmul.f32 0.7978846, %v876_v0  ;;  %v806_v56 = vadd.f32 %v798_v1, %v1865_v30  ;;  %v878_v12 = vadd.f32 %v870_v2, %v1868_v31  ;;  %v724_v14 = vpop.f32.mrb[15].mxu1  ;;  %v777_v15 = vpop.f32.mrb[15].mxu0 }
 0x3e0   :  { %v813_v16 = vmul.f32 0.7978846, %v805_v6  ;;  %v885_v17 = vmul.f32 0.7978846, %v877_v7  ;;  %v807_v19 = vadd.f32 %v799_v9, %v1875_v38  ;;  %v879_v4 = vadd.f32 %v871_v10, %v1878_v36 }
 0x3e1   :  { %1079 = vtanh.f32 %v812_v11  ;;  %v814_v21 = vmul.f32 0.7978846, %v806_v56  ;;  %v886_v22 = vmul.f32 0.7978846, %v878_v12  ;;  %v1905_v25 = vadd.f32 %v718_v61, %v1838_v13 }
 0x3e2   :  { %1081 = vtanh.f32 %v884_v50  ;;  %v815_v26 = vmul.f32 0.7978846, %v807_v19  ;;  %v887_v41 = vmul.f32 0.7978846, %v879_v4  ;;  %v1908_v44 = vadd.f32 %v771_v62, %v1840_v8 }
 0x3e3   :  { %1083 = vtanh.f32 %v813_v16  ;;  %v784_v28 = vmul.f32 %v1905_v25, %v1905_v25  ;;  %v1913_v29 = vadd.f32 %v720_v3, %v1844_v18  ;;  %v1916_v32 = vadd.f32 %v773_v5, %v1846_v20 }
 0x3e4   :  { %1085 = vtanh.f32 %v885_v17  ;;  %v856_v33 = vmul.f32 %v1908_v44, %v1908_v44  ;;  %v1921_v34 = vadd.f32 %v722_v48, %v1838_v13  ;;  %v1924_v35 = vadd.f32 %v775_v53, %v1840_v8 }
 0x3e5   :  { %1087 = vtanh.f32 %v814_v21  ;;  %v792_v37 = vmul.f32 %v784_v28, %v1905_v25  ;;  %v785_v39 = vmul.f32 %v1913_v29, %v1913_v29  ;;  %v857_v40 = vmul.f32 %v1916_v32, %v1916_v32 }
 0x3e6   :  { %1089 = vtanh.f32 %v886_v22  ;;  %v864_v43 = vmul.f32 %v856_v33, %v1908_v44  ;;  %v786_v45 = vmul.f32 %v1921_v34, %v1921_v34  ;;  %v858_v13 = vmul.f32 %v1924_v35, %v1924_v35 }
 0x3e7   :  { %1091 = vtanh.f32 %v815_v26  ;;  %v800_v8 = vmul.f32 0.044715, %v792_v37  ;;  %v793_v46 = vmul.f32 %v785_v39, %v1913_v29  ;;  %v865_v47 = vmul.f32 %v857_v40, %v1916_v32 }
 0x3e8   :  { %1093 = vtanh.f32 %v887_v41  ;;  %v872_v49 = vmul.f32 0.044715, %v864_v43  ;;  %v794_v51 = vmul.f32 %v786_v45, %v1921_v34  ;;  %v866_v52 = vmul.f32 %v858_v13, %v1924_v35 }
 0x3e9   :  { %v808_v54 = vadd.f32 %v800_v8, %v1905_v25  ;;  %v801_v55 = vmul.f32 0.044715, %v793_v46  ;;  %v873_v57 = vmul.f32 0.044715, %v865_v47  ;;  %v1942_v58 = vadd.f32 %v724_v14, %v1844_v18 }
 0x3ea   :  { %v880_v59 = vadd.f32 %v872_v49, %v1908_v44  ;;  %v802_v60 = vmul.f32 0.044715, %v794_v51  ;;  %v874_v61 = vmul.f32 0.044715, %v866_v52  ;;  %v1946_v62 = vadd.f32 %v777_v15, %v1846_v20 }
 0x3eb   :  { %v1080_v63 = vpop.eup %1079  ;;  %v816_v0 = vmul.f32 0.7978846, %v808_v54  ;;  %v809_v1 = vadd.f32 %v801_v55, %v1913_v29  ;;  %v881_v2 = vadd.f32 %v873_v57, %v1916_v32  ;;  %v787_v3 = vmul.f32 %v1942_v58, %v1942_v58 }
 0x3ec   :  { %v1082_v5 = vpop.eup %1081  ;;  %v828_v6 = vadd.f32 1.0, %v1080_v63  ;;  %v888_v18 = vmul.f32 0.7978846, %v880_v59  ;;  %v810_v7 = vadd.f32 %v802_v60, %v1921_v34  ;;  %v882_v9 = vadd.f32 %v874_v61, %v1924_v35 }
 0x3ed   :  { %v1084_v10 = vpop.eup %1083  ;;  %v900_v48 = vadd.f32 1.0, %v1082_v5  ;;  %1095 = vtanh.f32 %v816_v0  ;;  %v817_v20 = vmul.f32 0.7978846, %v809_v1  ;;  %v889_v53 = vmul.f32 0.7978846, %v881_v2 }
 0x3ee   :  { %v1086_v11 = vpop.eup %1085  ;;  %v836_v50 = vmul.f32 0.5, %v828_v6  ;;  %v829_v56 = vadd.f32 1.0, %v1084_v10  ;;  %1097 = vtanh.f32 %v888_v18  ;;  %v818_v12 = vmul.f32 0.7978846, %v810_v7 }
 0x3ef   :  { %v1088_v14 = vpop.eup %1087  ;;  %v908_v15 = vmul.f32 0.5, %v900_v48  ;;  %v901_v16 = vadd.f32 1.0, %v1086_v11  ;;  %1099 = vtanh.f32 %v817_v20  ;;  %v890_v17 = vmul.f32 0.7978846, %v882_v9 }
 0x3f0   :  { %v1090_v19 = vpop.eup %1089  ;;  %v844_v4 = vmul.f32 %v836_v50, %v1849_v23  ;;  %v837_v21 = vmul.f32 0.5, %v829_v56  ;;  %v830_v22 = vadd.f32 1.0, %v1088_v14  ;;  %1101 = vtanh.f32 %v889_v53 }
 0x3f1   :  { %v1092_v26 = vpop.eup %1091  ;;  %v916_v41 = vmul.f32 %v908_v15, %v1852_v24  ;;  %v909_v28 = vmul.f32 0.5, %v901_v16  ;;  %v902_v33 = vadd.f32 1.0, %v1090_v19  ;;  %1103 = vtanh.f32 %v818_v12 }
 0x3f2   :  { %v1094_v37 = vpop.eup %1093  ;;  %v845_v39 = vmul.f32 %v837_v21, %v1855_v42  ;;  %v838_v40 = vmul.f32 0.5, %v830_v22  ;;  %v831_v43 = vadd.f32 1.0, %v1092_v26  ;;  %1105 = vtanh.f32 %v890_v17 }
 0x3f3   :  { %v924_v45 = vadd.f32 %v916_v41, %v844_v4  ;;  %v917_v13 = vmul.f32 %v909_v28, %v1858_v27  ;;  %v910_v8 = vmul.f32 0.5, %v902_v33  ;;  %v903_v23 = vadd.f32 1.0, %v1094_v37 }
 0x3f4   :  { %v846_v46 = vmul.f32 %v838_v40, %v1865_v30  ;;  %v839_v47 = vmul.f32 0.5, %v831_v43  ;;  %v795_v49 = vmul.f32 %v787_v3, %v1942_v58  ;;  %v859_v24 = vmul.f32 %v1946_v62, %v1946_v62 }
 0x3f5   :  { %v1007_v51 = vmul.f32 -0.5, %v924_v45  ;;  %v925_v52 = vadd.f32 %v917_v13, %v845_v39  ;;  %v918_v42 = vmul.f32 %v910_v8, %v1868_v31  ;;  %v911_v54 = vmul.f32 0.5, %v903_v23 }
 0x3f6   :  { %v847_v55 = vmul.f32 %v839_v47, %v1875_v38  ;;  %v803_v57 = vmul.f32 0.044715, %v795_v49  ;;  %v867_v27 = vmul.f32 %v859_v24, %v1946_v62 }
 0x3f7   :  { %v1096_v59 = vpop.eup %1095  ;;  %v948_v60 = vmul.f32 1.442695, %v1007_v51  ;;  %v1008_v61 = vmul.f32 -0.5, %v925_v52  ;;  %v926_v30 = vadd.f32 %v918_v42, %v846_v46  ;;  %v919_v63 = vmul.f32 %v911_v54, %v1878_v36 }
 0x3f8   :  { %v1098_v0 = vpop.eup %1097  ;;  %v832_v1 = vadd.f32 1.0, %v1096_v59  ;;  %v811_v2 = vadd.f32 %v803_v57, %v1942_v58  ;;  %v875_v3 = vmul.f32 0.044715, %v867_v27 }
 0x3f9   :  { %v1100_v5 = vpop.eup %1099  ;;  %1107 = vpow2.f32 %v948_v60  ;;  %v950_v31 = vmul.f32 1.442695, %v1008_v61  ;;  %v1009_v6 = vmul.f32 -0.5, %v926_v30  ;;  %v927_v18 = vadd.f32 %v919_v63, %v847_v55 }
 0x3fa   :  { %v1102_v38 = vpop.eup %1101  ;;  %v840_v7 = vmul.f32 0.5, %v832_v1  ;;  %v904_v9 = vadd.f32 1.0, %v1098_v0  ;;  %v833_v10 = vadd.f32 1.0, %v1100_v5  ;;  %v819_v48 = vmul.f32 0.7978846, %v811_v2 }
 0x3fb   :  { %v1104_v20 = vpop.eup %1103  ;;  %1109 = vpow2.f32 %v950_v31  ;;  %v952_v53 = vmul.f32 1.442695, %v1009_v6  ;;  %v1010_v11 = vmul.f32 -0.5, %v927_v18  ;;  %v905_v36 = vadd.f32 1.0, %v1102_v38 }
 0x3fc   :  { %v1106_v50 = vpop.eup %1105  ;;  %v848_v56 = vmul.f32 %v840_v7, %v1905_v25  ;;  %v912_v12 = vmul.f32 0.5, %v904_v9  ;;  %v841_v14 = vmul.f32 0.5, %v833_v10  ;;  %v834_v15 = vadd.f32 1.0, %v1104_v20 }
 0x3fd   :  { %1111 = vpow2.f32 %v952_v53  ;;  %v954_v16 = vmul.f32 1.442695, %v1010_v11  ;;  %v913_v17 = vmul.f32 0.5, %v905_v36  ;;  %v906_v19 = vadd.f32 1.0, %v1106_v50 }
 0x3fe   :  { %v920_v4 = vmul.f32 %v912_v12, %v1908_v44  ;;  %v849_v21 = vmul.f32 %v841_v14, %v1913_v29  ;;  %v842_v22 = vmul.f32 0.5, %v834_v15  ;;  %1113 = vtanh.f32 %v819_v48 }
 0x3ff   :  { %1115 = vpow2.f32 %v954_v16  ;;  %v921_v26 = vmul.f32 %v913_v17, %v1916_v32  ;;  %v914_v41 = vmul.f32 0.5, %v906_v19  ;;  %v883_v28 = vadd.f32 %v875_v3, %v1946_v62 }
 0x400   :  { %v928_v25 = vadd.f32 %v920_v4, %v848_v56  ;;  %v850_v33 = vmul.f32 %v842_v22, %v1921_v34 }
 0x401   :  { %v929_v37 = vadd.f32 %v921_v26, %v849_v21  ;;  %v922_v39 = vmul.f32 %v914_v41, %v1924_v35  ;;  %v891_v40 = vmul.f32 0.7978846, %v883_v28 }
 0x402   :  { %v1011_v43 = vmul.f32 -0.5, %v928_v25 }
 0x403   :  { %v1108_v45 = vpop.eup %1107  ;;  %v1012_v44 = vmul.f32 -0.5, %v929_v37  ;;  %v930_v13 = vadd.f32 %v922_v39, %v850_v33  ;;  %1117 = vtanh.f32 %v891_v40 }
 0x404   :  { %v964_v29 = vadd.f32 1.0, %v1108_v45  ;;  %v956_v8 = vmul.f32 1.442695, %v1011_v43 }
 0x405   :  { %v1110_v23 = vpop.eup %1109  ;;  %v958_v46 = vmul.f32 1.442695, %v1012_v44  ;;  %v1013_v32 = vmul.f32 -0.5, %v930_v13 }
 0x406   :  { %1119 = vrcp.f32 %v964_v29  ;;  %v965_v47 = vadd.f32 1.0, %v1110_v23 }
 0x407   :  { %v1112_v49 = vpop.eup %1111  ;;  %1121 = vpow2.f32 %v956_v8  ;;  %v960_v24 = vmul.f32 1.442695, %v1013_v32 }
 0x408   :  { %v1114_v34 = vpop.eup %1113  ;;  %1123 = vrcp.f32 %v965_v47  ;;  %v966_v51 = vadd.f32 1.0, %v1112_v49 }
 0x409   :  { %v1116_v35 = vpop.eup %1115  ;;  %1125 = vpow2.f32 %v958_v46  ;;  %v835_v52 = vadd.f32 1.0, %v1114_v34 }
 0x40a   :  { %1127 = vrcp.f32 %v966_v51  ;;  %v967_v42 = vadd.f32 1.0, %v1116_v35 }
 0x40b   :  { %1129 = vpow2.f32 %v960_v24  ;;  %v843_v54 = vmul.f32 0.5, %v835_v52 }
 0x40c   :  { %1131 = vrcp.f32 %v967_v42 }
 0x40d   :  { %v1118_v55 = vpop.eup %1117  ;;  %v851_v59 = vmul.f32 %v843_v54, %v1942_v58 }
 0x40e   :  { %v907_v57 = vadd.f32 1.0, %v1118_v55 }
 0x410   :  { %v1120_v27 = vpop.eup %1119  ;;  %v915_v60 = vmul.f32 0.5, %v907_v57 }
 0x411   :  { %v1122_v61 = vpop.eup %1121  ;;  %988 = vst [vmem:[%s2009_s9] sm:$0xff] %v1120_v27 }
 0x412   :  { %v1124_v30 = vpop.eup %1123  ;;  %v968_v63 = vadd.f32 1.0, %v1122_v61  ;;  %v923_v0 = vmul.f32 %v915_v60, %v1946_v62 }
 0x413   :  { %v1126_v1 = vpop.eup %1125  ;;  %989 = vst [vmem:[%s2009_s9 + $0x8] sm:$0xff] %v1124_v30 }
 0x414   :  { %v1128_v2 = vpop.eup %1127  ;;  %1133 = vrcp.f32 %v968_v63  ;;  %v969_v3 = vadd.f32 1.0, %v1126_v1  ;;  %v931_v5 = vadd.f32 %v923_v0, %v851_v59 }
 0x415   :  { %v1130_v58 = vpop.eup %1129  ;;  %990 = vst [vmem:[%s2009_s9 + $0x10] sm:$0xff] %v1128_v2 }
 0x416   :  { %v1132_v31 = vpop.eup %1131  ;;  %1135 = vrcp.f32 %v969_v3  ;;  %v970_v6 = vadd.f32 1.0, %v1130_v58  ;;  %v1014_v18 = vmul.f32 -0.5, %v931_v5 }
 0x417   :  { %991 = vst [vmem:[%s2009_s9 + $0x18] sm:$0xff] %v1132_v31 }
 0x418   :  { %1137 = vrcp.f32 %v970_v6  ;;  %v962_v62 = vmul.f32 1.442695, %v1014_v18 }
 0x41a   :  { %1139 = vpow2.f32 %v962_v62 }
 0x41e   :  { %v1134_v38 = vpop.eup %1133 }
 0x41f   :  { %992 = vst [vmem:[%s2009_s9 + $0x20] sm:$0xff] %v1134_v38 }
 0x420   :  { %v1136_v7 = vpop.eup %1135 }
 0x421   :  { %993 = vst [vmem:[%s2009_s9 + $0x28] sm:$0xff] %v1136_v7 }
 0x422   :  { %v1138_v9 = vpop.eup %1137 }
 0x423   :  { %994 = vst [vmem:[%s2009_s9 + $0x30] sm:$0xff] %v1138_v9 }
 0x424   :  { %v1140_v10 = vpop.eup %1139 }
 0x425   :  { %v971_v48 = vadd.f32 1.0, %v1140_v10 }
 0x427   :  { %1141 = vrcp.f32 %v971_v48 }
 0x431   :  { %v1142_v20 = vpop.eup %1141 }
 0x432   :  { %995 = vst [vmem:[%s2009_s9 + $0x38] sm:$0xff] %v1142_v20 }
 0x433   :  { %1000 = vsyncpa [#allocation3], 1 }

// kernel: generator_forward.12
= control target key start
LH: loop header
LB: loop body
LE: loop exit
PB: predicated region body
PF: predicated region fallthrough
CT: control target
= control target key end

     0   :  { %s2662_s29 = smov 0   ;;  %s3039_s0 = inlined_call_operand.vmem [shape: f32[2,16,32], index: 0, kind: input, shape index: {}]   ;;  %s3040_s1 = inlined_call_operand.vmem [shape: f32[2,16,32], index: 1, kind: input, shape index: {}]   ;;  %s3041_s2 = inlined_call_operand.vmem [shape: f32[2,16,32], index: 2, kind: input, shape index: {}]   ;;  %s3042_s3 = inlined_call_operand.vmem [shape: f32[2,1,32], index: 3, kind: input, shape index: {}]   ;;  %s3043_s4 = inlined_call_operand.vmem [shape: f32[2,1,32], index: 4, kind: input, shape index: {}]   ;;  %s3044_s5 = inlined_call_operand.vmem [shape: f32[2,32,96], index: 5, kind: input, shape index: {}]   ;;  %s3045_s6 = inlined_call_operand.vmem [shape: f32[2,32,32], index: 6, kind: input, shape index: {}]   ;;  %s3046_s7 = inlined_call_operand.vmem [shape: f32[2,1,32], index: 7, kind: input, shape index: {}]   ;;  %s3047_s8 = inlined_call_operand.vmem [shape: f32[2,1,32], index: 8, kind: input, shape index: {}]   ;;  %s3048_s9 = inlined_call_operand.vmem [shape: f32[2,1,32], index: 9, kind: input, shape index: {}]   ;;  %s3049_s10 = inlined_call_operand.vmem [shape: f32[2,32,64], index: 10, kind: input, shape index: {}]   ;;  %s3050_s11 = inlined_call_operand.vmem [shape: f32[2,1,64], index: 11, kind: input, shape index: {}]   ;;  %s3051_s12 = inlined_call_operand.vmem [shape: f32[2,64,32], index: 12, kind: input, shape index: {}]   ;;  %s3052_s13 = inlined_call_operand.vmem [shape: f32[2,1,32], index: 13, kind: input, shape index: {}]   ;;  %s3053_s14 = inlined_call_operand.vmem [shape: f32[2,16,32], index: 14, kind: output, shape index: {}]  }
   0x1 LB: > { %s2129_s30 = sadd.s32 4294967295, %s2577_s29   ;;  %p2133_p0 = scmp.ge.s32.totalorder %s2577_s29, 1  ;;  %s2577_s29 = sphi %s2662_s29, %s24_s29  }
   0x2   : > { %p432_p1 = scmp.lt.s32.totalorder %s2577_s29, 3 }
   0x4   : > { %p433_p2 = pnand %p2133_p0, %p432_p1 }
   0x5   : > { %p488_p3 = scmp.lt.s32.totalorder (!%p433_p2), %s2129_s30, 1  ;;  %vm521_vm0 = vcmask (!%p433_p2), 261120   ;;  %v565_v22 = vld [vmem:[%s3044_s5] sm:$0xff] (!%p433_p2)  ;;  %v566_v23 = vld [vmem:[%s3044_s5 + $0x8] sm:$0xff] (!%p433_p2)  ;;  %v2579_v25 = vmov (!%p433_p2), 0.0   ;;  %v567_v26 = vld [vmem:[%s3044_s5 + $0x10] sm:$0xff] (!%p433_p2) }
   0x6   : > { %436 = sbr.rel (%p433_p2) target bundleno = 5080 (0x13d8), region = 76  ;;  %v570_v24 = vpack.c.bf16 (!%p433_p2), %v566_v23, %v565_v22  ;;  %2281 = vmatprep.subr.bf16.mxu1 (!%p433_p2), %v2579_v25  ;;  %v568_v27 = vld [vmem:[%s3044_s5 + $0x18] sm:$0xff] (!%p433_p2)  ;;  %vm2580_vm1 = vmmov (!%p433_p2), 0   ;;  %v2142_v37 = vld [vmem:[%s3042_s3] ss:$0 sm:$0xff] (!%p433_p2)  ;;  %vm622_vm2 = vcmask (!%p433_p2), 130048  }
   0x7   : > { %v571_v28 = vpack.c.bf16 (!%p433_p2), %v568_v27, %v567_v26  ;;  %2285 = vmatprep.mubr.msk.bf16.mxu1 (!%p433_p2), %vm2580_vm1, %v2579_v25  ;;  %v2143_v41 = vld [vmem:[%s3043_s4] ss:$0 sm:$0xff] (!%p433_p2)  ;;  %s2581_s23 = smov (!%p433_p2), 80   ;;  %s2583_s25 = smov (!%p433_p2), 112   ;;  %vm2730_vm3 = vmpackc.low (!%p433_p2), %vm622_vm2, %vm622_vm2  ;;  %vm1224_vm4 = vcmask (!%p433_p2), 523264  }
   0x8   : > { %2282 = vmatpush3.bf16.msra.mxu1 (!%p433_p2), %v570_v24  ;;  %s2584_s26 = smov (!%p433_p2), 48   ;;  %s2585_s27 = smov (!%p433_p2), 64  }
   0x9   : > { %2283 = vmatprep.subr.bf16.mxu1 (!%p433_p2), %v2579_v25  ;;  %s2586_s22 = smov (!%p433_p2), 16  }
   0xc   : > { %2284 = vmatpush3.bf16.msra.mxu1 (!%p433_p2), %v571_v28 }
   0xd   : > { %s3057_s30 = smov (!%p488_p3, %s2129_s30), 1 }
   0xe   : > { %s2670_s15 = sshll.u32 %s3057_s30, 4 }
   0xf   : > { %s492_s18 = scalar_lea.vmem %s3039_s0, %s2670_s15  ;;  %s497_s21 = scalar_lea.vmem %s3040_s1, %s2670_s15 }
  0x10   : > { %s502_s24 = scalar_lea.vmem %s3041_s2, %s2670_s15  ;;  %v509_v0 = vld [vmem:[%s492_s18] sm:$0xff]  ;;  %v510_v2 = vld [vmem:[%s492_s18 + $0x8] sm:$0xff] }
  0x11   : > { %v511_v1 = vld [vmem:[%s497_s21] sm:$0xff]  ;;  %v512_v5 = vld [vmem:[%s497_s21 + $0x8] sm:$0xff] }
  0x12   : > { %v513_v3 = vadd.f32 %v511_v1, %v509_v0  ;;  %v515_v4 = vld [vmem:[%s502_s24] sm:$0xff]  ;;  %v516_v6 = vld [vmem:[%s502_s24 + $0x8] sm:$0xff]  ;;  %v514_v7 = vadd.f32 %v512_v5, %v510_v2  ;;  %s2582_s24 = smov 96  }
  0x14   : > { %v2684_v8 = vadd.f32 %v515_v4, %v513_v3  ;;  %v2686_v9 = vadd.f32 %v516_v6, %v514_v7 }
  0x16   : > { %v522_v10 = vsel %vm521_vm0, %v2684_v8, 0.0  ;;  %v525_v11 = vsel %vm521_vm0, %v2686_v9, 0.0 }
  0x17   : > { %523 = vadd.xlane.f32.xlu0 %v522_v10 }
  0x1b   : > { %526 = vadd.xlane.f32.xlu0 %v525_v11 }
  0xa4   : > { %v524_v12 = vpop.xlane.xlu0 %523 }
  0xa5   : > { %v529_v13 = vmul.f32 0.03125, %v524_v12 }
  0xa7   : > { %v531_v14 = vsub.f32 %v2684_v8, %v529_v13 }
  0xa8   : > { %v527_v15 = vpop.xlane.xlu0 %526 }
  0xa9   : > { %v530_v16 = vmul.f32 0.03125, %v527_v15  ;;  %v533_v17 = vmul.f32 %v531_v14, %v531_v14 }
  0xab   : > { %v532_v18 = vsub.f32 %v2686_v9, %v530_v16  ;;  %v535_v19 = vsel %vm521_vm0, %v533_v17, 0.0 }
  0xac   : > { %536 = vadd.xlane.f32.xlu1 %v535_v19 }
  0xad   : > { %v534_v20 = vmul.f32 %v532_v18, %v532_v18 }
  0xaf   : > { %v538_v21 = vsel %vm521_vm0, %v534_v20, 0.0 }
  0xb0   : > { %539 = vadd.xlane.f32.xlu1 %v538_v21 }
 0x139   : > { %v537_v29 = vpop.xlane.xlu1 %536 }
 0x13a   : > { %v541_v30 = vmul.f32 0.03125, %v537_v29 }
 0x13c   : > { %v543_v31 = vadd.f32 1e-05, %v541_v30 }
 0x13d   : > { %v540_v32 = vpop.xlane.xlu1 %539 }
 0x13e   : > { %2515 = vrsqrt.f32 %v543_v31  ;;  %v542_v33 = vmul.f32 0.03125, %v540_v32 }
 0x140   : > { %v544_v34 = vadd.f32 1e-05, %v542_v33 }
 0x142   : > { %2517 = vrsqrt.f32 %v544_v34 }
 0x148   : > { %v2516_v35 = vpop.eup %2515 }
 0x149   : > { %v547_v36 = vmul.f32 %v2516_v35, %v531_v14 }
 0x14b   : > { %v555_v40 = vmul.f32 %v2142_v37, %v547_v36 }
 0x14c   : > { %v2518_v38 = vpop.eup %2517 }
 0x14d   : > { %v548_v39 = vmul.f32 %v2518_v38, %v532_v18  ;;  %v563_v43 = vadd.f32 %v2143_v41, %v555_v40 }
 0x14f   : > { %v556_v42 = vmul.f32 %v2142_v37, %v548_v39 }
 0x151   : > { %v564_v44 = vadd.f32 %v2143_v41, %v556_v42 }
 0x153   : > { %v569_v45 = vpack.c.bf16 %v564_v44, %v563_v43 }
 0x155   : > { %2286 = vmatmul.mubr.msk.bf16.vlgmr.msra.gmra.mrb[0].mxu1 %vm521_vm0, %v569_v45 }
 0x228   : > { %v609_v46 = vpop.f32.mrb[0].mxu1 }
 0x229   : > { %v2287_v47 = vpop.f32.mrb[1].mxu1  ;;  %2293 = vmatprep.mubr.msk.f32.mxu1 %vm622_vm2, %v609_v46 }
 0x22a   : > { %v612_v48 = vpop.f32.mrb[2].mxu1 }
 0x22b   : > { %v2288_v49 = vpop.f32.mrb[3].mxu1  ;;  %v2720_v50 = vpack.i.bf16 %v612_v48, %v609_v46 }
 0x22d   : > { %2471 = vrot.lane.b32.xlu1 %v2720_v50, %s2581_s23  ;;  %2466 = vrot.lane.b32.xlu0 %v2720_v50, %s2582_s24 }
 0x231   : > { %817 = vrot.lane.b32.xlu1 %v609_v46, %s2583_s25 }
 0x235   : > { %819 = vrot.lane.b32.xlu1 %v612_v48, %s2583_s25 }
 0x29f   : > { %v2472_v51 = vpop.permute.xlu1 %2471  ;;  %v2467_v52 = vpop.permute.xlu0 %2466 }
 0x2a0   : > { %v2474_v53 = vunpack.i.h.bf16 %v2472_v51  ;;  %v2473_v54 = vunpack.i.l.bf16 %v2472_v51  ;;  %v2469_v55 = vunpack.i.h.bf16 %v2467_v52  ;;  %v2468_v56 = vunpack.i.l.bf16 %v2467_v52 }
 0x2a2   : > { %v2409_v58 = vpack.c.bf16 %v2469_v55, %v2468_v56  ;;  %v2419_v59 = vpack.c.bf16 %v2474_v53, %v2473_v54  ;;  %v1029_v53 = vld [vmem:[%s3045_s6] sm:$0xff]  ;;  %v1030_v54 = vld [vmem:[%s3045_s6 + $0x8] sm:$0xff]  ;;  %v1031_v56 = vld [vmem:[%s3045_s6 + $0x10] sm:$0xff] }
 0x2a3   : > { %v818_v60 = vpop.permute.xlu1 %817  ;;  %v1034_v55 = vpack.c.bf16 %v1030_v54, %v1029_v53  ;;  %v1212_v53 = vld [vmem:[%s3051_s12 + $0x8] sm:$0xff] }
 0x2a4   : > { %2411 = vmatprep.subr.msk.bf16.mxu1 %vm2730_vm3, %v2409_v58  ;;  %2421 = vmatprep.subr.msk.bf16.mxu0 %vm2730_vm3, %v2419_v59 }
 0x2a5   : > { %2307 = vmatprep.mubr.msk.f32.mxu0 %vm622_vm2, %v818_v60  ;;  %2414 = vmatpush3.bf16.xpose.msk.msra.mxu1 %vm2730_vm3, %v2409_v58  ;;  %v1032_v58 = vld [vmem:[%s3045_s6 + $0x18] sm:$0xff] }
 0x2a6   : > { %2424 = vmatpush3.bf16.xpose.msk.msra.mxu0 %vm2730_vm3, %v2419_v59  ;;  %v1035_v59 = vpack.c.bf16 %v1032_v58, %v1031_v56  ;;  %v1214_v56 = vld [vmem:[%s3051_s12 + $0x18] sm:$0xff] }
 0x2a7   : > { %2317 = vmatprep.subr.bf16.mxu0 %v2579_v25  ;;  %v820_v61 = vpop.permute.xlu1 %819 }
 0x2ac   : > { %2294 = vmatmul.mubr.msk.f32.vlgmr.msra.gmra.mrb[4].mxu1 %vm622_vm2, %v612_v48 }
 0x2ad   : > { %2308 = vmatmul.mubr.msk.f32.vlgmr.msra.gmra.mrb[0].mxu0 %vm622_vm2, %v820_v61 }
 0x2ae   : > { %2321 = vmatprep.mubr.msk.bf16.mxu0 %vm2580_vm1, %v2579_v25  ;;  %2318 = vmatpush3.bf16.msra.mxu0 %v1034_v55  ;;  %v1213_v55 = vld [vmem:[%s3051_s12 + $0x10] sm:$0xff] }
 0x2af   : > { %2319 = vmatprep.subr.bf16.mxu0 %v2579_v25  ;;  %v1221_v58 = vpack.c.bf16 %v1214_v56, %v1213_v55 }
 0x2b2   : > { %2320 = vmatpush3.bf16.msra.mxu0 %v1035_v59  ;;  %v1215_v59 = vld [vmem:[%s3051_s12 + $0x20] sm:$0xff] }
 0x2b3   : > { %2333 = vmatprep.subr.bf16.mxu0 %v2579_v25 }
 0x37f   : > { %v2295_v62 = vpop.f32.mrb[4].mxu1 }
 0x380   : > { %v707_v63 = vmul.f32 0.25, %v2295_v62  ;;  %v2309_v0 = vpop.f32.mrb[0].mxu0  ;;  %v697_v1 = vpop.f32.mrb[5].mxu1 }
 0x381   : > { %v706_v2 = vmul.f32 0.25, %v697_v1  ;;  %v899_v3 = vpop.f32.mrb[1].mxu0  ;;  %v909_v7 = vmul.f32 0.25, %v2309_v0 }
 0x382   : > { %v711_v4 = vsel %vm622_vm2, %v707_v63, -inf  ;;  %v908_v5 = vmul.f32 0.25, %v899_v3 }
 0x383   : > { %712 = vmax.xlane.f32.xlu1 %v711_v4  ;;  %v708_v6 = vsel %vm622_vm2, %v706_v2, -inf  ;;  %v913_v11 = vsel %vm622_vm2, %v909_v7, -inf }
 0x384   : > { %709 = vmax.xlane.f32.xlu0 %v708_v6  ;;  %v910_v10 = vsel %vm622_vm2, %v908_v5, -inf }
 0x388   : > { %911 = vmax.xlane.f32.xlu0 %v910_v10  ;;  %v2158_v10 = vld [vmem:[%s3046_s7] ss:$0 sm:$0xff] }
 0x38c   : > { %914 = vmax.xlane.f32.xlu0 %v913_v11 }
 0x410   : > { %v713_v12 = vpop.xlane.xlu1 %712 }
 0x411   : > { %v715_v13 = vsub.f32 %v707_v63, %v713_v12  ;;  %v710_v14 = vpop.xlane.xlu0 %709 }
 0x412   : > { %v714_v15 = vsub.f32 %v706_v2, %v710_v14 }
 0x413   : > { %v718_v16 = vmul.f32 1.442695, %v715_v13 }
 0x414   : > { %v716_v17 = vmul.f32 1.442695, %v714_v15 }
 0x415   : > { %2519 = vpow2.f32 %v718_v16  ;;  %v912_v18 = vpop.xlane.xlu0 %911 }
 0x416   : > { %2521 = vpow2.f32 %v716_v17  ;;  %v916_v19 = vsub.f32 %v908_v5, %v912_v18 }
 0x418   : > { %v918_v20 = vmul.f32 1.442695, %v916_v19 }
 0x419   : > { %v915_v21 = vpop.xlane.xlu0 %914 }
 0x41a   : > { %2523 = vpow2.f32 %v918_v20  ;;  %v917_v22 = vsub.f32 %v909_v7, %v915_v21 }
 0x41c   : > { %v920_v23 = vmul.f32 1.442695, %v917_v22 }
 0x41e   : > { %2525 = vpow2.f32 %v920_v23 }
 0x41f   : > { %v2520_v24 = vpop.eup %2519 }
 0x420   : > { %v2522_v26 = vpop.eup %2521  ;;  %v723_v27 = vsel %vm622_vm2, %v2520_v24, 0.0 }
 0x421   : > { %724 = vadd.xlane.f32.xlu1 %v723_v27  ;;  %v720_v28 = vsel %vm622_vm2, %v2522_v26, 0.0 }
 0x422   : > { %721 = vadd.xlane.f32.xlu0 %v720_v28 }
 0x424   : > { %v2524_v29 = vpop.eup %2523 }
 0x425   : > { %v922_v30 = vsel %vm622_vm2, %v2524_v29, 0.0 }
 0x426   : > { %923 = vadd.xlane.f32.xlu0 %v922_v30  ;;  %v1136_v30 = vld [vmem:[%s3049_s10 + $0x8] sm:$0xff] }
 0x428   : > { %v2526_v31 = vpop.eup %2525 }
 0x429   : > { %v925_v32 = vsel %vm622_vm2, %v2526_v31, 0.0 }
 0x42a   : > { %926 = vadd.xlane.f32.xlu1 %v925_v32  ;;  %v1137_v32 = vld [vmem:[%s3049_s10 + $0x10] sm:$0xff] }
 0x43b   : > { %2481 = vrot.lane.b32.xlu1 %v2720_v50, %s2584_s26 }
 0x43c   : > { %2476 = vrot.lane.b32.xlu0 %v2720_v50, %s2585_s27 }
 0x4ae   : > { %v725_v33 = vpop.xlane.xlu1 %724 }
 0x4af   : > { %v722_v34 = vpop.xlane.xlu0 %721 }
 0x4b0   : > { %2527 = vrcp.f32 %v722_v34 }
 0x4b1   : > { %2529 = vrcp.f32 %v725_v33  ;;  %v1138_v33 = vld [vmem:[%s3049_s10 + $0x18] sm:$0xff] }
 0x4b2   : > { %v1141_v34 = vpack.c.bf16 %v1138_v33, %v1137_v32 }
 0x4b3   : > { %v924_v35 = vpop.xlane.xlu0 %923 }
 0x4b4   : > { %2531 = vrcp.f32 %v924_v35 }
 0x4b7   : > { %v927_v36 = vpop.xlane.xlu1 %926  ;;  %v2477_v37 = vpop.permute.xlu0 %2476 }
 0x4b8   : > { %2533 = vrcp.f32 %v927_v36  ;;  %v2479_v38 = vunpack.i.h.bf16 %v2477_v37  ;;  %v2478_v39 = vunpack.i.l.bf16 %v2477_v37 }
 0x4ba   : > { %v2528_v40 = vpop.eup %2527  ;;  %v2415_v41 = vpack.c.bf16 %v2479_v38, %v2478_v39 }
 0x4bb   : > { %v2530_v42 = vpop.eup %2529  ;;  %v2482_v43 = vpop.permute.xlu1 %2481  ;;  %v728_v44 = vmul.f32 %v2528_v40, %v2522_v26 }
 0x4bc   : > { %v2484_v45 = vunpack.i.h.bf16 %v2482_v43  ;;  %v2483_v46 = vunpack.i.l.bf16 %v2482_v43  ;;  %2416 = vmatprep.subr.bf16.mxu1 %v2415_v41  ;;  %v729_v48 = vmul.f32 %v2530_v42, %v2520_v24  ;;  %v2159_v43 = vld [vmem:[%s3047_s8] ss:$0 sm:$0xff] }
 0x4bd   : > { %2418 = vmatpush3.bf16.msra.mxu1 %v2415_v41  ;;  %2300 = vmatprep.mubr.msk.f32.mxu1 %vm622_vm2, %v728_v44 }
 0x4be   : > { %v2532_v47 = vpop.eup %2531  ;;  %v2425_v49 = vpack.c.bf16 %v2484_v45, %v2483_v46 }
 0x4bf   : > { %v930_v50 = vmul.f32 %v2532_v47, %v2524_v29  ;;  %v1135_v29 = vld [vmem:[%s3049_s10] sm:$0xff] }
 0x4c0   : > { %2301 = vmatmul.mubr.msk.f32.vlgmr.msra.gmra.mrb[6].mxu1 %vm622_vm2, %v729_v48  ;;  %2426 = vmatprep.subr.bf16.mxu1 %v2425_v49  ;;  %v2160_v47 = vld [vmem:[%s3048_s9] ss:$0 sm:$0xff] }
 0x4c1   : > { %2428 = vmatpush3.bf16.msra.mxu1 %v2425_v49  ;;  %2314 = vmatprep.mubr.msk.f32.mxu1 %vm622_vm2, %v930_v50 }
 0x4c2   : > { %v2534_v51 = vpop.eup %2533  ;;  %2325 = vmatprep.subr.bf16.mxu1 %v2579_v25 }
 0x4c3   : > { %v931_v52 = vmul.f32 %v2534_v51, %v2526_v31  ;;  %v1140_v31 = vpack.c.bf16 %v1136_v30, %v1135_v29 }
 0x4c5   : > { %2315 = vmatmul.mubr.msk.f32.vlgmr.msra.gmra.mrb[8].mxu1 %vm622_vm2, %v931_v52  ;;  %v1211_v52 = vld [vmem:[%s3051_s12] sm:$0xff] }
 0x4c6   : > { %2329 = vmatprep.mubr.msk.bf16.mxu1 %vm2580_vm1, %v2579_v25  ;;  %2326 = vmatpush3.bf16.msra.mxu1 %v1140_v31  ;;  %v1220_v54 = vpack.c.bf16 %v1212_v53, %v1211_v52  ;;  %v2164_v31 = vld [vmem:[%s3052_s13] ss:$0 sm:$0xff]  ;;  %v2171_v52 = vld [vmem:[%s3044_s5 + $0x30] sm:$0xff]  ;;  %v2172_v53 = vld [vmem:[%s3044_s5 + $0x38] sm:$0xff] }
 0x4c7   : > { %2327 = vmatprep.subr.bf16.mxu1 %v2579_v25 }
 0x4ca   : > { %2328 = vmatpush3.bf16.msra.mxu1 %v1141_v34 }
 0x4cb   : > { %2345 = vmatprep.subr.bf16.mxu1 %v2579_v25 }
 0x593   : > { %v2302_v60 = vpop.f32.mrb[6].mxu1 }
 0x594   : > { %v808_v61 = vpop.f32.mrb[7].mxu1 }
 0x598   : > { %v2316_v62 = vpop.f32.mrb[8].mxu1 }
 0x599   : > { %v1010_v63 = vpop.f32.mrb[9].mxu1 }
 0x59a   : > { %v2485_v0 = vpack.i.bf16 %v2316_v62, %v1010_v63  ;;  %v1217_v62 = vld [vmem:[%s3051_s12 + $0x30] sm:$0xff]  ;;  %v1218_v63 = vld [vmem:[%s3051_s12 + $0x38] sm:$0xff] }
 0x59c   : > { %2486 = vrot.lane.b32.xlu1 %v2485_v0, %s2586_s22  ;;  %v1223_v0 = vpack.c.bf16 %v1218_v63, %v1217_v62  ;;  %v2167_v63 = vld [vmem:[%s3042_s3 + $0x1] ss:$0 sm:$0xff] }
 0x60e   : > { %v2487_v1 = vpop.permute.xlu1 %2486 }
 0x60f   : > { %v2489_v2 = vunpack.i.h.bf16 %v2487_v1  ;;  %v2488_v3 = vunpack.i.l.bf16 %v2487_v1  ;;  %v2161_v1 = vld [vmem:[%s3050_s11] ss:$0 sm:$0xff] }
 0x611   : > { %v1028_v4 = vsel %vm622_vm2, %v2302_v60, %v2489_v2  ;;  %v1027_v5 = vsel %vm622_vm2, %v808_v61, %v2488_v3  ;;  %v1216_v60 = vld [vmem:[%s3051_s12 + $0x28] sm:$0xff] }
 0x612   : > { %v1033_v6 = vpack.c.bf16 %v1028_v4, %v1027_v5  ;;  %v1222_v61 = vpack.c.bf16 %v1216_v60, %v1215_v59 }
 0x614   : > { %2322 = vmatmul.mubr.msk.bf16.vlgmr.msra.gmra.mrb[4].mxu0 %vm521_vm0, %v1033_v6 }
 0x615   : > { %2341 = vmatprep.mubr.msk.bf16.mxu0 %vm2580_vm1, %v2579_v25  ;;  %2334 = vmatpush3.bf16.msra.mxu0 %v1220_v54  ;;  %v1333_v54 = vpack.c.bf16 %v2172_v53, %v2171_v52 }
 0x616   : > { %2335 = vmatprep.subr.bf16.mxu0 %v2579_v25 }
 0x619   : > { %2336 = vmatpush3.bf16.msra.mxu0 %v1221_v58 }
 0x61a   : > { %2337 = vmatprep.subr.bf16.mxu0 %v2579_v25 }
 0x61d   : > { %2338 = vmatpush3.bf16.msra.mxu0 %v1222_v61 }
 0x61e   : > { %2339 = vmatprep.subr.bf16.mxu0 %v2579_v25 }
 0x621   : > { %2340 = vmatpush3.bf16.msra.mxu0 %v1223_v0 }
 0x6e7   : > { %v1073_v7 = vpop.f32.mrb[4].mxu0 }
 0x6e8   : > { %v1080_v11 = vadd.f32 %v1073_v7, %v2684_v8  ;;  %v2323_v12 = vpop.f32.mrb[5].mxu0 }
 0x6e9   : > { %v1076_v13 = vpop.f32.mrb[6].mxu0 }
 0x6ea   : > { %v2791_v14 = vadd.f32 %v2158_v10, %v1080_v11  ;;  %v1081_v15 = vadd.f32 %v1076_v13, %v2686_v9  ;;  %v2324_v16 = vpop.f32.mrb[7].mxu0 }
 0x6ec   : > { %v2794_v17 = vadd.f32 %v2158_v10, %v1081_v15  ;;  %v1093_v18 = vsel %vm521_vm0, %v2791_v14, 0.0 }
 0x6ed   : > { %1094 = vadd.xlane.f32.xlu1 %v1093_v18 }
 0x6ee   : > { %v1096_v19 = vsel %vm521_vm0, %v2794_v17, 0.0 }
 0x6ef   : > { %1097 = vadd.xlane.f32.xlu0 %v1096_v19 }
 0x77a   : > { %v1095_v20 = vpop.xlane.xlu1 %1094 }
 0x77b   : > { %v1099_v21 = vmul.f32 0.03125, %v1095_v20 }
 0x77c   : > { %v1098_v8 = vpop.xlane.xlu0 %1097 }
 0x77d   : > { %v1101_v22 = vsub.f32 %v2791_v14, %v1099_v21  ;;  %v1100_v23 = vmul.f32 0.03125, %v1098_v8 }
 0x77f   : > { %v1102_v24 = vsub.f32 %v2794_v17, %v1100_v23  ;;  %v1103_v9 = vmul.f32 %v1101_v22, %v1101_v22 }
 0x781   : > { %v1105_v26 = vsel %vm521_vm0, %v1103_v9, 0.0  ;;  %v1104_v27 = vmul.f32 %v1102_v24, %v1102_v24 }
 0x782   : > { %1106 = vadd.xlane.f32.xlu0 %v1105_v26 }
 0x783   : > { %v1108_v28 = vsel %vm521_vm0, %v1104_v27, 0.0 }
 0x786   : > { %1109 = vadd.xlane.f32.xlu0 %v1108_v28 }
 0x80f   : > { %v1107_v35 = vpop.xlane.xlu0 %1106 }
 0x810   : > { %v1111_v36 = vmul.f32 0.03125, %v1107_v35 }
 0x812   : > { %v1113_v37 = vadd.f32 1e-05, %v1111_v36 }
 0x813   : > { %v1110_v38 = vpop.xlane.xlu0 %1109 }
 0x814   : > { %2535 = vrsqrt.f32 %v1113_v37  ;;  %v1112_v39 = vmul.f32 0.03125, %v1110_v38 }
 0x816   : > { %v1114_v40 = vadd.f32 1e-05, %v1112_v39 }
 0x818   : > { %2537 = vrsqrt.f32 %v1114_v40 }
 0x81e   : > { %v2536_v41 = vpop.eup %2535 }
 0x81f   : > { %v1117_v42 = vmul.f32 %v2536_v41, %v1101_v22 }
 0x821   : > { %v1125_v45 = vmul.f32 %v2159_v43, %v1117_v42 }
 0x822   : > { %v2538_v44 = vpop.eup %2537 }
 0x823   : > { %v1118_v46 = vmul.f32 %v2538_v44, %v1102_v24  ;;  %v1133_v49 = vadd.f32 %v2160_v47, %v1125_v45 }
 0x825   : > { %v1126_v48 = vmul.f32 %v2159_v43, %v1118_v46 }
 0x827   : > { %v1134_v50 = vadd.f32 %v2160_v47, %v1126_v48 }
 0x829   : > { %v1139_v51 = vpack.c.bf16 %v1134_v50, %v1133_v49  ;;  %v2169_v49 = vld [vmem:[%s3044_s5 + $0x20] sm:$0xff]  ;;  %v2170_v50 = vld [vmem:[%s3044_s5 + $0x28] sm:$0xff] }
 0x82b   : > { %2330 = vmatmul.mubr.msk.bf16.vlgmr.msra.gmra.mrb[12].mxu1 %vm521_vm0, %v1139_v51  ;;  %v1332_v51 = vpack.c.bf16 %v2170_v50, %v2169_v49 }
 0x82c   : > { %2349 = vmatprep.mubr.msk.bf16.mxu1 %vm2580_vm1, %v2579_v25 }
 0x82d   : > { %2346 = vmatpush3.bf16.msra.mxu1 %v1332_v51 }
 0x82e   : > { %2347 = vmatprep.subr.bf16.mxu1 %v2579_v25 }
 0x831   : > { %2348 = vmatpush3.bf16.msra.mxu1 %v1333_v54 }
 0x8fe   : > { %v1186_v2 = vpop.f32.mrb[12].mxu1 }
 0x8ff   : > { %v1187_v3 = vadd.f32 %v2161_v1, %v1186_v2  ;;  %v2331_v4 = vpop.f32.mrb[13].mxu1 }
 0x900   : > { %v1189_v5 = vpop.f32.mrb[14].mxu1  ;;  %v2168_v4 = vld [vmem:[%s3043_s4 + $0x1] ss:$0 sm:$0xff] }
 0x901   : > { %v1193_v6 = vmul.f32 %v1187_v3, %v1187_v3  ;;  %v1190_v7 = vadd.f32 %v2161_v1, %v1189_v5  ;;  %v2332_v10 = vpop.f32.mrb[15].mxu1 }
 0x903   : > { %v1195_v11 = vmul.f32 %v1193_v6, %v1187_v3  ;;  %v1194_v12 = vmul.f32 %v1190_v7, %v1190_v7 }
 0x905   : > { %v1197_v13 = vmul.f32 0.044715, %v1195_v11  ;;  %v1196_v15 = vmul.f32 %v1194_v12, %v1190_v7 }
 0x907   : > { %v1199_v16 = vadd.f32 %v1197_v13, %v1187_v3  ;;  %v1198_v18 = vmul.f32 0.044715, %v1196_v15 }
 0x909   : > { %v1201_v19 = vmul.f32 0.7978846, %v1199_v16  ;;  %v1200_v20 = vadd.f32 %v1198_v18, %v1190_v7 }
 0x90b   : > { %2539 = vtanh.f32 %v1201_v19  ;;  %v1202_v21 = vmul.f32 0.7978846, %v1200_v20 }
 0x90d   : > { %2541 = vtanh.f32 %v1202_v21 }
 0x915   : > { %v2540_v8 = vpop.eup %2539 }
 0x916   : > { %v1205_v22 = vadd.f32 1.0, %v2540_v8 }
 0x917   : > { %v2542_v23 = vpop.eup %2541 }
 0x918   : > { %v1207_v24 = vmul.f32 0.5, %v1205_v22  ;;  %v1206_v9 = vadd.f32 1.0, %v2542_v23 }
 0x91a   : > { %v1208_v26 = vmul.f32 0.5, %v1206_v9  ;;  %v1209_v27 = vmul.f32 %v1207_v24, %v1187_v3 }
 0x91c   : > { %v1210_v28 = vmul.f32 %v1208_v26, %v1190_v7 }
 0x91e   : > { %v1219_v29 = vpack.c.bf16 %v1210_v28, %v1209_v27 }
 0x920   : > { %2342 = vmatmul.mubr.msk.bf16.vlgmr.msra.gmra.mrb[8].mxu0 %vm1224_vm4, %v1219_v29 }
 0x9f3   : > { %v1262_v30 = vpop.f32.mrb[8].mxu0 }
 0x9f4   : > { %v1269_v32 = vadd.f32 %v1262_v30, %v2791_v14  ;;  %v2343_v33 = vpop.f32.mrb[9].mxu0 }
 0x9f5   : > { %v1265_v34 = vpop.f32.mrb[10].mxu0 }
 0x9f6   : > { %v2862_v35 = vadd.f32 %v2164_v31, %v1269_v32  ;;  %v1270_v36 = vadd.f32 %v1265_v34, %v2794_v17  ;;  %v2344_v37 = vpop.f32.mrb[11].mxu0 }
 0x9f8   : > { %v2865_v38 = vadd.f32 %v2164_v31, %v1270_v36  ;;  %v1284_v39 = vsel %vm521_vm0, %v2862_v35, 0.0 }
 0x9f9   : > { %1285 = vadd.xlane.f32.xlu1 %v1284_v39 }
 0x9fa   : > { %v1287_v40 = vsel %vm521_vm0, %v2865_v38, 0.0 }
 0x9fb   : > { %1288 = vadd.xlane.f32.xlu0 %v1287_v40 }
 0xa86   : > { %v1286_v41 = vpop.xlane.xlu1 %1285 }
 0xa87   : > { %v1290_v42 = vmul.f32 0.03125, %v1286_v41 }
 0xa88   : > { %v1289_v14 = vpop.xlane.xlu0 %1288 }
 0xa89   : > { %v1292_v43 = vsub.f32 %v2862_v35, %v1290_v42  ;;  %v1291_v44 = vmul.f32 0.03125, %v1289_v14 }
 0xa8b   : > { %v1293_v45 = vsub.f32 %v2865_v38, %v1291_v44  ;;  %v1294_v17 = vmul.f32 %v1292_v43, %v1292_v43 }
 0xa8d   : > { %v1296_v46 = vsel %vm521_vm0, %v1294_v17, 0.0  ;;  %v1295_v47 = vmul.f32 %v1293_v45, %v1293_v45 }
 0xa8e   : > { %1297 = vadd.xlane.f32.xlu1 %v1296_v46 }
 0xa8f   : > { %v1299_v48 = vsel %vm521_vm0, %v1295_v47, 0.0 }
 0xa90   : > { %1300 = vadd.xlane.f32.xlu0 %v1299_v48 }
 0xb1b   : > { %v1298_v55 = vpop.xlane.xlu1 %1297 }
 0xb1c   : > { %v1302_v56 = vmul.f32 0.03125, %v1298_v55 }
 0xb1d   : > { %v1301_v58 = vpop.xlane.xlu0 %1300 }
 0xb1e   : > { %v1304_v59 = vadd.f32 1e-05, %v1302_v56  ;;  %v1303_v60 = vmul.f32 0.03125, %v1301_v58 }
 0xb20   : > { %2543 = vrsqrt.f32 %v1304_v59  ;;  %v1305_v61 = vadd.f32 1e-05, %v1303_v60 }
 0xb22   : > { %2545 = vrsqrt.f32 %v1305_v61 }
 0xb2a   : > { %v2544_v62 = vpop.eup %2543 }
 0xb2b   : > { %v1308_v0 = vmul.f32 %v2544_v62, %v1292_v43 }
 0xb2c   : > { %v2546_v1 = vpop.eup %2545 }
 0xb2d   : > { %v1316_v2 = vmul.f32 %v2167_v63, %v1308_v0  ;;  %v1309_v3 = vmul.f32 %v2546_v1, %v1293_v45 }
 0xb2f   : > { %v1317_v5 = vmul.f32 %v2167_v63, %v1309_v3  ;;  %v1324_v6 = vadd.f32 %v2168_v4, %v1316_v2 }
 0xb31   : > { %v1325_v7 = vadd.f32 %v2168_v4, %v1317_v5 }
 0xb33   : > { %v1331_v10 = vpack.c.bf16 %v1325_v7, %v1324_v6 }
 0xb35   : > { %2350 = vmatmul.mubr.msk.bf16.vlgmr.msra.gmra.mrb[16].mxu1 %vm521_vm0, %v1331_v10 }
 0xc08   : > { %v1371_v11 = vpop.f32.mrb[16].mxu1 }
 0xc09   : > { %v2351_v12 = vpop.f32.mrb[17].mxu1  ;;  %2357 = vmatprep.mubr.msk.f32.mxu1 %vm622_vm2, %v1371_v11 }
 0xc0a   : > { %v1374_v13 = vpop.f32.mrb[18].mxu1 }
 0xc0b   : > { %v2352_v15 = vpop.f32.mrb[19].mxu1  ;;  %v2896_v16 = vpack.i.bf16 %v1374_v13, %v1371_v11 }
 0xc0d   : > { %2496 = vrot.lane.b32.xlu0 %v2896_v16, %s2581_s23  ;;  %2491 = vrot.lane.b32.xlu1 %v2896_v16, %s2582_s24 }
 0xc11   : > { %1578 = vrot.lane.b32.xlu1 %v1371_v11, %s2583_s25 }
 0xc15   : > { %1580 = vrot.lane.b32.xlu1 %v1374_v13, %s2583_s25  ;;  %s507_s25 = scalar_lea.vmem %s3053_s14, %s2670_s15 }
 0xc7f   : > { %v2497_v18 = vpop.permute.xlu0 %2496  ;;  %v2492_v19 = vpop.permute.xlu1 %2491 }
 0xc80   : > { %v2499_v20 = vunpack.i.h.bf16 %v2497_v18  ;;  %v2498_v21 = vunpack.i.l.bf16 %v2497_v18  ;;  %v2494_v8 = vunpack.i.h.bf16 %v2492_v19  ;;  %v2493_v22 = vunpack.i.l.bf16 %v2492_v19  ;;  %v2186_v19 = vld [vmem:[%s3045_s6 + $0x20] sm:$0xff] }
 0xc82   : > { %v2439_v23 = vpack.c.bf16 %v2499_v20, %v2498_v21  ;;  %v2429_v24 = vpack.c.bf16 %v2494_v8, %v2493_v22  ;;  %v2187_v20 = vld [vmem:[%s3045_s6 + $0x28] sm:$0xff]  ;;  %v2188_v8 = vld [vmem:[%s3045_s6 + $0x30] sm:$0xff]  ;;  %v2189_v22 = vld [vmem:[%s3045_s6 + $0x38] sm:$0xff] }
 0xc83   : > { %v1579_v9 = vpop.permute.xlu1 %1578  ;;  %v1796_v21 = vpack.c.bf16 %v2187_v20, %v2186_v19  ;;  %v2206_v20 = vld [vmem:[%s3051_s12 + $0x50] sm:$0xff] }
 0xc84   : > { %2431 = vmatprep.subr.msk.bf16.mxu1 %vm2730_vm3, %v2429_v24  ;;  %2441 = vmatprep.subr.msk.bf16.mxu0 %vm2730_vm3, %v2439_v23 }
 0xc85   : > { %2371 = vmatprep.mubr.msk.f32.mxu0 %vm622_vm2, %v1579_v9  ;;  %2434 = vmatpush3.bf16.xpose.msk.msra.mxu1 %vm2730_vm3, %v2429_v24 }
 0xc86   : > { %2444 = vmatpush3.bf16.xpose.msk.msra.mxu0 %vm2730_vm3, %v2439_v23  ;;  %v1797_v23 = vpack.c.bf16 %v2189_v22, %v2188_v8  ;;  %v2208_v22 = vld [vmem:[%s3051_s12 + $0x60] sm:$0xff] }
 0xc87   : > { %2381 = vmatprep.subr.bf16.mxu0 %v2579_v25  ;;  %v1581_v26 = vpop.permute.xlu1 %1580 }
 0xc8c   : > { %2358 = vmatmul.mubr.msk.f32.vlgmr.msra.gmra.mrb[10].mxu1 %vm622_vm2, %v1374_v13 }
 0xc8d   : > { %2372 = vmatmul.mubr.msk.f32.vlgmr.msra.gmra.mrb[2].mxu0 %vm622_vm2, %v1581_v26 }
 0xc8e   : > { %2385 = vmatprep.mubr.msk.bf16.mxu0 %vm2580_vm1, %v2579_v25  ;;  %2382 = vmatpush3.bf16.msra.mxu0 %v1796_v21  ;;  %v2207_v21 = vld [vmem:[%s3051_s12 + $0x58] sm:$0xff] }
 0xc8f   : > { %2383 = vmatprep.subr.bf16.mxu0 %v2579_v25  ;;  %v1989_v8 = vpack.c.bf16 %v2207_v21, %v2206_v20 }
 0xc92   : > { %2384 = vmatpush3.bf16.msra.mxu0 %v1797_v23  ;;  %v2209_v23 = vld [vmem:[%s3051_s12 + $0x68] sm:$0xff] }
 0xc93   : > { %2397 = vmatprep.subr.bf16.mxu0 %v2579_v25 }
 0xd5f   : > { %v2359_v27 = vpop.f32.mrb[10].mxu1 }
 0xd60   : > { %v1468_v28 = vmul.f32 0.25, %v2359_v27  ;;  %v2373_v29 = vpop.f32.mrb[2].mxu0  ;;  %v1458_v30 = vpop.f32.mrb[11].mxu1 }
 0xd61   : > { %v1467_v31 = vmul.f32 0.25, %v1458_v30  ;;  %v1660_v32 = vpop.f32.mrb[3].mxu0  ;;  %v1670_v36 = vmul.f32 0.25, %v2373_v29 }
 0xd62   : > { %v1669_v33 = vmul.f32 0.25, %v1660_v32  ;;  %v1472_v57 = vsel %vm622_vm2, %v1468_v28, -inf }
 0xd63   : > { %1473 = vmax.xlane.f32.xlu0 %v1472_v57  ;;  %v1469_v34 = vsel %vm622_vm2, %v1467_v31, -inf  ;;  %v1674_v39 = vsel %vm622_vm2, %v1670_v36, -inf }
 0xd64   : > { %1470 = vmax.xlane.f32.xlu1 %v1469_v34  ;;  %v1671_v37 = vsel %vm622_vm2, %v1669_v33, -inf }
 0xd67   : > { %1672 = vmax.xlane.f32.xlu0 %v1671_v37 }
 0xd6b   : > { %1675 = vmax.xlane.f32.xlu0 %v1674_v39 }
 0xdf0   : > { %v1474_v40 = vpop.xlane.xlu0 %1473 }
 0xdf1   : > { %v1476_v41 = vsub.f32 %v1468_v28, %v1474_v40  ;;  %v1471_v42 = vpop.xlane.xlu1 %1470 }
 0xdf2   : > { %v1475_v14 = vsub.f32 %v1467_v31, %v1471_v42 }
 0xdf3   : > { %v1479_v43 = vmul.f32 1.442695, %v1476_v41 }
 0xdf4   : > { %v1477_v44 = vmul.f32 1.442695, %v1475_v14  ;;  %v1673_v45 = vpop.xlane.xlu0 %1672 }
 0xdf5   : > { %2547 = vpow2.f32 %v1479_v43  ;;  %v1677_v17 = vsub.f32 %v1669_v33, %v1673_v45 }
 0xdf6   : > { %2549 = vpow2.f32 %v1477_v44 }
 0xdf7   : > { %v1679_v46 = vmul.f32 1.442695, %v1677_v17 }
 0xdf8   : > { %v1676_v47 = vpop.xlane.xlu0 %1675 }
 0xdf9   : > { %2551 = vpow2.f32 %v1679_v46  ;;  %v1678_v48 = vsub.f32 %v1670_v36, %v1676_v47  ;;  %v2192_v36 = vld [vmem:[%s3046_s7 + $0x1] ss:$0 sm:$0xff] }
 0xdfb   : > { %v1681_v49 = vmul.f32 1.442695, %v1678_v48 }
 0xdfd   : > { %2553 = vpow2.f32 %v1681_v49 }
 0xdff   : > { %v2548_v50 = vpop.eup %2547 }
 0xe00   : > { %v2550_v51 = vpop.eup %2549  ;;  %v1484_v52 = vsel %vm622_vm2, %v2548_v50, 0.0 }
 0xe01   : > { %1485 = vadd.xlane.f32.xlu0 %v1484_v52  ;;  %v1481_v53 = vsel %vm622_vm2, %v2550_v51, 0.0 }
 0xe02   : > { %1482 = vadd.xlane.f32.xlu1 %v1481_v53  ;;  %v2197_v53 = vld [vmem:[%s3049_s10 + $0x20] sm:$0xff] }
 0xe03   : > { %v2552_v54 = vpop.eup %2551 }
 0xe04   : > { %v1683_v55 = vsel %vm622_vm2, %v2552_v54, 0.0 }
 0xe06   : > { %1684 = vadd.xlane.f32.xlu1 %v1683_v55 }
 0xe07   : > { %v2554_v56 = vpop.eup %2553 }
 0xe08   : > { %v1686_v58 = vsel %vm622_vm2, %v2554_v56, 0.0 }
 0xe09   : > { %1687 = vadd.xlane.f32.xlu0 %v1686_v58  ;;  %v2200_v58 = vld [vmem:[%s3049_s10 + $0x38] sm:$0xff] }
 0xe17   : > { %2501 = vrot.lane.b32.xlu1 %v2896_v16, %s2585_s27 }
 0xe1f   : > { %2506 = vrot.lane.b32.xlu0 %v2896_v16, %s2584_s26 }
 0xe8e   : > { %v1486_v59 = vpop.xlane.xlu0 %1485 }
 0xe8f   : > { %v1483_v60 = vpop.xlane.xlu1 %1482 }
 0xe90   : > { %2555 = vrcp.f32 %v1483_v60 }
 0xe91   : > { %2557 = vrcp.f32 %v1486_v59 }
 0xe93   : > { %v1685_v61 = vpop.xlane.xlu1 %1684 }
 0xe94   : > { %2559 = vrcp.f32 %v1685_v61 }
 0xe96   : > { %v1688_v62 = vpop.xlane.xlu0 %1687 }
 0xe97   : > { %2561 = vrcp.f32 %v1688_v62  ;;  %v2502_v63 = vpop.permute.xlu1 %2501 }
 0xe98   : > { %v2504_v0 = vunpack.i.h.bf16 %v2502_v63  ;;  %v2503_v1 = vunpack.i.l.bf16 %v2502_v63 }
 0xe9a   : > { %v2556_v2 = vpop.eup %2555  ;;  %v2435_v3 = vpack.c.bf16 %v2504_v0, %v2503_v1  ;;  %v2507_v4 = vpop.permute.xlu0 %2506 }
 0xe9b   : > { %v2558_v5 = vpop.eup %2557  ;;  %v2509_v6 = vunpack.i.h.bf16 %v2507_v4  ;;  %v2508_v7 = vunpack.i.l.bf16 %v2507_v4  ;;  %v1489_v10 = vmul.f32 %v2556_v2, %v2550_v51 }
 0xe9c   : > { %2436 = vmatprep.subr.bf16.mxu1 %v2435_v3  ;;  %v1490_v13 = vmul.f32 %v2558_v5, %v2548_v50 }
 0xe9d   : > { %v2445_v11 = vpack.c.bf16 %v2509_v6, %v2508_v7  ;;  %2438 = vmatpush3.bf16.msra.mxu1 %v2435_v3  ;;  %2364 = vmatprep.mubr.msk.f32.mxu1 %vm622_vm2, %v1489_v10  ;;  %v2195_v3 = vld [vmem:[%s3047_s8 + $0x1] ss:$0 sm:$0xff] }
 0xe9e   : > { %v2560_v12 = vpop.eup %2559  ;;  %v2196_v10 = vld [vmem:[%s3048_s9 + $0x1] ss:$0 sm:$0xff] }
 0xe9f   : > { %2446 = vmatprep.subr.bf16.mxu1 %v2445_v11  ;;  %v1691_v15 = vmul.f32 %v2560_v12, %v2552_v54  ;;  %v2198_v54 = vld [vmem:[%s3049_s10 + $0x28] sm:$0xff] }
 0xea0   : > { %2365 = vmatmul.mubr.msk.f32.vlgmr.msra.gmra.mrb[20].mxu1 %vm622_vm2, %v1490_v13  ;;  %v1906_v55 = vpack.c.bf16 %v2198_v54, %v2197_v53  ;;  %v2214_v53 = vld [vmem:[%s3052_s13 + $0x1] ss:$0 sm:$0xff] }
 0xea1   : > { %v2562_v16 = vpop.eup %2561  ;;  %2448 = vmatpush3.bf16.msra.mxu1 %v2445_v11  ;;  %2378 = vmatprep.mubr.msk.f32.mxu1 %vm622_vm2, %v1691_v15 }
 0xea2   : > { %v1692_v18 = vmul.f32 %v2562_v16, %v2554_v56  ;;  %2389 = vmatprep.subr.bf16.mxu1 %v2579_v25  ;;  %v2199_v56 = vld [vmem:[%s3049_s10 + $0x30] sm:$0xff]  ;;  %v2204_v16 = vld [vmem:[%s3051_s12 + $0x40] sm:$0xff] }
 0xea3   : > { %v1907_v59 = vpack.c.bf16 %v2200_v58, %v2199_v56 }
 0xea4   : > { %2379 = vmatmul.mubr.msk.f32.vlgmr.msra.gmra.mrb[22].mxu1 %vm622_vm2, %v1692_v18  ;;  %v2205_v18 = vld [vmem:[%s3051_s12 + $0x48] sm:$0xff] }
 0xea5   : > { %2393 = vmatprep.mubr.msk.bf16.mxu1 %vm2580_vm1, %v2579_v25  ;;  %2390 = vmatpush3.bf16.msra.mxu1 %v1906_v55  ;;  %v1988_v19 = vpack.c.bf16 %v2205_v18, %v2204_v16 }
 0xea6   : > { %2391 = vmatprep.subr.bf16.mxu1 %v2579_v25 }
 0xea9   : > { %2392 = vmatpush3.bf16.msra.mxu1 %v1907_v59 }
 0xf73   : > { %v2366_v24 = vpop.f32.mrb[20].mxu1 }
 0xf74   : > { %v1569_v9 = vpop.f32.mrb[21].mxu1 }
 0xf77   : > { %v2380_v26 = vpop.f32.mrb[22].mxu1 }
 0xf78   : > { %v1771_v27 = vpop.f32.mrb[23].mxu1 }
 0xf79   : > { %v2510_v28 = vpack.i.bf16 %v2380_v26, %v1771_v27  ;;  %v2211_v26 = vld [vmem:[%s3051_s12 + $0x78] sm:$0xff] }
 0xf7b   : > { %2511 = vrot.lane.b32.xlu1 %v2510_v28, %s2586_s22  ;;  %v2202_v28 = vld [vmem:[%s3050_s11 + $0x1] ss:$0 sm:$0xff] }
 0xfed   : > { %v2512_v29 = vpop.permute.xlu1 %2511 }
 0xfee   : > { %v2514_v30 = vunpack.i.h.bf16 %v2512_v29  ;;  %v2513_v31 = vunpack.i.l.bf16 %v2512_v29 }
 0xff0   : > { %v1789_v32 = vsel %vm622_vm2, %v2366_v24, %v2514_v30  ;;  %v1788_v33 = vsel %vm622_vm2, %v1569_v9, %v2513_v31  ;;  %v1990_v24 = vpack.c.bf16 %v2209_v23, %v2208_v22  ;;  %v2210_v9 = vld [vmem:[%s3051_s12 + $0x70] sm:$0xff] }
 0xff1   : > { %v1795_v57 = vpack.c.bf16 %v1789_v32, %v1788_v33  ;;  %v1991_v27 = vpack.c.bf16 %v2211_v26, %v2210_v9 }
 0xff3   : > { %2386 = vmatmul.mubr.msk.bf16.vlgmr.msra.gmra.mrb[12].mxu0 %vm521_vm0, %v1795_v57 }
 0xff4   : > { %2405 = vmatprep.mubr.msk.bf16.mxu0 %vm2580_vm1, %v2579_v25  ;;  %2398 = vmatpush3.bf16.msra.mxu0 %v1988_v19 }
 0xff5   : > { %2399 = vmatprep.subr.bf16.mxu0 %v2579_v25 }
 0xff8   : > { %2400 = vmatpush3.bf16.msra.mxu0 %v1989_v8 }
 0xff9   : > { %2401 = vmatprep.subr.bf16.mxu0 %v2579_v25 }
 0xffc   : > { %2402 = vmatpush3.bf16.msra.mxu0 %v1990_v24 }
 0xffd   : > { %2403 = vmatprep.subr.bf16.mxu0 %v2579_v25 }
0x1000   : > { %2404 = vmatpush3.bf16.msra.mxu0 %v1991_v27 }
0x10c6   : > { %v1835_v34 = vpop.f32.mrb[12].mxu0 }
0x10c7   : > { %v1842_v37 = vadd.f32 %v1835_v34, %v2862_v35  ;;  %v2387_v39 = vpop.f32.mrb[13].mxu0 }
0x10c8   : > { %v1838_v40 = vpop.f32.mrb[14].mxu0 }
0x10c9   : > { %v2961_v41 = vadd.f32 %v2192_v36, %v1842_v37  ;;  %v1843_v42 = vadd.f32 %v1838_v40, %v2865_v38  ;;  %v2388_v14 = vpop.f32.mrb[15].mxu0 }
0x10cb   : > { %v2964_v43 = vadd.f32 %v2192_v36, %v1843_v42  ;;  %v1858_v44 = vsel %vm521_vm0, %v2961_v41, 0.0 }
0x10cc   : > { %1859 = vadd.xlane.f32.xlu1 %v1858_v44 }
0x10cd   : > { %v1861_v45 = vsel %vm521_vm0, %v2964_v43, 0.0 }
0x10ce   : > { %1862 = vadd.xlane.f32.xlu0 %v1861_v45 }
0x1159   : > { %v1860_v17 = vpop.xlane.xlu1 %1859 }
0x115a   : > { %v1864_v46 = vmul.f32 0.03125, %v1860_v17 }
0x115b   : > { %v1863_v35 = vpop.xlane.xlu0 %1862 }
0x115c   : > { %v1866_v47 = vsub.f32 %v2961_v41, %v1864_v46  ;;  %v1865_v48 = vmul.f32 0.03125, %v1863_v35 }
0x115e   : > { %v1867_v49 = vsub.f32 %v2964_v43, %v1865_v48  ;;  %v1868_v38 = vmul.f32 %v1866_v47, %v1866_v47 }
0x1160   : > { %v1870_v50 = vsel %vm521_vm0, %v1868_v38, 0.0  ;;  %v1869_v51 = vmul.f32 %v1867_v49, %v1867_v49 }
0x1161   : > { %1871 = vadd.xlane.f32.xlu0 %v1870_v50 }
0x1162   : > { %v1873_v52 = vsel %vm521_vm0, %v1869_v51, 0.0 }
0x1163   : > { %1874 = vadd.xlane.f32.xlu1 %v1873_v52 }
0x11ee   : > { %v1872_v60 = vpop.xlane.xlu0 %1871 }
0x11ef   : > { %v1876_v61 = vmul.f32 0.03125, %v1872_v60 }
0x11f0   : > { %v1875_v62 = vpop.xlane.xlu1 %1874 }
0x11f1   : > { %v1878_v63 = vadd.f32 1e-05, %v1876_v61  ;;  %v1877_v0 = vmul.f32 0.03125, %v1875_v62 }
0x11f3   : > { %2563 = vrsqrt.f32 %v1878_v63  ;;  %v1879_v1 = vadd.f32 1e-05, %v1877_v0 }
0x11f5   : > { %2565 = vrsqrt.f32 %v1879_v1 }
0x11fd   : > { %v2564_v2 = vpop.eup %2563 }
0x11fe   : > { %v1882_v4 = vmul.f32 %v2564_v2, %v1866_v47 }
0x11ff   : > { %v2566_v5 = vpop.eup %2565 }
0x1200   : > { %v1890_v6 = vmul.f32 %v2195_v3, %v1882_v4  ;;  %v1883_v7 = vmul.f32 %v2566_v5, %v1867_v49 }
0x1202   : > { %v1891_v11 = vmul.f32 %v2195_v3, %v1883_v7  ;;  %v1898_v12 = vadd.f32 %v2196_v10, %v1890_v6 }
0x1204   : > { %v1899_v13 = vadd.f32 %v2196_v10, %v1891_v11 }
0x1206   : > { %v1905_v15 = vpack.c.bf16 %v1899_v13, %v1898_v12 }
0x1208   : > { %2394 = vmatmul.mubr.msk.bf16.vlgmr.msra.gmra.mrb[24].mxu1 %vm521_vm0, %v1905_v15 }
0x12db   : > { %v1953_v29 = vpop.f32.mrb[24].mxu1 }
0x12dc   : > { %v1954_v30 = vadd.f32 %v2202_v28, %v1953_v29  ;;  %v2395_v31 = vpop.f32.mrb[25].mxu1 }
0x12dd   : > { %v1956_v32 = vpop.f32.mrb[26].mxu1 }
0x12de   : > { %v1960_v33 = vmul.f32 %v1954_v30, %v1954_v30  ;;  %v1957_v25 = vadd.f32 %v2202_v28, %v1956_v32  ;;  %v2396_v57 = vpop.f32.mrb[27].mxu1 }
0x12e0   : > { %v1962_v34 = vmul.f32 %v1960_v33, %v1954_v30  ;;  %v1961_v36 = vmul.f32 %v1957_v25, %v1957_v25 }
0x12e2   : > { %v1964_v37 = vmul.f32 0.044715, %v1962_v34  ;;  %v1963_v39 = vmul.f32 %v1961_v36, %v1957_v25 }
0x12e4   : > { %v1966_v40 = vadd.f32 %v1964_v37, %v1954_v30  ;;  %v1965_v42 = vmul.f32 0.044715, %v1963_v39 }
0x12e6   : > { %v1968_v14 = vmul.f32 0.7978846, %v1966_v40  ;;  %v1967_v44 = vadd.f32 %v1965_v42, %v1957_v25 }
0x12e8   : > { %2567 = vtanh.f32 %v1968_v14  ;;  %v1969_v45 = vmul.f32 0.7978846, %v1967_v44 }
0x12ea   : > { %2569 = vtanh.f32 %v1969_v45 }
0x12f2   : > { %v2568_v17 = vpop.eup %2567 }
0x12f3   : > { %v1972_v46 = vadd.f32 1.0, %v2568_v17 }
0x12f4   : > { %v2570_v35 = vpop.eup %2569 }
0x12f5   : > { %v1974_v47 = vmul.f32 0.5, %v1972_v46  ;;  %v1973_v48 = vadd.f32 1.0, %v2570_v35 }
0x12f7   : > { %v1975_v49 = vmul.f32 0.5, %v1973_v48  ;;  %v1976_v38 = vmul.f32 %v1974_v47, %v1954_v30 }
0x12f9   : > { %v1977_v50 = vmul.f32 %v1975_v49, %v1957_v25 }
0x12fb   : > { %v1987_v51 = vpack.c.bf16 %v1977_v50, %v1976_v38 }
0x12fd   : > { %2406 = vmatmul.mubr.msk.bf16.vlgmr.msra.gmra.mrb[16].mxu0 %vm1224_vm4, %v1987_v51 }
0x13d0   : > { %v2029_v52 = vpop.f32.mrb[16].mxu0 }
0x13d1   : > { %v2036_v54 = vadd.f32 %v2029_v52, %v2961_v41  ;;  %v2407_v55 = vpop.f32.mrb[17].mxu0 }
0x13d2   : > { %v2032_v56 = vpop.f32.mrb[18].mxu0 }
0x13d3   : > { %v2046_v58 = vadd.f32 %v2214_v53, %v2036_v54  ;;  %v2037_v59 = vadd.f32 %v2032_v56, %v2964_v43  ;;  %v2408_v60 = vpop.f32.mrb[19].mxu0 }
0x13d5   : > { %2048 = vst.msk [vmem:[%s507_s25] sm:$0xff] %vm521_vm0, %v2046_v58  ;;  %v2047_v61 = vadd.f32 %v2214_v53, %v2037_v59 }
0x13d7   : > { %2049 = vst.msk [vmem:[%s507_s25 + $0x8] sm:$0xff] %vm521_vm0, %v2047_v61 }
0x13d8 PF: > { %s24_s29 = sadd.s32 1, %s2577_s29  }
0x13d9   : > { %p21_p4 = scmp.ge.s32.totalorder %s24_s29, 4  }
0x13db   :  { %23 = sbr.rel (!%p21_p4) target bundleno = 1 (0x1), region = 123 }

// kernel: generator_forward.11
= control target key start
LH: loop header
LB: loop body
LE: loop exit
PB: predicated region body
PF: predicated region fallthrough
CT: control target
= control target key end

     0   :  { %s3693_s0 = inlined_call_operand.vmem [shape: f32[4,16,32], index: 0, kind: input, shape index: {}]   ;;  %s3694_s1 = inlined_call_operand.vmem [shape: f32[4,16,32], index: 1, kind: input, shape index: {}]   ;;  %s3695_s2 = inlined_call_operand.vmem [shape: f32[2,1,32], index: 2, kind: input, shape index: {}]   ;;  %s3696_s3 = inlined_call_operand.vmem [shape: f32[2,1,32], index: 3, kind: input, shape index: {}]   ;;  %s3697_s4 = inlined_call_operand.vmem [shape: f32[2,32,96], index: 4, kind: input, shape index: {}]   ;;  %s3698_s5 = inlined_call_operand.vmem [shape: f32[2,32,32], index: 5, kind: input, shape index: {}]   ;;  %s3699_s6 = inlined_call_operand.vmem [shape: f32[2,1,32], index: 6, kind: input, shape index: {}]   ;;  %s3700_s7 = inlined_call_operand.vmem [shape: f32[2,1,32], index: 7, kind: input, shape index: {}]   ;;  %s3701_s8 = inlined_call_operand.vmem [shape: f32[2,1,32], index: 8, kind: input, shape index: {}]   ;;  %s3702_s9 = inlined_call_operand.vmem [shape: f32[2,32,64], index: 9, kind: input, shape index: {}]   ;;  %s3703_s10 = inlined_call_operand.vmem [shape: f32[2,1,64], index: 10, kind: input, shape index: {}]   ;;  %s3704_s11 = inlined_call_operand.vmem [shape: f32[2,64,32], index: 11, kind: input, shape index: {}]   ;;  %s3705_s12 = inlined_call_operand.vmem [shape: f32[2,1,32], index: 12, kind: input, shape index: {}]   ;;  %s3706_s13 = inlined_call_operand.vmem [shape: f32[32,128], index: 13, kind: input, shape index: {}]   ;;  %s3707_s14 = inlined_call_operand.vmem [shape: f32[1,128], index: 14, kind: input, shape index: {}]   ;;  %s3708_s15 = inlined_call_operand.vmem [shape: f32[9,128], index: 15, kind: input, shape index: {}]   ;;  %s3709_s16 = inlined_call_operand.vmem [shape: f32[1,128], index: 16, kind: input, shape index: {}]   ;;  %s3710_s17 = inlined_call_operand.vmem [shape: f32[16,144], index: 17, kind: input, shape index: {}]   ;;  %s3711_s18 = inlined_call_operand.vmem [shape: f32[128,32], index: 18, kind: input, shape index: {}]   ;;  %s3712_s19 = inlined_call_operand.vmem [shape: f32[1,32], index: 19, kind: input, shape index: {}]   ;;  %s3713_s20 = inlined_call_operand.vmem [shape: f32[4,16,32], index: 20, kind: output, shape index: {}]  }
   0x1   :  { %3722 = sst [smem:[#allocation2_spill]] %s3693_s0 }
   0x2   :  { %3723 = sst [smem:[#allocation3_spill]] %s3694_s1  ;;  %s3179_s1 = smov 0  }
   0x3   :  { %3724 = sst [smem:[#allocation4_spill]] %s3695_s2 }
   0x4   :  { %3725 = sst [smem:[#allocation5_spill]] %s3696_s3 }
   0x5   :  { %3726 = sst [smem:[#allocation6_spill]] %s3697_s4 }
   0x6 LB: > { %s2555_s22 = sadd.s32 4294967295, %s3063_s1   ;;  %p2559_p0 = scmp.ge.s32.totalorder %s3063_s1, 1  ;;  %s3063_s1 = sphi %s3179_s1, %s30_s1  }
   0x7   : > { %p572_p1 = scmp.lt.s32.totalorder %s3063_s1, 5 }
   0x9   : > { %p573_p2 = pnand %p2559_p0, %p572_p1 }
   0xa   : > { %p635_p3 = scmp.lt.s32.totalorder (!%p573_p2), %s2555_s22, 3  ;;  %s3727_s25 = sld [smem:[#allocation2_spill]] (!%p573_p2)  ;;  %vm659_vm0 = vcmask (!%p573_p2), 261120   ;;  %v3065_v21 = vmov (!%p573_p2), 0.0   ;;  %vm3066_vm1 = vmmov (!%p573_p2), 0   ;;  %vm760_vm2 = vcmask (!%p573_p2), 130048  }
   0xb   : > { %576 = sbr.rel (%p573_p2) target bundleno = 5830 (0x16c6), region = 100  ;;  %s3728_s28 = sld [smem:[#allocation3_spill]] (!%p573_p2)  ;;  %2730 = vmatprep.subr.bf16.mxu0 (!%p573_p2), %v3065_v21  ;;  %2734 = vmatprep.mubr.msk.bf16.mxu0 (!%p573_p2), %vm3066_vm1, %v3065_v21  ;;  %vm3243_vm3 = vmpackc.low (!%p573_p2), %vm760_vm2, %vm760_vm2  ;;  %vm1362_vm4 = vcmask (!%p573_p2), 523264  }
   0xc   : > { %s3729_s0 = sld [smem:[#allocation6_spill]] (!%p573_p2)  ;;  %s3731_s30 = sld [smem:[#allocation5_spill]] (!%p573_p2) }
   0xd   : > { %s3067_s21 = smov (!%p573_p2), 80   ;;  %s3719_s24 = smov (!%p573_p2), 112  }
   0xe   : > { %s3717_s2 = smov (!%p573_p2), 48  }
  0x12   : > { %s3739_s22 = smov (!%p635_p3, %s2555_s22), 3  ;;  %v703_v18 = vld [vmem:[%s3729_s0] sm:$0xff]  ;;  %v704_v19 = vld [vmem:[%s3729_s0 + $0x8] sm:$0xff]  ;;  %v705_v22 = vld [vmem:[%s3729_s0 + $0x10] sm:$0xff] }
  0x13   : > { %s3187_s23 = sshll.u32 %s3739_s22, 4  ;;  %v708_v20 = vpack.c.bf16 %v704_v19, %v703_v18  ;;  %v706_v23 = vld [vmem:[%s3729_s0 + $0x18] sm:$0xff]  ;;  %v2567_v37 = vld [vmem:[%s3731_s30] ss:$0 sm:$0xff]  ;;  %s3068_s22 = smov 96  }
  0x14   : > { %s639_s3 = scalar_lea.vmem %s3727_s25, %s3187_s23  ;;  %s644_s4 = scalar_lea.vmem %s3728_s28, %s3187_s23  ;;  %v709_v24 = vpack.c.bf16 %v706_v23, %v705_v22 }
  0x15   : > { %v651_v0 = vld [vmem:[%s639_s3] sm:$0xff]  ;;  %v652_v2 = vld [vmem:[%s639_s3 + $0x8] sm:$0xff]  ;;  %2731 = vmatpush3.bf16.msra.mxu0 %v708_v20  ;;  %s3730_s28 = sld [smem:[#allocation4_spill]]  ;;  %s3718_s25 = smov 64  }
  0x16   : > { %v653_v1 = vld [vmem:[%s644_s4] sm:$0xff]  ;;  %v654_v4 = vld [vmem:[%s644_s4 + $0x8] sm:$0xff]  ;;  %2732 = vmatprep.subr.bf16.mxu0 %v3065_v21  ;;  %s3721_s3 = smov 16   ;;  %s3734_s4 = smov 112  }
  0x17   : > { %v3197_v3 = vadd.f32 %v653_v1, %v651_v0  ;;  %v3199_v5 = vadd.f32 %v654_v4, %v652_v2 }
  0x19   : > { %v660_v6 = vsel %vm659_vm0, %v3197_v3, 0.0  ;;  %v663_v7 = vsel %vm659_vm0, %v3199_v5, 0.0  ;;  %2733 = vmatpush3.bf16.msra.mxu0 %v709_v24 }
  0x1a   : > { %661 = vadd.xlane.f32.xlu0 %v660_v6 }
  0x1b   : > { %v2566_v33 = vld [vmem:[%s3730_s28] ss:$0 sm:$0xff] }
  0x1e   : > { %664 = vadd.xlane.f32.xlu0 %v663_v7 }
  0xa7   : > { %v662_v8 = vpop.xlane.xlu0 %661 }
  0xa8   : > { %v667_v9 = vmul.f32 0.03125, %v662_v8 }
  0xaa   : > { %v669_v10 = vsub.f32 %v3197_v3, %v667_v9 }
  0xab   : > { %v665_v11 = vpop.xlane.xlu0 %664 }
  0xac   : > { %v668_v12 = vmul.f32 0.03125, %v665_v11  ;;  %v671_v13 = vmul.f32 %v669_v10, %v669_v10 }
  0xae   : > { %v670_v14 = vsub.f32 %v3199_v5, %v668_v12  ;;  %v673_v15 = vsel %vm659_vm0, %v671_v13, 0.0 }
  0xaf   : > { %674 = vadd.xlane.f32.xlu1 %v673_v15 }
  0xb0   : > { %v672_v16 = vmul.f32 %v670_v14, %v670_v14 }
  0xb2   : > { %v676_v17 = vsel %vm659_vm0, %v672_v16, 0.0 }
  0xb3   : > { %677 = vadd.xlane.f32.xlu1 %v676_v17 }
 0x13c   : > { %v675_v25 = vpop.xlane.xlu1 %674 }
 0x13d   : > { %v679_v26 = vmul.f32 0.03125, %v675_v25 }
 0x13f   : > { %v681_v27 = vadd.f32 1e-05, %v679_v26 }
 0x140   : > { %v678_v28 = vpop.xlane.xlu1 %677 }
 0x141   : > { %2993 = vrsqrt.f32 %v681_v27  ;;  %v680_v29 = vmul.f32 0.03125, %v678_v28 }
 0x143   : > { %v682_v30 = vadd.f32 1e-05, %v680_v29 }
 0x145   : > { %2995 = vrsqrt.f32 %v682_v30 }
 0x14b   : > { %v2994_v31 = vpop.eup %2993 }
 0x14c   : > { %v685_v32 = vmul.f32 %v2994_v31, %v669_v10 }
 0x14e   : > { %v693_v36 = vmul.f32 %v2566_v33, %v685_v32 }
 0x14f   : > { %v2996_v34 = vpop.eup %2995 }
 0x150   : > { %v686_v35 = vmul.f32 %v2996_v34, %v670_v14  ;;  %v701_v39 = vadd.f32 %v2567_v37, %v693_v36 }
 0x152   : > { %v694_v38 = vmul.f32 %v2566_v33, %v686_v35 }
 0x154   : > { %v702_v40 = vadd.f32 %v2567_v37, %v694_v38 }
 0x156   : > { %v707_v41 = vpack.c.bf16 %v702_v40, %v701_v39 }
 0x158   : > { %2735 = vmatmul.mubr.msk.bf16.vlgmr.msra.gmra.mrb[0].mxu0 %vm659_vm0, %v707_v41 }
 0x22b   : > { %v747_v42 = vpop.f32.mrb[0].mxu0 }
 0x22c   : > { %v2736_v43 = vpop.f32.mrb[1].mxu0  ;;  %2742 = vmatprep.mubr.msk.f32.mxu1 %vm760_vm2, %v747_v42 }
 0x22d   : > { %v750_v44 = vpop.f32.mrb[2].mxu0 }
 0x22e   : > { %v2737_v45 = vpop.f32.mrb[3].mxu0  ;;  %v3233_v46 = vpack.i.bf16 %v750_v44, %v747_v42 }
 0x230   : > { %2949 = vrot.lane.b32.xlu1 %v3233_v46, %s3067_s21  ;;  %2944 = vrot.lane.b32.xlu0 %v3233_v46, %s3068_s22 }
 0x234   : > { %955 = vrot.lane.b32.xlu1 %v747_v42, %s3719_s24 }
 0x238   : > { %957 = vrot.lane.b32.xlu1 %v750_v44, %s3719_s24 }
 0x2a2   : > { %v2950_v47 = vpop.permute.xlu1 %2949  ;;  %v2945_v48 = vpop.permute.xlu0 %2944 }
 0x2a3   : > { %v2952_v49 = vunpack.i.h.bf16 %v2950_v47  ;;  %v2951_v50 = vunpack.i.l.bf16 %v2950_v47  ;;  %v2947_v51 = vunpack.i.h.bf16 %v2945_v48  ;;  %v2946_v52 = vunpack.i.l.bf16 %v2945_v48 }
 0x2a5   : > { %v2896_v54 = vpack.c.bf16 %v2952_v49, %v2951_v50  ;;  %v2886_v55 = vpack.c.bf16 %v2947_v51, %v2946_v52  ;;  %v1167_v49 = vld [vmem:[%s3698_s5] sm:$0xff]  ;;  %v1168_v50 = vld [vmem:[%s3698_s5 + $0x8] sm:$0xff]  ;;  %v1169_v52 = vld [vmem:[%s3698_s5 + $0x10] sm:$0xff] }
 0x2a6   : > { %v956_v56 = vpop.permute.xlu1 %955  ;;  %v1172_v51 = vpack.c.bf16 %v1168_v50, %v1167_v49  ;;  %v1350_v49 = vld [vmem:[%s3704_s11 + $0x8] sm:$0xff] }
 0x2a7   : > { %2888 = vmatprep.subr.msk.bf16.mxu1 %vm3243_vm3, %v2886_v55  ;;  %2898 = vmatprep.subr.msk.bf16.mxu0 %vm3243_vm3, %v2896_v54 }
 0x2a8   : > { %2756 = vmatprep.mubr.msk.f32.mxu0 %vm760_vm2, %v956_v56  ;;  %2891 = vmatpush3.bf16.xpose.msk.msra.mxu1 %vm3243_vm3, %v2886_v55 }
 0x2a9   : > { %2901 = vmatpush3.bf16.xpose.msk.msra.mxu0 %vm3243_vm3, %v2896_v54  ;;  %v1170_v54 = vld [vmem:[%s3698_s5 + $0x18] sm:$0xff] }
 0x2aa   : > { %2766 = vmatprep.subr.bf16.mxu0 %v3065_v21  ;;  %v958_v57 = vpop.permute.xlu1 %957  ;;  %v1173_v55 = vpack.c.bf16 %v1170_v54, %v1169_v52  ;;  %v1352_v52 = vld [vmem:[%s3704_s11 + $0x18] sm:$0xff] }
 0x2af   : > { %2743 = vmatmul.mubr.msk.f32.vlgmr.msra.gmra.mrb[0].mxu1 %vm760_vm2, %v750_v44 }
 0x2b0   : > { %2757 = vmatmul.mubr.msk.f32.vlgmr.msra.gmra.mrb[4].mxu0 %vm760_vm2, %v958_v57 }
 0x2b1   : > { %2770 = vmatprep.mubr.msk.bf16.mxu0 %vm3066_vm1, %v3065_v21  ;;  %2767 = vmatpush3.bf16.msra.mxu0 %v1172_v51  ;;  %v1351_v51 = vld [vmem:[%s3704_s11 + $0x10] sm:$0xff] }
 0x2b2   : > { %2768 = vmatprep.subr.bf16.mxu0 %v3065_v21  ;;  %v1359_v54 = vpack.c.bf16 %v1352_v52, %v1351_v51 }
 0x2b5   : > { %2769 = vmatpush3.bf16.msra.mxu0 %v1173_v55  ;;  %v1353_v55 = vld [vmem:[%s3704_s11 + $0x20] sm:$0xff] }
 0x2b6   : > { %2782 = vmatprep.subr.bf16.mxu0 %v3065_v21 }
 0x382   : > { %v2744_v58 = vpop.f32.mrb[0].mxu1 }
 0x383   : > { %v845_v59 = vmul.f32 0.25, %v2744_v58  ;;  %v2758_v60 = vpop.f32.mrb[4].mxu0  ;;  %v835_v61 = vpop.f32.mrb[1].mxu1 }
 0x384   : > { %v844_v62 = vmul.f32 0.25, %v835_v61  ;;  %v1037_v63 = vpop.f32.mrb[5].mxu0  ;;  %v1047_v4 = vmul.f32 0.25, %v2758_v60 }
 0x385   : > { %v849_v0 = vsel %vm760_vm2, %v845_v59, -inf  ;;  %v1046_v1 = vmul.f32 0.25, %v1037_v63 }
 0x386   : > { %850 = vmax.xlane.f32.xlu1 %v849_v0  ;;  %v846_v2 = vsel %vm760_vm2, %v844_v62, -inf  ;;  %v1051_v7 = vsel %vm760_vm2, %v1047_v4, -inf }
 0x387   : > { %847 = vmax.xlane.f32.xlu0 %v846_v2  ;;  %v1048_v6 = vsel %vm760_vm2, %v1046_v1, -inf }
 0x38b   : > { %1049 = vmax.xlane.f32.xlu0 %v1048_v6  ;;  %v2582_v6 = vld [vmem:[%s3699_s6] ss:$0 sm:$0xff] }
 0x38f   : > { %1052 = vmax.xlane.f32.xlu0 %v1051_v7 }
 0x413   : > { %v851_v8 = vpop.xlane.xlu1 %850 }
 0x414   : > { %v853_v9 = vsub.f32 %v845_v59, %v851_v8  ;;  %v848_v10 = vpop.xlane.xlu0 %847 }
 0x415   : > { %v852_v11 = vsub.f32 %v844_v62, %v848_v10 }
 0x416   : > { %v856_v12 = vmul.f32 1.442695, %v853_v9 }
 0x417   : > { %v854_v13 = vmul.f32 1.442695, %v852_v11 }
 0x418   : > { %2997 = vpow2.f32 %v856_v12  ;;  %v1050_v14 = vpop.xlane.xlu0 %1049 }
 0x419   : > { %2999 = vpow2.f32 %v854_v13  ;;  %v1054_v15 = vsub.f32 %v1046_v1, %v1050_v14 }
 0x41b   : > { %v1056_v16 = vmul.f32 1.442695, %v1054_v15 }
 0x41c   : > { %v1053_v17 = vpop.xlane.xlu0 %1052 }
 0x41d   : > { %3001 = vpow2.f32 %v1056_v16  ;;  %v1055_v18 = vsub.f32 %v1047_v4, %v1053_v17 }
 0x41f   : > { %v1058_v19 = vmul.f32 1.442695, %v1055_v18 }
 0x421   : > { %3003 = vpow2.f32 %v1058_v19 }
 0x422   : > { %v2998_v20 = vpop.eup %2997 }
 0x423   : > { %v3000_v22 = vpop.eup %2999  ;;  %v861_v23 = vsel %vm760_vm2, %v2998_v20, 0.0 }
 0x424   : > { %862 = vadd.xlane.f32.xlu1 %v861_v23  ;;  %v858_v24 = vsel %vm760_vm2, %v3000_v22, 0.0 }
 0x425   : > { %859 = vadd.xlane.f32.xlu0 %v858_v24 }
 0x427   : > { %v3002_v25 = vpop.eup %3001 }
 0x428   : > { %v1060_v26 = vsel %vm760_vm2, %v3002_v25, 0.0 }
 0x429   : > { %1061 = vadd.xlane.f32.xlu0 %v1060_v26  ;;  %v1274_v26 = vld [vmem:[%s3702_s9 + $0x8] sm:$0xff] }
 0x42b   : > { %v3004_v27 = vpop.eup %3003 }
 0x42c   : > { %v1063_v28 = vsel %vm760_vm2, %v3004_v27, 0.0 }
 0x42d   : > { %1064 = vadd.xlane.f32.xlu1 %v1063_v28  ;;  %v1275_v28 = vld [vmem:[%s3702_s9 + $0x10] sm:$0xff] }
 0x43e   : > { %2959 = vrot.lane.b32.xlu1 %v3233_v46, %s3717_s2 }
 0x43f   : > { %2954 = vrot.lane.b32.xlu0 %v3233_v46, %s3718_s25 }
 0x4b1   : > { %v863_v29 = vpop.xlane.xlu1 %862 }
 0x4b2   : > { %v860_v30 = vpop.xlane.xlu0 %859 }
 0x4b3   : > { %3005 = vrcp.f32 %v860_v30 }
 0x4b4   : > { %3007 = vrcp.f32 %v863_v29  ;;  %v1276_v29 = vld [vmem:[%s3702_s9 + $0x18] sm:$0xff] }
 0x4b5   : > { %v1279_v30 = vpack.c.bf16 %v1276_v29, %v1275_v28 }
 0x4b6   : > { %v1062_v31 = vpop.xlane.xlu0 %1061 }
 0x4b7   : > { %3009 = vrcp.f32 %v1062_v31 }
 0x4ba   : > { %v1065_v32 = vpop.xlane.xlu1 %1064  ;;  %v2955_v33 = vpop.permute.xlu0 %2954 }
 0x4bb   : > { %3011 = vrcp.f32 %v1065_v32  ;;  %v2957_v34 = vunpack.i.h.bf16 %v2955_v33  ;;  %v2956_v35 = vunpack.i.l.bf16 %v2955_v33 }
 0x4bd   : > { %v3006_v36 = vpop.eup %3005  ;;  %v2892_v37 = vpack.c.bf16 %v2957_v34, %v2956_v35 }
 0x4be   : > { %v3008_v38 = vpop.eup %3007  ;;  %v2960_v39 = vpop.permute.xlu1 %2959  ;;  %v866_v40 = vmul.f32 %v3006_v36, %v3000_v22 }
 0x4bf   : > { %v2962_v41 = vunpack.i.h.bf16 %v2960_v39  ;;  %v2961_v42 = vunpack.i.l.bf16 %v2960_v39  ;;  %2893 = vmatprep.subr.bf16.mxu1 %v2892_v37  ;;  %v867_v44 = vmul.f32 %v3008_v38, %v2998_v20  ;;  %v2583_v39 = vld [vmem:[%s3700_s7] ss:$0 sm:$0xff] }
 0x4c0   : > { %2895 = vmatpush3.bf16.msra.mxu1 %v2892_v37  ;;  %2749 = vmatprep.mubr.msk.f32.mxu1 %vm760_vm2, %v866_v40 }
 0x4c1   : > { %v3010_v43 = vpop.eup %3009  ;;  %v2902_v45 = vpack.c.bf16 %v2962_v41, %v2961_v42 }
 0x4c2   : > { %v1068_v46 = vmul.f32 %v3010_v43, %v3002_v25  ;;  %v1273_v25 = vld [vmem:[%s3702_s9] sm:$0xff] }
 0x4c3   : > { %2750 = vmatmul.mubr.msk.f32.vlgmr.msra.gmra.mrb[2].mxu1 %vm760_vm2, %v867_v44  ;;  %2903 = vmatprep.subr.bf16.mxu1 %v2902_v45  ;;  %v2584_v43 = vld [vmem:[%s3701_s8] ss:$0 sm:$0xff] }
 0x4c4   : > { %2905 = vmatpush3.bf16.msra.mxu1 %v2902_v45  ;;  %2763 = vmatprep.mubr.msk.f32.mxu1 %vm760_vm2, %v1068_v46 }
 0x4c5   : > { %v3012_v47 = vpop.eup %3011  ;;  %2774 = vmatprep.subr.bf16.mxu1 %v3065_v21 }
 0x4c6   : > { %v1069_v48 = vmul.f32 %v3012_v47, %v3004_v27  ;;  %v1278_v27 = vpack.c.bf16 %v1274_v26, %v1273_v25 }
 0x4c8   : > { %2764 = vmatmul.mubr.msk.f32.vlgmr.msra.gmra.mrb[4].mxu1 %vm760_vm2, %v1069_v48  ;;  %v1349_v48 = vld [vmem:[%s3704_s11] sm:$0xff] }
 0x4c9   : > { %2778 = vmatprep.mubr.msk.bf16.mxu1 %vm3066_vm1, %v3065_v21  ;;  %2775 = vmatpush3.bf16.msra.mxu1 %v1278_v27  ;;  %v1358_v50 = vpack.c.bf16 %v1350_v49, %v1349_v48  ;;  %v2588_v27 = vld [vmem:[%s3705_s12] ss:$0 sm:$0xff]  ;;  %v2595_v48 = vld [vmem:[%s3729_s0 + $0x30] sm:$0xff]  ;;  %v2596_v49 = vld [vmem:[%s3729_s0 + $0x38] sm:$0xff] }
 0x4ca   : > { %2776 = vmatprep.subr.bf16.mxu1 %v3065_v21 }
 0x4cd   : > { %2777 = vmatpush3.bf16.msra.mxu1 %v1279_v30 }
 0x4ce   : > { %2794 = vmatprep.subr.bf16.mxu1 %v3065_v21 }
 0x596   : > { %v2751_v56 = vpop.f32.mrb[2].mxu1 }
 0x597   : > { %v946_v57 = vpop.f32.mrb[3].mxu1 }
 0x59b   : > { %v2765_v58 = vpop.f32.mrb[4].mxu1 }
 0x59c   : > { %v1148_v59 = vpop.f32.mrb[5].mxu1 }
 0x59d   : > { %v2963_v60 = vpack.i.bf16 %v2765_v58, %v1148_v59  ;;  %v1355_v58 = vld [vmem:[%s3704_s11 + $0x30] sm:$0xff]  ;;  %v1356_v59 = vld [vmem:[%s3704_s11 + $0x38] sm:$0xff] }
 0x59f   : > { %2964 = vrot.lane.b32.xlu1 %v2963_v60, %s3721_s3  ;;  %v1361_v60 = vpack.c.bf16 %v1356_v59, %v1355_v58  ;;  %v2591_v59 = vld [vmem:[%s3730_s28 + $0x1] ss:$0 sm:$0xff] }
 0x611   : > { %v2965_v61 = vpop.permute.xlu1 %2964 }
 0x612   : > { %v2967_v62 = vunpack.i.h.bf16 %v2965_v61  ;;  %v2966_v63 = vunpack.i.l.bf16 %v2965_v61  ;;  %v2585_v61 = vld [vmem:[%s3703_s10] ss:$0 sm:$0xff] }
 0x614   : > { %v1166_v0 = vsel %vm760_vm2, %v2751_v56, %v2967_v62  ;;  %v1165_v1 = vsel %vm760_vm2, %v946_v57, %v2966_v63  ;;  %v1354_v56 = vld [vmem:[%s3704_s11 + $0x28] sm:$0xff] }
 0x615   : > { %v1171_v2 = vpack.c.bf16 %v1166_v0, %v1165_v1  ;;  %v1360_v57 = vpack.c.bf16 %v1354_v56, %v1353_v55 }
 0x617   : > { %2771 = vmatmul.mubr.msk.bf16.vlgmr.msra.gmra.mrb[8].mxu0 %vm659_vm0, %v1171_v2 }
 0x618   : > { %2790 = vmatprep.mubr.msk.bf16.mxu0 %vm3066_vm1, %v3065_v21  ;;  %2783 = vmatpush3.bf16.msra.mxu0 %v1358_v50  ;;  %v1471_v50 = vpack.c.bf16 %v2596_v49, %v2595_v48 }
 0x619   : > { %2784 = vmatprep.subr.bf16.mxu0 %v3065_v21 }
 0x61c   : > { %2785 = vmatpush3.bf16.msra.mxu0 %v1359_v54 }
 0x61d   : > { %2786 = vmatprep.subr.bf16.mxu0 %v3065_v21 }
 0x620   : > { %2787 = vmatpush3.bf16.msra.mxu0 %v1360_v57 }
 0x621   : > { %2788 = vmatprep.subr.bf16.mxu0 %v3065_v21 }
 0x624   : > { %2789 = vmatpush3.bf16.msra.mxu0 %v1361_v60 }
 0x6ea   : > { %v1211_v4 = vpop.f32.mrb[8].mxu0 }
 0x6eb   : > { %v1218_v7 = vadd.f32 %v1211_v4, %v3197_v3  ;;  %v2772_v8 = vpop.f32.mrb[9].mxu0 }
 0x6ec   : > { %v1214_v9 = vpop.f32.mrb[10].mxu0 }
 0x6ed   : > { %v3304_v10 = vadd.f32 %v2582_v6, %v1218_v7  ;;  %v1219_v11 = vadd.f32 %v1214_v9, %v3199_v5  ;;  %v2773_v12 = vpop.f32.mrb[11].mxu0 }
 0x6ef   : > { %v3307_v13 = vadd.f32 %v2582_v6, %v1219_v11  ;;  %v1231_v14 = vsel %vm659_vm0, %v3304_v10, 0.0 }
 0x6f0   : > { %1232 = vadd.xlane.f32.xlu1 %v1231_v14 }
 0x6f1   : > { %v1234_v15 = vsel %vm659_vm0, %v3307_v13, 0.0 }
 0x6f2   : > { %1235 = vadd.xlane.f32.xlu0 %v1234_v15 }
 0x77d   : > { %v1233_v16 = vpop.xlane.xlu1 %1232 }
 0x77e   : > { %v1237_v17 = vmul.f32 0.03125, %v1233_v16 }
 0x77f   : > { %v1236_v3 = vpop.xlane.xlu0 %1235 }
 0x780   : > { %v1239_v18 = vsub.f32 %v3304_v10, %v1237_v17  ;;  %v1238_v19 = vmul.f32 0.03125, %v1236_v3 }
 0x782   : > { %v1240_v20 = vsub.f32 %v3307_v13, %v1238_v19  ;;  %v1241_v5 = vmul.f32 %v1239_v18, %v1239_v18 }
 0x784   : > { %v1243_v22 = vsel %vm659_vm0, %v1241_v5, 0.0  ;;  %v1242_v23 = vmul.f32 %v1240_v20, %v1240_v20 }
 0x785   : > { %1244 = vadd.xlane.f32.xlu0 %v1243_v22 }
 0x786   : > { %v1246_v24 = vsel %vm659_vm0, %v1242_v23, 0.0 }
 0x789   : > { %1247 = vadd.xlane.f32.xlu0 %v1246_v24 }
 0x812   : > { %v1245_v31 = vpop.xlane.xlu0 %1244 }
 0x813   : > { %v1249_v32 = vmul.f32 0.03125, %v1245_v31 }
 0x815   : > { %v1251_v33 = vadd.f32 1e-05, %v1249_v32 }
 0x816   : > { %v1248_v34 = vpop.xlane.xlu0 %1247 }
 0x817   : > { %3013 = vrsqrt.f32 %v1251_v33  ;;  %v1250_v35 = vmul.f32 0.03125, %v1248_v34 }
 0x819   : > { %v1252_v36 = vadd.f32 1e-05, %v1250_v35 }
 0x81b   : > { %3015 = vrsqrt.f32 %v1252_v36 }
 0x821   : > { %v3014_v37 = vpop.eup %3013 }
 0x822   : > { %v1255_v38 = vmul.f32 %v3014_v37, %v1239_v18 }
 0x824   : > { %v1263_v41 = vmul.f32 %v2583_v39, %v1255_v38 }
 0x825   : > { %v3016_v40 = vpop.eup %3015 }
 0x826   : > { %v1256_v42 = vmul.f32 %v3016_v40, %v1240_v20  ;;  %v1271_v45 = vadd.f32 %v2584_v43, %v1263_v41 }
 0x828   : > { %v1264_v44 = vmul.f32 %v2583_v39, %v1256_v42 }
 0x82a   : > { %v1272_v46 = vadd.f32 %v2584_v43, %v1264_v44 }
 0x82c   : > { %v1277_v47 = vpack.c.bf16 %v1272_v46, %v1271_v45  ;;  %v2593_v45 = vld [vmem:[%s3729_s0 + $0x20] sm:$0xff]  ;;  %v2594_v46 = vld [vmem:[%s3729_s0 + $0x28] sm:$0xff] }
 0x82e   : > { %2779 = vmatmul.mubr.msk.bf16.vlgmr.msra.gmra.mrb[8].mxu1 %vm659_vm0, %v1277_v47  ;;  %v1470_v47 = vpack.c.bf16 %v2594_v46, %v2593_v45 }
 0x82f   : > { %2798 = vmatprep.mubr.msk.bf16.mxu1 %vm3066_vm1, %v3065_v21 }
 0x830   : > { %2795 = vmatpush3.bf16.msra.mxu1 %v1470_v47 }
 0x831   : > { %2796 = vmatprep.subr.bf16.mxu1 %v3065_v21 }
 0x834   : > { %2797 = vmatpush3.bf16.msra.mxu1 %v1471_v50 }
 0x901   : > { %v1324_v62 = vpop.f32.mrb[8].mxu1 }
 0x902   : > { %v1325_v63 = vadd.f32 %v2585_v61, %v1324_v62  ;;  %v2780_v0 = vpop.f32.mrb[9].mxu1 }
 0x903   : > { %v1327_v1 = vpop.f32.mrb[10].mxu1  ;;  %v2592_v0 = vld [vmem:[%s3731_s30 + $0x1] ss:$0 sm:$0xff] }
 0x904   : > { %v1331_v2 = vmul.f32 %v1325_v63, %v1325_v63  ;;  %v1328_v4 = vadd.f32 %v2585_v61, %v1327_v1  ;;  %v2781_v6 = vpop.f32.mrb[11].mxu1 }
 0x906   : > { %v1333_v7 = vmul.f32 %v1331_v2, %v1325_v63  ;;  %v1332_v8 = vmul.f32 %v1328_v4, %v1328_v4 }
 0x908   : > { %v1335_v9 = vmul.f32 0.044715, %v1333_v7  ;;  %v1334_v11 = vmul.f32 %v1332_v8, %v1328_v4 }
 0x90a   : > { %v1337_v12 = vadd.f32 %v1335_v9, %v1325_v63  ;;  %v1336_v14 = vmul.f32 0.044715, %v1334_v11 }
 0x90c   : > { %v1339_v15 = vmul.f32 0.7978846, %v1337_v12  ;;  %v1338_v16 = vadd.f32 %v1336_v14, %v1328_v4 }
 0x90e   : > { %3017 = vtanh.f32 %v1339_v15  ;;  %v1340_v17 = vmul.f32 0.7978846, %v1338_v16 }
 0x910   : > { %3019 = vtanh.f32 %v1340_v17 }
 0x918   : > { %v3018_v3 = vpop.eup %3017 }
 0x919   : > { %v1343_v18 = vadd.f32 1.0, %v3018_v3 }
 0x91a   : > { %v3020_v19 = vpop.eup %3019 }
 0x91b   : > { %v1345_v20 = vmul.f32 0.5, %v1343_v18  ;;  %v1344_v5 = vadd.f32 1.0, %v3020_v19 }
 0x91d   : > { %v1346_v22 = vmul.f32 0.5, %v1344_v5  ;;  %v1347_v23 = vmul.f32 %v1345_v20, %v1325_v63 }
 0x91f   : > { %v1348_v24 = vmul.f32 %v1346_v22, %v1328_v4 }
 0x921   : > { %v1357_v25 = vpack.c.bf16 %v1348_v24, %v1347_v23 }
 0x923   : > { %2791 = vmatmul.mubr.msk.bf16.vlgmr.msra.gmra.mrb[12].mxu0 %vm1362_vm4, %v1357_v25 }
 0x9f6   : > { %v1400_v26 = vpop.f32.mrb[12].mxu0 }
 0x9f7   : > { %v1407_v28 = vadd.f32 %v1400_v26, %v3304_v10  ;;  %v2792_v29 = vpop.f32.mrb[13].mxu0 }
 0x9f8   : > { %v1403_v30 = vpop.f32.mrb[14].mxu0 }
 0x9f9   : > { %v3375_v31 = vadd.f32 %v2588_v27, %v1407_v28  ;;  %v1408_v32 = vadd.f32 %v1403_v30, %v3307_v13  ;;  %v2793_v33 = vpop.f32.mrb[15].mxu0 }
 0x9fb   : > { %v3378_v34 = vadd.f32 %v2588_v27, %v1408_v32  ;;  %v1422_v35 = vsel %vm659_vm0, %v3375_v31, 0.0 }
 0x9fc   : > { %1423 = vadd.xlane.f32.xlu1 %v1422_v35 }
 0x9fd   : > { %v1425_v36 = vsel %vm659_vm0, %v3378_v34, 0.0 }
 0x9fe   : > { %1426 = vadd.xlane.f32.xlu0 %v1425_v36 }
 0xa89   : > { %v1424_v37 = vpop.xlane.xlu1 %1423 }
 0xa8a   : > { %v1428_v38 = vmul.f32 0.03125, %v1424_v37 }
 0xa8b   : > { %v1427_v10 = vpop.xlane.xlu0 %1426 }
 0xa8c   : > { %v1430_v39 = vsub.f32 %v3375_v31, %v1428_v38  ;;  %v1429_v40 = vmul.f32 0.03125, %v1427_v10 }
 0xa8e   : > { %v1431_v41 = vsub.f32 %v3378_v34, %v1429_v40  ;;  %v1432_v13 = vmul.f32 %v1430_v39, %v1430_v39 }
 0xa90   : > { %v1434_v42 = vsel %vm659_vm0, %v1432_v13, 0.0  ;;  %v1433_v43 = vmul.f32 %v1431_v41, %v1431_v41 }
 0xa91   : > { %1435 = vadd.xlane.f32.xlu1 %v1434_v42 }
 0xa92   : > { %v1437_v44 = vsel %vm659_vm0, %v1433_v43, 0.0 }
 0xa93   : > { %1438 = vadd.xlane.f32.xlu0 %v1437_v44 }
 0xb1e   : > { %v1436_v51 = vpop.xlane.xlu1 %1435 }
 0xb1f   : > { %v1440_v52 = vmul.f32 0.03125, %v1436_v51 }
 0xb20   : > { %v1439_v54 = vpop.xlane.xlu0 %1438 }
 0xb21   : > { %v1442_v55 = vadd.f32 1e-05, %v1440_v52  ;;  %v1441_v56 = vmul.f32 0.03125, %v1439_v54 }
 0xb23   : > { %3021 = vrsqrt.f32 %v1442_v55  ;;  %v1443_v57 = vadd.f32 1e-05, %v1441_v56 }
 0xb25   : > { %3023 = vrsqrt.f32 %v1443_v57 }
 0xb2d   : > { %v3022_v58 = vpop.eup %3021 }
 0xb2e   : > { %v1446_v60 = vmul.f32 %v3022_v58, %v1430_v39 }
 0xb2f   : > { %v3024_v61 = vpop.eup %3023 }
 0xb30   : > { %v1454_v62 = vmul.f32 %v2591_v59, %v1446_v60  ;;  %v1447_v63 = vmul.f32 %v3024_v61, %v1431_v41 }
 0xb32   : > { %v1455_v1 = vmul.f32 %v2591_v59, %v1447_v63  ;;  %v1462_v2 = vadd.f32 %v2592_v0, %v1454_v62 }
 0xb34   : > { %v1463_v4 = vadd.f32 %v2592_v0, %v1455_v1 }
 0xb36   : > { %v1469_v6 = vpack.c.bf16 %v1463_v4, %v1462_v2 }
 0xb38   : > { %2799 = vmatmul.mubr.msk.bf16.vlgmr.msra.gmra.mrb[12].mxu1 %vm659_vm0, %v1469_v6 }
 0xc0b   : > { %v1509_v7 = vpop.f32.mrb[12].mxu1 }
 0xc0c   : > { %v2800_v8 = vpop.f32.mrb[13].mxu1  ;;  %2806 = vmatprep.mubr.msk.f32.mxu1 %vm760_vm2, %v1509_v7 }
 0xc0d   : > { %v1512_v9 = vpop.f32.mrb[14].mxu1 }
 0xc0e   : > { %v2801_v11 = vpop.f32.mrb[15].mxu1  ;;  %v3409_v12 = vpack.i.bf16 %v1512_v9, %v1509_v7 }
 0xc10   : > { %2974 = vrot.lane.b32.xlu0 %v3409_v12, %s3067_s21  ;;  %2969 = vrot.lane.b32.xlu1 %v3409_v12, %s3068_s22  ;;  %s3735_s21 = smov 64   ;;  %s3736_s22 = smov 48  }
 0xc14   : > { %1716 = vrot.lane.b32.xlu1 %v1509_v7, %s3734_s4 }
 0xc18   : > { %1718 = vrot.lane.b32.xlu1 %v1512_v9, %s3734_s4  ;;  %s649_s4 = scalar_lea.vmem %s3713_s20, %s3187_s23 }
 0xc82   : > { %v2975_v14 = vpop.permute.xlu0 %2974  ;;  %v2970_v15 = vpop.permute.xlu1 %2969 }
 0xc83   : > { %v2977_v16 = vunpack.i.h.bf16 %v2975_v14  ;;  %v2976_v17 = vunpack.i.l.bf16 %v2975_v14  ;;  %v2972_v3 = vunpack.i.h.bf16 %v2970_v15  ;;  %v2971_v18 = vunpack.i.l.bf16 %v2970_v15  ;;  %v2610_v15 = vld [vmem:[%s3698_s5 + $0x20] sm:$0xff] }
 0xc85   : > { %v2916_v19 = vpack.c.bf16 %v2977_v16, %v2976_v17  ;;  %v2906_v20 = vpack.c.bf16 %v2972_v3, %v2971_v18  ;;  %v2611_v16 = vld [vmem:[%s3698_s5 + $0x28] sm:$0xff]  ;;  %v2612_v3 = vld [vmem:[%s3698_s5 + $0x30] sm:$0xff]  ;;  %v2613_v18 = vld [vmem:[%s3698_s5 + $0x38] sm:$0xff] }
 0xc86   : > { %v1717_v5 = vpop.permute.xlu1 %1716  ;;  %v1934_v17 = vpack.c.bf16 %v2611_v16, %v2610_v15  ;;  %v2630_v16 = vld [vmem:[%s3704_s11 + $0x50] sm:$0xff] }
 0xc87   : > { %2908 = vmatprep.subr.msk.bf16.mxu1 %vm3243_vm3, %v2906_v20  ;;  %2918 = vmatprep.subr.msk.bf16.mxu0 %vm3243_vm3, %v2916_v19 }
 0xc88   : > { %2820 = vmatprep.mubr.msk.f32.mxu0 %vm760_vm2, %v1717_v5  ;;  %2911 = vmatpush3.bf16.xpose.msk.msra.mxu1 %vm3243_vm3, %v2906_v20 }
 0xc89   : > { %2921 = vmatpush3.bf16.xpose.msk.msra.mxu0 %vm3243_vm3, %v2916_v19  ;;  %v1935_v19 = vpack.c.bf16 %v2613_v18, %v2612_v3  ;;  %v2632_v18 = vld [vmem:[%s3704_s11 + $0x60] sm:$0xff] }
 0xc8a   : > { %2830 = vmatprep.subr.bf16.mxu0 %v3065_v21  ;;  %v1719_v22 = vpop.permute.xlu1 %1718 }
 0xc8f   : > { %2807 = vmatmul.mubr.msk.f32.vlgmr.msra.gmra.mrb[6].mxu1 %vm760_vm2, %v1512_v9 }
 0xc90   : > { %2821 = vmatmul.mubr.msk.f32.vlgmr.msra.gmra.mrb[6].mxu0 %vm760_vm2, %v1719_v22 }
 0xc91   : > { %2834 = vmatprep.mubr.msk.bf16.mxu0 %vm3066_vm1, %v3065_v21  ;;  %2831 = vmatpush3.bf16.msra.mxu0 %v1934_v17  ;;  %v2631_v17 = vld [vmem:[%s3704_s11 + $0x58] sm:$0xff] }
 0xc92   : > { %2832 = vmatprep.subr.bf16.mxu0 %v3065_v21  ;;  %v2127_v3 = vpack.c.bf16 %v2631_v17, %v2630_v16 }
 0xc95   : > { %2833 = vmatpush3.bf16.msra.mxu0 %v1935_v19  ;;  %v2633_v19 = vld [vmem:[%s3704_s11 + $0x68] sm:$0xff] }
 0xc96   : > { %2846 = vmatprep.subr.bf16.mxu0 %v3065_v21 }
 0xd62   : > { %v2808_v23 = vpop.f32.mrb[6].mxu1 }
 0xd63   : > { %v1606_v24 = vmul.f32 0.25, %v2808_v23  ;;  %v2822_v25 = vpop.f32.mrb[6].mxu0  ;;  %v1596_v26 = vpop.f32.mrb[7].mxu1 }
 0xd64   : > { %v1605_v27 = vmul.f32 0.25, %v1596_v26  ;;  %v1798_v28 = vpop.f32.mrb[7].mxu0  ;;  %v1808_v32 = vmul.f32 0.25, %v2822_v25 }
 0xd65   : > { %v1807_v29 = vmul.f32 0.25, %v1798_v28  ;;  %v1610_v53 = vsel %vm760_vm2, %v1606_v24, -inf }
 0xd66   : > { %1611 = vmax.xlane.f32.xlu0 %v1610_v53  ;;  %v1607_v30 = vsel %vm760_vm2, %v1605_v27, -inf  ;;  %v1812_v35 = vsel %vm760_vm2, %v1808_v32, -inf }
 0xd67   : > { %1608 = vmax.xlane.f32.xlu1 %v1607_v30  ;;  %v1809_v33 = vsel %vm760_vm2, %v1807_v29, -inf }
 0xd6a   : > { %1810 = vmax.xlane.f32.xlu0 %v1809_v33 }
 0xd6e   : > { %1813 = vmax.xlane.f32.xlu0 %v1812_v35 }
 0xdf3   : > { %v1612_v36 = vpop.xlane.xlu0 %1611 }
 0xdf4   : > { %v1614_v37 = vsub.f32 %v1606_v24, %v1612_v36  ;;  %v1609_v38 = vpop.xlane.xlu1 %1608 }
 0xdf5   : > { %v1613_v10 = vsub.f32 %v1605_v27, %v1609_v38 }
 0xdf6   : > { %v1617_v39 = vmul.f32 1.442695, %v1614_v37 }
 0xdf7   : > { %v1615_v40 = vmul.f32 1.442695, %v1613_v10  ;;  %v1811_v41 = vpop.xlane.xlu0 %1810 }
 0xdf8   : > { %3025 = vpow2.f32 %v1617_v39  ;;  %v1815_v13 = vsub.f32 %v1807_v29, %v1811_v41 }
 0xdf9   : > { %3027 = vpow2.f32 %v1615_v40 }
 0xdfa   : > { %v1817_v42 = vmul.f32 1.442695, %v1815_v13 }
 0xdfb   : > { %v1814_v43 = vpop.xlane.xlu0 %1813 }
 0xdfc   : > { %3029 = vpow2.f32 %v1817_v42  ;;  %v1816_v44 = vsub.f32 %v1808_v32, %v1814_v43  ;;  %v2616_v32 = vld [vmem:[%s3699_s6 + $0x1] ss:$0 sm:$0xff] }
 0xdfe   : > { %v1819_v45 = vmul.f32 1.442695, %v1816_v44 }
 0xe00   : > { %3031 = vpow2.f32 %v1819_v45 }
 0xe02   : > { %v3026_v46 = vpop.eup %3025 }
 0xe03   : > { %v3028_v47 = vpop.eup %3027  ;;  %v1622_v48 = vsel %vm760_vm2, %v3026_v46, 0.0 }
 0xe04   : > { %1623 = vadd.xlane.f32.xlu0 %v1622_v48  ;;  %v1619_v49 = vsel %vm760_vm2, %v3028_v47, 0.0 }
 0xe05   : > { %1620 = vadd.xlane.f32.xlu1 %v1619_v49  ;;  %v2621_v49 = vld [vmem:[%s3702_s9 + $0x20] sm:$0xff] }
 0xe06   : > { %v3030_v50 = vpop.eup %3029 }
 0xe07   : > { %v1821_v51 = vsel %vm760_vm2, %v3030_v50, 0.0 }
 0xe09   : > { %1822 = vadd.xlane.f32.xlu1 %v1821_v51 }
 0xe0a   : > { %v3032_v52 = vpop.eup %3031 }
 0xe0b   : > { %v1824_v54 = vsel %vm760_vm2, %v3032_v52, 0.0 }
 0xe0c   : > { %1825 = vadd.xlane.f32.xlu0 %v1824_v54  ;;  %v2624_v54 = vld [vmem:[%s3702_s9 + $0x38] sm:$0xff] }
 0xe1a   : > { %2979 = vrot.lane.b32.xlu1 %v3409_v12, %s3735_s21  ;;  %s3737_s21 = smov 16  }
 0xe22   : > { %2984 = vrot.lane.b32.xlu0 %v3409_v12, %s3736_s22 }
 0xe91   : > { %v1624_v55 = vpop.xlane.xlu0 %1623 }
 0xe92   : > { %v1621_v56 = vpop.xlane.xlu1 %1620 }
 0xe93   : > { %3033 = vrcp.f32 %v1621_v56 }
 0xe94   : > { %3035 = vrcp.f32 %v1624_v55 }
 0xe96   : > { %v1823_v57 = vpop.xlane.xlu1 %1822 }
 0xe97   : > { %3037 = vrcp.f32 %v1823_v57 }
 0xe99   : > { %v1826_v58 = vpop.xlane.xlu0 %1825 }
 0xe9a   : > { %3039 = vrcp.f32 %v1826_v58  ;;  %v2980_v59 = vpop.permute.xlu1 %2979 }
 0xe9b   : > { %v2982_v60 = vunpack.i.h.bf16 %v2980_v59  ;;  %v2981_v61 = vunpack.i.l.bf16 %v2980_v59 }
 0xe9d   : > { %v3034_v62 = vpop.eup %3033  ;;  %v2912_v63 = vpack.c.bf16 %v2982_v60, %v2981_v61  ;;  %v2985_v0 = vpop.permute.xlu0 %2984 }
 0xe9e   : > { %v3036_v1 = vpop.eup %3035  ;;  %v2987_v2 = vunpack.i.h.bf16 %v2985_v0  ;;  %v2986_v4 = vunpack.i.l.bf16 %v2985_v0  ;;  %v1627_v6 = vmul.f32 %v3034_v62, %v3028_v47 }
 0xe9f   : > { %2913 = vmatprep.subr.bf16.mxu1 %v2912_v63  ;;  %v1628_v9 = vmul.f32 %v3036_v1, %v3026_v46 }
 0xea0   : > { %v2922_v7 = vpack.c.bf16 %v2987_v2, %v2986_v4  ;;  %2915 = vmatpush3.bf16.msra.mxu1 %v2912_v63  ;;  %2813 = vmatprep.mubr.msk.f32.mxu1 %vm760_vm2, %v1627_v6  ;;  %v2619_v63 = vld [vmem:[%s3700_s7 + $0x1] ss:$0 sm:$0xff] }
 0xea1   : > { %v3038_v8 = vpop.eup %3037  ;;  %v2620_v6 = vld [vmem:[%s3701_s8 + $0x1] ss:$0 sm:$0xff] }
 0xea2   : > { %2923 = vmatprep.subr.bf16.mxu1 %v2922_v7  ;;  %v1829_v11 = vmul.f32 %v3038_v8, %v3030_v50  ;;  %v2622_v50 = vld [vmem:[%s3702_s9 + $0x28] sm:$0xff] }
 0xea3   : > { %2814 = vmatmul.mubr.msk.f32.vlgmr.msra.gmra.mrb[16].mxu1 %vm760_vm2, %v1628_v9  ;;  %v2044_v51 = vpack.c.bf16 %v2622_v50, %v2621_v49  ;;  %v2186_v49 = vld [vmem:[%s3706_s13] sm:$0xff]  ;;  %v2187_v50 = vld [vmem:[%s3706_s13 + $0x8] sm:$0xff] }
 0xea4   : > { %v3040_v12 = vpop.eup %3039  ;;  %2925 = vmatpush3.bf16.msra.mxu1 %v2922_v7  ;;  %2827 = vmatprep.mubr.msk.f32.mxu1 %vm760_vm2, %v1829_v11 }
 0xea5   : > { %v1830_v14 = vmul.f32 %v3040_v12, %v3032_v52  ;;  %2838 = vmatprep.subr.bf16.mxu1 %v3065_v21  ;;  %v2623_v52 = vld [vmem:[%s3702_s9 + $0x30] sm:$0xff]  ;;  %v2628_v12 = vld [vmem:[%s3704_s11 + $0x40] sm:$0xff] }
 0xea6   : > { %v2045_v55 = vpack.c.bf16 %v2624_v54, %v2623_v52  ;;  %v2188_v52 = vld [vmem:[%s3706_s13 + $0x10] sm:$0xff]  ;;  %v2189_v54 = vld [vmem:[%s3706_s13 + $0x18] sm:$0xff] }
 0xea7   : > { %2828 = vmatmul.mubr.msk.f32.vlgmr.msra.gmra.mrb[18].mxu1 %vm760_vm2, %v1830_v14  ;;  %v2629_v14 = vld [vmem:[%s3704_s11 + $0x48] sm:$0xff] }
 0xea8   : > { %2842 = vmatprep.mubr.msk.bf16.mxu1 %vm3066_vm1, %v3065_v21  ;;  %2839 = vmatpush3.bf16.msra.mxu1 %v2044_v51  ;;  %v2126_v15 = vpack.c.bf16 %v2629_v14, %v2628_v12  ;;  %v2191_v51 = vpack.c.bf16 %v2187_v50, %v2186_v49 }
 0xea9   : > { %2840 = vmatprep.subr.bf16.mxu1 %v3065_v21 }
 0xeac   : > { %2841 = vmatpush3.bf16.msra.mxu1 %v2045_v55  ;;  %v2192_v55 = vpack.c.bf16 %v2189_v54, %v2188_v52 }
 0xead   : > { %2858 = vmatprep.subr.bf16.mxu1 %v3065_v21 }
 0xf76   : > { %v2815_v20 = vpop.f32.mrb[16].mxu1 }
 0xf77   : > { %v1707_v5 = vpop.f32.mrb[17].mxu1 }
 0xf7a   : > { %v2829_v22 = vpop.f32.mrb[18].mxu1 }
 0xf7b   : > { %v1909_v23 = vpop.f32.mrb[19].mxu1 }
 0xf7c   : > { %v2988_v24 = vpack.i.bf16 %v2829_v22, %v1909_v23  ;;  %v2635_v22 = vld [vmem:[%s3704_s11 + $0x78] sm:$0xff] }
 0xf7e   : > { %2989 = vrot.lane.b32.xlu1 %v2988_v24, %s3737_s21  ;;  %v2626_v24 = vld [vmem:[%s3703_s10 + $0x1] ss:$0 sm:$0xff] }
 0xff0   : > { %v2990_v25 = vpop.permute.xlu1 %2989 }
 0xff1   : > { %v2992_v26 = vunpack.i.h.bf16 %v2990_v25  ;;  %v2991_v27 = vunpack.i.l.bf16 %v2990_v25 }
 0xff3   : > { %v1927_v28 = vsel %vm760_vm2, %v2815_v20, %v2992_v26  ;;  %v1926_v29 = vsel %vm760_vm2, %v1707_v5, %v2991_v27  ;;  %v2128_v20 = vpack.c.bf16 %v2633_v19, %v2632_v18  ;;  %v2634_v5 = vld [vmem:[%s3704_s11 + $0x70] sm:$0xff] }
 0xff4   : > { %v1933_v53 = vpack.c.bf16 %v1927_v28, %v1926_v29  ;;  %v2129_v23 = vpack.c.bf16 %v2635_v22, %v2634_v5 }
 0xff6   : > { %2835 = vmatmul.mubr.msk.bf16.vlgmr.msra.gmra.mrb[16].mxu0 %vm659_vm0, %v1933_v53 }
 0xff7   : > { %2854 = vmatprep.mubr.msk.bf16.mxu0 %vm3066_vm1, %v3065_v21  ;;  %2847 = vmatpush3.bf16.msra.mxu0 %v2126_v15 }
 0xff8   : > { %2848 = vmatprep.subr.bf16.mxu0 %v3065_v21 }
 0xffb   : > { %2849 = vmatpush3.bf16.msra.mxu0 %v2127_v3 }
 0xffc   : > { %2850 = vmatprep.subr.bf16.mxu0 %v3065_v21 }
 0xfff   : > { %2851 = vmatpush3.bf16.msra.mxu0 %v2128_v20 }
0x1000   : > { %2852 = vmatprep.subr.bf16.mxu0 %v3065_v21 }
0x1003   : > { %2853 = vmatpush3.bf16.msra.mxu0 %v2129_v23 }
0x1004   : > { %2866 = vmatprep.subr.bf16.mxu0 %v3065_v21 }
0x10c9   : > { %v1973_v30 = vpop.f32.mrb[16].mxu0 }
0x10ca   : > { %v1980_v33 = vadd.f32 %v1973_v30, %v3375_v31  ;;  %v2836_v35 = vpop.f32.mrb[17].mxu0 }
0x10cb   : > { %v1976_v36 = vpop.f32.mrb[18].mxu0 }
0x10cc   : > { %v3474_v37 = vadd.f32 %v2616_v32, %v1980_v33  ;;  %v1981_v38 = vadd.f32 %v1976_v36, %v3378_v34  ;;  %v2837_v10 = vpop.f32.mrb[19].mxu0 }
0x10ce   : > { %v3477_v39 = vadd.f32 %v2616_v32, %v1981_v38  ;;  %v1996_v40 = vsel %vm659_vm0, %v3474_v37, 0.0 }
0x10cf   : > { %1997 = vadd.xlane.f32.xlu1 %v1996_v40 }
0x10d0   : > { %v1999_v41 = vsel %vm659_vm0, %v3477_v39, 0.0 }
0x10d1   : > { %2000 = vadd.xlane.f32.xlu0 %v1999_v41 }
0x115c   : > { %v1998_v13 = vpop.xlane.xlu1 %1997 }
0x115d   : > { %v2002_v42 = vmul.f32 0.03125, %v1998_v13 }
0x115e   : > { %v2001_v31 = vpop.xlane.xlu0 %2000 }
0x115f   : > { %v2004_v43 = vsub.f32 %v3474_v37, %v2002_v42  ;;  %v2003_v44 = vmul.f32 0.03125, %v2001_v31 }
0x1161   : > { %v2005_v45 = vsub.f32 %v3477_v39, %v2003_v44  ;;  %v2006_v34 = vmul.f32 %v2004_v43, %v2004_v43 }
0x1163   : > { %v2008_v46 = vsel %vm659_vm0, %v2006_v34, 0.0  ;;  %v2007_v47 = vmul.f32 %v2005_v45, %v2005_v45 }
0x1164   : > { %2009 = vadd.xlane.f32.xlu0 %v2008_v46 }
0x1165   : > { %v2011_v48 = vsel %vm659_vm0, %v2007_v47, 0.0 }
0x1166   : > { %2012 = vadd.xlane.f32.xlu1 %v2011_v48 }
0x11f1   : > { %v2010_v56 = vpop.xlane.xlu0 %2009 }
0x11f2   : > { %v2014_v57 = vmul.f32 0.03125, %v2010_v56 }
0x11f3   : > { %v2013_v58 = vpop.xlane.xlu1 %2012 }
0x11f4   : > { %v2016_v59 = vadd.f32 1e-05, %v2014_v57  ;;  %v2015_v60 = vmul.f32 0.03125, %v2013_v58 }
0x11f6   : > { %3041 = vrsqrt.f32 %v2016_v59  ;;  %v2017_v61 = vadd.f32 1e-05, %v2015_v60  ;;  %v2638_v59 = vld [vmem:[%s3705_s12 + $0x1] ss:$0 sm:$0xff] }
0x11f8   : > { %3043 = vrsqrt.f32 %v2017_v61 }
0x1200   : > { %v3042_v62 = vpop.eup %3041 }
0x1201   : > { %v2020_v0 = vmul.f32 %v3042_v62, %v2004_v43 }
0x1202   : > { %v3044_v1 = vpop.eup %3043 }
0x1203   : > { %v2028_v2 = vmul.f32 %v2619_v63, %v2020_v0  ;;  %v2021_v4 = vmul.f32 %v3044_v1, %v2005_v45 }
0x1205   : > { %v2029_v7 = vmul.f32 %v2619_v63, %v2021_v4  ;;  %v2036_v8 = vadd.f32 %v2620_v6, %v2028_v2  ;;  %v3073_v2 = vmov 0  }
0x1207   : > { %v2037_v9 = vadd.f32 %v2620_v6, %v2029_v7  ;;  %v2639_v6 = vld [vmem:[%s3707_s14] ss:$0 sm:$0xff] }
0x1209   : > { %v2043_v11 = vpack.c.bf16 %v2037_v9, %v2036_v8 }
0x120b   : > { %2843 = vmatmul.mubr.msk.bf16.vlgmr.msra.gmra.mrb[20].mxu1 %vm659_vm0, %v2043_v11 }
0x120c   : > { %2862 = vmatprep.mubr.msk.bf16.mxu1 %vm3066_vm1, %v3065_v21  ;;  %2859 = vmatpush3.bf16.msra.mxu1 %v2191_v51 }
0x120d   : > { %2860 = vmatprep.subr.bf16.mxu1 %v3065_v21 }
0x1210   : > { %2861 = vmatpush3.bf16.msra.mxu1 %v2192_v55  ;;  %v2649_v55 = vld [vmem:[%s3708_s15 + $0x8] ss:$0 sm:$0xff] }
0x1211   : > { %2350 = vmatprep.subr.bf16.mxu1 %v3073_v2 }
0x12de   : > { %v2091_v25 = vpop.f32.mrb[20].mxu1 }
0x12df   : > { %v2092_v26 = vadd.f32 %v2626_v24, %v2091_v25  ;;  %v2844_v27 = vpop.f32.mrb[21].mxu1 }
0x12e0   : > { %v2094_v28 = vpop.f32.mrb[22].mxu1 }
0x12e1   : > { %v2098_v29 = vmul.f32 %v2092_v26, %v2092_v26  ;;  %v2095_v53 = vadd.f32 %v2626_v24, %v2094_v28  ;;  %v2845_v30 = vpop.f32.mrb[23].mxu1 }
0x12e2   : > { %v2643_v30 = vld [vmem:[%s3708_s15 + $0x2] ss:$0 sm:$0xff] }
0x12e3   : > { %v2100_v32 = vmul.f32 %v2098_v29, %v2092_v26  ;;  %v2099_v33 = vmul.f32 %v2095_v53, %v2095_v53  ;;  %v2641_v29 = vld [vmem:[%s3708_s15] ss:$0 sm:$0xff] }
0x12e5   : > { %v2102_v35 = vmul.f32 0.044715, %v2100_v32  ;;  %v2101_v36 = vmul.f32 %v2099_v33, %v2095_v53  ;;  %v2644_v32 = vld [vmem:[%s3708_s15 + $0x3] ss:$0 sm:$0xff]  ;;  %v2645_v33 = vld [vmem:[%s3708_s15 + $0x4] ss:$0 sm:$0xff] }
0x12e7   : > { %v2104_v38 = vadd.f32 %v2102_v35, %v2092_v26  ;;  %v2103_v10 = vmul.f32 0.044715, %v2101_v36 }
0x12e9   : > { %v2106_v40 = vmul.f32 0.7978846, %v2104_v38  ;;  %v2105_v41 = vadd.f32 %v2103_v10, %v2095_v53  ;;  %v2646_v38 = vld [vmem:[%s3708_s15 + $0x5] ss:$0 sm:$0xff]  ;;  %v2647_v10 = vld [vmem:[%s3708_s15 + $0x6] ss:$0 sm:$0xff] }
0x12eb   : > { %3045 = vtanh.f32 %v2106_v40  ;;  %v2107_v13 = vmul.f32 0.7978846, %v2105_v41 }
0x12ed   : > { %3047 = vtanh.f32 %v2107_v13 }
0x12f5   : > { %v3046_v42 = vpop.eup %3045 }
0x12f6   : > { %v2110_v31 = vadd.f32 1.0, %v3046_v42 }
0x12f7   : > { %v3048_v43 = vpop.eup %3047 }
0x12f8   : > { %v2112_v44 = vmul.f32 0.5, %v2110_v31  ;;  %v2111_v45 = vadd.f32 1.0, %v3048_v43  ;;  %v2648_v31 = vld [vmem:[%s3708_s15 + $0x7] ss:$0 sm:$0xff] }
0x12fa   : > { %v2113_v34 = vmul.f32 0.5, %v2111_v45  ;;  %v2114_v46 = vmul.f32 %v2112_v44, %v2092_v26 }
0x12fc   : > { %v2115_v47 = vmul.f32 %v2113_v34, %v2095_v53  ;;  %v2642_v53 = vld [vmem:[%s3708_s15 + $0x1] ss:$0 sm:$0xff] }
0x12fe   : > { %v2125_v48 = vpack.c.bf16 %v2115_v47, %v2114_v46 }
0x1300   : > { %2855 = vmatmul.mubr.msk.bf16.vlgmr.msra.gmra.mrb[20].mxu0 %vm1362_vm4, %v2125_v48 }
0x1301   : > { %2882 = vmatprep.mubr.msk.bf16.mxu0 %vm3066_vm1, %v3065_v21 }
0x13d3   : > { %v2167_v56 = vpop.f32.mrb[20].mxu0 }
0x13d4   : > { %v2174_v57 = vadd.f32 %v2167_v56, %v3474_v37  ;;  %v2856_v58 = vpop.f32.mrb[21].mxu0  ;;  %v2326_v37 = vld [vmem:[%s3710_s17 + $0x8] sm:$0xff] }
0x13d5   : > { %v2170_v60 = vpop.f32.mrb[22].mxu0 }
0x13d6   : > { %v2175_v61 = vadd.f32 %v2170_v60, %v3477_v39  ;;  %v2857_v62 = vpop.f32.mrb[23].mxu0  ;;  %v3562_v63 = vadd.f32 %v2638_v59, %v2174_v57  ;;  %v2328_v39 = vld [vmem:[%s3710_s17 + $0x18] sm:$0xff] }
0x13d7   : > { %v2330_v4 = vpack.c.bf16 %v2328_v39, %v2326_v37 }
0x13d8   : > { %v3564_v0 = vadd.f32 %v2638_v59, %v2175_v61 }
0x13da   : > { %v2190_v1 = vpack.c.bf16 %v3564_v0, %v3562_v63 }
0x13dc   : > { %2863 = vmatmul.mubr.msk.bf16.vlgmr.msra.gmra.mrb[24].mxu1 %vm659_vm0, %v2190_v1 }
0x13dd   : > { %2651 = vmatprep.mubr.msk.bf16.mxu1 %vm760_vm2, %v2330_v4 }
0x14af   : > { %v2237_v7 = vpop.f32.mrb[24].mxu1 }
0x14b0   : > { %v2238_v8 = vadd.f32 %v2639_v6, %v2237_v7  ;;  %v2864_v9 = vpop.f32.mrb[25].mxu1  ;;  %v2325_v7 = vld [vmem:[%s3710_s17] sm:$0xff] }
0x14b1   : > { %v2240_v11 = vpop.f32.mrb[26].mxu1 }
0x14b2   : > { %v2244_v12 = vmul.f32 %v2238_v8, %v2238_v8  ;;  %v2241_v14 = vadd.f32 %v2639_v6, %v2240_v11  ;;  %v2865_v15 = vpop.f32.mrb[27].mxu1  ;;  %v2409_v11 = vld [vmem:[%s3711_s18] sm:$0xff] }
0x14b3   : > { %v2411_v15 = vld [vmem:[%s3711_s18 + $0x10] sm:$0xff] }
0x14b4   : > { %v2246_v16 = vmul.f32 %v2244_v12, %v2238_v8  ;;  %v2245_v17 = vmul.f32 %v2241_v14, %v2241_v14  ;;  %v2410_v12 = vld [vmem:[%s3711_s18 + $0x8] sm:$0xff] }
0x14b6   : > { %v2248_v3 = vmul.f32 0.044715, %v2246_v16  ;;  %v2247_v18 = vmul.f32 %v2245_v17, %v2241_v14  ;;  %v2413_v17 = vld [vmem:[%s3711_s18 + $0x20] sm:$0xff] }
0x14b8   : > { %v2250_v19 = vadd.f32 %v2248_v3, %v2238_v8  ;;  %v2249_v20 = vmul.f32 0.044715, %v2247_v18  ;;  %v2414_v3 = vld [vmem:[%s3711_s18 + $0x28] sm:$0xff] }
0x14b9   : > { %v2428_v18 = vpack.c.bf16 %v2414_v3, %v2413_v17 }
0x14ba   : > { %v2252_v5 = vmul.f32 0.7978846, %v2250_v19  ;;  %v2251_v22 = vadd.f32 %v2249_v20, %v2241_v14  ;;  %v2415_v19 = vld [vmem:[%s3711_s18 + $0x30] sm:$0xff]  ;;  %v2416_v20 = vld [vmem:[%s3711_s18 + $0x38] sm:$0xff] }
0x14bc   : > { %3049 = vtanh.f32 %v2252_v5  ;;  %v2253_v23 = vmul.f32 0.7978846, %v2251_v22  ;;  %v2429_v5 = vpack.c.bf16 %v2416_v20, %v2415_v19  ;;  %v2417_v22 = vld [vmem:[%s3711_s18 + $0x40] sm:$0xff] }
0x14be   : > { %3051 = vtanh.f32 %v2253_v23  ;;  %v2418_v23 = vld [vmem:[%s3711_s18 + $0x48] sm:$0xff] }
0x14c6   : > { %v3050_v24 = vpop.eup %3049 }
0x14c7   : > { %v2256_v25 = vadd.f32 1.0, %v3050_v24  ;;  %v2430_v24 = vpack.c.bf16 %v2418_v23, %v2417_v22 }
0x14c8   : > { %v3052_v26 = vpop.eup %3051 }
0x14c9   : > { %v2258_v27 = vmul.f32 0.5, %v2256_v25  ;;  %v2257_v28 = vadd.f32 1.0, %v3052_v26  ;;  %v2419_v25 = vld [vmem:[%s3711_s18 + $0x50] sm:$0xff]  ;;  %v2420_v26 = vld [vmem:[%s3711_s18 + $0x58] sm:$0xff] }
0x14cb   : > { %v2260_v35 = vmul.f32 %v2258_v27, %v2238_v8  ;;  %v2259_v36 = vmul.f32 0.5, %v2257_v28  ;;  %v2327_v8 = vld [vmem:[%s3710_s17 + $0x10] sm:$0xff]  ;;  %v2431_v27 = vpack.c.bf16 %v2420_v26, %v2419_v25  ;;  %v2421_v28 = vld [vmem:[%s3711_s18 + $0x60] sm:$0xff] }
0x14cc   : > { %v2329_v9 = vpack.c.bf16 %v2327_v8, %v2325_v7 }
0x14cd   : > { %v2261_v40 = vmul.f32 %v2259_v36, %v2241_v14  ;;  %v2267_v41 = vmul.f32 %v2641_v29, %v2260_v35  ;;  %v2274_v13 = vmul.f32 %v2642_v53, %v2260_v35  ;;  %v2281_v42 = vmul.f32 %v2643_v30, %v2260_v35 }
0x14ce   : > { %v2288_v43 = vmul.f32 %v2644_v32, %v2260_v35  ;;  %v2295_v44 = vmul.f32 %v2645_v33, %v2260_v35  ;;  %v2302_v45 = vmul.f32 %v2646_v38, %v2260_v35  ;;  %v2309_v34 = vmul.f32 %v2647_v10, %v2260_v35 }
0x14cf   : > { %v2268_v46 = vmul.f32 %v2641_v29, %v2261_v40  ;;  %v2275_v47 = vmul.f32 %v2642_v53, %v2261_v40  ;;  %v2282_v48 = vmul.f32 %v2643_v30, %v2261_v40  ;;  %v2289_v49 = vmul.f32 %v2644_v32, %v2261_v40  ;;  %v2422_v29 = vld [vmem:[%s3711_s18 + $0x68] sm:$0xff]  ;;  %v2423_v53 = vld [vmem:[%s3711_s18 + $0x70] sm:$0xff]  ;;  %v2424_v32 = vld [vmem:[%s3711_s18 + $0x78] sm:$0xff] }
0x14d0   : > { %v2296_v50 = vmul.f32 %v2645_v33, %v2261_v40  ;;  %v2303_v51 = vmul.f32 %v2646_v38, %v2261_v40  ;;  %v2310_v52 = vmul.f32 %v2647_v10, %v2261_v40  ;;  %v2316_v54 = vmul.f32 %v2648_v31, %v2260_v35 }
0x14d1   : > { %v2331_v56 = vpack.c.bf16 %v2268_v46, %v2267_v41  ;;  %v2332_v57 = vpack.c.bf16 %v2275_v47, %v2274_v13  ;;  %v2333_v58 = vpack.c.bf16 %v2282_v48, %v2281_v42  ;;  %v2334_v59 = vpack.c.bf16 %v2289_v49, %v2288_v43 }
0x14d2   : > { %v2335_v60 = vpack.c.bf16 %v2296_v50, %v2295_v44  ;;  %v2336_v61 = vpack.c.bf16 %v2303_v51, %v2302_v45  ;;  %v2337_v62 = vpack.c.bf16 %v2310_v52, %v2309_v34  ;;  %v2317_v1 = vmul.f32 %v2648_v31, %v2261_v40 }
0x14d3   : > { %2351 = vmatpush1.bf16.msra.mxu1 %v2331_v56  ;;  %v2323_v37 = vmul.f32 %v2649_v55, %v2260_v35  ;;  %v2324_v39 = vmul.f32 %v2649_v55, %v2261_v40  ;;  %v2426_v14 = vpack.c.bf16 %v2410_v12, %v2409_v11  ;;  %v2432_v30 = vpack.c.bf16 %v2422_v29, %v2421_v28  ;;  %v2650_v35 = vld [vmem:[%s3709_s16] ss:$0 sm:$0xff] }
0x14d4   : > { %2352 = vmatprep.subr.bf16.mxu1 %v3073_v2  ;;  %v2338_v4 = vpack.c.bf16 %v2317_v1, %v2316_v54  ;;  %v2433_v33 = vpack.c.bf16 %v2424_v32, %v2423_v53 }
0x14d5   : > { %v2339_v6 = vpack.c.bf16 %v2324_v39, %v2323_v37  ;;  %2867 = vmatpush3.bf16.msra.mxu0 %v2426_v14 }
0x14d6   : > { %2868 = vmatprep.subr.bf16.mxu0 %v3065_v21 }
0x14d7   : > { %2353 = vmatpush1.bf16.msra.mxu1 %v2332_v57 }
0x14d8   : > { %2354 = vmatprep.subr.bf16.mxu1 %v3073_v2 }
0x14db   : > { %2355 = vmatpush1.bf16.msra.mxu1 %v2333_v58 }
0x14dc   : > { %2356 = vmatprep.subr.bf16.mxu1 %v3073_v2 }
0x14df   : > { %2357 = vmatpush1.bf16.msra.mxu1 %v2334_v59 }
0x14e0   : > { %2358 = vmatprep.subr.bf16.mxu1 %v3073_v2 }
0x14e3   : > { %2359 = vmatpush1.bf16.msra.mxu1 %v2335_v60  ;;  %v2652_v60 = vld [vmem:[%s3712_s19] ss:$0 sm:$0xff] }
0x14e4   : > { %2360 = vmatprep.subr.bf16.mxu1 %v3073_v2 }
0x14e7   : > { %2361 = vmatpush1.bf16.msra.mxu1 %v2336_v61 }
0x14e8   : > { %2362 = vmatprep.subr.bf16.mxu1 %v3073_v2 }
0x14eb   : > { %2363 = vmatpush1.bf16.msra.mxu1 %v2337_v62 }
0x14ec   : > { %2364 = vmatprep.subr.bf16.mxu1 %v3073_v2 }
0x14ef   : > { %2365 = vmatpush1.bf16.msra.mxu1 %v2338_v4 }
0x14f0   : > { %2366 = vmatprep.subr.bf16.mxu1 %v3073_v2  ;;  %v2412_v2 = vld [vmem:[%s3711_s18 + $0x18] sm:$0xff] }
0x14f1   : > { %v2427_v16 = vpack.c.bf16 %v2412_v2, %v2411_v15 }
0x14f3   : > { %2367 = vmatpush1.bf16.msra.mxu1 %v2339_v6  ;;  %2869 = vmatpush3.bf16.msra.mxu0 %v2427_v16 }
0x14f4   : > { %2870 = vmatprep.subr.bf16.mxu0 %v3065_v21 }
0x14f6   : > { %2383 = vmatmul.mubr.bf16.vlgmr.msra.gmra.mrb[28].mxu1 %v2329_v9 }
0x14f7   : > { %2871 = vmatpush3.bf16.msra.mxu0 %v2428_v18 }
0x14f8   : > { %2872 = vmatprep.subr.bf16.mxu0 %v3065_v21 }
0x14fb   : > { %2873 = vmatpush3.bf16.msra.mxu0 %v2429_v5 }
0x14fc   : > { %2874 = vmatprep.subr.bf16.mxu0 %v3065_v21 }
0x14ff   : > { %2875 = vmatpush3.bf16.msra.mxu0 %v2430_v24 }
0x1500   : > { %2876 = vmatprep.subr.bf16.mxu0 %v3065_v21 }
0x1503   : > { %2877 = vmatpush3.bf16.msra.mxu0 %v2431_v27 }
0x1504   : > { %2878 = vmatprep.subr.bf16.mxu0 %v3065_v21 }
0x1507   : > { %2879 = vmatpush3.bf16.msra.mxu0 %v2432_v30 }
0x1508   : > { %2880 = vmatprep.subr.bf16.mxu0 %v3065_v21 }
0x150b   : > { %2881 = vmatpush3.bf16.msra.mxu0 %v2433_v33 }
0x15c9   : > { %v2384_v36 = vpop.f32.mrb[28].mxu1 }
0x15ca   : > { %v2385_v38 = vadd.f32 %v2650_v35, %v2384_v36  ;;  %v2386_v10 = vpop.f32.mrb[29].mxu1 }
0x15cb   : > { %v2387_v40 = vpop.f32.mrb[30].mxu1 }
0x15cc   : > { %v2391_v41 = vmul.f32 %v2385_v38, %v2385_v38  ;;  %v2388_v13 = vadd.f32 %v2650_v35, %v2387_v40  ;;  %v2389_v42 = vpop.f32.mrb[31].mxu1 }
0x15ce   : > { %v2393_v31 = vmul.f32 %v2391_v41, %v2385_v38  ;;  %v2392_v43 = vmul.f32 %v2388_v13, %v2388_v13 }
0x15d0   : > { %v2395_v44 = vmul.f32 0.044715, %v2393_v31  ;;  %v2394_v45 = vmul.f32 %v2392_v43, %v2388_v13 }
0x15d2   : > { %v2397_v34 = vadd.f32 %v2395_v44, %v2385_v38  ;;  %v2396_v46 = vmul.f32 0.044715, %v2394_v45 }
0x15d4   : > { %v2399_v47 = vmul.f32 0.7978846, %v2397_v34  ;;  %v2398_v21 = vadd.f32 %v2396_v46, %v2388_v13 }
0x15d6   : > { %3053 = vtanh.f32 %v2399_v47  ;;  %v2400_v48 = vmul.f32 0.7978846, %v2398_v21 }
0x15d8   : > { %3055 = vtanh.f32 %v2400_v48 }
0x15e0   : > { %v3054_v49 = vpop.eup %3053 }
0x15e1   : > { %v2403_v50 = vadd.f32 1.0, %v3054_v49 }
0x15e2   : > { %v3056_v51 = vpop.eup %3055 }
0x15e3   : > { %v2405_v52 = vmul.f32 0.5, %v2403_v50  ;;  %v2404_v54 = vadd.f32 1.0, %v3056_v51 }
0x15e5   : > { %v2406_v55 = vmul.f32 0.5, %v2404_v54  ;;  %v2407_v56 = vmul.f32 %v2405_v52, %v2385_v38 }
0x15e7   : > { %v2408_v57 = vmul.f32 %v2406_v55, %v2388_v13 }
0x15e9   : > { %v2425_v58 = vpack.c.bf16 %v2408_v57, %v2407_v56 }
0x15eb   : > { %2883 = vmatmul.mubr.bf16.vlgmr.msra.gmra.mrb[24].mxu0 %v2425_v58 }
0x16be   : > { %v2468_v59 = vpop.f32.mrb[24].mxu0 }
0x16bf   : > { %v2475_v61 = vadd.f32 %v2468_v59, %v3562_v63  ;;  %v2884_v62 = vpop.f32.mrb[25].mxu0 }
0x16c0   : > { %v2471_v1 = vpop.f32.mrb[26].mxu0 }
0x16c1   : > { %v2484_v37 = vadd.f32 %v2652_v60, %v2475_v61  ;;  %v2476_v39 = vadd.f32 %v2471_v1, %v3564_v0  ;;  %v2885_v4 = vpop.f32.mrb[27].mxu0 }
0x16c3   : > { %2486 = vst.msk [vmem:[%s649_s4] sm:$0xff] %vm659_vm0, %v2484_v37  ;;  %v2485_v6 = vadd.f32 %v2652_v60, %v2476_v39 }
0x16c5   : > { %2487 = vst.msk [vmem:[%s649_s4 + $0x8] sm:$0xff] %vm659_vm0, %v2485_v6 }
0x16c6 PF: > { %s30_s1 = sadd.s32 1, %s3063_s1  }
0x16c7   : > { %p27_p4 = scmp.ge.s32.totalorder %s30_s1, 6  }
0x16c9   :  { %29 = sbr.rel (!%p27_p4) target bundleno = 6 (0x6), region = 144 }

</bundles_post_ra>
